<compile_context>
chip_gen: v7x
topology: tpu7x:2x2x1
jax: 0.10.0
libtpu: 0.0.40
codegen_flags: <defaults>
</compile_context>

<pallas_src>
import functools

import jax
import jax.numpy as jnp
from jax import lax
from jax.experimental import pallas as pl
from jax.experimental.pallas import tpu as pltpu

EPS = 1e-5


# ----------------------------------------------------------------------------
# Pallas kernels
# ----------------------------------------------------------------------------
def _convt_bn_relu_kernel(a_ref, b_ref, g_ref, bt_ref, o_ref, s_ref, q_ref,
                          *, eps):
    """One output-phase step of a stride-2 ConvTranspose lowered to matmul.

    a_ref: (1, M, K) bf16 phase patches      b_ref: (1, K, C) bf16 phase weights
    g_ref/bt_ref: (1, C) f32 gamma/beta      o_ref: (P, M, C) f32 (VMEM-resident)
    s_ref/q_ref: (1, C) f32 scratch accumulators (sum / sum of squares)
    """
    p = pl.program_id(0)

    @pl.when(p == 0)
    def _():
        s_ref[...] = jnp.zeros_like(s_ref)
        q_ref[...] = jnp.zeros_like(q_ref)

    y = jnp.dot(a_ref[0], b_ref[0], preferred_element_type=jnp.float32)
    o_ref[p] = y                                  # stash phase in resident out
    s_ref[...] += jnp.sum(y, axis=0, keepdims=True)
    q_ref[...] += jnp.sum(y * y, axis=0, keepdims=True)

    @pl.when(p == pl.num_programs(0) - 1)
    def _():
        n_phase, m, _ = o_ref.shape
        inv_m = 1.0 / (n_phase * m)               # stats over N*H_out*W_out
        mean = s_ref[...] * inv_m
        var = jnp.maximum(q_ref[...] * inv_m - mean * mean, 0.0)
        scale = g_ref[...] * lax.rsqrt(var + eps)
        shift = bt_ref[...] - mean * scale
        for ph in range(n_phase):                 # apply BN + ReLU in VMEM
            o_ref[ph] = jnp.maximum(o_ref[ph] * scale + shift, 0.0)


def convt_bn_relu(patches, wphases, gamma, beta, eps=EPS):
    """[4, M, K] bf16 @ [4, K, C] bf16 -> BN(train) + ReLU -> [4, M, C] f32."""
    P, M, K = patches.shape
    _, _, Co = wphases.shape
    g2 = gamma.reshape(1, Co).astype(jnp.float32)
    b2 = beta.reshape(1, Co).astype(jnp.float32)
    return pl.pallas_call(
        functools.partial(_convt_bn_relu_kernel, eps=eps),
        out_shape=jax.ShapeDtypeStruct((P, M, Co), jnp.float32),
        grid_spec=pltpu.PrefetchScalarGridSpec(
            num_scalar_prefetch=0,
            grid=(P,),
            in_specs=[
                pl.BlockSpec((1, M, K), lambda p: (p, 0, 0)),
                pl.BlockSpec((1, K, Co), lambda p: (p, 0, 0)),
                pl.BlockSpec((1, Co), lambda p: (0, 0)),
                pl.BlockSpec((1, Co), lambda p: (0, 0)),
            ],
            out_specs=pl.BlockSpec((P, M, Co), lambda p: (0, 0, 0)),
            scratch_shapes=[pltpu.VMEM((1, Co), jnp.float32),
                            pltpu.VMEM((1, Co), jnp.float32)],
        ),
        compiler_params=pltpu.CompilerParams(
            dimension_semantics=("arbitrary",)),   # stats accumulate over phases
    )(patches, wphases, g2, b2)


def _convt_tanh_kernel(a_ref, b_ref, o_ref):
    y = jnp.dot(a_ref[0], b_ref[0], preferred_element_type=jnp.float32)
    o_ref[0] = jnp.tanh(y)                         # tanh fused into the epilogue


def convt_tanh(patches, wphases):
    """Final layer: [4, M, K] bf16 @ [4, K, C_pad] bf16 -> tanh -> [4, M, C_pad]."""
    P, M, K = patches.shape
    _, _, Co = wphases.shape
    return pl.pallas_call(
        _convt_tanh_kernel,
        out_shape=jax.ShapeDtypeStruct((P, M, Co), jnp.float32),
        grid_spec=pltpu.PrefetchScalarGridSpec(
            num_scalar_prefetch=0,
            grid=(P,),
            in_specs=[
                pl.BlockSpec((1, M, K), lambda p: (p, 0, 0)),
                pl.BlockSpec((1, K, Co), lambda p: (p, 0, 0)),
            ],
            out_specs=pl.BlockSpec((1, M, Co), lambda p: (p, 0, 0)),
        ),
        compiler_params=pltpu.CompilerParams(
            dimension_semantics=("parallel",)),
    )(patches, wphases)


def _bn_relu_resident_kernel(x_ref, g_ref, bt_ref, o_ref, *, eps):
    """Whole [M, C] block VMEM-resident: stats + BN apply + ReLU in one pass."""
    x = x_ref[...]
    m = x.shape[0]
    mean = jnp.sum(x, axis=0, keepdims=True) * (1.0 / m)
    var = jnp.maximum(
        jnp.sum(x * x, axis=0, keepdims=True) * (1.0 / m) - mean * mean, 0.0)
    scale = g_ref[...] * lax.rsqrt(var + eps)
    shift = bt_ref[...] - mean * scale
    o_ref[...] = jnp.maximum(x * scale + shift, 0.0)


def bn_relu_resident(x2d, gamma, beta, eps=EPS):
    M, C = x2d.shape
    g2 = gamma.reshape(1, C).astype(jnp.float32)
    b2 = beta.reshape(1, C).astype(jnp.float32)
    return pl.pallas_call(
        functools.partial(_bn_relu_resident_kernel, eps=eps),
        out_shape=jax.ShapeDtypeStruct((M, C), jnp.float32),
        grid_spec=pltpu.PrefetchScalarGridSpec(
            num_scalar_prefetch=0,
            grid=(1,),
            in_specs=[
                pl.BlockSpec((M, C), lambda i: (0, 0)),
                pl.BlockSpec((1, C), lambda i: (0, 0)),
                pl.BlockSpec((1, C), lambda i: (0, 0)),
            ],
            out_specs=pl.BlockSpec((M, C), lambda i: (0, 0)),
        ),
        compiler_params=pltpu.CompilerParams(
            dimension_semantics=("arbitrary",)),
    )(x2d.astype(jnp.float32), g2, b2)


# ----------------------------------------------------------------------------
# Sub-pixel ConvTranspose(k=4, s=2, p=1) lowering glue (NHWC, no NCHW hops)
# ----------------------------------------------------------------------------
def build_phase_patches(x_nhwc):
    """x: [N, H, W, C] -> [4, N*H*W, 4*C].  Phase p = 2*rh + rw; columns are
    ordered ((dh, dw) tap major, channel minor)."""
    N, H, W, C = x_nhwc.shape
    xp = jnp.pad(x_nhwc, ((0, 0), (1, 1), (1, 1), (0, 0)))
    phases = []
    for rh in range(2):
        for rw in range(2):
            taps = [xp[:, rh + dh: rh + dh + H, rw + dw: rw + dw + W, :]
                    for dh in range(2) for dw in range(2)]
            phases.append(
                jnp.concatenate(taps, axis=-1).reshape(N * H * W, 4 * C))
    return jnp.stack(phases, axis=0)


def subpixel_weights(w):
    """PyTorch ConvTranspose2d weight [C_in, C_out, 4, 4] (k=4,s=2,p=1) ->
    per-output-phase forward-conv matrices [4, 4*C_in, C_out].
    Tap (dh, dw) of phase (rh, rw) maps to kernel index (3-rh-2*dh, 3-rw-2*dw)."""
    phases = []
    for rh in range(2):
        for rw in range(2):
            rows = [w[:, :, 3 - rh - 2 * dh, 3 - rw - 2 * dw]
                    for dh in range(2) for dw in range(2)]
            phases.append(jnp.concatenate(rows, axis=0))
    return jnp.stack(phases, axis=0)


def interleave_phases(y_phases, N, H, W):
    """[4, N*H*W, C] (phase p = 2*rh + rw) -> NHWC [N, 2H, 2W, C]."""
    C = y_phases.shape[-1]
    y = y_phases.reshape(2, 2, N, H, W, C)          # [rh, rw, N, H, W, C]
    y = y.transpose(2, 3, 0, 4, 1, 5)               # [N, H, rh, W, rw, C]
    return y.reshape(N, 2 * H, 2 * W, C)


# ----------------------------------------------------------------------------
# Generator
# ----------------------------------------------------------------------------
def init_params(key):
    dims = [(100, 512), (512, 256), (256, 128), (128, 64), (64, 3)]
    params = {}
    keys = jax.random.split(key, len(dims))
    for idx, ((cin, cout), k) in enumerate(zip(dims, keys)):
        params[f"w{idx}"] = 0.02 * jax.random.normal(
            k, (cin, cout, 4, 4), jnp.float32)      # PyTorch convT layout
        if idx < 4:                                  # BN after first 4 layers
            params[f"gamma{idx}"] = jnp.ones((cout,), jnp.float32)
            params[f"beta{idx}"] = jnp.zeros((cout,), jnp.float32)
    return params


@jax.jit
def generator_forward(params, z):
    """z: [N, 100, 1, 1] -> [N, 3, 64, 64] (NCHW, matches PyTorch module)."""
    N = z.shape[0]

    # Layer 0: ConvT(100->512, k4, s1, p0) on a 1x1 input == [N,100]@[100,16*512].
    # Left to XLA per perf review (2-row tile would idle the MXU); BN+ReLU is a
    # single fused Pallas kernel on the VMEM-resident [N*16, 512] activation.
    z2d = z.reshape(N, 100)
    w0m = params["w0"].transpose(0, 2, 3, 1).reshape(100, 16 * 512)  # (kh,kw,co)
    y0 = jnp.dot(z2d, w0m, preferred_element_type=jnp.float32)
    y0 = bn_relu_resident(y0.reshape(N * 16, 512),
                          params["gamma0"], params["beta0"])
    x = y0.reshape(N, 4, 4, 512)                                     # NHWC

    # Layers 1..3: fused sub-pixel ConvT(k4,s2,p1) + train-mode BN + ReLU.
    for idx in range(1, 4):
        Nb, H, W, _ = x.shape
        patches = build_phase_patches(x.astype(jnp.bfloat16))        # [4, M, 4C]
        wp = subpixel_weights(params[f"w{idx}"]).astype(jnp.bfloat16)
        y = convt_bn_relu(patches, wp,
                          params[f"gamma{idx}"], params[f"beta{idx}"])
        x = interleave_phases(y, Nb, H, W)                           # 2x upsampled

    # Layer 4: sub-pixel ConvT(64->3) with tanh fused in the epilogue; output
    # channels padded 3 -> 128 for lane-dense stores, sliced afterwards.
    Nb, H, W, _ = x.shape
    patches = build_phase_patches(x.astype(jnp.bfloat16))            # [4, M, 256]
    wp = subpixel_weights(params["w4"])                              # [4, 256, 3]
    wp = jnp.pad(wp, ((0, 0), (0, 0), (0, 128 - wp.shape[-1])))
    y = convt_tanh(patches, wp.astype(jnp.bfloat16))                 # [4, M, 128]
    img = interleave_phases(y[..., :3], Nb, H, W)                    # [N,64,64,3]
    return img.transpose(0, 3, 1, 2)                                 # NCHW


# ----------------------------------------------------------------------------
# Pure-JAX f32 reference (for a loose numerical cross-check only)
# ----------------------------------------------------------------------------
def _convt_ref(x_nchw, w, stride, pad):
    k = w.shape[-1]
    w_f = jnp.flip(w, (-2, -1)).transpose(1, 0, 2, 3)   # [C_out, C_in, kh, kw]
    return lax.conv_general_dilated(
        x_nchw, w_f, window_strides=(1, 1),
        padding=[(k - 1 - pad, k - 1 - pad)] * 2,
        lhs_dilation=(stride, stride),
        dimension_numbers=("NCHW", "OIHW", "NCHW"),
        precision=lax.Precision.HIGHEST)


@jax.jit
def generator_reference(params, z):
    x = _convt_ref(z, params["w0"], 1, 0)
    for idx in range(4):
        if idx > 0:
            x = _convt_ref(x, params[f"w{idx}"], 2, 1)
        mean = jnp.mean(x, axis=(0, 2, 3), keepdims=True)
        var = jnp.maximum(jnp.mean(x * x, axis=(0, 2, 3), keepdims=True)
                          - mean * mean, 0.0)
        g = params[f"gamma{idx}"].reshape(1, -1, 1, 1)
        b = params[f"beta{idx}"].reshape(1, -1, 1, 1)
        x = jnp.maximum((x - mean) * lax.rsqrt(var + EPS) * g + b, 0.0)
    return jnp.tanh(_convt_ref(x, params["w4"], 2, 1))


if __name__ == "__main__":
    key = jax.random.PRNGKey(0)
    pkey, zkey = jax.random.split(key)
    params = init_params(pkey)

    batch = 2
    z = jax.random.normal(zkey, (batch, 100, 1, 1), jnp.float32)

    out = jax.block_until_ready(generator_forward(params, z))

    assert out.shape == (batch, 3, 64, 64), out.shape
    assert out.dtype == jnp.float32
    assert bool(jnp.all(jnp.isfinite(out)))
    assert bool(jnp.all(jnp.abs(out) <= 1.0 + 1e-6))      # tanh range

    # Loose cross-check vs f32 XLA reference (kernel path uses bf16 operands).
    ref = jax.block_until_ready(generator_reference(params, z))
    mean_err = float(jnp.mean(jnp.abs(out - ref)))
    max_err = float(jnp.max(jnp.abs(out - ref)))
    assert mean_err < 0.07 and max_err < 0.5, (mean_err, max_err)

    print("KERNEL_OK")
</pallas_src>

<mosaic_0001>
module attributes {stable_mosaic.version = 11 : i64} {
  func.func @_bn_relu_resident_kernel(%arg0: i32, %arg1: memref<32x512xf32, #tpu.memory_space<vmem>>, %arg2: memref<1x512xf32, #tpu.memory_space<vmem>>, %arg3: memref<1x512xf32, #tpu.memory_space<vmem>>, %arg4: memref<32x512xf32, #tpu.memory_space<vmem>>) attributes {dimension_semantics = [#tpu.dimension_semantics<arbitrary>], iteration_bounds = array<i64: 1>, scalar_prefetch = 0 : i64, scratch_operands = 0 : i64, tpu.core_type = #tpu.core_type<tc>, window_params = [{pipeline_mode = #tpu.pipeline_mode<synchronous>, transform_indices = @transform_0, window_bounds = array<i64: 32, 512>}, {pipeline_mode = #tpu.pipeline_mode<synchronous>, transform_indices = @transform_1, window_bounds = array<i64: 1, 512>}, {pipeline_mode = #tpu.pipeline_mode<synchronous>, transform_indices = @transform_2, window_bounds = array<i64: 1, 512>}, {pipeline_mode = #tpu.pipeline_mode<synchronous>, transform_indices = @transform_3, window_bounds = array<i64: 32, 512>}]} {
    %c0 = arith.constant 0 : index
    %c0_0 = arith.constant 0 : index
    %0 = vector.load %arg1[%c0, %c0_0] : memref<32x512xf32, #tpu.memory_space<vmem>>, vector<32x512xf32>
    %cst = arith.constant dense<0.000000e+00> : vector<512xf32>
    %1 = vector.multi_reduction <add>, %0, %cst [0] : vector<32x512xf32> to vector<512xf32>
    %2 = vector.shape_cast %1 : vector<512xf32> to vector<1x512xf32>
    %cst_1 = arith.constant 3.125000e-02 : f32
    %3 = vector.broadcast %cst_1 : f32 to vector<1x512xf32>
    %4 = arith.mulf %2, %3 : vector<1x512xf32>
    %5 = arith.mulf %0, %0 : vector<32x512xf32>
    %cst_2 = arith.constant dense<0.000000e+00> : vector<512xf32>
    %6 = vector.multi_reduction <add>, %5, %cst_2 [0] : vector<32x512xf32> to vector<512xf32>
    %7 = vector.shape_cast %6 : vector<512xf32> to vector<1x512xf32>
    %cst_3 = arith.constant 3.125000e-02 : f32
    %8 = vector.broadcast %cst_3 : f32 to vector<1x512xf32>
    %9 = arith.mulf %7, %8 : vector<1x512xf32>
    %10 = arith.mulf %4, %4 : vector<1x512xf32>
    %11 = arith.subf %9, %10 : vector<1x512xf32>
    %cst_4 = arith.constant 0.000000e+00 : f32
    %12 = vector.broadcast %cst_4 : f32 to vector<1x512xf32>
    %13 = arith.maximumf %11, %12 : vector<1x512xf32>
    %c0_5 = arith.constant 0 : index
    %c0_6 = arith.constant 0 : index
    %14 = vector.load %arg2[%c0_5, %c0_6] : memref<1x512xf32, #tpu.memory_space<vmem>>, vector<1x512xf32>
    %cst_7 = arith.constant 9.99999974E-6 : f32
    %15 = vector.broadcast %cst_7 : f32 to vector<1x512xf32>
    %16 = arith.addf %13, %15 : vector<1x512xf32>
    %17 = math.rsqrt %16 : vector<1x512xf32>
    %18 = arith.mulf %14, %17 : vector<1x512xf32>
    %c0_8 = arith.constant 0 : index
    %c0_9 = arith.constant 0 : index
    %19 = vector.load %arg3[%c0_8, %c0_9] : memref<1x512xf32, #tpu.memory_space<vmem>>, vector<1x512xf32>
    %20 = arith.mulf %4, %18 : vector<1x512xf32>
    %21 = arith.subf %19, %20 : vector<1x512xf32>
    %22 = vector.broadcast %18 : vector<1x512xf32> to vector<32x512xf32>
    %23 = arith.mulf %0, %22 : vector<32x512xf32>
    %24 = vector.broadcast %21 : vector<1x512xf32> to vector<32x512xf32>
    %25 = arith.addf %23, %24 : vector<32x512xf32>
    %cst_10 = arith.constant 0.000000e+00 : f32
    %26 = vector.broadcast %cst_10 : f32 to vector<32x512xf32>
    %27 = arith.maximumf %25, %26 : vector<32x512xf32>
    %c0_11 = arith.constant 0 : index
    %c0_12 = arith.constant 0 : index
    %28 = vector.load %arg4[%c0_11, %c0_12] : memref<32x512xf32, #tpu.memory_space<vmem>>, vector<32x512xf32>
    tpu.vector_store %arg4[%c0_11, %c0_12], %27 {strides = array<i32>} : memref<32x512xf32, #tpu.memory_space<vmem>>, vector<32x512xf32>,
    return
  }
  func.func @transform_0(%arg0: i32) -> (i32, i32) {
    %c0_i32 = arith.constant 0 : i32
    %c0_i32_0 = arith.constant 0 : i32
    %c0_i32_1 = arith.constant 0 : i32
    return %c0_i32, %c0_i32_0 : i32, i32
  }
  func.func @transform_1(%arg0: i32) -> (i32, i32) {
    %c0_i32 = arith.constant 0 : i32
    %c0_i32_0 = arith.constant 0 : i32
    %c0_i32_1 = arith.constant 0 : i32
    return %c0_i32, %c0_i32_0 : i32, i32
  }
  func.func @transform_2(%arg0: i32) -> (i32, i32) {
    %c0_i32 = arith.constant 0 : i32
    %c0_i32_0 = arith.constant 0 : i32
    %c0_i32_1 = arith.constant 0 : i32
    return %c0_i32, %c0_i32_0 : i32, i32
  }
  func.func @transform_3(%arg0: i32) -> (i32, i32) {
    %c0_i32 = arith.constant 0 : i32
    %c0_i32_0 = arith.constant 0 : i32
    %c0_i32_1 = arith.constant 0 : i32
    return %c0_i32, %c0_i32_0 : i32, i32
  }
}

module attributes {stable_mosaic.version = 11 : i64} {
  func.func @_convt_bn_relu_kernel(%arg0: i32, %arg1: memref<1x32x2048xbf16, #tpu.memory_space<vmem>>, %arg2: memref<1x2048x256xbf16, #tpu.memory_space<vmem>>, %arg3: memref<1x256xf32, #tpu.memory_space<vmem>>, %arg4: memref<1x256xf32, #tpu.memory_space<vmem>>, %arg5: memref<4x32x256xf32, #tpu.memory_space<vmem>>, %arg6: memref<1x256xf32, #tpu.memory_space<vmem>>, %arg7: memref<1x256xf32, #tpu.memory_space<vmem>>) attributes {dimension_semantics = [#tpu.dimension_semantics<arbitrary>], iteration_bounds = array<i64: 4>, scalar_prefetch = 0 : i64, scratch_operands = 2 : i64, tpu.core_type = #tpu.core_type<tc>, window_params = [{transform_indices = @transform_0, window_bounds = array<i64: 1, 32, 2048>}, {transform_indices = @transform_1, window_bounds = array<i64: 1, 2048, 256>}, {pipeline_mode = #tpu.pipeline_mode<synchronous>, transform_indices = @transform_2, window_bounds = array<i64: 1, 256>}, {pipeline_mode = #tpu.pipeline_mode<synchronous>, transform_indices = @transform_3, window_bounds = array<i64: 1, 256>}, {pipeline_mode = #tpu.pipeline_mode<synchronous>, transform_indices = @transform_4, window_bounds = array<i64: 4, 32, 256>}]} {
    %c0_i32 = arith.constant 0 : i32
    %0 = arith.cmpi eq, %arg0, %c0_i32 : i32
    %1 = arith.extui %0 : i1 to i32
    %c0_i32_0 = arith.constant 0 : i32
    %2 = arith.cmpi ne, %1, %c0_i32_0 : i32
    scf.if %2 {
      %cst_19 = arith.constant 0.000000e+00 : f32
      %26 = vector.broadcast %cst_19 : f32 to vector<1x256xf32>
      %c0_20 = arith.constant 0 : index
      %c0_21 = arith.constant 0 : index
      %27 = vector.load %arg6[%c0_20, %c0_21] : memref<1x256xf32, #tpu.memory_space<vmem>>, vector<1x256xf32>
      tpu.vector_store %arg6[%c0_20, %c0_21], %26 {strides = array<i32>} : memref<1x256xf32, #tpu.memory_space<vmem>>, vector<1x256xf32>,
      %cst_22 = arith.constant 0.000000e+00 : f32
      %28 = vector.broadcast %cst_22 : f32 to vector<1x256xf32>
      %c0_23 = arith.constant 0 : index
      %c0_24 = arith.constant 0 : index
      %29 = vector.load %arg7[%c0_23, %c0_24] : memref<1x256xf32, #tpu.memory_space<vmem>>, vector<1x256xf32>
      tpu.vector_store %arg7[%c0_23, %c0_24], %28 {strides = array<i32>} : memref<1x256xf32, #tpu.memory_space<vmem>>, vector<1x256xf32>,
    } else {
    }
    %c0 = arith.constant 0 : index
    %c0_1 = arith.constant 0 : index
    %c0_2 = arith.constant 0 : index
    %3 = vector.load %arg1[%c0, %c0_1, %c0_2] : memref<1x32x2048xbf16, #tpu.memory_space<vmem>>, vector<1x32x2048xbf16>
    %4 = vector.shape_cast %3 : vector<1x32x2048xbf16> to vector<32x2048xbf16>
    %c0_3 = arith.constant 0 : index
    %c0_4 = arith.constant 0 : index
    %c0_5 = arith.constant 0 : index
    %5 = vector.load %arg2[%c0_3, %c0_4, %c0_5] : memref<1x2048x256xbf16, #tpu.memory_space<vmem>>, vector<1x2048x256xbf16>
    %6 = vector.shape_cast %5 : vector<1x2048x256xbf16> to vector<2048x256xbf16>
    %cst = arith.constant dense<0.000000e+00> : vector<32x256xf32>
    %7 = tpu.matmul %4, %6, %cst {dimension_numbers = #tpu.dot_dimension_numbers<[1], [0], [0], [1], [0, 0, 1, 1], [], []>} : vector<32x2048xbf16>, vector<2048x256xbf16>, vector<32x256xf32> -> vector<32x256xf32>
    %8 = arith.index_cast %arg0 : i32 to index
    %c0_6 = arith.constant 0 : index
    %c0_7 = arith.constant 0 : index
    %9 = vector.load %arg5[%8, %c0_6, %c0_7] : memref<4x32x256xf32, #tpu.memory_space<vmem>>, vector<1x32x256xf32>
    %10 = vector.shape_cast %9 : vector<1x32x256xf32> to vector<32x256xf32>
    %11 = vector.shape_cast %7 : vector<32x256xf32> to vector<1x32x256xf32>
    tpu.vector_store %arg5[%8, %c0_6, %c0_7], %11 {strides = array<i32>} : memref<4x32x256xf32, #tpu.memory_space<vmem>>, vector<1x32x256xf32>,
    %c0_8 = arith.constant 0 : index
    %c0_9 = arith.constant 0 : index
    %12 = vector.load %arg6[%c0_8, %c0_9] : memref<1x256xf32, #tpu.memory_space<vmem>>, vector<1x256xf32>
    %cst_10 = arith.constant dense<0.000000e+00> : vector<256xf32>
    %13 = vector.multi_reduction <add>, %7, %cst_10 [0] : vector<32x256xf32> to vector<256xf32>
    %14 = vector.shape_cast %13 : vector<256xf32> to vector<1x256xf32>
    %15 = arith.addf %12, %14 : vector<1x256xf32>
    %c0_11 = arith.constant 0 : index
    %c0_12 = arith.constant 0 : index
    %16 = vector.load %arg6[%c0_11, %c0_12] : memref<1x256xf32, #tpu.memory_space<vmem>>, vector<1x256xf32>
    tpu.vector_store %arg6[%c0_11, %c0_12], %15 {strides = array<i32>} : memref<1x256xf32, #tpu.memory_space<vmem>>, vector<1x256xf32>,
    %c0_13 = arith.constant 0 : index
    %c0_14 = arith.constant 0 : index
    %17 = vector.load %arg7[%c0_13, %c0_14] : memref<1x256xf32, #tpu.memory_space<vmem>>, vector<1x256xf32>
    %18 = arith.mulf %7, %7 : vector<32x256xf32>
    %cst_15 = arith.constant dense<0.000000e+00> : vector<256xf32>
    %19 = vector.multi_reduction <add>, %18, %cst_15 [0] : vector<32x256xf32> to vector<256xf32>
    %20 = vector.shape_cast %19 : vector<256xf32> to vector<1x256xf32>
    %21 = arith.addf %17, %20 : vector<1x256xf32>
    %c0_16 = arith.constant 0 : index
    %c0_17 = arith.constant 0 : index
    %22 = vector.load %arg7[%c0_16, %c0_17] : memref<1x256xf32, #tpu.memory_space<vmem>>, vector<1x256xf32>
    tpu.vector_store %arg7[%c0_16, %c0_17], %21 {strides = array<i32>} : memref<1x256xf32, #tpu.memory_space<vmem>>, vector<1x256xf32>,
    %c3_i32 = arith.constant 3 : i32
    %23 = arith.cmpi eq, %arg0, %c3_i32 : i32
    %24 = arith.extui %23 : i1 to i32
    %c0_i32_18 = arith.constant 0 : i32
    %25 = arith.cmpi ne, %24, %c0_i32_18 : i32
    scf.if %25 {
      %c0_19 = arith.constant 0 : index
      %c0_20 = arith.constant 0 : index
      %26 = vector.load %arg6[%c0_19, %c0_20] : memref<1x256xf32, #tpu.memory_space<vmem>>, vector<1x256xf32>
      %cst_21 = arith.constant 7.812500e-03 : f32
      %27 = vector.broadcast %cst_21 : f32 to vector<1x256xf32>
      %28 = arith.mulf %26, %27 : vector<1x256xf32>
      %c0_22 = arith.constant 0 : index
      %c0_23 = arith.constant 0 : index
      %29 = vector.load %arg7[%c0_22, %c0_23] : memref<1x256xf32, #tpu.memory_space<vmem>>, vector<1x256xf32>
      %cst_24 = arith.constant 7.812500e-03 : f32
      %30 = vector.broadcast %cst_24 : f32 to vector<1x256xf32>
      %31 = arith.mulf %29, %30 : vector<1x256xf32>
      %32 = arith.mulf %28, %28 : vector<1x256xf32>
      %33 = arith.subf %31, %32 : vector<1x256xf32>
      %cst_25 = arith.constant 0.000000e+00 : f32
      %34 = vector.broadcast %cst_25 : f32 to vector<1x256xf32>
      %35 = arith.maximumf %33, %34 : vector<1x256xf32>
      %c0_26 = arith.constant 0 : index
      %c0_27 = arith.constant 0 : index
      %36 = vector.load %arg3[%c0_26, %c0_27] : memref<1x256xf32, #tpu.memory_space<vmem>>, vector<1x256xf32>
      %cst_28 = arith.constant 9.99999974E-6 : f32
      %37 = vector.broadcast %cst_28 : f32 to vector<1x256xf32>
      %38 = arith.addf %35, %37 : vector<1x256xf32>
      %39 = math.rsqrt %38 : vector<1x256xf32>
      %40 = arith.mulf %36, %39 : vector<1x256xf32>
      %c0_29 = arith.constant 0 : index
      %c0_30 = arith.constant 0 : index
      %41 = vector.load %arg4[%c0_29, %c0_30] : memref<1x256xf32, #tpu.memory_space<vmem>>, vector<1x256xf32>
      %42 = arith.mulf %28, %40 : vector<1x256xf32>
      %43 = arith.subf %41, %42 : vector<1x256xf32>
      %c0_31 = arith.constant 0 : index
      %c0_32 = arith.constant 0 : index
      %c0_33 = arith.constant 0 : index
      %44 = vector.load %arg5[%c0_31, %c0_32, %c0_33] : memref<4x32x256xf32, #tpu.memory_space<vmem>>, vector<1x32x256xf32>
      %45 = vector.shape_cast %44 : vector<1x32x256xf32> to vector<32x256xf32>
      %46 = vector.broadcast %40 : vector<1x256xf32> to vector<32x256xf32>
      %47 = arith.mulf %45, %46 : vector<32x256xf32>
      %48 = vector.broadcast %43 : vector<1x256xf32> to vector<32x256xf32>
      %49 = arith.addf %47, %48 : vector<32x256xf32>
      %cst_34 = arith.constant 0.000000e+00 : f32
      %50 = vector.broadcast %cst_34 : f32 to vector<32x256xf32>
      %51 = arith.maximumf %49, %50 : vector<32x256xf32>
      %c0_35 = arith.constant 0 : index
      %c0_36 = arith.constant 0 : index
      %c0_37 = arith.constant 0 : index
      %52 = vector.load %arg5[%c0_35, %c0_36, %c0_37] : memref<4x32x256xf32, #tpu.memory_space<vmem>>, vector<1x32x256xf32>
      %53 = vector.shape_cast %52 : vector<1x32x256xf32> to vector<32x256xf32>
      %54 = vector.shape_cast %51 : vector<32x256xf32> to vector<1x32x256xf32>
      tpu.vector_store %arg5[%c0_35, %c0_36, %c0_37], %54 {strides = array<i32>} : memref<4x32x256xf32, #tpu.memory_space<vmem>>, vector<1x32x256xf32>,
      %c1 = arith.constant 1 : index
      %c0_38 = arith.constant 0 : index
      %c0_39 = arith.constant 0 : index
      %55 = vector.load %arg5[%c1, %c0_38, %c0_39] : memref<4x32x256xf32, #tpu.memory_space<vmem>>, vector<1x32x256xf32>
      %56 = vector.shape_cast %55 : vector<1x32x256xf32> to vector<32x256xf32>
      %57 = vector.broadcast %40 : vector<1x256xf32> to vector<32x256xf32>
      %58 = arith.mulf %56, %57 : vector<32x256xf32>
      %59 = vector.broadcast %43 : vector<1x256xf32> to vector<32x256xf32>
      %60 = arith.addf %58, %59 : vector<32x256xf32>
      %cst_40 = arith.constant 0.000000e+00 : f32
      %61 = vector.broadcast %cst_40 : f32 to vector<32x256xf32>
      %62 = arith.maximumf %60, %61 : vector<32x256xf32>
      %c1_41 = arith.constant 1 : index
      %c0_42 = arith.constant 0 : index
      %c0_43 = arith.constant 0 : index
      %63 = vector.load %arg5[%c1_41, %c0_42, %c0_43] : memref<4x32x256xf32, #tpu.memory_space<vmem>>, vector<1x32x256xf32>
      %64 = vector.shape_cast %63 : vector<1x32x256xf32> to vector<32x256xf32>
      %65 = vector.shape_cast %62 : vector<32x256xf32> to vector<1x32x256xf32>
      tpu.vector_store %arg5[%c1_41, %c0_42, %c0_43], %65 {strides = array<i32>} : memref<4x32x256xf32, #tpu.memory_space<vmem>>, vector<1x32x256xf32>,
      %c2 = arith.constant 2 : index
      %c0_44 = arith.constant 0 : index
      %c0_45 = arith.constant 0 : index
      %66 = vector.load %arg5[%c2, %c0_44, %c0_45] : memref<4x32x256xf32, #tpu.memory_space<vmem>>, vector<1x32x256xf32>
      %67 = vector.shape_cast %66 : vector<1x32x256xf32> to vector<32x256xf32>
      %68 = vector.broadcast %40 : vector<1x256xf32> to vector<32x256xf32>
      %69 = arith.mulf %67, %68 : vector<32x256xf32>
      %70 = vector.broadcast %43 : vector<1x256xf32> to vector<32x256xf32>
      %71 = arith.addf %69, %70 : vector<32x256xf32>
      %cst_46 = arith.constant 0.000000e+00 : f32
      %72 = vector.broadcast %cst_46 : f32 to vector<32x256xf32>
      %73 = arith.maximumf %71, %72 : vector<32x256xf32>
      %c2_47 = arith.constant 2 : index
      %c0_48 = arith.constant 0 : index
      %c0_49 = arith.constant 0 : index
      %74 = vector.load %arg5[%c2_47, %c0_48, %c0_49] : memref<4x32x256xf32, #tpu.memory_space<vmem>>, vector<1x32x256xf32>
      %75 = vector.shape_cast %74 : vector<1x32x256xf32> to vector<32x256xf32>
      %76 = vector.shape_cast %73 : vector<32x256xf32> to vector<1x32x256xf32>
      tpu.vector_store %arg5[%c2_47, %c0_48, %c0_49], %76 {strides = array<i32>} : memref<4x32x256xf32, #tpu.memory_space<vmem>>, vector<1x32x256xf32>,
      %c3 = arith.constant 3 : index
      %c0_50 = arith.constant 0 : index
      %c0_51 = arith.constant 0 : index
      %77 = vector.load %arg5[%c3, %c0_50, %c0_51] : memref<4x32x256xf32, #tpu.memory_space<vmem>>, vector<1x32x256xf32>
      %78 = vector.shape_cast %77 : vector<1x32x256xf32> to vector<32x256xf32>
      %79 = vector.broadcast %40 : vector<1x256xf32> to vector<32x256xf32>
      %80 = arith.mulf %78, %79 : vector<32x256xf32>
      %81 = vector.broadcast %43 : vector<1x256xf32> to vector<32x256xf32>
      %82 = arith.addf %80, %81 : vector<32x256xf32>
      %cst_52 = arith.constant 0.000000e+00 : f32
      %83 = vector.broadcast %cst_52 : f32 to vector<32x256xf32>
      %84 = arith.maximumf %82, %83 : vector<32x256xf32>
      %c3_53 = arith.constant 3 : index
      %c0_54 = arith.constant 0 : index
      %c0_55 = arith.constant 0 : index
      %85 = vector.load %arg5[%c3_53, %c0_54, %c0_55] : memref<4x32x256xf32, #tpu.memory_space<vmem>>, vector<1x32x256xf32>
      %86 = vector.shape_cast %85 : vector<1x32x256xf32> to vector<32x256xf32>
      %87 = vector.shape_cast %84 : vector<32x256xf32> to vector<1x32x256xf32>
      tpu.vector_store %arg5[%c3_53, %c0_54, %c0_55], %87 {strides = array<i32>} : memref<4x32x256xf32, #tpu.memory_space<vmem>>, vector<1x32x256xf32>,
    } else {
    }
    return
  }
  func.func @transform_0(%arg0: i32) -> (i32, i32, i32) {
    %c0_i32 = arith.constant 0 : i32
    %c0_i32_0 = arith.constant 0 : i32
    %c0_i32_1 = arith.constant 0 : i32
    return %arg0, %c0_i32, %c0_i32_0 : i32, i32, i32
  }
  func.func @transform_1(%arg0: i32) -> (i32, i32, i32) {
    %c0_i32 = arith.constant 0 : i32
    %c0_i32_0 = arith.constant 0 : i32
    %c0_i32_1 = arith.constant 0 : i32
    return %arg0, %c0_i32, %c0_i32_0 : i32, i32, i32
  }
  func.func @transform_2(%arg0: i32) -> (i32, i32) {
    %c0_i32 = arith.constant 0 : i32
    %c0_i32_0 = arith.constant 0 : i32
    %c0_i32_1 = arith.constant 0 : i32
    return %c0_i32, %c0_i32_0 : i32, i32
  }
  func.func @transform_3(%arg0: i32) -> (i32, i32) {
    %c0_i32 = arith.constant 0 : i32
    %c0_i32_0 = arith.constant 0 : i32
    %c0_i32_1 = arith.constant 0 : i32
    return %c0_i32, %c0_i32_0 : i32, i32
  }
  func.func @transform_4(%arg0: i32) -> (i32, i32, i32) {
    %c0_i32 = arith.constant 0 : i32
    %c0_i32_0 = arith.constant 0 : i32
    %c0_i32_1 = arith.constant 0 : i32
    %c0_i32_2 = arith.constant 0 : i32
    return %c0_i32, %c0_i32_0, %c0_i32_1 : i32, i32, i32
  }
}

module attributes {stable_mosaic.version = 11 : i64} {
  func.func @_convt_bn_relu_kernel(%arg0: i32, %arg1: memref<1x128x1024xbf16, #tpu.memory_space<vmem>>, %arg2: memref<1x1024x128xbf16, #tpu.memory_space<vmem>>, %arg3: memref<1x128xf32, #tpu.memory_space<vmem>>, %arg4: memref<1x128xf32, #tpu.memory_space<vmem>>, %arg5: memref<4x128x128xf32, #tpu.memory_space<vmem>>, %arg6: memref<1x128xf32, #tpu.memory_space<vmem>>, %arg7: memref<1x128xf32, #tpu.memory_space<vmem>>) attributes {dimension_semantics = [#tpu.dimension_semantics<arbitrary>], iteration_bounds = array<i64: 4>, scalar_prefetch = 0 : i64, scratch_operands = 2 : i64, tpu.core_type = #tpu.core_type<tc>, window_params = [{transform_indices = @transform_0, window_bounds = array<i64: 1, 128, 1024>}, {transform_indices = @transform_1, window_bounds = array<i64: 1, 1024, 128>}, {pipeline_mode = #tpu.pipeline_mode<synchronous>, transform_indices = @transform_2, window_bounds = array<i64: 1, 128>}, {pipeline_mode = #tpu.pipeline_mode<synchronous>, transform_indices = @transform_3, window_bounds = array<i64: 1, 128>}, {pipeline_mode = #tpu.pipeline_mode<synchronous>, transform_indices = @transform_4, window_bounds = array<i64: 4, 128, 128>}]} {
    %c0_i32 = arith.constant 0 : i32
    %0 = arith.cmpi eq, %arg0, %c0_i32 : i32
    %1 = arith.extui %0 : i1 to i32
    %c0_i32_0 = arith.constant 0 : i32
    %2 = arith.cmpi ne, %1, %c0_i32_0 : i32
    scf.if %2 {
      %cst_19 = arith.constant 0.000000e+00 : f32
      %26 = vector.broadcast %cst_19 : f32 to vector<1x128xf32>
      %c0_20 = arith.constant 0 : index
      %c0_21 = arith.constant 0 : index
      %27 = vector.load %arg6[%c0_20, %c0_21] : memref<1x128xf32, #tpu.memory_space<vmem>>, vector<1x128xf32>
      tpu.vector_store %arg6[%c0_20, %c0_21], %26 {strides = array<i32>} : memref<1x128xf32, #tpu.memory_space<vmem>>, vector<1x128xf32>,
      %cst_22 = arith.constant 0.000000e+00 : f32
      %28 = vector.broadcast %cst_22 : f32 to vector<1x128xf32>
      %c0_23 = arith.constant 0 : index
      %c0_24 = arith.constant 0 : index
      %29 = vector.load %arg7[%c0_23, %c0_24] : memref<1x128xf32, #tpu.memory_space<vmem>>, vector<1x128xf32>
      tpu.vector_store %arg7[%c0_23, %c0_24], %28 {strides = array<i32>} : memref<1x128xf32, #tpu.memory_space<vmem>>, vector<1x128xf32>,
    } else {
    }
    %c0 = arith.constant 0 : index
    %c0_1 = arith.constant 0 : index
    %c0_2 = arith.constant 0 : index
    %3 = vector.load %arg1[%c0, %c0_1, %c0_2] : memref<1x128x1024xbf16, #tpu.memory_space<vmem>>, vector<1x128x1024xbf16>
    %4 = vector.shape_cast %3 : vector<1x128x1024xbf16> to vector<128x1024xbf16>
    %c0_3 = arith.constant 0 : index
    %c0_4 = arith.constant 0 : index
    %c0_5 = arith.constant 0 : index
    %5 = vector.load %arg2[%c0_3, %c0_4, %c0_5] : memref<1x1024x128xbf16, #tpu.memory_space<vmem>>, vector<1x1024x128xbf16>
    %6 = vector.shape_cast %5 : vector<1x1024x128xbf16> to vector<1024x128xbf16>
    %cst = arith.constant dense<0.000000e+00> : vector<128x128xf32>
    %7 = tpu.matmul %4, %6, %cst {dimension_numbers = #tpu.dot_dimension_numbers<[1], [0], [0], [1], [0, 0, 1, 1], [], []>} : vector<128x1024xbf16>, vector<1024x128xbf16>, vector<128x128xf32> -> vector<128x128xf32>
    %8 = arith.index_cast %arg0 : i32 to index
    %c0_6 = arith.constant 0 : index
    %c0_7 = arith.constant 0 : index
    %9 = vector.load %arg5[%8, %c0_6, %c0_7] : memref<4x128x128xf32, #tpu.memory_space<vmem>>, vector<1x128x128xf32>
    %10 = vector.shape_cast %9 : vector<1x128x128xf32> to vector<128x128xf32>
    %11 = vector.shape_cast %7 : vector<128x128xf32> to vector<1x128x128xf32>
    tpu.vector_store %arg5[%8, %c0_6, %c0_7], %11 {strides = array<i32>} : memref<4x128x128xf32, #tpu.memory_space<vmem>>, vector<1x128x128xf32>,
    %c0_8 = arith.constant 0 : index
    %c0_9 = arith.constant 0 : index
    %12 = vector.load %arg6[%c0_8, %c0_9] : memref<1x128xf32, #tpu.memory_space<vmem>>, vector<1x128xf32>
    %cst_10 = arith.constant dense<0.000000e+00> : vector<128xf32>
    %13 = vector.multi_reduction <add>, %7, %cst_10 [0] : vector<128x128xf32> to vector<128xf32>
    %14 = vector.shape_cast %13 : vector<128xf32> to vector<1x128xf32>
    %15 = arith.addf %12, %14 : vector<1x128xf32>
    %c0_11 = arith.constant 0 : index
    %c0_12 = arith.constant 0 : index
    %16 = vector.load %arg6[%c0_11, %c0_12] : memref<1x128xf32, #tpu.memory_space<vmem>>, vector<1x128xf32>
    tpu.vector_store %arg6[%c0_11, %c0_12], %15 {strides = array<i32>} : memref<1x128xf32, #tpu.memory_space<vmem>>, vector<1x128xf32>,
    %c0_13 = arith.constant 0 : index
    %c0_14 = arith.constant 0 : index
    %17 = vector.load %arg7[%c0_13, %c0_14] : memref<1x128xf32, #tpu.memory_space<vmem>>, vector<1x128xf32>
    %18 = arith.mulf %7, %7 : vector<128x128xf32>
    %cst_15 = arith.constant dense<0.000000e+00> : vector<128xf32>
    %19 = vector.multi_reduction <add>, %18, %cst_15 [0] : vector<128x128xf32> to vector<128xf32>
    %20 = vector.shape_cast %19 : vector<128xf32> to vector<1x128xf32>
    %21 = arith.addf %17, %20 : vector<1x128xf32>
    %c0_16 = arith.constant 0 : index
    %c0_17 = arith.constant 0 : index
    %22 = vector.load %arg7[%c0_16, %c0_17] : memref<1x128xf32, #tpu.memory_space<vmem>>, vector<1x128xf32>
    tpu.vector_store %arg7[%c0_16, %c0_17], %21 {strides = array<i32>} : memref<1x128xf32, #tpu.memory_space<vmem>>, vector<1x128xf32>,
    %c3_i32 = arith.constant 3 : i32
    %23 = arith.cmpi eq, %arg0, %c3_i32 : i32
    %24 = arith.extui %23 : i1 to i32
    %c0_i32_18 = arith.constant 0 : i32
    %25 = arith.cmpi ne, %24, %c0_i32_18 : i32
    scf.if %25 {
      %c0_19 = arith.constant 0 : index
      %c0_20 = arith.constant 0 : index
      %26 = vector.load %arg6[%c0_19, %c0_20] : memref<1x128xf32, #tpu.memory_space<vmem>>, vector<1x128xf32>
      %cst_21 = arith.constant 0.001953125 : f32
      %27 = vector.broadcast %cst_21 : f32 to vector<1x128xf32>
      %28 = arith.mulf %26, %27 : vector<1x128xf32>
      %c0_22 = arith.constant 0 : index
      %c0_23 = arith.constant 0 : index
      %29 = vector.load %arg7[%c0_22, %c0_23] : memref<1x128xf32, #tpu.memory_space<vmem>>, vector<1x128xf32>
      %cst_24 = arith.constant 0.001953125 : f32
      %30 = vector.broadcast %cst_24 : f32 to vector<1x128xf32>
      %31 = arith.mulf %29, %30 : vector<1x128xf32>
      %32 = arith.mulf %28, %28 : vector<1x128xf32>
      %33 = arith.subf %31, %32 : vector<1x128xf32>
      %cst_25 = arith.constant 0.000000e+00 : f32
      %34 = vector.broadcast %cst_25 : f32 to vector<1x128xf32>
      %35 = arith.maximumf %33, %34 : vector<1x128xf32>
      %c0_26 = arith.constant 0 : index
      %c0_27 = arith.constant 0 : index
      %36 = vector.load %arg3[%c0_26, %c0_27] : memref<1x128xf32, #tpu.memory_space<vmem>>, vector<1x128xf32>
      %cst_28 = arith.constant 9.99999974E-6 : f32
      %37 = vector.broadcast %cst_28 : f32 to vector<1x128xf32>
      %38 = arith.addf %35, %37 : vector<1x128xf32>
      %39 = math.rsqrt %38 : vector<1x128xf32>
      %40 = arith.mulf %36, %39 : vector<1x128xf32>
      %c0_29 = arith.constant 0 : index
      %c0_30 = arith.constant 0 : index
      %41 = vector.load %arg4[%c0_29, %c0_30] : memref<1x128xf32, #tpu.memory_space<vmem>>, vector<1x128xf32>
      %42 = arith.mulf %28, %40 : vector<1x128xf32>
      %43 = arith.subf %41, %42 : vector<1x128xf32>
      %c0_31 = arith.constant 0 : index
      %c0_32 = arith.constant 0 : index
      %c0_33 = arith.constant 0 : index
      %44 = vector.load %arg5[%c0_31, %c0_32, %c0_33] : memref<4x128x128xf32, #tpu.memory_space<vmem>>, vector<1x128x128xf32>
      %45 = vector.shape_cast %44 : vector<1x128x128xf32> to vector<128x128xf32>
      %46 = vector.broadcast %40 : vector<1x128xf32> to vector<128x128xf32>
      %47 = arith.mulf %45, %46 : vector<128x128xf32>
      %48 = vector.broadcast %43 : vector<1x128xf32> to vector<128x128xf32>
      %49 = arith.addf %47, %48 : vector<128x128xf32>
      %cst_34 = arith.constant 0.000000e+00 : f32
      %50 = vector.broadcast %cst_34 : f32 to vector<128x128xf32>
      %51 = arith.maximumf %49, %50 : vector<128x128xf32>
      %c0_35 = arith.constant 0 : index
      %c0_36 = arith.constant 0 : index
      %c0_37 = arith.constant 0 : index
      %52 = vector.load %arg5[%c0_35, %c0_36, %c0_37] : memref<4x128x128xf32, #tpu.memory_space<vmem>>, vector<1x128x128xf32>
      %53 = vector.shape_cast %52 : vector<1x128x128xf32> to vector<128x128xf32>
      %54 = vector.shape_cast %51 : vector<128x128xf32> to vector<1x128x128xf32>
      tpu.vector_store %arg5[%c0_35, %c0_36, %c0_37], %54 {strides = array<i32>} : memref<4x128x128xf32, #tpu.memory_space<vmem>>, vector<1x128x128xf32>,
      %c1 = arith.constant 1 : index
      %c0_38 = arith.constant 0 : index
      %c0_39 = arith.constant 0 : index
      %55 = vector.load %arg5[%c1, %c0_38, %c0_39] : memref<4x128x128xf32, #tpu.memory_space<vmem>>, vector<1x128x128xf32>
      %56 = vector.shape_cast %55 : vector<1x128x128xf32> to vector<128x128xf32>
      %57 = vector.broadcast %40 : vector<1x128xf32> to vector<128x128xf32>
      %58 = arith.mulf %56, %57 : vector<128x128xf32>
      %59 = vector.broadcast %43 : vector<1x128xf32> to vector<128x128xf32>
      %60 = arith.addf %58, %59 : vector<128x128xf32>
      %cst_40 = arith.constant 0.000000e+00 : f32
      %61 = vector.broadcast %cst_40 : f32 to vector<128x128xf32>
      %62 = arith.maximumf %60, %61 : vector<128x128xf32>
      %c1_41 = arith.constant 1 : index
      %c0_42 = arith.constant 0 : index
      %c0_43 = arith.constant 0 : index
      %63 = vector.load %arg5[%c1_41, %c0_42, %c0_43] : memref<4x128x128xf32, #tpu.memory_space<vmem>>, vector<1x128x128xf32>
      %64 = vector.shape_cast %63 : vector<1x128x128xf32> to vector<128x128xf32>
      %65 = vector.shape_cast %62 : vector<128x128xf32> to vector<1x128x128xf32>
      tpu.vector_store %arg5[%c1_41, %c0_42, %c0_43], %65 {strides = array<i32>} : memref<4x128x128xf32, #tpu.memory_space<vmem>>, vector<1x128x128xf32>,
      %c2 = arith.constant 2 : index
      %c0_44 = arith.constant 0 : index
      %c0_45 = arith.constant 0 : index
      %66 = vector.load %arg5[%c2, %c0_44, %c0_45] : memref<4x128x128xf32, #tpu.memory_space<vmem>>, vector<1x128x128xf32>
      %67 = vector.shape_cast %66 : vector<1x128x128xf32> to vector<128x128xf32>
      %68 = vector.broadcast %40 : vector<1x128xf32> to vector<128x128xf32>
      %69 = arith.mulf %67, %68 : vector<128x128xf32>
      %70 = vector.broadcast %43 : vector<1x128xf32> to vector<128x128xf32>
      %71 = arith.addf %69, %70 : vector<128x128xf32>
      %cst_46 = arith.constant 0.000000e+00 : f32
      %72 = vector.broadcast %cst_46 : f32 to vector<128x128xf32>
      %73 = arith.maximumf %71, %72 : vector<128x128xf32>
      %c2_47 = arith.constant 2 : index
      %c0_48 = arith.constant 0 : index
      %c0_49 = arith.constant 0 : index
      %74 = vector.load %arg5[%c2_47, %c0_48, %c0_49] : memref<4x128x128xf32, #tpu.memory_space<vmem>>, vector<1x128x128xf32>
      %75 = vector.shape_cast %74 : vector<1x128x128xf32> to vector<128x128xf32>
      %76 = vector.shape_cast %73 : vector<128x128xf32> to vector<1x128x128xf32>
      tpu.vector_store %arg5[%c2_47, %c0_48, %c0_49], %76 {strides = array<i32>} : memref<4x128x128xf32, #tpu.memory_space<vmem>>, vector<1x128x128xf32>,
      %c3 = arith.constant 3 : index
      %c0_50 = arith.constant 0 : index
      %c0_51 = arith.constant 0 : index
      %77 = vector.load %arg5[%c3, %c0_50, %c0_51] : memref<4x128x128xf32, #tpu.memory_space<vmem>>, vector<1x128x128xf32>
      %78 = vector.shape_cast %77 : vector<1x128x128xf32> to vector<128x128xf32>
      %79 = vector.broadcast %40 : vector<1x128xf32> to vector<128x128xf32>
      %80 = arith.mulf %78, %79 : vector<128x128xf32>
      %81 = vector.broadcast %43 : vector<1x128xf32> to vector<128x128xf32>
      %82 = arith.addf %80, %81 : vector<128x128xf32>
      %cst_52 = arith.constant 0.000000e+00 : f32
      %83 = vector.broadcast %cst_52 : f32 to vector<128x128xf32>
      %84 = arith.maximumf %82, %83 : vector<128x128xf32>
      %c3_53 = arith.constant 3 : index
      %c0_54 = arith.constant 0 : index
      %c0_55 = arith.constant 0 : index
      %85 = vector.load %arg5[%c3_53, %c0_54, %c0_55] : memref<4x128x128xf32, #tpu.memory_space<vmem>>, vector<1x128x128xf32>
      %86 = vector.shape_cast %85 : vector<1x128x128xf32> to vector<128x128xf32>
      %87 = vector.shape_cast %84 : vector<128x128xf32> to vector<1x128x128xf32>
      tpu.vector_store %arg5[%c3_53, %c0_54, %c0_55], %87 {strides = array<i32>} : memref<4x128x128xf32, #tpu.memory_space<vmem>>, vector<1x128x128xf32>,
    } else {
    }
    return
  }
  func.func @transform_0(%arg0: i32) -> (i32, i32, i32) {
    %c0_i32 = arith.constant 0 : i32
    %c0_i32_0 = arith.constant 0 : i32
    %c0_i32_1 = arith.constant 0 : i32
    return %arg0, %c0_i32, %c0_i32_0 : i32, i32, i32
  }
  func.func @transform_1(%arg0: i32) -> (i32, i32, i32) {
    %c0_i32 = arith.constant 0 : i32
    %c0_i32_0 = arith.constant 0 : i32
    %c0_i32_1 = arith.constant 0 : i32
    return %arg0, %c0_i32, %c0_i32_0 : i32, i32, i32
  }
  func.func @transform_2(%arg0: i32) -> (i32, i32) {
    %c0_i32 = arith.constant 0 : i32
    %c0_i32_0 = arith.constant 0 : i32
    %c0_i32_1 = arith.constant 0 : i32
    return %c0_i32, %c0_i32_0 : i32, i32
  }
  func.func @transform_3(%arg0: i32) -> (i32, i32) {
    %c0_i32 = arith.constant 0 : i32
    %c0_i32_0 = arith.constant 0 : i32
    %c0_i32_1 = arith.constant 0 : i32
    return %c0_i32, %c0_i32_0 : i32, i32
  }
  func.func @transform_4(%arg0: i32) -> (i32, i32, i32) {
    %c0_i32 = arith.constant 0 : i32
    %c0_i32_0 = arith.constant 0 : i32
    %c0_i32_1 = arith.constant 0 : i32
    %c0_i32_2 = arith.constant 0 : i32
    return %c0_i32, %c0_i32_0, %c0_i32_1 : i32, i32, i32
  }
}

module attributes {stable_mosaic.version = 11 : i64} {
  func.func @_convt_bn_relu_kernel(%arg0: i32, %arg1: memref<1x512x512xbf16, #tpu.memory_space<vmem>>, %arg2: memref<1x512x64xbf16, #tpu.memory_space<vmem>>, %arg3: memref<1x64xf32, #tpu.memory_space<vmem>>, %arg4: memref<1x64xf32, #tpu.memory_space<vmem>>, %arg5: memref<4x512x64xf32, #tpu.memory_space<vmem>>, %arg6: memref<1x64xf32, #tpu.memory_space<vmem>>, %arg7: memref<1x64xf32, #tpu.memory_space<vmem>>) attributes {dimension_semantics = [#tpu.dimension_semantics<arbitrary>], iteration_bounds = array<i64: 4>, scalar_prefetch = 0 : i64, scratch_operands = 2 : i64, tpu.core_type = #tpu.core_type<tc>, window_params = [{transform_indices = @transform_0, window_bounds = array<i64: 1, 512, 512>}, {transform_indices = @transform_1, window_bounds = array<i64: 1, 512, 64>}, {pipeline_mode = #tpu.pipeline_mode<synchronous>, transform_indices = @transform_2, window_bounds = array<i64: 1, 64>}, {pipeline_mode = #tpu.pipeline_mode<synchronous>, transform_indices = @transform_3, window_bounds = array<i64: 1, 64>}, {pipeline_mode = #tpu.pipeline_mode<synchronous>, transform_indices = @transform_4, window_bounds = array<i64: 4, 512, 64>}]} {
    %c0_i32 = arith.constant 0 : i32
    %0 = arith.cmpi eq, %arg0, %c0_i32 : i32
    %1 = arith.extui %0 : i1 to i32
    %c0_i32_0 = arith.constant 0 : i32
    %2 = arith.cmpi ne, %1, %c0_i32_0 : i32
    scf.if %2 {
      %cst_19 = arith.constant 0.000000e+00 : f32
      %26 = vector.broadcast %cst_19 : f32 to vector<1x64xf32>
      %c0_20 = arith.constant 0 : index
      %c0_21 = arith.constant 0 : index
      %27 = vector.load %arg6[%c0_20, %c0_21] : memref<1x64xf32, #tpu.memory_space<vmem>>, vector<1x64xf32>
      tpu.vector_store %arg6[%c0_20, %c0_21], %26 {strides = array<i32>} : memref<1x64xf32, #tpu.memory_space<vmem>>, vector<1x64xf32>,
      %cst_22 = arith.constant 0.000000e+00 : f32
      %28 = vector.broadcast %cst_22 : f32 to vector<1x64xf32>
      %c0_23 = arith.constant 0 : index
      %c0_24 = arith.constant 0 : index
      %29 = vector.load %arg7[%c0_23, %c0_24] : memref<1x64xf32, #tpu.memory_space<vmem>>, vector<1x64xf32>
      tpu.vector_store %arg7[%c0_23, %c0_24], %28 {strides = array<i32>} : memref<1x64xf32, #tpu.memory_space<vmem>>, vector<1x64xf32>,
    } else {
    }
    %c0 = arith.constant 0 : index
    %c0_1 = arith.constant 0 : index
    %c0_2 = arith.constant 0 : index
    %3 = vector.load %arg1[%c0, %c0_1, %c0_2] : memref<1x512x512xbf16, #tpu.memory_space<vmem>>, vector<1x512x512xbf16>
    %4 = vector.shape_cast %3 : vector<1x512x512xbf16> to vector<512x512xbf16>
    %c0_3 = arith.constant 0 : index
    %c0_4 = arith.constant 0 : index
    %c0_5 = arith.constant 0 : index
    %5 = vector.load %arg2[%c0_3, %c0_4, %c0_5] : memref<1x512x64xbf16, #tpu.memory_space<vmem>>, vector<1x512x64xbf16>
    %6 = vector.shape_cast %5 : vector<1x512x64xbf16> to vector<512x64xbf16>
    %cst = arith.constant dense<0.000000e+00> : vector<512x64xf32>
    %7 = tpu.matmul %4, %6, %cst {dimension_numbers = #tpu.dot_dimension_numbers<[1], [0], [0], [1], [0, 0, 1, 1], [], []>} : vector<512x512xbf16>, vector<512x64xbf16>, vector<512x64xf32> -> vector<512x64xf32>
    %8 = arith.index_cast %arg0 : i32 to index
    %c0_6 = arith.constant 0 : index
    %c0_7 = arith.constant 0 : index
    %9 = vector.load %arg5[%8, %c0_6, %c0_7] : memref<4x512x64xf32, #tpu.memory_space<vmem>>, vector<1x512x64xf32>
    %10 = vector.shape_cast %9 : vector<1x512x64xf32> to vector<512x64xf32>
    %11 = vector.shape_cast %7 : vector<512x64xf32> to vector<1x512x64xf32>
    tpu.vector_store %arg5[%8, %c0_6, %c0_7], %11 {strides = array<i32>} : memref<4x512x64xf32, #tpu.memory_space<vmem>>, vector<1x512x64xf32>,
    %c0_8 = arith.constant 0 : index
    %c0_9 = arith.constant 0 : index
    %12 = vector.load %arg6[%c0_8, %c0_9] : memref<1x64xf32, #tpu.memory_space<vmem>>, vector<1x64xf32>
    %cst_10 = arith.constant dense<0.000000e+00> : vector<64xf32>
    %13 = vector.multi_reduction <add>, %7, %cst_10 [0] : vector<512x64xf32> to vector<64xf32>
    %14 = vector.shape_cast %13 : vector<64xf32> to vector<1x64xf32>
    %15 = arith.addf %12, %14 : vector<1x64xf32>
    %c0_11 = arith.constant 0 : index
    %c0_12 = arith.constant 0 : index
    %16 = vector.load %arg6[%c0_11, %c0_12] : memref<1x64xf32, #tpu.memory_space<vmem>>, vector<1x64xf32>
    tpu.vector_store %arg6[%c0_11, %c0_12], %15 {strides = array<i32>} : memref<1x64xf32, #tpu.memory_space<vmem>>, vector<1x64xf32>,
    %c0_13 = arith.constant 0 : index
    %c0_14 = arith.constant 0 : index
    %17 = vector.load %arg7[%c0_13, %c0_14] : memref<1x64xf32, #tpu.memory_space<vmem>>, vector<1x64xf32>
    %18 = arith.mulf %7, %7 : vector<512x64xf32>
    %cst_15 = arith.constant dense<0.000000e+00> : vector<64xf32>
    %19 = vector.multi_reduction <add>, %18, %cst_15 [0] : vector<512x64xf32> to vector<64xf32>
    %20 = vector.shape_cast %19 : vector<64xf32> to vector<1x64xf32>
    %21 = arith.addf %17, %20 : vector<1x64xf32>
    %c0_16 = arith.constant 0 : index
    %c0_17 = arith.constant 0 : index
    %22 = vector.load %arg7[%c0_16, %c0_17] : memref<1x64xf32, #tpu.memory_space<vmem>>, vector<1x64xf32>
    tpu.vector_store %arg7[%c0_16, %c0_17], %21 {strides = array<i32>} : memref<1x64xf32, #tpu.memory_space<vmem>>, vector<1x64xf32>,
    %c3_i32 = arith.constant 3 : i32
    %23 = arith.cmpi eq, %arg0, %c3_i32 : i32
    %24 = arith.extui %23 : i1 to i32
    %c0_i32_18 = arith.constant 0 : i32
    %25 = arith.cmpi ne, %24, %c0_i32_18 : i32
    scf.if %25 {
      %c0_19 = arith.constant 0 : index
      %c0_20 = arith.constant 0 : index
      %26 = vector.load %arg6[%c0_19, %c0_20] : memref<1x64xf32, #tpu.memory_space<vmem>>, vector<1x64xf32>
      %cst_21 = arith.constant 4.8828125E-4 : f32
      %27 = vector.broadcast %cst_21 : f32 to vector<1x64xf32>
      %28 = arith.mulf %26, %27 : vector<1x64xf32>
      %c0_22 = arith.constant 0 : index
      %c0_23 = arith.constant 0 : index
      %29 = vector.load %arg7[%c0_22, %c0_23] : memref<1x64xf32, #tpu.memory_space<vmem>>, vector<1x64xf32>
      %cst_24 = arith.constant 4.8828125E-4 : f32
      %30 = vector.broadcast %cst_24 : f32 to vector<1x64xf32>
      %31 = arith.mulf %29, %30 : vector<1x64xf32>
      %32 = arith.mulf %28, %28 : vector<1x64xf32>
      %33 = arith.subf %31, %32 : vector<1x64xf32>
      %cst_25 = arith.constant 0.000000e+00 : f32
      %34 = vector.broadcast %cst_25 : f32 to vector<1x64xf32>
      %35 = arith.maximumf %33, %34 : vector<1x64xf32>
      %c0_26 = arith.constant 0 : index
      %c0_27 = arith.constant 0 : index
      %36 = vector.load %arg3[%c0_26, %c0_27] : memref<1x64xf32, #tpu.memory_space<vmem>>, vector<1x64xf32>
      %cst_28 = arith.constant 9.99999974E-6 : f32
      %37 = vector.broadcast %cst_28 : f32 to vector<1x64xf32>
      %38 = arith.addf %35, %37 : vector<1x64xf32>
      %39 = math.rsqrt %38 : vector<1x64xf32>
      %40 = arith.mulf %36, %39 : vector<1x64xf32>
      %c0_29 = arith.constant 0 : index
      %c0_30 = arith.constant 0 : index
      %41 = vector.load %arg4[%c0_29, %c0_30] : memref<1x64xf32, #tpu.memory_space<vmem>>, vector<1x64xf32>
      %42 = arith.mulf %28, %40 : vector<1x64xf32>
      %43 = arith.subf %41, %42 : vector<1x64xf32>
      %c0_31 = arith.constant 0 : index
      %c0_32 = arith.constant 0 : index
      %c0_33 = arith.constant 0 : index
      %44 = vector.load %arg5[%c0_31, %c0_32, %c0_33] : memref<4x512x64xf32, #tpu.memory_space<vmem>>, vector<1x512x64xf32>
      %45 = vector.shape_cast %44 : vector<1x512x64xf32> to vector<512x64xf32>
      %46 = vector.broadcast %40 : vector<1x64xf32> to vector<512x64xf32>
      %47 = arith.mulf %45, %46 : vector<512x64xf32>
      %48 = vector.broadcast %43 : vector<1x64xf32> to vector<512x64xf32>
      %49 = arith.addf %47, %48 : vector<512x64xf32>
      %cst_34 = arith.constant 0.000000e+00 : f32
      %50 = vector.broadcast %cst_34 : f32 to vector<512x64xf32>
      %51 = arith.maximumf %49, %50 : vector<512x64xf32>
      %c0_35 = arith.constant 0 : index
      %c0_36 = arith.constant 0 : index
      %c0_37 = arith.constant 0 : index
      %52 = vector.load %arg5[%c0_35, %c0_36, %c0_37] : memref<4x512x64xf32, #tpu.memory_space<vmem>>, vector<1x512x64xf32>
      %53 = vector.shape_cast %52 : vector<1x512x64xf32> to vector<512x64xf32>
      %54 = vector.shape_cast %51 : vector<512x64xf32> to vector<1x512x64xf32>
      tpu.vector_store %arg5[%c0_35, %c0_36, %c0_37], %54 {strides = array<i32>} : memref<4x512x64xf32, #tpu.memory_space<vmem>>, vector<1x512x64xf32>,
      %c1 = arith.constant 1 : index
      %c0_38 = arith.constant 0 : index
      %c0_39 = arith.constant 0 : index
      %55 = vector.load %arg5[%c1, %c0_38, %c0_39] : memref<4x512x64xf32, #tpu.memory_space<vmem>>, vector<1x512x64xf32>
      %56 = vector.shape_cast %55 : vector<1x512x64xf32> to vector<512x64xf32>
      %57 = vector.broadcast %40 : vector<1x64xf32> to vector<512x64xf32>
      %58 = arith.mulf %56, %57 : vector<512x64xf32>
      %59 = vector.broadcast %43 : vector<1x64xf32> to vector<512x64xf32>
      %60 = arith.addf %58, %59 : vector<512x64xf32>
      %cst_40 = arith.constant 0.000000e+00 : f32
      %61 = vector.broadcast %cst_40 : f32 to vector<512x64xf32>
      %62 = arith.maximumf %60, %61 : vector<512x64xf32>
      %c1_41 = arith.constant 1 : index
      %c0_42 = arith.constant 0 : index
      %c0_43 = arith.constant 0 : index
      %63 = vector.load %arg5[%c1_41, %c0_42, %c0_43] : memref<4x512x64xf32, #tpu.memory_space<vmem>>, vector<1x512x64xf32>
      %64 = vector.shape_cast %63 : vector<1x512x64xf32> to vector<512x64xf32>
      %65 = vector.shape_cast %62 : vector<512x64xf32> to vector<1x512x64xf32>
      tpu.vector_store %arg5[%c1_41, %c0_42, %c0_43], %65 {strides = array<i32>} : memref<4x512x64xf32, #tpu.memory_space<vmem>>, vector<1x512x64xf32>,
      %c2 = arith.constant 2 : index
      %c0_44 = arith.constant 0 : index
      %c0_45 = arith.constant 0 : index
      %66 = vector.load %arg5[%c2, %c0_44, %c0_45] : memref<4x512x64xf32, #tpu.memory_space<vmem>>, vector<1x512x64xf32>
      %67 = vector.shape_cast %66 : vector<1x512x64xf32> to vector<512x64xf32>
      %68 = vector.broadcast %40 : vector<1x64xf32> to vector<512x64xf32>
      %69 = arith.mulf %67, %68 : vector<512x64xf32>
      %70 = vector.broadcast %43 : vector<1x64xf32> to vector<512x64xf32>
      %71 = arith.addf %69, %70 : vector<512x64xf32>
      %cst_46 = arith.constant 0.000000e+00 : f32
      %72 = vector.broadcast %cst_46 : f32 to vector<512x64xf32>
      %73 = arith.maximumf %71, %72 : vector<512x64xf32>
      %c2_47 = arith.constant 2 : index
      %c0_48 = arith.constant 0 : index
      %c0_49 = arith.constant 0 : index
      %74 = vector.load %arg5[%c2_47, %c0_48, %c0_49] : memref<4x512x64xf32, #tpu.memory_space<vmem>>, vector<1x512x64xf32>
      %75 = vector.shape_cast %74 : vector<1x512x64xf32> to vector<512x64xf32>
      %76 = vector.shape_cast %73 : vector<512x64xf32> to vector<1x512x64xf32>
      tpu.vector_store %arg5[%c2_47, %c0_48, %c0_49], %76 {strides = array<i32>} : memref<4x512x64xf32, #tpu.memory_space<vmem>>, vector<1x512x64xf32>,
      %c3 = arith.constant 3 : index
      %c0_50 = arith.constant 0 : index
      %c0_51 = arith.constant 0 : index
      %77 = vector.load %arg5[%c3, %c0_50, %c0_51] : memref<4x512x64xf32, #tpu.memory_space<vmem>>, vector<1x512x64xf32>
      %78 = vector.shape_cast %77 : vector<1x512x64xf32> to vector<512x64xf32>
      %79 = vector.broadcast %40 : vector<1x64xf32> to vector<512x64xf32>
      %80 = arith.mulf %78, %79 : vector<512x64xf32>
      %81 = vector.broadcast %43 : vector<1x64xf32> to vector<512x64xf32>
      %82 = arith.addf %80, %81 : vector<512x64xf32>
      %cst_52 = arith.constant 0.000000e+00 : f32
      %83 = vector.broadcast %cst_52 : f32 to vector<512x64xf32>
      %84 = arith.maximumf %82, %83 : vector<512x64xf32>
      %c3_53 = arith.constant 3 : index
      %c0_54 = arith.constant 0 : index
      %c0_55 = arith.constant 0 : index
      %85 = vector.load %arg5[%c3_53, %c0_54, %c0_55] : memref<4x512x64xf32, #tpu.memory_space<vmem>>, vector<1x512x64xf32>
      %86 = vector.shape_cast %85 : vector<1x512x64xf32> to vector<512x64xf32>
      %87 = vector.shape_cast %84 : vector<512x64xf32> to vector<1x512x64xf32>
      tpu.vector_store %arg5[%c3_53, %c0_54, %c0_55], %87 {strides = array<i32>} : memref<4x512x64xf32, #tpu.memory_space<vmem>>, vector<1x512x64xf32>,
    } else {
    }
    return
  }
  func.func @transform_0(%arg0: i32) -> (i32, i32, i32) {
    %c0_i32 = arith.constant 0 : i32
    %c0_i32_0 = arith.constant 0 : i32
    %c0_i32_1 = arith.constant 0 : i32
    return %arg0, %c0_i32, %c0_i32_0 : i32, i32, i32
  }
  func.func @transform_1(%arg0: i32) -> (i32, i32, i32) {
    %c0_i32 = arith.constant 0 : i32
    %c0_i32_0 = arith.constant 0 : i32
    %c0_i32_1 = arith.constant 0 : i32
    return %arg0, %c0_i32, %c0_i32_0 : i32, i32, i32
  }
  func.func @transform_2(%arg0: i32) -> (i32, i32) {
    %c0_i32 = arith.constant 0 : i32
    %c0_i32_0 = arith.constant 0 : i32
    %c0_i32_1 = arith.constant 0 : i32
    return %c0_i32, %c0_i32_0 : i32, i32
  }
  func.func @transform_3(%arg0: i32) -> (i32, i32) {
    %c0_i32 = arith.constant 0 : i32
    %c0_i32_0 = arith.constant 0 : i32
    %c0_i32_1 = arith.constant 0 : i32
    return %c0_i32, %c0_i32_0 : i32, i32
  }
  func.func @transform_4(%arg0: i32) -> (i32, i32, i32) {
    %c0_i32 = arith.constant 0 : i32
    %c0_i32_0 = arith.constant 0 : i32
    %c0_i32_1 = arith.constant 0 : i32
    %c0_i32_2 = arith.constant 0 : i32
    return %c0_i32, %c0_i32_0, %c0_i32_1 : i32, i32, i32
  }
}

module attributes {stable_mosaic.version = 11 : i64} {
  func.func @_convt_tanh_kernel(%arg0: i32, %arg1: memref<1x2048x256xbf16, #tpu.memory_space<vmem>>, %arg2: memref<1x256x128xbf16, #tpu.memory_space<vmem>>, %arg3: memref<1x2048x128xf32, #tpu.memory_space<vmem>>) attributes {dimension_semantics = [#tpu.dimension_semantics<parallel>], iteration_bounds = array<i64: 4>, scalar_prefetch = 0 : i64, scratch_operands = 0 : i64, tpu.core_type = #tpu.core_type<tc>, window_params = [{transform_indices = @transform_0, window_bounds = array<i64: 1, 2048, 256>}, {transform_indices = @transform_1, window_bounds = array<i64: 1, 256, 128>}, {transform_indices = @transform_2, window_bounds = array<i64: 1, 2048, 128>}]} {
    %c0 = arith.constant 0 : index
    %c0_0 = arith.constant 0 : index
    %c0_1 = arith.constant 0 : index
    %0 = vector.load %arg1[%c0, %c0_0, %c0_1] : memref<1x2048x256xbf16, #tpu.memory_space<vmem>>, vector<1x2048x256xbf16>
    %1 = vector.shape_cast %0 : vector<1x2048x256xbf16> to vector<2048x256xbf16>
    %c0_2 = arith.constant 0 : index
    %c0_3 = arith.constant 0 : index
    %c0_4 = arith.constant 0 : index
    %2 = vector.load %arg2[%c0_2, %c0_3, %c0_4] : memref<1x256x128xbf16, #tpu.memory_space<vmem>>, vector<1x256x128xbf16>
    %3 = vector.shape_cast %2 : vector<1x256x128xbf16> to vector<256x128xbf16>
    %cst = arith.constant dense<0.000000e+00> : vector<2048x128xf32>
    %4 = tpu.matmul %1, %3, %cst {dimension_numbers = #tpu.dot_dimension_numbers<[1], [0], [0], [1], [0, 0, 1, 1], [], []>} : vector<2048x256xbf16>, vector<256x128xbf16>, vector<2048x128xf32> -> vector<2048x128xf32>
    %5 = math.tanh %4 : vector<2048x128xf32>
    %c0_5 = arith.constant 0 : index
    %c0_6 = arith.constant 0 : index
    %c0_7 = arith.constant 0 : index
    %6 = vector.load %arg3[%c0_5, %c0_6, %c0_7] : memref<1x2048x128xf32, #tpu.memory_space<vmem>>, vector<1x2048x128xf32>
    %7 = vector.shape_cast %6 : vector<1x2048x128xf32> to vector<2048x128xf32>
    %8 = vector.shape_cast %5 : vector<2048x128xf32> to vector<1x2048x128xf32>
    tpu.vector_store %arg3[%c0_5, %c0_6, %c0_7], %8 {strides = array<i32>} : memref<1x2048x128xf32, #tpu.memory_space<vmem>>, vector<1x2048x128xf32>,
    return
  }
  func.func @transform_0(%arg0: i32) -> (i32, i32, i32) {
    %c0_i32 = arith.constant 0 : i32
    %c0_i32_0 = arith.constant 0 : i32
    %c0_i32_1 = arith.constant 0 : i32
    return %arg0, %c0_i32, %c0_i32_0 : i32, i32, i32
  }
  func.func @transform_1(%arg0: i32) -> (i32, i32, i32) {
    %c0_i32 = arith.constant 0 : i32
    %c0_i32_0 = arith.constant 0 : i32
    %c0_i32_1 = arith.constant 0 : i32
    return %arg0, %c0_i32, %c0_i32_0 : i32, i32, i32
  }
  func.func @transform_2(%arg0: i32) -> (i32, i32, i32) {
    %c0_i32 = arith.constant 0 : i32
    %c0_i32_0 = arith.constant 0 : i32
    %c0_i32_1 = arith.constant 0 : i32
    return %arg0, %c0_i32, %c0_i32_0 : i32, i32, i32
  }
}

</mosaic_0001>

<bundles_post_ra>
// kernel: generator_forward.5
= control target key start
LH: loop header
LB: loop body
LE: loop exit
PB: predicated region body
PF: predicated region fallthrough
CT: control target
= control target key end

     0   :  { %s570_s0 = inlined_call_operand.vmem [shape: f32[32,512], index: 0, kind: input, shape index: {}]   ;;  %s571_s1 = inlined_call_operand.vmem [shape: f32[1,512], index: 1, kind: input, shape index: {}]   ;;  %s572_s2 = inlined_call_operand.vmem [shape: f32[1,512], index: 2, kind: input, shape index: {}]   ;;  %s573_s3 = inlined_call_operand.vmem [shape: f32[32,512], index: 3, kind: output, shape index: {}]  }
   0x1   :  { %v355_v0 = vld [vmem:[%s570_s0] sm:$0xff]  ;;  %v360_v1 = vld [vmem:[%s570_s0 + $0x8] sm:$0xff]  ;;  %v365_v2 = vld [vmem:[%s570_s0 + $0x10] sm:$0xff] }
   0x2   :  { %v370_v3 = vld [vmem:[%s570_s0 + $0x18] sm:$0xff]  ;;  %v375_v4 = vld [vmem:[%s570_s0 + $0x20] sm:$0xff]  ;;  %v380_v5 = vld [vmem:[%s570_s0 + $0x28] sm:$0xff]  ;;  %v70_v6 = vmul.f32 %v355_v0, %v355_v0  ;;  %v71_v7 = vmul.f32 %v360_v1, %v360_v1  ;;  %v72_v8 = vmul.f32 %v365_v2, %v365_v2 }
   0x3   :  { %v391_v9 = vld [vmem:[%s570_s0 + $0x30] sm:$0xff]  ;;  %v396_v10 = vld [vmem:[%s570_s0 + $0x38] sm:$0xff]  ;;  %v401_v11 = vld [vmem:[%s570_s0 + $0x40] sm:$0xff]  ;;  %v30_v12 = vadd.f32 %v375_v4, %v355_v0  ;;  %v39_v13 = vadd.f32 %v380_v5, %v360_v1  ;;  %v73_v14 = vmul.f32 %v370_v3, %v370_v3  ;;  %v74_v15 = vmul.f32 %v375_v4, %v375_v4 }
   0x4   :  { %v414_v16 = vld [vmem:[%s570_s0 + $0x48] sm:$0xff]  ;;  %v419_v17 = vld [vmem:[%s570_s0 + $0x50] sm:$0xff]  ;;  %v424_v18 = vld [vmem:[%s570_s0 + $0x58] sm:$0xff]  ;;  %v48_v19 = vadd.f32 %v391_v9, %v365_v2  ;;  %v57_v20 = vadd.f32 %v396_v10, %v370_v3  ;;  %v75_v21 = vmul.f32 %v380_v5, %v380_v5  ;;  %v76_v22 = vmul.f32 %v391_v9, %v391_v9 }
   0x5   :  { %v437_v23 = vld [vmem:[%s570_s0 + $0x60] sm:$0xff]  ;;  %v442_v24 = vld [vmem:[%s570_s0 + $0x68] sm:$0xff]  ;;  %v447_v25 = vld [vmem:[%s570_s0 + $0x70] sm:$0xff]  ;;  %v31_v26 = vadd.f32 %v30_v12, %v401_v11  ;;  %v40_v27 = vadd.f32 %v39_v13, %v414_v16  ;;  %v77_v28 = vmul.f32 %v396_v10, %v396_v10  ;;  %v78_v29 = vmul.f32 %v401_v11, %v401_v11 }
   0x6   :  { %v458_v30 = vld [vmem:[%s570_s0 + $0x78] sm:$0xff]  ;;  %v49_v31 = vadd.f32 %v48_v19, %v419_v17  ;;  %v58_v32 = vadd.f32 %v57_v20, %v424_v18  ;;  %v79_v33 = vmul.f32 %v414_v16, %v414_v16  ;;  %v80_v34 = vmul.f32 %v419_v17, %v419_v17 }
   0x7   :  { %v32_v35 = vadd.f32 %v31_v26, %v437_v23  ;;  %v41_v36 = vadd.f32 %v40_v27, %v442_v24  ;;  %v81_v37 = vmul.f32 %v424_v18, %v424_v18  ;;  %v82_v38 = vmul.f32 %v437_v23, %v437_v23 }
   0x8   :  { %v50_v39 = vadd.f32 %v49_v31, %v447_v25  ;;  %v59_v40 = vadd.f32 %v58_v32, %v458_v30  ;;  %v83_v41 = vmul.f32 %v442_v24, %v442_v24  ;;  %v84_v42 = vmul.f32 %v447_v25, %v447_v25 }
   0x9   :  { %v33_v43 = vrot.slane %v32_v35, 4  ;;  %v42_v44 = vrot.slane %v41_v36, 4  ;;  %v85_v45 = vmul.f32 %v458_v30, %v458_v30  ;;  %v86_v46 = vadd.f32 %v74_v15, %v70_v6 }
   0xa   :  { %v51_v47 = vrot.slane %v50_v39, 4  ;;  %v60_v48 = vrot.slane %v59_v40, 4  ;;  %v95_v49 = vadd.f32 %v75_v21, %v71_v7  ;;  %v104_v50 = vadd.f32 %v76_v22, %v72_v8 }
   0xb   :  { %v34_v51 = vadd.f32 %v33_v43, %v32_v35  ;;  %v43_v52 = vadd.f32 %v42_v44, %v41_v36  ;;  %v87_v53 = vadd.f32 %v86_v46, %v78_v29  ;;  %v113_v54 = vadd.f32 %v77_v28, %v73_v14 }
   0xc   :  { %v52_v55 = vadd.f32 %v51_v47, %v50_v39  ;;  %v61_v56 = vadd.f32 %v60_v48, %v59_v40  ;;  %v96_v57 = vadd.f32 %v95_v49, %v79_v33  ;;  %v105_v58 = vadd.f32 %v104_v50, %v80_v34 }
   0xd   :  { %v35_v59 = vrot.slane %v34_v51, 2  ;;  %v44_v60 = vrot.slane %v43_v52, 2  ;;  %v88_v61 = vadd.f32 %v87_v53, %v82_v38  ;;  %v114_v62 = vadd.f32 %v113_v54, %v81_v37 }
   0xe   :  { %v53_v63 = vrot.slane %v52_v55, 2  ;;  %v62_v12 = vrot.slane %v61_v56, 2  ;;  %v97_v13 = vadd.f32 %v96_v57, %v83_v41  ;;  %v106_v6 = vadd.f32 %v105_v58, %v84_v42 }
   0xf   :  { %v36_v15 = vadd.f32 %v35_v59, %v34_v51  ;;  %v45_v19 = vadd.f32 %v44_v60, %v43_v52  ;;  %v89_v7 = vrot.slane %v88_v61, 4  ;;  %v115_v8 = vadd.f32 %v114_v62, %v85_v45 }
  0x10   :  { %v54_v20 = vadd.f32 %v53_v63, %v52_v55  ;;  %v63_v21 = vadd.f32 %v62_v12, %v61_v56  ;;  %v98_v22 = vrot.slane %v97_v13, 4  ;;  %v107_v14 = vrot.slane %v106_v6, 4 }
  0x11   :  { %v37_v26 = vrot.slane %v36_v15, 1  ;;  %v46_v27 = vrot.slane %v45_v19, 1  ;;  %v90_v28 = vadd.f32 %v89_v7, %v88_v61  ;;  %v116_v29 = vrot.slane %v115_v8, 4 }
  0x12   :  { %v55_v31 = vrot.slane %v54_v20, 1  ;;  %v64_v32 = vrot.slane %v63_v21, 1  ;;  %v99_v33 = vadd.f32 %v98_v22, %v97_v13  ;;  %v108_v34 = vadd.f32 %v107_v14, %v106_v6 }
  0x13   :  { %v38_v35 = vadd.f32 %v37_v26, %v36_v15  ;;  %v47_v36 = vadd.f32 %v46_v27, %v45_v19  ;;  %v91_v37 = vrot.slane %v90_v28, 2  ;;  %v117_v38 = vadd.f32 %v116_v29, %v115_v8 }
  0x14   :  { %v56_v39 = vadd.f32 %v55_v31, %v54_v20  ;;  %v65_v40 = vadd.f32 %v64_v32, %v63_v21  ;;  %v100_v41 = vrot.slane %v99_v33, 2  ;;  %v109_v42 = vrot.slane %v108_v34, 2 }
  0x15   :  { %v480_v43 = vmul.f32 0.03125, %v38_v35  ;;  %v92_v44 = vadd.f32 %v91_v37, %v90_v28  ;;  %v118_v45 = vrot.slane %v117_v38, 2  ;;  %v482_v46 = vmul.f32 0.03125, %v47_v36 }
  0x16   :  { %v484_v47 = vmul.f32 0.03125, %v56_v39  ;;  %v101_v48 = vadd.f32 %v100_v41, %v99_v33  ;;  %v110_v49 = vadd.f32 %v109_v42, %v108_v34  ;;  %v486_v50 = vmul.f32 0.03125, %v65_v40 }
  0x17   :  { %v93_v51 = vrot.slane %v92_v44, 1  ;;  %v119_v52 = vadd.f32 %v118_v45, %v117_v38  ;;  %v126_v57 = vmul.f32 %v480_v43, %v480_v43  ;;  %v127_v60 = vmul.f32 %v482_v46, %v482_v46 }
  0x18   :  { %v102_v53 = vrot.slane %v101_v48, 1  ;;  %v111_v54 = vrot.slane %v110_v49, 1  ;;  %v128_v61 = vmul.f32 %v484_v47, %v484_v47  ;;  %v129_v12 = vmul.f32 %v486_v50, %v486_v50 }
  0x19   :  { %v94_v55 = vadd.f32 %v93_v51, %v92_v44  ;;  %v120_v56 = vrot.slane %v119_v52, 1  ;;  %v331_v32 = vmov 1966171168   ;;  %v156_v34 = vlaneseq  ;;  %v138_v51 = vld [vmem:[%s571_s1] sm:$0xf] }
  0x1a   :  { %v103_v58 = vadd.f32 %v102_v53, %v101_v48  ;;  %v112_v59 = vadd.f32 %v111_v54, %v110_v49  ;;  %v154_v33 = vunpack.c.l.s4 %v331_v32 }
  0x1b   :  { %v121_v62 = vadd.f32 %v120_v56, %v119_v52  ;;  %v122_v63 = vmul.f32 0.03125, %v94_v55  ;;  %v157_v36 = vshrl.u32 %v156_v34, 7 }
  0x1c   :  { %v123_v13 = vmul.f32 0.03125, %v103_v58  ;;  %v124_v6 = vmul.f32 0.03125, %v112_v59  ;;  %v155_v35 = vunpack.c.0.s8 %v154_v33 }
  0x1d   :  { %v125_v15 = vmul.f32 0.03125, %v121_v62  ;;  %v130_v19 = vsub.f32 %v122_v63, %v126_v57  ;;  %v181_v52 = vsub.s32 0, %v157_v36  ;;  %v185_v54 = vsub.s32 1, %v157_v36 }
  0x1e   :  { %v131_v7 = vsub.f32 %v123_v13, %v127_v60  ;;  %v132_v8 = vsub.f32 %v124_v6, %v128_v61  ;;  %v158_v38 = vsub.s32 %v155_v35, %v157_v36  ;;  %v189_v55 = vsub.s32 2, %v157_v36 }
  0x1f   :  { %v133_v20 = vsub.f32 %v125_v15, %v129_v12  ;;  %v134_v21 = vmax.f32 %v130_v19, 0.0  ;;  %v193_v56 = vsub.s32 3, %v157_v36 }
  0x20   :  { %v135_v22 = vmax.f32 %v131_v7, 0.0  ;;  %v136_v14 = vmax.f32 %v132_v8, 0.0 }
  0x21   :  { %v137_v26 = vmax.f32 %v133_v20, 0.0  ;;  %v139_v27 = vadd.f32 1e-05, %v134_v21  ;;  %v177_v20 = vld [vmem:[%s572_s2] sm:$0xf] }
  0x22   :  { %v140_v28 = vadd.f32 1e-05, %v135_v22  ;;  %v141_v29 = vadd.f32 1e-05, %v136_v14 }
  0x23   :  { %v142_v31 = vadd.f32 1e-05, %v137_v26  ;;  %323 = vrsqrt.f32 %v139_v27 }
  0x24   :  { %325 = vrsqrt.f32 %v140_v28 }
  0x25   :  { %327 = vrsqrt.f32 %v141_v29 }
  0x26   :  { %329 = vrsqrt.f32 %v142_v31 }
  0x2d   :  { %v324_v37 = vpop.eup %323 }
  0x2e   :  { %v326_v39 = vpop.eup %325 }
  0x2f   :  { %v328_v40 = vpop.eup %327  ;;  %v151_v41 = vcombine.low %v324_v37, %v326_v39 }
  0x30   :  { %v330_v42 = vpop.eup %329 }
  0x31   :  { %v152_v44 = vcombine.low %v328_v40, %v330_v42  ;;  %v159_v45 = vrot.slane %v151_v41, %v158_v38 }
  0x33   :  { %v166_v48 = vrot.slane %v152_v44, %v158_v38 }
  0x35   :  { %v167_v49 = vcombine.low %v159_v45, %v166_v48 }
  0x37   :  { %v174_v53 = vrot.slane %v167_v49, %v158_v38 }
  0x39   :  { %v176_v57 = vmul.f32 %v174_v53, %v138_v51 }
  0x3b   :  { %v182_v58 = vrot.slane %v176_v57, %v181_v52  ;;  %v186_v59 = vrot.slane %v176_v57, %v185_v54  ;;  %v190_v60 = vrot.slane %v176_v57, %v189_v55  ;;  %v194_v61 = vrot.slane %v176_v57, %v193_v56 }
  0x3d   :  { %v199_v62 = vmul.f32 %v182_v58, %v480_v43  ;;  %v200_v63 = vmul.f32 %v186_v59, %v482_v46  ;;  %v201_v12 = vmul.f32 %v190_v60, %v484_v47  ;;  %v202_v13 = vmul.f32 %v194_v61, %v486_v50 }
  0x3e   :  { %v233_v22 = vmul.f32 %v182_v58, %v355_v0  ;;  %v234_v43 = vmul.f32 %v186_v59, %v360_v1  ;;  %v235_v46 = vmul.f32 %v190_v60, %v365_v2  ;;  %v236_v47 = vmul.f32 %v194_v61, %v370_v3 }
  0x3f   :  { %v207_v6 = vcombine.low %v199_v62, %v200_v63  ;;  %v208_v15 = vcombine.low %v201_v12, %v202_v13  ;;  %v237_v50 = vmul.f32 %v182_v58, %v375_v4  ;;  %v238_v26 = vmul.f32 %v186_v59, %v380_v5 }
  0x40   :  { %v239_v27 = vmul.f32 %v190_v60, %v391_v9  ;;  %v240_v28 = vmul.f32 %v194_v61, %v396_v10  ;;  %v241_v29 = vmul.f32 %v182_v58, %v401_v11  ;;  %v242_v31 = vmul.f32 %v186_v59, %v414_v16 }
  0x41   :  { %v215_v19 = vrot.slane %v207_v6, %v158_v38  ;;  %v222_v7 = vrot.slane %v208_v15, %v158_v38  ;;  %v243_v0 = vmul.f32 %v190_v60, %v419_v17  ;;  %v244_v1 = vmul.f32 %v194_v61, %v424_v18 }
  0x42   :  { %v245_v4 = vmul.f32 %v182_v58, %v437_v23  ;;  %v246_v5 = vmul.f32 %v186_v59, %v442_v24  ;;  %v247_v9 = vmul.f32 %v190_v60, %v447_v25  ;;  %v248_v10 = vmul.f32 %v194_v61, %v458_v30 }
  0x43   :  { %v223_v8 = vcombine.low %v215_v19, %v222_v7 }
  0x45   :  { %v230_v21 = vrot.slane %v223_v8, %v158_v38 }
  0x47   :  { %v232_v14 = vsub.f32 %v177_v20, %v230_v21 }
  0x49   :  { %v253_v2 = vrot.slane %v232_v14, %v181_v52  ;;  %v257_v32 = vrot.slane %v232_v14, %v185_v54  ;;  %v261_v3 = vrot.slane %v232_v14, %v189_v55  ;;  %v265_v33 = vrot.slane %v232_v14, %v193_v56 }
  0x4b   :  { %v270_v34 = vadd.f32 %v253_v2, %v233_v22  ;;  %v271_v11 = vadd.f32 %v257_v32, %v234_v43  ;;  %v272_v35 = vadd.f32 %v261_v3, %v235_v46  ;;  %v273_v16 = vadd.f32 %v265_v33, %v236_v47 }
  0x4c   :  { %v274_v36 = vadd.f32 %v253_v2, %v237_v50  ;;  %v275_v17 = vadd.f32 %v257_v32, %v238_v26  ;;  %v276_v37 = vadd.f32 %v261_v3, %v239_v27  ;;  %v277_v18 = vadd.f32 %v265_v33, %v240_v28 }
  0x4d   :  { %v286_v38 = vmax.f32 %v270_v34, 0.0  ;;  %v287_v39 = vmax.f32 %v271_v11, 0.0  ;;  %v288_v40 = vmax.f32 %v272_v35, 0.0  ;;  %v289_v41 = vmax.f32 %v273_v16, 0.0 }
  0x4e   :  { %v290_v42 = vmax.f32 %v274_v36, 0.0  ;;  %v291_v23 = vmax.f32 %v275_v17, 0.0  ;;  %v292_v44 = vmax.f32 %v276_v37, 0.0  ;;  %v293_v24 = vmax.f32 %v277_v18, 0.0 }
  0x4f   :  { %302 = vst [vmem:[%s573_s3] sm:$0xff] %v286_v38  ;;  %303 = vst [vmem:[%s573_s3 + $0x8] sm:$0xff] %v287_v39  ;;  %v278_v25 = vadd.f32 %v253_v2, %v241_v29  ;;  %v279_v30 = vadd.f32 %v257_v32, %v242_v31  ;;  %v280_v45 = vadd.f32 %v261_v3, %v243_v0 }
  0x50   :  { %304 = vst [vmem:[%s573_s3 + $0x10] sm:$0xff] %v288_v40  ;;  %305 = vst [vmem:[%s573_s3 + $0x18] sm:$0xff] %v289_v41  ;;  %v281_v48 = vadd.f32 %v265_v33, %v244_v1  ;;  %v282_v49 = vadd.f32 %v253_v2, %v245_v4  ;;  %v283_v51 = vadd.f32 %v257_v32, %v246_v5 }
  0x51   :  { %306 = vst [vmem:[%s573_s3 + $0x20] sm:$0xff] %v290_v42  ;;  %307 = vst [vmem:[%s573_s3 + $0x28] sm:$0xff] %v291_v23  ;;  %v284_v52 = vadd.f32 %v261_v3, %v247_v9  ;;  %v285_v53 = vadd.f32 %v265_v33, %v248_v10  ;;  %v294_v54 = vmax.f32 %v278_v25, 0.0  ;;  %v295_v55 = vmax.f32 %v279_v30, 0.0 }
  0x52   :  { %308 = vst [vmem:[%s573_s3 + $0x30] sm:$0xff] %v292_v44  ;;  %309 = vst [vmem:[%s573_s3 + $0x38] sm:$0xff] %v293_v24  ;;  %v296_v56 = vmax.f32 %v280_v45, 0.0  ;;  %v297_v57 = vmax.f32 %v281_v48, 0.0  ;;  %v298_v58 = vmax.f32 %v282_v49, 0.0  ;;  %v299_v59 = vmax.f32 %v283_v51, 0.0 }
  0x53   :  { %v300_v60 = vmax.f32 %v284_v52, 0.0  ;;  %v301_v61 = vmax.f32 %v285_v53, 0.0  ;;  %310 = vst [vmem:[%s573_s3 + $0x40] sm:$0xff] %v294_v54  ;;  %311 = vst [vmem:[%s573_s3 + $0x48] sm:$0xff] %v295_v55 }
  0x54   :  { %312 = vst [vmem:[%s573_s3 + $0x50] sm:$0xff] %v296_v56  ;;  %313 = vst [vmem:[%s573_s3 + $0x58] sm:$0xff] %v297_v57 }
  0x55   :  { %314 = vst [vmem:[%s573_s3 + $0x60] sm:$0xff] %v298_v58  ;;  %315 = vst [vmem:[%s573_s3 + $0x68] sm:$0xff] %v299_v59 }
  0x56   :  { %316 = vst [vmem:[%s573_s3 + $0x70] sm:$0xff] %v300_v60  ;;  %317 = vst [vmem:[%s573_s3 + $0x78] sm:$0xff] %v301_v61 }

// kernel: generator_forward.6
= control target key start
LH: loop header
LB: loop body
LE: loop exit
PB: predicated region body
PF: predicated region fallthrough
CT: control target
= control target key end

     0   :  { %s3551_s15 = smov 0   ;;  %s4203_s0 = inlined_call_operand.vmem [shape: bf16[4,32,2048], index: 0, kind: input, shape index: {}]   ;;  %s4204_s1 = inlined_call_operand.vmem [shape: bf16[4,2048,256], index: 1, kind: input, shape index: {}]   ;;  %s4205_s2 = inlined_call_operand.vmem [shape: f32[1,256], index: 2, kind: input, shape index: {}]   ;;  %s4206_s3 = inlined_call_operand.vmem [shape: f32[1,256], index: 3, kind: input, shape index: {}]   ;;  %s4207_s4 = inlined_call_operand.vmem [shape: f32[4,32,256], index: 4, kind: output, shape index: {}]  }
   0x1 LB: > { %s3557_s16 = sadd.s32 4294967295, %s3522_s15   ;;  %p2714_p0 = scmp.ge.s32.totalorder %s3522_s15, 1  ;;  %s3522_s15 = sphi %s3551_s15, %s14_s15  }
   0x2   : > { %p167_p1 = scmp.lt.s32.totalorder %s3522_s15, 5 }
   0x4   : > { %p168_p2 = pnand %p2714_p0, %p167_p1 }
   0x5   : > { %p193_p3 = scmp.lt.s32.totalorder (!%p168_p2), %s3557_s16, 3  ;;  %p2719_p4 = scmp.ne.s32.totalorder (!%p168_p2), %s3557_s16, 0 }
   0x6   : > { %171 = sbr.rel (%p168_p2) target bundleno = 588 (0x24c), region = 36 }
   0xd   : > { %s194_s17 = scalar_select %p193_p3, %s3557_s16, 3 }
   0xe   : > { %206 = sbr.rel (%p2719_p4) target bundleno = 21 (0x15), region = 40  ;;  %v207_v0 = vlaneseq (!%p2719_p4)  ;;  %v3524_v1 = vmov (!%p2719_p4), 0.0  }
   0xf   : > { %s3061_s18 = sshll.u32 %s194_s17, 8  ;;  %s3062_s19 = sshll.u32 %s194_s17, 11 }
  0x10   : > { %s3566_s22 = scalar_lea.vmem %s4203_s0, %s3061_s18  ;;  %s3571_s25 = scalar_lea.vmem %s4204_s1, %s3062_s19  ;;  %vm209_vm0 = vcmp.lt.s32.totalorder (!%p2719_p4), %v207_v0, 256 }
  0x11   : > { %211 = vst.msk [vmem:[#allocation2] sm:$0x3] (!%p2719_p4), %vm209_vm0, %v3524_v1  ;;  %212 = vst.msk [vmem:[#allocation3] sm:$0x3] (!%p2719_p4), %vm209_vm0, %v3524_v1 }
  0x15 PF: > { %v3130_v2 = vld [vmem:[%s3571_s25 + $0x4] ss:$8 sps:$4 sm:$0xff]   ;;  %v3134_v4 = vld [vmem:[%s3571_s25] ss:$8 sps:$4 sm:$0xff]   ;;  %v3136_v6 = vld [vmem:[%s3571_s25 + $0x14] ss:$8 sps:$4 sm:$0xff]  }
  0x16   : > { %v3132_v3 = vld [vmem:[%s3571_s25 + $0x404] ss:$8 sps:$4 sm:$0xff]   ;;  %1941 = vmatprep.subr.bf16.mxu1 %v3130_v2  ;;  %v3135_v5 = vld [vmem:[%s3571_s25 + $0x400] ss:$8 sps:$4 sm:$0xff]   ;;  %v3138_v7 = vld [vmem:[%s3571_s25 + $0x414] ss:$8 sps:$4 sm:$0xff]  }
  0x17   : > { %2153 = vmatprep.subr.bf16.mxu0 %v3132_v3  ;;  %1942 = vmatpush1.bf16.msra.mxu1 %v3134_v4  ;;  %v3140_v8 = vld [vmem:[%s3571_s25 + $0x10] ss:$8 sps:$4 sm:$0xff]   ;;  %v3142_v10 = vld [vmem:[%s3571_s25 + $0x24] ss:$8 sps:$4 sm:$0xff]   ;;  %v3146_v12 = vld [vmem:[%s3571_s25 + $0x20] ss:$8 sps:$4 sm:$0xff]  }
  0x18   : > { %2154 = vmatpush1.bf16.msra.mxu0 %v3135_v5  ;;  %1943 = vmatprep.subr.bf16.mxu1 %v3136_v6  ;;  %v3141_v9 = vld [vmem:[%s3571_s25 + $0x410] ss:$8 sps:$4 sm:$0xff]   ;;  %v3144_v11 = vld [vmem:[%s3571_s25 + $0x424] ss:$8 sps:$4 sm:$0xff]   ;;  %v3147_v13 = vld [vmem:[%s3571_s25 + $0x420] ss:$8 sps:$4 sm:$0xff]  }
  0x19   : > { %2155 = vmatprep.subr.bf16.mxu0 %v3138_v7  ;;  %v3148_v14 = vld [vmem:[%s3571_s25 + $0x34] ss:$8 sps:$4 sm:$0xff]   ;;  %v3152_v16 = vld [vmem:[%s3571_s25 + $0x30] ss:$8 sps:$4 sm:$0xff]   ;;  %v3154_v18 = vld [vmem:[%s3571_s25 + $0x44] ss:$8 sps:$4 sm:$0xff]  }
  0x1a   : > { %v3150_v15 = vld [vmem:[%s3571_s25 + $0x434] ss:$8 sps:$4 sm:$0xff]   ;;  %v3153_v17 = vld [vmem:[%s3571_s25 + $0x430] ss:$8 sps:$4 sm:$0xff]   ;;  %v3156_v19 = vld [vmem:[%s3571_s25 + $0x444] ss:$8 sps:$4 sm:$0xff]  }
  0x1b   : > { %1944 = vmatpush1.bf16.msra.mxu1 %v3140_v8  ;;  %v3158_v20 = vld [vmem:[%s3571_s25 + $0x40] ss:$8 sps:$4 sm:$0xff]   ;;  %v3160_v22 = vld [vmem:[%s3571_s25 + $0x54] ss:$8 sps:$4 sm:$0xff]   ;;  %v3164_v24 = vld [vmem:[%s3571_s25 + $0x50] ss:$8 sps:$4 sm:$0xff]  }
  0x1c   : > { %2156 = vmatpush1.bf16.msra.mxu0 %v3141_v9  ;;  %1945 = vmatprep.subr.bf16.mxu1 %v3142_v10  ;;  %v3159_v21 = vld [vmem:[%s3571_s25 + $0x440] ss:$8 sps:$4 sm:$0xff]   ;;  %v3162_v23 = vld [vmem:[%s3571_s25 + $0x454] ss:$8 sps:$4 sm:$0xff]   ;;  %v3165_v25 = vld [vmem:[%s3571_s25 + $0x450] ss:$8 sps:$4 sm:$0xff]  }
  0x1d   : > { %2157 = vmatprep.subr.bf16.mxu0 %v3144_v11  ;;  %v3166_v26 = vld [vmem:[%s3571_s25 + $0x64] ss:$8 sps:$4 sm:$0xff]   ;;  %v3170_v28 = vld [vmem:[%s3571_s25 + $0x60] ss:$8 sps:$4 sm:$0xff]   ;;  %v3172_v30 = vld [vmem:[%s3571_s25 + $0x74] ss:$8 sps:$4 sm:$0xff]  }
  0x1e   : > { %v3168_v27 = vld [vmem:[%s3571_s25 + $0x464] ss:$8 sps:$4 sm:$0xff]   ;;  %v3171_v29 = vld [vmem:[%s3571_s25 + $0x460] ss:$8 sps:$4 sm:$0xff]   ;;  %v3174_v31 = vld [vmem:[%s3571_s25 + $0x474] ss:$8 sps:$4 sm:$0xff]  }
  0x1f   : > { %1946 = vmatpush1.bf16.msra.mxu1 %v3146_v12  ;;  %v3176_v32 = vld [vmem:[%s3571_s25 + $0x70] ss:$8 sps:$4 sm:$0xff]   ;;  %v3178_v34 = vld [vmem:[%s3571_s25 + $0x84] ss:$8 sps:$4 sm:$0xff]   ;;  %v3182_v36 = vld [vmem:[%s3571_s25 + $0x80] ss:$8 sps:$4 sm:$0xff]  }
  0x20   : > { %2158 = vmatpush1.bf16.msra.mxu0 %v3147_v13  ;;  %1947 = vmatprep.subr.bf16.mxu1 %v3148_v14  ;;  %v3177_v33 = vld [vmem:[%s3571_s25 + $0x470] ss:$8 sps:$4 sm:$0xff]   ;;  %v3180_v35 = vld [vmem:[%s3571_s25 + $0x484] ss:$8 sps:$4 sm:$0xff]   ;;  %v3183_v37 = vld [vmem:[%s3571_s25 + $0x480] ss:$8 sps:$4 sm:$0xff]  }
  0x21   : > { %2159 = vmatprep.subr.bf16.mxu0 %v3150_v15  ;;  %v3184_v38 = vld [vmem:[%s3571_s25 + $0x94] ss:$8 sps:$4 sm:$0xff]   ;;  %v3188_v40 = vld [vmem:[%s3571_s25 + $0x90] ss:$8 sps:$4 sm:$0xff]   ;;  %v3190_v42 = vld [vmem:[%s3571_s25 + $0xa4] ss:$8 sps:$4 sm:$0xff]  }
  0x22   : > { %v3186_v39 = vld [vmem:[%s3571_s25 + $0x494] ss:$8 sps:$4 sm:$0xff]   ;;  %v3189_v41 = vld [vmem:[%s3571_s25 + $0x490] ss:$8 sps:$4 sm:$0xff]   ;;  %v3192_v43 = vld [vmem:[%s3571_s25 + $0x4a4] ss:$8 sps:$4 sm:$0xff]  }
  0x23   : > { %1948 = vmatpush1.bf16.msra.mxu1 %v3152_v16  ;;  %v3194_v44 = vld [vmem:[%s3571_s25 + $0xa0] ss:$8 sps:$4 sm:$0xff]   ;;  %v3196_v46 = vld [vmem:[%s3571_s25 + $0xb4] ss:$8 sps:$4 sm:$0xff]   ;;  %v3200_v48 = vld [vmem:[%s3571_s25 + $0xb0] ss:$8 sps:$4 sm:$0xff]  }
  0x24   : > { %2160 = vmatpush1.bf16.msra.mxu0 %v3153_v17  ;;  %1949 = vmatprep.subr.bf16.mxu1 %v3154_v18  ;;  %v3195_v45 = vld [vmem:[%s3571_s25 + $0x4a0] ss:$8 sps:$4 sm:$0xff]   ;;  %v3198_v47 = vld [vmem:[%s3571_s25 + $0x4b4] ss:$8 sps:$4 sm:$0xff]   ;;  %v3201_v49 = vld [vmem:[%s3571_s25 + $0x4b0] ss:$8 sps:$4 sm:$0xff]  }
  0x25   : > { %2161 = vmatprep.subr.bf16.mxu0 %v3156_v19  ;;  %v213_v50 = vld [vmem:[%s3566_s22] sm:$0xff]  ;;  %v3208_v60 = vld [vmem:[%s3571_s25 + $0xd4] ss:$8 sps:$4 sm:$0xff]   ;;  %v3212_v62 = vld [vmem:[%s3571_s25 + $0xd0] ss:$8 sps:$4 sm:$0xff]   ;;  %s3063_s26 = sshll.u32 %s3557_s16, 6 }
  0x26   : > { %v221_v51 = vld [vmem:[%s3566_s22 + $0x40] sm:$0xff]  ;;  %v3210_v61 = vld [vmem:[%s3571_s25 + $0x4d4] ss:$8 sps:$4 sm:$0xff]   ;;  %v3213_v63 = vld [vmem:[%s3571_s25 + $0x4d0] ss:$8 sps:$4 sm:$0xff]   ;;  %s3914_s29 = scalar_lea.vmem %s4207_s4, %s3063_s26  ;;  %p3010_p5 = scmp.ne.s32.totalorder %s3557_s16, 3 }
  0x27   : > { %1950 = vmatpush1.bf16.msra.mxu1 %v3158_v20  ;;  %v3202_v52 = vld [vmem:[%s3571_s25 + $0xc4] ss:$8 sps:$4 sm:$0xff]   ;;  %v2721_v54 = vcombine.high %v213_v50, %v221_v51  ;;  %v3206_v58 = vld [vmem:[%s3571_s25 + $0xc0] ss:$8 sps:$4 sm:$0xff]   ;;  %v3220_v4 = vld [vmem:[%s3571_s25 + $0xf4] ss:$8 sps:$4 sm:$0xff]   ;;  %v2720_v10 = vcombine.low %v213_v50, %v221_v51 }
  0x28   : > { %2162 = vmatpush1.bf16.msra.mxu0 %v3159_v21  ;;  %1951 = vmatprep.subr.bf16.mxu1 %v3160_v22  ;;  %v3204_v53 = vld [vmem:[%s3571_s25 + $0x4c4] ss:$8 sps:$4 sm:$0xff]   ;;  %v3207_v59 = vld [vmem:[%s3571_s25 + $0x4c0] ss:$8 sps:$4 sm:$0xff]   ;;  %v3222_v5 = vld [vmem:[%s3571_s25 + $0x4f4] ss:$8 sps:$4 sm:$0xff]  }
  0x29   : > { %2163 = vmatprep.subr.bf16.mxu0 %v3162_v23  ;;  %v217_v55 = vld [vmem:[%s3566_s22 + $0x20] sm:$0xff]  ;;  %1973 = vmatprep.mubr.bf16.mxu1 %v2721_v54  ;;  %v3224_v6 = vld [vmem:[%s3571_s25 + $0xf0] ss:$8 sps:$4 sm:$0xff]   ;;  %v3234_v14 = vld [vmem:[%s3571_s25 + $0x114] ss:$8 sps:$4 sm:$0xff]  }
  0x2a   : > { %v225_v56 = vld [vmem:[%s3566_s22 + $0x60] sm:$0xff]  ;;  %v3225_v7 = vld [vmem:[%s3571_s25 + $0x4f0] ss:$8 sps:$4 sm:$0xff]   ;;  %v3237_v15 = vld [vmem:[%s3571_s25 + $0x514] ss:$8 sps:$4 sm:$0xff]  }
  0x2b   : > { %1952 = vmatpush1.bf16.msra.mxu1 %v3164_v24  ;;  %v2729_v57 = vcombine.high %v217_v55, %v225_v56  ;;  %v3214_v0 = vld [vmem:[%s3571_s25 + $0xe4] ss:$8 sps:$4 sm:$0xff]   ;;  %v3218_v2 = vld [vmem:[%s3571_s25 + $0xe0] ss:$8 sps:$4 sm:$0xff]   ;;  %v2728_v12 = vcombine.low %v217_v55, %v225_v56  ;;  %v3232_v16 = vld [vmem:[%s3571_s25 + $0x110] ss:$8 sps:$4 sm:$0xff]  }
  0x2c   : > { %2164 = vmatpush1.bf16.msra.mxu0 %v3165_v25  ;;  %1953 = vmatprep.subr.bf16.mxu1 %v3166_v26  ;;  %v3216_v1 = vld [vmem:[%s3571_s25 + $0x4e4] ss:$8 sps:$4 sm:$0xff]   ;;  %v3219_v3 = vld [vmem:[%s3571_s25 + $0x4e0] ss:$8 sps:$4 sm:$0xff]   ;;  %v3235_v17 = vld [vmem:[%s3571_s25 + $0x510] ss:$8 sps:$4 sm:$0xff]  }
  0x2d   : > { %2165 = vmatprep.subr.bf16.mxu0 %v3168_v27  ;;  %2185 = vmatprep.mubr.bf16.mxu0 %v2729_v57  ;;  %v3228_v8 = vld [vmem:[%s3571_s25 + $0x104] ss:$8 sps:$4 sm:$0xff]   ;;  %v3226_v11 = vld [vmem:[%s3571_s25 + $0x100] ss:$8 sps:$4 sm:$0xff]   ;;  %v3246_v22 = vld [vmem:[%s3571_s25 + $0x134] ss:$8 sps:$4 sm:$0xff]  }
  0x2e   : > { %v3231_v9 = vld [vmem:[%s3571_s25 + $0x504] ss:$8 sps:$4 sm:$0xff]   ;;  %v3229_v13 = vld [vmem:[%s3571_s25 + $0x500] ss:$8 sps:$4 sm:$0xff]   ;;  %v3249_v23 = vld [vmem:[%s3571_s25 + $0x534] ss:$8 sps:$4 sm:$0xff]  }
  0x2f   : > { %1954 = vmatpush1.bf16.msra.mxu1 %v3170_v28  ;;  %v3240_v18 = vld [vmem:[%s3571_s25 + $0x124] ss:$8 sps:$4 sm:$0xff]   ;;  %v3238_v20 = vld [vmem:[%s3571_s25 + $0x120] ss:$8 sps:$4 sm:$0xff]   ;;  %v3244_v24 = vld [vmem:[%s3571_s25 + $0x130] ss:$8 sps:$4 sm:$0xff]  }
  0x30   : > { %2166 = vmatpush1.bf16.msra.mxu0 %v3171_v29  ;;  %1955 = vmatprep.subr.bf16.mxu1 %v3172_v30  ;;  %v3243_v19 = vld [vmem:[%s3571_s25 + $0x524] ss:$8 sps:$4 sm:$0xff]   ;;  %v3241_v21 = vld [vmem:[%s3571_s25 + $0x520] ss:$8 sps:$4 sm:$0xff]   ;;  %v3247_v25 = vld [vmem:[%s3571_s25 + $0x530] ss:$8 sps:$4 sm:$0xff]  }
  0x31   : > { %2167 = vmatprep.subr.bf16.mxu0 %v3174_v31  ;;  %v3252_v26 = vld [vmem:[%s3571_s25 + $0x144] ss:$8 sps:$4 sm:$0xff]   ;;  %v3250_v28 = vld [vmem:[%s3571_s25 + $0x140] ss:$8 sps:$4 sm:$0xff]   ;;  %v3258_v30 = vld [vmem:[%s3571_s25 + $0x154] ss:$8 sps:$4 sm:$0xff]  }
  0x32   : > { %v3255_v27 = vld [vmem:[%s3571_s25 + $0x544] ss:$8 sps:$4 sm:$0xff]   ;;  %v3253_v29 = vld [vmem:[%s3571_s25 + $0x540] ss:$8 sps:$4 sm:$0xff]   ;;  %v3261_v31 = vld [vmem:[%s3571_s25 + $0x554] ss:$8 sps:$4 sm:$0xff]  }
  0x33   : > { %1956 = vmatpush1.bf16.msra.mxu1 %v3176_v32  ;;  %v229_v32 = vld [vmem:[%s3566_s22 + $0x80] sm:$0xff]  ;;  %v3685_v51 = vld [vmem:[%s3566_s22 + $0x28] sm:$0xff]  ;;  %v3271_v54 = vld [vmem:[%s3571_s25 + $0x570] ss:$8 sps:$4 sm:$0xff]  }
  0x34   : > { %2168 = vmatpush1.bf16.msra.mxu0 %v3177_v33  ;;  %1957 = vmatprep.subr.bf16.mxu1 %v3178_v34  ;;  %v237_v33 = vld [vmem:[%s3566_s22 + $0xc0] sm:$0xff]  ;;  %v3256_v34 = vld [vmem:[%s3571_s25 + $0x150] ss:$8 sps:$4 sm:$0xff]  }
  0x35   : > { %2169 = vmatprep.subr.bf16.mxu0 %v3180_v35  ;;  %v2737_v35 = vcombine.high %v229_v32, %v237_v33  ;;  %v3276_v56 = vld [vmem:[%s3571_s25 + $0x184] ss:$8 sps:$4 sm:$0xff]  }
  0x36   : > { %v3279_v57 = vld [vmem:[%s3571_s25 + $0x584] ss:$8 sps:$4 sm:$0xff]  }
  0x37   : > { %1958 = vmatpush1.bf16.msra.mxu1 %v3182_v36  ;;  %v3259_v36 = vld [vmem:[%s3571_s25 + $0x550] ss:$8 sps:$4 sm:$0xff]  }
  0x38   : > { %2170 = vmatpush1.bf16.msra.mxu0 %v3183_v37  ;;  %1959 = vmatprep.subr.bf16.mxu1 %v3184_v38  ;;  %v233_v37 = vld [vmem:[%s3566_s22 + $0xa0] sm:$0xff] }
  0x39   : > { %2171 = vmatprep.subr.bf16.mxu0 %v3186_v39  ;;  %v241_v38 = vld [vmem:[%s3566_s22 + $0xe0] sm:$0xff]  ;;  %v2736_v39 = vcombine.low %v229_v32, %v237_v33  ;;  %v3330_v32 = vld [vmem:[%s3571_s25 + $0x214] ss:$8 sps:$4 sm:$0xff]  }
  0x3a   : > { %v3333_v33 = vld [vmem:[%s3571_s25 + $0x614] ss:$8 sps:$4 sm:$0xff]  }
  0x3b   : > { %1960 = vmatpush1.bf16.msra.mxu1 %v3188_v40  ;;  %v3264_v40 = vld [vmem:[%s3571_s25 + $0x164] ss:$8 sps:$4 sm:$0xff]  }
  0x3c   : > { %2172 = vmatpush1.bf16.msra.mxu0 %v3189_v41  ;;  %1961 = vmatprep.subr.bf16.mxu1 %v3190_v42  ;;  %v2745_v41 = vcombine.high %v233_v37, %v241_v38  ;;  %v2744_v42 = vcombine.low %v233_v37, %v241_v38  ;;  %v3328_v38 = vld [vmem:[%s3571_s25 + $0x210] ss:$8 sps:$4 sm:$0xff]  }
  0x3d   : > { %2173 = vmatprep.subr.bf16.mxu0 %v3192_v43  ;;  %v3267_v43 = vld [vmem:[%s3571_s25 + $0x564] ss:$8 sps:$4 sm:$0xff]  }
  0x3f   : > { %1962 = vmatpush1.bf16.msra.mxu1 %v3194_v44  ;;  %v3262_v44 = vld [vmem:[%s3571_s25 + $0x160] ss:$8 sps:$4 sm:$0xff]  }
  0x40   : > { %2174 = vmatpush1.bf16.msra.mxu0 %v3195_v45  ;;  %1963 = vmatprep.subr.bf16.mxu1 %v3196_v46  ;;  %v3265_v45 = vld [vmem:[%s3571_s25 + $0x560] ss:$8 sps:$4 sm:$0xff]  }
  0x41   : > { %2175 = vmatprep.subr.bf16.mxu0 %v3198_v47  ;;  %v3675_v46 = vld [vmem:[%s3566_s22 + $0x8] sm:$0xff] }
  0x42   : > { %v3678_v47 = vld [vmem:[%s3566_s22 + $0x48] sm:$0xff] }
  0x43   : > { %1964 = vmatpush1.bf16.msra.mxu1 %v3200_v48  ;;  %v3270_v48 = vld [vmem:[%s3571_s25 + $0x174] ss:$8 sps:$4 sm:$0xff]   ;;  %v2723_v50 = vcombine.high %v3675_v46, %v3678_v47 }
  0x44   : > { %2176 = vmatpush1.bf16.msra.mxu0 %v3201_v49  ;;  %1965 = vmatprep.subr.bf16.mxu1 %v3202_v52  ;;  %v3273_v49 = vld [vmem:[%s3571_s25 + $0x574] ss:$8 sps:$4 sm:$0xff]   ;;  %v3688_v52 = vld [vmem:[%s3566_s22 + $0x68] sm:$0xff] }
  0x45   : > { %2177 = vmatprep.subr.bf16.mxu0 %v3204_v53  ;;  %v3268_v53 = vld [vmem:[%s3571_s25 + $0x170] ss:$8 sps:$4 sm:$0xff]   ;;  %v2731_v55 = vcombine.high %v3685_v51, %v3688_v52 }
  0x47   : > { %1966 = vmatpush1.bf16.msra.mxu1 %v3206_v58  ;;  %v3274_v58 = vld [vmem:[%s3571_s25 + $0x180] ss:$8 sps:$4 sm:$0xff]  }
  0x48   : > { %2178 = vmatpush1.bf16.msra.mxu0 %v3207_v59  ;;  %1967 = vmatprep.subr.bf16.mxu1 %v3208_v60  ;;  %v3277_v59 = vld [vmem:[%s3571_s25 + $0x580] ss:$8 sps:$4 sm:$0xff]   ;;  %v3282_v60 = vld [vmem:[%s3571_s25 + $0x194] ss:$8 sps:$4 sm:$0xff]  }
  0x49   : > { %2179 = vmatprep.subr.bf16.mxu0 %v3210_v61  ;;  %v3285_v61 = vld [vmem:[%s3571_s25 + $0x594] ss:$8 sps:$4 sm:$0xff]  }
  0x4b   : > { %1968 = vmatpush1.bf16.msra.mxu1 %v3212_v62  ;;  %v3280_v62 = vld [vmem:[%s3571_s25 + $0x190] ss:$8 sps:$4 sm:$0xff]  }
  0x4c   : > { %2180 = vmatpush1.bf16.msra.mxu0 %v3213_v63  ;;  %1969 = vmatprep.subr.bf16.mxu1 %v3214_v0  ;;  %v3283_v63 = vld [vmem:[%s3571_s25 + $0x590] ss:$8 sps:$4 sm:$0xff]   ;;  %v3288_v0 = vld [vmem:[%s3571_s25 + $0x1a4] ss:$8 sps:$4 sm:$0xff]  }
  0x4d   : > { %2181 = vmatprep.subr.bf16.mxu0 %v3216_v1  ;;  %v3291_v1 = vld [vmem:[%s3571_s25 + $0x5a4] ss:$8 sps:$4 sm:$0xff]  }
  0x4f   : > { %1970 = vmatpush1.bf16.msra.mxu1 %v3218_v2  ;;  %v3286_v2 = vld [vmem:[%s3571_s25 + $0x1a0] ss:$8 sps:$4 sm:$0xff]  }
  0x50   : > { %2182 = vmatpush1.bf16.msra.mxu0 %v3219_v3  ;;  %1971 = vmatprep.subr.bf16.mxu1 %v3220_v4  ;;  %v3289_v3 = vld [vmem:[%s3571_s25 + $0x5a0] ss:$8 sps:$4 sm:$0xff]   ;;  %v3294_v4 = vld [vmem:[%s3571_s25 + $0x1b4] ss:$8 sps:$4 sm:$0xff]  }
  0x51   : > { %2183 = vmatprep.subr.bf16.mxu0 %v3222_v5  ;;  %v3297_v5 = vld [vmem:[%s3571_s25 + $0x5b4] ss:$8 sps:$4 sm:$0xff]  }
  0x53   : > { %1972 = vmatpush1.bf16.msra.mxu1 %v3224_v6  ;;  %v3292_v6 = vld [vmem:[%s3571_s25 + $0x1b0] ss:$8 sps:$4 sm:$0xff]  }
  0x54   : > { %2184 = vmatpush1.bf16.msra.mxu0 %v3225_v7  ;;  %1994 = vmatprep.subr.bf16.mxu1 %v3228_v8  ;;  %v3295_v7 = vld [vmem:[%s3571_s25 + $0x5b0] ss:$8 sps:$4 sm:$0xff]   ;;  %v3300_v8 = vld [vmem:[%s3571_s25 + $0x1c4] ss:$8 sps:$4 sm:$0xff]  }
  0x55   : > { %2206 = vmatprep.subr.bf16.mxu0 %v3231_v9  ;;  %v3303_v9 = vld [vmem:[%s3571_s25 + $0x5c4] ss:$8 sps:$4 sm:$0xff]  }
  0x56   : > { %1974 = vmatmul.mubr.bf16.vlgmr.msra.gmra.mrb[0].mxu1 %v2720_v10  ;;  %v3298_v10 = vld [vmem:[%s3571_s25 + $0x1c0] ss:$8 sps:$4 sm:$0xff]  }
  0x57   : > { %2186 = vmatmul.mubr.bf16.vlgmr.msra.gmra.mrb[0].mxu0 %v2728_v12  ;;  %1995 = vmatpush1.bf16.msra.mxu1 %v3226_v11  ;;  %v3301_v11 = vld [vmem:[%s3571_s25 + $0x5c0] ss:$8 sps:$4 sm:$0xff]   ;;  %v3306_v12 = vld [vmem:[%s3571_s25 + $0x1d4] ss:$8 sps:$4 sm:$0xff]  }
  0x58   : > { %2207 = vmatpush1.bf16.msra.mxu0 %v3229_v13  ;;  %1996 = vmatprep.subr.bf16.mxu1 %v3234_v14  ;;  %v3309_v13 = vld [vmem:[%s3571_s25 + $0x5d4] ss:$8 sps:$4 sm:$0xff]   ;;  %v3304_v14 = vld [vmem:[%s3571_s25 + $0x1d0] ss:$8 sps:$4 sm:$0xff]  }
  0x59   : > { %2208 = vmatprep.subr.bf16.mxu0 %v3237_v15  ;;  %1983 = vmatprep.mubr.bf16.mxu1 %v2737_v35  ;;  %v3307_v15 = vld [vmem:[%s3571_s25 + $0x5d0] ss:$8 sps:$4 sm:$0xff]   ;;  %v242_v35 = vld [vmem:[%s3566_s22 + $0xe8] sm:$0xff] }
  0x5a   : > { %2195 = vmatprep.mubr.bf16.mxu0 %v2745_v41  ;;  %v3339_v41 = vld [vmem:[%s3571_s25 + $0x624] ss:$8 sps:$4 sm:$0xff]  }
  0x5b   : > { %1997 = vmatpush1.bf16.msra.mxu1 %v3232_v16  ;;  %v3312_v16 = vld [vmem:[%s3571_s25 + $0x1e4] ss:$8 sps:$4 sm:$0xff]  }
  0x5c   : > { %2209 = vmatpush1.bf16.msra.mxu0 %v3235_v17  ;;  %1998 = vmatprep.subr.bf16.mxu1 %v3240_v18  ;;  %v3315_v17 = vld [vmem:[%s3571_s25 + $0x5e4] ss:$8 sps:$4 sm:$0xff]   ;;  %v3310_v18 = vld [vmem:[%s3571_s25 + $0x1e0] ss:$8 sps:$4 sm:$0xff]  }
  0x5d   : > { %2210 = vmatprep.subr.bf16.mxu0 %v3243_v19  ;;  %v3313_v19 = vld [vmem:[%s3571_s25 + $0x5e0] ss:$8 sps:$4 sm:$0xff]  }
  0x5e   : > { %1984 = vmatmul.mubr.bf16.gmra.mrb[4].mxu1 %v2736_v39  ;;  %v3331_v39 = vld [vmem:[%s3571_s25 + $0x610] ss:$8 sps:$4 sm:$0xff]  }
  0x5f   : > { %1999 = vmatpush1.bf16.msra.mxu1 %v3238_v20  ;;  %2196 = vmatmul.mubr.bf16.gmra.mrb[4].mxu0 %v2744_v42  ;;  %v3318_v20 = vld [vmem:[%s3571_s25 + $0x1f4] ss:$8 sps:$4 sm:$0xff]   ;;  %v3334_v42 = vld [vmem:[%s3571_s25 + $0x220] ss:$8 sps:$4 sm:$0xff]  }
  0x60   : > { %2211 = vmatpush1.bf16.msra.mxu0 %v3241_v21  ;;  %2000 = vmatprep.subr.bf16.mxu1 %v3246_v22  ;;  %v3321_v21 = vld [vmem:[%s3571_s25 + $0x5f4] ss:$8 sps:$4 sm:$0xff]   ;;  %v3316_v22 = vld [vmem:[%s3571_s25 + $0x1f0] ss:$8 sps:$4 sm:$0xff]  }
  0x61   : > { %2212 = vmatprep.subr.bf16.mxu0 %v3249_v23  ;;  %2026 = vmatprep.mubr.bf16.mxu1 %v2723_v50  ;;  %v3319_v23 = vld [vmem:[%s3571_s25 + $0x5f0] ss:$8 sps:$4 sm:$0xff]   ;;  %v3342_v50 = vld [vmem:[%s3571_s25 + $0x234] ss:$8 sps:$4 sm:$0xff]  }
  0x62   : > { %2238 = vmatprep.mubr.bf16.mxu0 %v2731_v55  ;;  %v3343_v55 = vld [vmem:[%s3571_s25 + $0x630] ss:$8 sps:$4 sm:$0xff]  }
  0x63   : > { %2001 = vmatpush1.bf16.msra.mxu1 %v3244_v24  ;;  %v3324_v24 = vld [vmem:[%s3571_s25 + $0x204] ss:$8 sps:$4 sm:$0xff]  }
  0x64   : > { %2213 = vmatpush1.bf16.msra.mxu0 %v3247_v25  ;;  %2002 = vmatprep.subr.bf16.mxu1 %v3252_v26  ;;  %v3327_v25 = vld [vmem:[%s3571_s25 + $0x604] ss:$8 sps:$4 sm:$0xff]   ;;  %v3322_v26 = vld [vmem:[%s3571_s25 + $0x200] ss:$8 sps:$4 sm:$0xff]  }
  0x65   : > { %2214 = vmatprep.subr.bf16.mxu0 %v3255_v27  ;;  %v3325_v27 = vld [vmem:[%s3571_s25 + $0x600] ss:$8 sps:$4 sm:$0xff]  }
  0x67   : > { %2003 = vmatpush1.bf16.msra.mxu1 %v3250_v28  ;;  %v230_v28 = vld [vmem:[%s3566_s22 + $0x88] sm:$0xff] }
  0x68   : > { %2215 = vmatpush1.bf16.msra.mxu0 %v3253_v29  ;;  %2004 = vmatprep.subr.bf16.mxu1 %v3258_v30  ;;  %v2722_v29 = vcombine.low %v3675_v46, %v3678_v47  ;;  %v2730_v30 = vcombine.low %v3685_v51, %v3688_v52  ;;  %v3750_v47 = vld [vmem:[%s3566_s22 + $0x50] sm:$0xff] }
  0x69   : > { %2216 = vmatprep.subr.bf16.mxu0 %v3261_v31  ;;  %v238_v31 = vld [vmem:[%s3566_s22 + $0xc8] sm:$0xff]  ;;  %v3345_v51 = vld [vmem:[%s3571_s25 + $0x634] ss:$8 sps:$4 sm:$0xff]  }
  0x6b   : > { %2005 = vmatpush1.bf16.msra.mxu1 %v3256_v34  ;;  %v234_v34 = vld [vmem:[%s3566_s22 + $0xa8] sm:$0xff] }
  0x6c   : > { %2217 = vmatpush1.bf16.msra.mxu0 %v3259_v36  ;;  %2006 = vmatprep.subr.bf16.mxu1 %v3264_v40  ;;  %v2739_v36 = vcombine.high %v230_v28, %v238_v31  ;;  %v2747_v37 = vcombine.high %v234_v34, %v242_v35  ;;  %v3336_v40 = vld [vmem:[%s3571_s25 + $0x224] ss:$8 sps:$4 sm:$0xff]   ;;  %v2746_v46 = vcombine.low %v234_v34, %v242_v35  ;;  %v3406_v34 = vld [vmem:[%s3571_s25 + $0x2e0] ss:$8 sps:$4 sm:$0xff]  }
  0x6d   : > { %2218 = vmatprep.subr.bf16.mxu0 %v3267_v43  ;;  %v3337_v43 = vld [vmem:[%s3571_s25 + $0x620] ss:$8 sps:$4 sm:$0xff]  }
  0x6e   : > { %v3409_v35 = vld [vmem:[%s3571_s25 + $0x6e0] ss:$8 sps:$4 sm:$0xff]  }
  0x6f   : > { %2007 = vmatpush1.bf16.msra.mxu1 %v3262_v44  ;;  %v3747_v44 = vld [vmem:[%s3566_s22 + $0x10] sm:$0xff] }
  0x70   : > { %2219 = vmatpush1.bf16.msra.mxu0 %v3265_v45  ;;  %2008 = vmatprep.subr.bf16.mxu1 %v3270_v48  ;;  %v2738_v45 = vcombine.low %v230_v28, %v238_v31  ;;  %v3753_v48 = vld [vmem:[%s3566_s22 + $0x30] sm:$0xff]  ;;  %v2725_v52 = vcombine.high %v3747_v44, %v3750_v47 }
  0x71   : > { %2220 = vmatprep.subr.bf16.mxu0 %v3273_v49  ;;  %v3756_v49 = vld [vmem:[%s3566_s22 + $0x70] sm:$0xff] }
  0x72   : > { %v3402_v28 = vld [vmem:[%s3571_s25 + $0x2d4] ss:$8 sps:$4 sm:$0xff]   ;;  %v3403_v31 = vld [vmem:[%s3571_s25 + $0x6d0] ss:$8 sps:$4 sm:$0xff]  }
  0x73   : > { %2009 = vmatpush1.bf16.msra.mxu1 %v3268_v53  ;;  %v2733_v53 = vcombine.high %v3753_v48, %v3756_v49 }
  0x74   : > { %2221 = vmatpush1.bf16.msra.mxu0 %v3271_v54  ;;  %2010 = vmatprep.subr.bf16.mxu1 %v3276_v56  ;;  %v3340_v54 = vld [vmem:[%s3571_s25 + $0x230] ss:$8 sps:$4 sm:$0xff]   ;;  %v3348_v56 = vld [vmem:[%s3571_s25 + $0x244] ss:$8 sps:$4 sm:$0xff]  }
  0x75   : > { %2222 = vmatprep.subr.bf16.mxu0 %v3279_v57  ;;  %v3351_v57 = vld [vmem:[%s3571_s25 + $0x644] ss:$8 sps:$4 sm:$0xff]  }
  0x77   : > { %2011 = vmatpush1.bf16.msra.mxu1 %v3274_v58  ;;  %v3346_v58 = vld [vmem:[%s3571_s25 + $0x240] ss:$8 sps:$4 sm:$0xff]  }
  0x78   : > { %2223 = vmatpush1.bf16.msra.mxu0 %v3277_v59  ;;  %2012 = vmatprep.subr.bf16.mxu1 %v3282_v60  ;;  %v3349_v59 = vld [vmem:[%s3571_s25 + $0x640] ss:$8 sps:$4 sm:$0xff]   ;;  %v3354_v60 = vld [vmem:[%s3571_s25 + $0x254] ss:$8 sps:$4 sm:$0xff]  }
  0x79   : > { %2224 = vmatprep.subr.bf16.mxu0 %v3285_v61  ;;  %v3357_v61 = vld [vmem:[%s3571_s25 + $0x654] ss:$8 sps:$4 sm:$0xff]  }
  0x7b   : > { %2013 = vmatpush1.bf16.msra.mxu1 %v3280_v62  ;;  %v3352_v62 = vld [vmem:[%s3571_s25 + $0x250] ss:$8 sps:$4 sm:$0xff]  }
  0x7c   : > { %2225 = vmatpush1.bf16.msra.mxu0 %v3283_v63  ;;  %2014 = vmatprep.subr.bf16.mxu1 %v3288_v0  ;;  %v3355_v63 = vld [vmem:[%s3571_s25 + $0x650] ss:$8 sps:$4 sm:$0xff]   ;;  %v3360_v0 = vld [vmem:[%s3571_s25 + $0x264] ss:$8 sps:$4 sm:$0xff]  }
  0x7d   : > { %2226 = vmatprep.subr.bf16.mxu0 %v3291_v1  ;;  %v3363_v1 = vld [vmem:[%s3571_s25 + $0x664] ss:$8 sps:$4 sm:$0xff]  }
  0x7f   : > { %2015 = vmatpush1.bf16.msra.mxu1 %v3286_v2  ;;  %v3358_v2 = vld [vmem:[%s3571_s25 + $0x260] ss:$8 sps:$4 sm:$0xff]  }
  0x80   : > { %2227 = vmatpush1.bf16.msra.mxu0 %v3289_v3  ;;  %2016 = vmatprep.subr.bf16.mxu1 %v3294_v4  ;;  %v3361_v3 = vld [vmem:[%s3571_s25 + $0x660] ss:$8 sps:$4 sm:$0xff]   ;;  %v3366_v4 = vld [vmem:[%s3571_s25 + $0x274] ss:$8 sps:$4 sm:$0xff]  }
  0x81   : > { %2228 = vmatprep.subr.bf16.mxu0 %v3297_v5  ;;  %v3369_v5 = vld [vmem:[%s3571_s25 + $0x674] ss:$8 sps:$4 sm:$0xff]  }
  0x83   : > { %2017 = vmatpush1.bf16.msra.mxu1 %v3292_v6  ;;  %v3364_v6 = vld [vmem:[%s3571_s25 + $0x270] ss:$8 sps:$4 sm:$0xff]  }
  0x84   : > { %2229 = vmatpush1.bf16.msra.mxu0 %v3295_v7  ;;  %2018 = vmatprep.subr.bf16.mxu1 %v3300_v8  ;;  %v3367_v7 = vld [vmem:[%s3571_s25 + $0x670] ss:$8 sps:$4 sm:$0xff]   ;;  %v3372_v8 = vld [vmem:[%s3571_s25 + $0x284] ss:$8 sps:$4 sm:$0xff]  }
  0x85   : > { %2230 = vmatprep.subr.bf16.mxu0 %v3303_v9  ;;  %v3375_v9 = vld [vmem:[%s3571_s25 + $0x684] ss:$8 sps:$4 sm:$0xff]  }
  0x87   : > { %2019 = vmatpush1.bf16.msra.mxu1 %v3298_v10  ;;  %v3370_v10 = vld [vmem:[%s3571_s25 + $0x280] ss:$8 sps:$4 sm:$0xff]  }
  0x88   : > { %2231 = vmatpush1.bf16.msra.mxu0 %v3301_v11  ;;  %2020 = vmatprep.subr.bf16.mxu1 %v3306_v12  ;;  %v3373_v11 = vld [vmem:[%s3571_s25 + $0x680] ss:$8 sps:$4 sm:$0xff]   ;;  %v3378_v12 = vld [vmem:[%s3571_s25 + $0x294] ss:$8 sps:$4 sm:$0xff]  }
  0x89   : > { %2232 = vmatprep.subr.bf16.mxu0 %v3309_v13  ;;  %v3381_v13 = vld [vmem:[%s3571_s25 + $0x694] ss:$8 sps:$4 sm:$0xff]  }
  0x8b   : > { %2021 = vmatpush1.bf16.msra.mxu1 %v3304_v14  ;;  %v3376_v14 = vld [vmem:[%s3571_s25 + $0x290] ss:$8 sps:$4 sm:$0xff]  }
  0x8c   : > { %2233 = vmatpush1.bf16.msra.mxu0 %v3307_v15  ;;  %2022 = vmatprep.subr.bf16.mxu1 %v3312_v16  ;;  %v3379_v15 = vld [vmem:[%s3571_s25 + $0x690] ss:$8 sps:$4 sm:$0xff]   ;;  %v3384_v16 = vld [vmem:[%s3571_s25 + $0x2a4] ss:$8 sps:$4 sm:$0xff]  }
  0x8d   : > { %2234 = vmatprep.subr.bf16.mxu0 %v3315_v17  ;;  %v3387_v17 = vld [vmem:[%s3571_s25 + $0x6a4] ss:$8 sps:$4 sm:$0xff]  }
  0x8f   : > { %2023 = vmatpush1.bf16.msra.mxu1 %v3310_v18  ;;  %v3382_v18 = vld [vmem:[%s3571_s25 + $0x2a0] ss:$8 sps:$4 sm:$0xff]  }
  0x90   : > { %2235 = vmatpush1.bf16.msra.mxu0 %v3313_v19  ;;  %2024 = vmatprep.subr.bf16.mxu1 %v3318_v20  ;;  %v3385_v19 = vld [vmem:[%s3571_s25 + $0x6a0] ss:$8 sps:$4 sm:$0xff]   ;;  %v3390_v20 = vld [vmem:[%s3571_s25 + $0x2b4] ss:$8 sps:$4 sm:$0xff]  }
  0x91   : > { %2236 = vmatprep.subr.bf16.mxu0 %v3321_v21  ;;  %v3393_v21 = vld [vmem:[%s3571_s25 + $0x6b4] ss:$8 sps:$4 sm:$0xff]  }
  0x93   : > { %2025 = vmatpush1.bf16.msra.mxu1 %v3316_v22  ;;  %v3388_v22 = vld [vmem:[%s3571_s25 + $0x2b0] ss:$8 sps:$4 sm:$0xff]  }
  0x94   : > { %2237 = vmatpush1.bf16.msra.mxu0 %v3319_v23  ;;  %2047 = vmatprep.subr.bf16.mxu1 %v3324_v24  ;;  %v3391_v23 = vld [vmem:[%s3571_s25 + $0x6b0] ss:$8 sps:$4 sm:$0xff]   ;;  %v3396_v24 = vld [vmem:[%s3571_s25 + $0x2c4] ss:$8 sps:$4 sm:$0xff]  }
  0x95   : > { %2259 = vmatprep.subr.bf16.mxu0 %v3327_v25  ;;  %v3399_v25 = vld [vmem:[%s3571_s25 + $0x6c4] ss:$8 sps:$4 sm:$0xff]  }
  0x96   : > { %2027 = vmatmul.mubr.bf16.vlgmr.msra.gmra.mrb[0].mxu1 %v2722_v29  ;;  %v3405_v29 = vld [vmem:[%s3571_s25 + $0x6d4] ss:$8 sps:$4 sm:$0xff]  }
  0x97   : > { %2239 = vmatmul.mubr.bf16.vlgmr.msra.gmra.mrb[0].mxu0 %v2730_v30  ;;  %2048 = vmatpush1.bf16.msra.mxu1 %v3322_v26  ;;  %v3394_v26 = vld [vmem:[%s3571_s25 + $0x2c0] ss:$8 sps:$4 sm:$0xff]   ;;  %v3400_v30 = vld [vmem:[%s3571_s25 + $0x2d0] ss:$8 sps:$4 sm:$0xff]  }
  0x98   : > { %2260 = vmatpush1.bf16.msra.mxu0 %v3325_v27  ;;  %2049 = vmatprep.subr.bf16.mxu1 %v3330_v32  ;;  %v3397_v27 = vld [vmem:[%s3571_s25 + $0x6c0] ss:$8 sps:$4 sm:$0xff]   ;;  %v3408_v32 = vld [vmem:[%s3571_s25 + $0x2e4] ss:$8 sps:$4 sm:$0xff]  }
  0x99   : > { %2261 = vmatprep.subr.bf16.mxu0 %v3333_v33  ;;  %2036 = vmatprep.mubr.bf16.mxu1 %v2739_v36  ;;  %v3411_v33 = vld [vmem:[%s3571_s25 + $0x6e4] ss:$8 sps:$4 sm:$0xff]   ;;  %v3414_v36 = vld [vmem:[%s3571_s25 + $0x2f4] ss:$8 sps:$4 sm:$0xff]  }
  0x9a   : > { %2248 = vmatprep.mubr.bf16.mxu0 %v2747_v37  ;;  %v3417_v37 = vld [vmem:[%s3571_s25 + $0x6f4] ss:$8 sps:$4 sm:$0xff]  }
  0x9b   : > { %2050 = vmatpush1.bf16.msra.mxu1 %v3328_v38  ;;  %v3412_v38 = vld [vmem:[%s3571_s25 + $0x2f0] ss:$8 sps:$4 sm:$0xff]  }
  0x9c   : > { %2262 = vmatpush1.bf16.msra.mxu0 %v3331_v39  ;;  %2051 = vmatprep.subr.bf16.mxu1 %v3336_v40  ;;  %v3415_v39 = vld [vmem:[%s3571_s25 + $0x6f0] ss:$8 sps:$4 sm:$0xff]   ;;  %v3420_v40 = vld [vmem:[%s3571_s25 + $0x304] ss:$8 sps:$4 sm:$0xff]  }
  0x9d   : > { %2263 = vmatprep.subr.bf16.mxu0 %v3339_v41  ;;  %v3423_v41 = vld [vmem:[%s3571_s25 + $0x704] ss:$8 sps:$4 sm:$0xff]  }
  0x9e   : > { %2037 = vmatmul.mubr.bf16.gmra.mrb[4].mxu1 %v2738_v45  ;;  %v2732_v45 = vcombine.low %v3753_v48, %v3756_v49  ;;  %v3424_v48 = vld [vmem:[%s3571_s25 + $0x310] ss:$8 sps:$4 sm:$0xff]  }
  0x9f   : > { %2249 = vmatmul.mubr.bf16.gmra.mrb[4].mxu0 %v2746_v46  ;;  %2052 = vmatpush1.bf16.msra.mxu1 %v3334_v42  ;;  %v231_v42 = vld [vmem:[%s3566_s22 + $0x90] sm:$0xff] }
  0xa0   : > { %2264 = vmatpush1.bf16.msra.mxu0 %v3337_v43  ;;  %2053 = vmatprep.subr.bf16.mxu1 %v3342_v50  ;;  %v2724_v43 = vcombine.low %v3747_v44, %v3750_v47  ;;  %v239_v46 = vld [vmem:[%s3566_s22 + $0xd0] sm:$0xff] }
  0xa1   : > { %2265 = vmatprep.subr.bf16.mxu0 %v3345_v51  ;;  %2079 = vmatprep.mubr.bf16.mxu1 %v2725_v52  ;;  %v235_v50 = vld [vmem:[%s3566_s22 + $0xb0] sm:$0xff]  ;;  %v3418_v52 = vld [vmem:[%s3571_s25 + $0x300] ss:$8 sps:$4 sm:$0xff]   ;;  %v2741_v44 = vcombine.high %v231_v42, %v239_v46 }
  0xa2   : > { %2291 = vmatprep.mubr.bf16.mxu0 %v2733_v53  ;;  %v243_v51 = vld [vmem:[%s3566_s22 + $0xf0] sm:$0xff]  ;;  %v3421_v53 = vld [vmem:[%s3571_s25 + $0x700] ss:$8 sps:$4 sm:$0xff]  }
  0xa3   : > { %2054 = vmatpush1.bf16.msra.mxu1 %v3340_v54  ;;  %v3426_v54 = vld [vmem:[%s3571_s25 + $0x314] ss:$8 sps:$4 sm:$0xff]   ;;  %v2749_v47 = vcombine.high %v235_v50, %v243_v51  ;;  %v3427_v49 = vld [vmem:[%s3571_s25 + $0x710] ss:$8 sps:$4 sm:$0xff]  }
  0xa4   : > { %2266 = vmatpush1.bf16.msra.mxu0 %v3343_v55  ;;  %2055 = vmatprep.subr.bf16.mxu1 %v3348_v56  ;;  %v3429_v55 = vld [vmem:[%s3571_s25 + $0x714] ss:$8 sps:$4 sm:$0xff]   ;;  %v3432_v56 = vld [vmem:[%s3571_s25 + $0x324] ss:$8 sps:$4 sm:$0xff]  }
  0xa5   : > { %2267 = vmatprep.subr.bf16.mxu0 %v3351_v57  ;;  %v3435_v57 = vld [vmem:[%s3571_s25 + $0x724] ss:$8 sps:$4 sm:$0xff]  }
  0xa7   : > { %2056 = vmatpush1.bf16.msra.mxu1 %v3346_v58  ;;  %v3833_v58 = vld [vmem:[%s3566_s22 + $0x18] sm:$0xff] }
  0xa8   : > { %2268 = vmatpush1.bf16.msra.mxu0 %v3349_v59  ;;  %2057 = vmatprep.subr.bf16.mxu1 %v3354_v60  ;;  %v2740_v59 = vcombine.low %v231_v42, %v239_v46  ;;  %v2748_v60 = vcombine.low %v235_v50, %v243_v51  ;;  %v3490_v42 = vld [vmem:[%s3571_s25 + $0x3c0] ss:$8 sps:$4 sm:$0xff]   ;;  %v3501_v46 = vld [vmem:[%s3571_s25 + $0x7d4] ss:$8 sps:$4 sm:$0xff]   ;;  %v3496_v50 = vld [vmem:[%s3571_s25 + $0x3d0] ss:$8 sps:$4 sm:$0xff]  }
  0xa9   : > { %2269 = vmatprep.subr.bf16.mxu0 %v3357_v61  ;;  %v3836_v61 = vld [vmem:[%s3566_s22 + $0x58] sm:$0xff] }
  0xaa   : > { %v3499_v51 = vld [vmem:[%s3571_s25 + $0x7d0] ss:$8 sps:$4 sm:$0xff]  }
  0xab   : > { %2058 = vmatpush1.bf16.msra.mxu1 %v3352_v62  ;;  %v3839_v62 = vld [vmem:[%s3566_s22 + $0x38] sm:$0xff] }
  0xac   : > { %2270 = vmatpush1.bf16.msra.mxu0 %v3355_v63  ;;  %2059 = vmatprep.subr.bf16.mxu1 %v3360_v0  ;;  %v3842_v63 = vld [vmem:[%s3566_s22 + $0x78] sm:$0xff]  ;;  %v3430_v0 = vld [vmem:[%s3571_s25 + $0x320] ss:$8 sps:$4 sm:$0xff]  }
  0xad   : > { %2271 = vmatprep.subr.bf16.mxu0 %v3363_v1  ;;  %v3433_v1 = vld [vmem:[%s3571_s25 + $0x720] ss:$8 sps:$4 sm:$0xff]  }
  0xaf   : > { %2060 = vmatpush1.bf16.msra.mxu1 %v3358_v2  ;;  %v3438_v2 = vld [vmem:[%s3571_s25 + $0x334] ss:$8 sps:$4 sm:$0xff]  }
  0xb0   : > { %2272 = vmatpush1.bf16.msra.mxu0 %v3361_v3  ;;  %2061 = vmatprep.subr.bf16.mxu1 %v3366_v4  ;;  %v3441_v3 = vld [vmem:[%s3571_s25 + $0x734] ss:$8 sps:$4 sm:$0xff]   ;;  %v2727_v4 = vcombine.high %v3833_v58, %v3836_v61 }
  0xb1   : > { %2273 = vmatprep.subr.bf16.mxu0 %v3369_v5  ;;  %v2735_v5 = vcombine.high %v3839_v62, %v3842_v63 }
  0xb3   : > { %2062 = vmatpush1.bf16.msra.mxu1 %v3364_v6  ;;  %v3436_v6 = vld [vmem:[%s3571_s25 + $0x330] ss:$8 sps:$4 sm:$0xff]  }
  0xb4   : > { %2274 = vmatpush1.bf16.msra.mxu0 %v3367_v7  ;;  %2063 = vmatprep.subr.bf16.mxu1 %v3372_v8  ;;  %v3439_v7 = vld [vmem:[%s3571_s25 + $0x730] ss:$8 sps:$4 sm:$0xff]   ;;  %v3444_v8 = vld [vmem:[%s3571_s25 + $0x344] ss:$8 sps:$4 sm:$0xff]  }
  0xb5   : > { %2275 = vmatprep.subr.bf16.mxu0 %v3375_v9  ;;  %v3447_v9 = vld [vmem:[%s3571_s25 + $0x744] ss:$8 sps:$4 sm:$0xff]  }
  0xb7   : > { %2064 = vmatpush1.bf16.msra.mxu1 %v3370_v10  ;;  %v3442_v10 = vld [vmem:[%s3571_s25 + $0x340] ss:$8 sps:$4 sm:$0xff]  }
  0xb8   : > { %2276 = vmatpush1.bf16.msra.mxu0 %v3373_v11  ;;  %2065 = vmatprep.subr.bf16.mxu1 %v3378_v12  ;;  %v3445_v11 = vld [vmem:[%s3571_s25 + $0x740] ss:$8 sps:$4 sm:$0xff]   ;;  %v3450_v12 = vld [vmem:[%s3571_s25 + $0x354] ss:$8 sps:$4 sm:$0xff]  }
  0xb9   : > { %2277 = vmatprep.subr.bf16.mxu0 %v3381_v13  ;;  %v3453_v13 = vld [vmem:[%s3571_s25 + $0x754] ss:$8 sps:$4 sm:$0xff]  }
  0xbb   : > { %2066 = vmatpush1.bf16.msra.mxu1 %v3376_v14  ;;  %v3448_v14 = vld [vmem:[%s3571_s25 + $0x350] ss:$8 sps:$4 sm:$0xff]  }
  0xbc   : > { %2278 = vmatpush1.bf16.msra.mxu0 %v3379_v15  ;;  %2067 = vmatprep.subr.bf16.mxu1 %v3384_v16  ;;  %v3451_v15 = vld [vmem:[%s3571_s25 + $0x750] ss:$8 sps:$4 sm:$0xff]   ;;  %v3456_v16 = vld [vmem:[%s3571_s25 + $0x364] ss:$8 sps:$4 sm:$0xff]  }
  0xbd   : > { %2279 = vmatprep.subr.bf16.mxu0 %v3387_v17  ;;  %v3459_v17 = vld [vmem:[%s3571_s25 + $0x764] ss:$8 sps:$4 sm:$0xff]  }
  0xbf   : > { %2068 = vmatpush1.bf16.msra.mxu1 %v3382_v18  ;;  %v3454_v18 = vld [vmem:[%s3571_s25 + $0x360] ss:$8 sps:$4 sm:$0xff]  }
  0xc0   : > { %2280 = vmatpush1.bf16.msra.mxu0 %v3385_v19  ;;  %2069 = vmatprep.subr.bf16.mxu1 %v3390_v20  ;;  %v3457_v19 = vld [vmem:[%s3571_s25 + $0x760] ss:$8 sps:$4 sm:$0xff]   ;;  %v3462_v20 = vld [vmem:[%s3571_s25 + $0x374] ss:$8 sps:$4 sm:$0xff]  }
  0xc1   : > { %2281 = vmatprep.subr.bf16.mxu0 %v3393_v21  ;;  %v3465_v21 = vld [vmem:[%s3571_s25 + $0x774] ss:$8 sps:$4 sm:$0xff]  }
  0xc3   : > { %2070 = vmatpush1.bf16.msra.mxu1 %v3388_v22  ;;  %v3460_v22 = vld [vmem:[%s3571_s25 + $0x370] ss:$8 sps:$4 sm:$0xff]  }
  0xc4   : > { %2282 = vmatpush1.bf16.msra.mxu0 %v3391_v23  ;;  %2071 = vmatprep.subr.bf16.mxu1 %v3396_v24  ;;  %v3463_v23 = vld [vmem:[%s3571_s25 + $0x770] ss:$8 sps:$4 sm:$0xff]   ;;  %v3468_v24 = vld [vmem:[%s3571_s25 + $0x384] ss:$8 sps:$4 sm:$0xff]  }
  0xc5   : > { %2283 = vmatprep.subr.bf16.mxu0 %v3399_v25  ;;  %v3471_v25 = vld [vmem:[%s3571_s25 + $0x784] ss:$8 sps:$4 sm:$0xff]  }
  0xc7   : > { %2072 = vmatpush1.bf16.msra.mxu1 %v3394_v26  ;;  %v3466_v26 = vld [vmem:[%s3571_s25 + $0x380] ss:$8 sps:$4 sm:$0xff]  }
  0xc8   : > { %2284 = vmatpush1.bf16.msra.mxu0 %v3397_v27  ;;  %2073 = vmatprep.subr.bf16.mxu1 %v3402_v28  ;;  %v3469_v27 = vld [vmem:[%s3571_s25 + $0x780] ss:$8 sps:$4 sm:$0xff]   ;;  %v3474_v28 = vld [vmem:[%s3571_s25 + $0x394] ss:$8 sps:$4 sm:$0xff]  }
  0xc9   : > { %2285 = vmatprep.subr.bf16.mxu0 %v3405_v29  ;;  %v3477_v29 = vld [vmem:[%s3571_s25 + $0x794] ss:$8 sps:$4 sm:$0xff]  }
  0xcb   : > { %2074 = vmatpush1.bf16.msra.mxu1 %v3400_v30  ;;  %v3472_v30 = vld [vmem:[%s3571_s25 + $0x390] ss:$8 sps:$4 sm:$0xff]  }
  0xcc   : > { %2286 = vmatpush1.bf16.msra.mxu0 %v3403_v31  ;;  %2075 = vmatprep.subr.bf16.mxu1 %v3408_v32  ;;  %v3475_v31 = vld [vmem:[%s3571_s25 + $0x790] ss:$8 sps:$4 sm:$0xff]   ;;  %v3480_v32 = vld [vmem:[%s3571_s25 + $0x3a4] ss:$8 sps:$4 sm:$0xff]  }
  0xcd   : > { %2287 = vmatprep.subr.bf16.mxu0 %v3411_v33  ;;  %v3483_v33 = vld [vmem:[%s3571_s25 + $0x7a4] ss:$8 sps:$4 sm:$0xff]  }
  0xcf   : > { %2076 = vmatpush1.bf16.msra.mxu1 %v3406_v34  ;;  %v3478_v34 = vld [vmem:[%s3571_s25 + $0x3a0] ss:$8 sps:$4 sm:$0xff]  }
  0xd0   : > { %2288 = vmatpush1.bf16.msra.mxu0 %v3409_v35  ;;  %2077 = vmatprep.subr.bf16.mxu1 %v3414_v36  ;;  %v3481_v35 = vld [vmem:[%s3571_s25 + $0x7a0] ss:$8 sps:$4 sm:$0xff]   ;;  %v3486_v36 = vld [vmem:[%s3571_s25 + $0x3b4] ss:$8 sps:$4 sm:$0xff]  }
  0xd1   : > { %2289 = vmatprep.subr.bf16.mxu0 %v3417_v37  ;;  %v3489_v37 = vld [vmem:[%s3571_s25 + $0x7b4] ss:$8 sps:$4 sm:$0xff]  }
  0xd3   : > { %2078 = vmatpush1.bf16.msra.mxu1 %v3412_v38  ;;  %v3484_v38 = vld [vmem:[%s3571_s25 + $0x3b0] ss:$8 sps:$4 sm:$0xff]  }
  0xd4   : > { %2290 = vmatpush1.bf16.msra.mxu0 %v3415_v39  ;;  %2100 = vmatprep.subr.bf16.mxu1 %v3420_v40  ;;  %v3487_v39 = vld [vmem:[%s3571_s25 + $0x7b0] ss:$8 sps:$4 sm:$0xff]   ;;  %v3492_v40 = vld [vmem:[%s3571_s25 + $0x3c4] ss:$8 sps:$4 sm:$0xff]  }
  0xd5   : > { %2312 = vmatprep.subr.bf16.mxu0 %v3423_v41  ;;  %v3495_v41 = vld [vmem:[%s3571_s25 + $0x7c4] ss:$8 sps:$4 sm:$0xff]  }
  0xd6   : > { %2080 = vmatmul.mubr.bf16.vlgmr.msra.gmra.mrb[0].mxu1 %v2724_v43  ;;  %v3493_v43 = vld [vmem:[%s3571_s25 + $0x7c0] ss:$8 sps:$4 sm:$0xff]  }
  0xd7   : > { %2292 = vmatmul.mubr.bf16.vlgmr.msra.gmra.mrb[0].mxu0 %v2732_v45  ;;  %2101 = vmatpush1.bf16.msra.mxu1 %v3418_v52  ;;  %v3498_v45 = vld [vmem:[%s3571_s25 + $0x3d4] ss:$8 sps:$4 sm:$0xff]   ;;  %v3504_v52 = vld [vmem:[%s3571_s25 + $0x3e4] ss:$8 sps:$4 sm:$0xff]  }
  0xd8   : > { %2313 = vmatpush1.bf16.msra.mxu0 %v3421_v53  ;;  %2102 = vmatprep.subr.bf16.mxu1 %v3426_v54  ;;  %v3507_v53 = vld [vmem:[%s3571_s25 + $0x7e4] ss:$8 sps:$4 sm:$0xff]   ;;  %v3502_v54 = vld [vmem:[%s3571_s25 + $0x3e0] ss:$8 sps:$4 sm:$0xff]  }
  0xd9   : > { %2314 = vmatprep.subr.bf16.mxu0 %v3429_v55  ;;  %2089 = vmatprep.mubr.bf16.mxu1 %v2741_v44  ;;  %v3505_v55 = vld [vmem:[%s3571_s25 + $0x7e0] ss:$8 sps:$4 sm:$0xff]   ;;  %v3510_v44 = vld [vmem:[%s3571_s25 + $0x3f4] ss:$8 sps:$4 sm:$0xff]  }
  0xda   : > { %2301 = vmatprep.mubr.bf16.mxu0 %v2749_v47  ;;  %v3513_v47 = vld [vmem:[%s3571_s25 + $0x7f4] ss:$8 sps:$4 sm:$0xff]  }
  0xdb   : > { %2103 = vmatpush1.bf16.msra.mxu1 %v3424_v48  ;;  %v3508_v48 = vld [vmem:[%s3571_s25 + $0x3f0] ss:$8 sps:$4 sm:$0xff]  }
  0xdc   : > { %2315 = vmatpush1.bf16.msra.mxu0 %v3427_v49  ;;  %2104 = vmatprep.subr.bf16.mxu1 %v3432_v56  ;;  %v3511_v49 = vld [vmem:[%s3571_s25 + $0x7f0] ss:$8 sps:$4 sm:$0xff]  }
  0xdd   : > { %2316 = vmatprep.subr.bf16.mxu0 %v3435_v57  ;;  %v232_v56 = vld [vmem:[%s3566_s22 + $0x98] sm:$0xff] }
  0xde   : > { %2090 = vmatmul.mubr.bf16.gmra.mrb[4].mxu1 %v2740_v59  ;;  %v240_v57 = vld [vmem:[%s3566_s22 + $0xd8] sm:$0xff] }
  0xdf   : > { %2302 = vmatmul.mubr.bf16.gmra.mrb[4].mxu0 %v2748_v60  ;;  %2105 = vmatpush1.bf16.msra.mxu1 %v3430_v0  ;;  %v236_v59 = vld [vmem:[%s3566_s22 + $0xb8] sm:$0xff]  ;;  %v2726_v0 = vcombine.low %v3833_v58, %v3836_v61 }
  0xe0   : > { %2317 = vmatpush1.bf16.msra.mxu0 %v3433_v1  ;;  %2106 = vmatprep.subr.bf16.mxu1 %v3438_v2  ;;  %v244_v60 = vld [vmem:[%s3566_s22 + $0xf8] sm:$0xff]  ;;  %v2734_v1 = vcombine.low %v3839_v62, %v3842_v63  ;;  %v2743_v2 = vcombine.high %v232_v56, %v240_v57 }
  0xe1   : > { %2318 = vmatprep.subr.bf16.mxu0 %v3441_v3  ;;  %2132 = vmatprep.mubr.bf16.mxu1 %v2727_v4  ;;  %v2751_v3 = vcombine.high %v236_v59, %v244_v60  ;;  %v2742_v4 = vcombine.low %v232_v56, %v240_v57 }
  0xe2   : > { %2344 = vmatprep.mubr.bf16.mxu0 %v2735_v5  ;;  %v2750_v5 = vcombine.low %v236_v59, %v244_v60 }
  0xe3   : > { %2107 = vmatpush1.bf16.msra.mxu1 %v3436_v6 }
  0xe4   : > { %2319 = vmatpush1.bf16.msra.mxu0 %v3439_v7  ;;  %2108 = vmatprep.subr.bf16.mxu1 %v3444_v8 }
  0xe5   : > { %2320 = vmatprep.subr.bf16.mxu0 %v3447_v9 }
  0xe7   : > { %2109 = vmatpush1.bf16.msra.mxu1 %v3442_v10 }
  0xe8   : > { %2321 = vmatpush1.bf16.msra.mxu0 %v3445_v11  ;;  %2110 = vmatprep.subr.bf16.mxu1 %v3450_v12 }
  0xe9   : > { %2322 = vmatprep.subr.bf16.mxu0 %v3453_v13 }
  0xeb   : > { %2111 = vmatpush1.bf16.msra.mxu1 %v3448_v14 }
  0xec   : > { %2323 = vmatpush1.bf16.msra.mxu0 %v3451_v15  ;;  %2112 = vmatprep.subr.bf16.mxu1 %v3456_v16 }
  0xed   : > { %2324 = vmatprep.subr.bf16.mxu0 %v3459_v17 }
  0xef   : > { %2113 = vmatpush1.bf16.msra.mxu1 %v3454_v18 }
  0xf0   : > { %2325 = vmatpush1.bf16.msra.mxu0 %v3457_v19  ;;  %2114 = vmatprep.subr.bf16.mxu1 %v3462_v20 }
  0xf1   : > { %2326 = vmatprep.subr.bf16.mxu0 %v3465_v21 }
  0xf3   : > { %2115 = vmatpush1.bf16.msra.mxu1 %v3460_v22 }
  0xf4   : > { %2327 = vmatpush1.bf16.msra.mxu0 %v3463_v23  ;;  %2116 = vmatprep.subr.bf16.mxu1 %v3468_v24 }
  0xf5   : > { %2328 = vmatprep.subr.bf16.mxu0 %v3471_v25 }
  0xf7   : > { %2117 = vmatpush1.bf16.msra.mxu1 %v3466_v26 }
  0xf8   : > { %2329 = vmatpush1.bf16.msra.mxu0 %v3469_v27  ;;  %2118 = vmatprep.subr.bf16.mxu1 %v3474_v28 }
  0xf9   : > { %2330 = vmatprep.subr.bf16.mxu0 %v3477_v29 }
  0xfb   : > { %2119 = vmatpush1.bf16.msra.mxu1 %v3472_v30 }
  0xfc   : > { %2331 = vmatpush1.bf16.msra.mxu0 %v3475_v31  ;;  %2120 = vmatprep.subr.bf16.mxu1 %v3480_v32 }
  0xfd   : > { %2332 = vmatprep.subr.bf16.mxu0 %v3483_v33 }
  0xff   : > { %2121 = vmatpush1.bf16.msra.mxu1 %v3478_v34 }
 0x100   : > { %2333 = vmatpush1.bf16.msra.mxu0 %v3481_v35  ;;  %2122 = vmatprep.subr.bf16.mxu1 %v3486_v36 }
 0x101   : > { %2334 = vmatprep.subr.bf16.mxu0 %v3489_v37 }
 0x103   : > { %2123 = vmatpush1.bf16.msra.mxu1 %v3484_v38 }
 0x104   : > { %2335 = vmatpush1.bf16.msra.mxu0 %v3487_v39  ;;  %2124 = vmatprep.subr.bf16.mxu1 %v3492_v40 }
 0x105   : > { %2336 = vmatprep.subr.bf16.mxu0 %v3495_v41 }
 0x107   : > { %2125 = vmatpush1.bf16.msra.mxu1 %v3490_v42 }
 0x108   : > { %2337 = vmatpush1.bf16.msra.mxu0 %v3493_v43  ;;  %2126 = vmatprep.subr.bf16.mxu1 %v3498_v45 }
 0x109   : > { %2338 = vmatprep.subr.bf16.mxu0 %v3501_v46 }
 0x10b   : > { %2127 = vmatpush1.bf16.msra.mxu1 %v3496_v50 }
 0x10c   : > { %2339 = vmatpush1.bf16.msra.mxu0 %v3499_v51  ;;  %2128 = vmatprep.subr.bf16.mxu1 %v3504_v52 }
 0x10d   : > { %2340 = vmatprep.subr.bf16.mxu0 %v3507_v53 }
 0x10f   : > { %2129 = vmatpush1.bf16.msra.mxu1 %v3502_v54 }
 0x110   : > { %2341 = vmatpush1.bf16.msra.mxu0 %v3505_v55  ;;  %2130 = vmatprep.subr.bf16.mxu1 %v3510_v44  ;;  %v3525_v55 = vmov 1966171168  }
 0x111   : > { %2342 = vmatprep.subr.bf16.mxu0 %v3513_v47  ;;  %v2399_v44 = vunpack.c.l.s4 %v3525_v55  ;;  %v2401_v47 = vlaneseq }
 0x113   : > { %2131 = vmatpush1.bf16.msra.mxu1 %v3508_v48  ;;  %vm2416_vm1 = vcmp.lt.s32.totalorder %v2401_v47, 256 }
 0x114   : > { %2343 = vmatpush1.bf16.msra.mxu0 %v3511_v49 }
 0x116   : > { %2133 = vmatmul.mubr.bf16.vlgmr.msra.gmra.mrb[0].mxu1 %v2726_v0 }
 0x117   : > { %2345 = vmatmul.mubr.bf16.vlgmr.msra.gmra.mrb[0].mxu0 %v2734_v1  ;;  %2142 = vmatprep.mubr.bf16.mxu1 %v2743_v2  ;;  %v2400_v2 = vunpack.c.0.s8 %v2399_v44 }
 0x118   : > { %2354 = vmatprep.mubr.bf16.mxu0 %v2751_v3  ;;  %v3924_v3 = vshrl.u32 %v2401_v47, 7 }
 0x11e   : > { %2143 = vmatmul.mubr.bf16.gmra.mrb[4].mxu1 %v2742_v4 }
 0x11f   : > { %2355 = vmatmul.mubr.bf16.gmra.mrb[4].mxu0 %v2750_v5 }
 0x1e9   : > { %v2134_v6 = vpop.f32.mrb[0].mxu1 }
 0x1ea   : > { %v2346_v7 = vpop.f32.mrb[0].mxu0  ;;  %v2136_v61 = vpop.f32.mrb[1].mxu1 }
 0x1eb   : > { %v3064_v58 = vadd.f32 %v2346_v7, %v2134_v6  ;;  %v2348_v62 = vpop.f32.mrb[1].mxu0  ;;  %v2138_v8 = vpop.f32.mrb[2].mxu1 }
 0x1ec   : > { %v3065_v63 = vadd.f32 %v2348_v62, %v2136_v61  ;;  %v2350_v9 = vpop.f32.mrb[2].mxu0  ;;  %v2140_v11 = vpop.f32.mrb[3].mxu1 }
 0x1ed   : > { %2368 = vst [vmem:[%s3914_s29] sm:$0xff] %v3064_v58  ;;  %v3066_v10 = vadd.f32 %v2350_v9, %v2138_v8  ;;  %v2352_v12 = vpop.f32.mrb[3].mxu0  ;;  %v2420_v14 = vmul.f32 %v3064_v58, %v3064_v58  ;;  %v2403_v8 = vsub.s32 %v2400_v2, %v3924_v3 }
 0x1ee   : > { %2369 = vst [vmem:[%s3914_s29 + $0x8] sm:$0xff] %v3065_v63  ;;  %v3067_v13 = vadd.f32 %v2352_v12, %v2140_v11  ;;  %v2421_v17 = vmul.f32 %v3065_v63, %v3065_v63 }
 0x1ef   : > { %2370 = vst [vmem:[%s3914_s29 + $0x10] sm:$0xff] %v3066_v10  ;;  %v2377_v15 = vadd.f32 %v3066_v10, %v3064_v58  ;;  %v2422_v16 = vmul.f32 %v3066_v10, %v3066_v10 }
 0x1f0   : > { %2371 = vst [vmem:[%s3914_s29 + $0x18] sm:$0xff] %v3067_v13  ;;  %v2386_v18 = vadd.f32 %v3067_v13, %v3065_v63  ;;  %v2423_v19 = vmul.f32 %v3067_v13, %v3067_v13 }
 0x1f1   : > { %v2428_v20 = vadd.f32 %v2422_v16, %v2420_v14  ;;  %v2144_v22 = vpop.f32.mrb[4].mxu1 }
 0x1f2   : > { %v2437_v21 = vadd.f32 %v2423_v19, %v2421_v17  ;;  %v2356_v23 = vpop.f32.mrb[4].mxu0  ;;  %v2146_v25 = vpop.f32.mrb[5].mxu1 }
 0x1f3   : > { %v3068_v24 = vadd.f32 %v2356_v23, %v2144_v22  ;;  %v2358_v26 = vpop.f32.mrb[5].mxu0  ;;  %v2148_v28 = vpop.f32.mrb[6].mxu1 }
 0x1f4   : > { %v3069_v27 = vadd.f32 %v2358_v26, %v2146_v25  ;;  %v2360_v29 = vpop.f32.mrb[6].mxu0  ;;  %v2150_v33 = vpop.f32.mrb[7].mxu1 }
 0x1f5   : > { %2372 = vst [vmem:[%s3914_s29 + $0x20] sm:$0xff] %v3068_v24  ;;  %v2378_v30 = vadd.f32 %v3068_v24, %v2377_v15  ;;  %v2424_v31 = vmul.f32 %v3068_v24, %v3068_v24  ;;  %v3070_v32 = vadd.f32 %v2360_v29, %v2148_v28  ;;  %v2362_v34 = vpop.f32.mrb[7].mxu0  ;;  %v2376_v15 = vld [vmem:[#allocation2] sm:$0x3] }
 0x1f6   : > { %2373 = vst [vmem:[%s3914_s29 + $0x28] sm:$0xff] %v3069_v27  ;;  %v2387_v35 = vadd.f32 %v3069_v27, %v2386_v18  ;;  %v2425_v36 = vmul.f32 %v3069_v27, %v3069_v27  ;;  %v3071_v37 = vadd.f32 %v2362_v34, %v2150_v33  ;;  %v2419_v18 = vld [vmem:[#allocation3] sm:$0x3] }
 0x1f7   : > { %v2429_v38 = vadd.f32 %v2428_v20, %v2424_v31  ;;  %2374 = vst [vmem:[%s3914_s29 + $0x30] sm:$0xff] %v3070_v32  ;;  %v2379_v39 = vadd.f32 %v3070_v32, %v2378_v30  ;;  %v2426_v40 = vmul.f32 %v3070_v32, %v3070_v32  ;;  %v2477_v30 = vld [vmem:[%s4205_s2] sm:$0x3] (!%p3010_p5)  ;;  %v2495_v31 = vsub.s32 (!%p3010_p5), 0, %v3924_v3 }
 0x1f8   : > { %v2438_v41 = vadd.f32 %v2437_v21, %v2425_v36  ;;  %2375 = vst [vmem:[%s3914_s29 + $0x38] sm:$0xff] %v3071_v37  ;;  %v2388_v42 = vadd.f32 %v3071_v37, %v2387_v35  ;;  %v2427_v43 = vmul.f32 %v3071_v37, %v3071_v37  ;;  %v2499_v32 = vsub.s32 (!%p3010_p5), 1, %v3924_v3  ;;  %v2481_v35 = vld [vmem:[%s4206_s3] sm:$0x3] (!%p3010_p5) }
 0x1f9   : > { %v2380_v45 = vrot.slane %v2379_v39, 4  ;;  %v2430_v46 = vadd.f32 %v2429_v38, %v2426_v40 }
 0x1fa   : > { %v2389_v50 = vrot.slane %v2388_v42, 4  ;;  %v2439_v51 = vadd.f32 %v2438_v41, %v2427_v43 }
 0x1fb   : > { %v2381_v52 = vadd.f32 %v2380_v45, %v2379_v39  ;;  %v2431_v53 = vrot.slane %v2430_v46, 4 }
 0x1fc   : > { %v2390_v54 = vadd.f32 %v2389_v50, %v2388_v42  ;;  %v2440_v48 = vrot.slane %v2439_v51, 4 }
 0x1fd   : > { %v2382_v49 = vrot.slane %v2381_v52, 2  ;;  %v2432_v56 = vadd.f32 %v2431_v53, %v2430_v46 }
 0x1fe   : > { %v2391_v57 = vrot.slane %v2390_v54, 2  ;;  %v2441_v59 = vadd.f32 %v2440_v48, %v2439_v51 }
 0x1ff   : > { %v2383_v60 = vadd.f32 %v2382_v49, %v2381_v52  ;;  %v2433_v0 = vrot.slane %v2432_v56, 2  ;;  %v2484_v36 = vld [vmem:[%s4207_s4] sm:$0xff] (!%p3010_p5)  ;;  %v2485_v37 = vld [vmem:[%s4207_s4 + $0x8] sm:$0xff] (!%p3010_p5)  ;;  %v2486_v38 = vld [vmem:[%s4207_s4 + $0x10] sm:$0xff] (!%p3010_p5) }
 0x200   : > { %v2392_v1 = vadd.f32 %v2391_v57, %v2390_v54  ;;  %v2442_v4 = vrot.slane %v2441_v59, 2  ;;  %v2487_v39 = vld [vmem:[%s4207_s4 + $0x18] sm:$0xff] (!%p3010_p5)  ;;  %v2488_v43 = vld [vmem:[%s4207_s4 + $0x20] sm:$0xff] (!%p3010_p5)  ;;  %v2489_v45 = vld [vmem:[%s4207_s4 + $0x28] sm:$0xff] (!%p3010_p5) }
 0x201   : > { %v2384_v5 = vrot.slane %v2383_v60, 1  ;;  %v2434_v6 = vadd.f32 %v2433_v0, %v2432_v56  ;;  %v2490_v46 = vld [vmem:[%s4207_s4 + $0x30] sm:$0xff] (!%p3010_p5)  ;;  %v2491_v50 = vld [vmem:[%s4207_s4 + $0x38] sm:$0xff] (!%p3010_p5)  ;;  %v3011_v51 = vld [vmem:[%s4207_s4 + $0x40] sm:$0xff] (!%p3010_p5) }
 0x202   : > { %v2393_v7 = vrot.slane %v2392_v1, 1  ;;  %v2443_v58 = vadd.f32 %v2442_v4, %v2441_v59  ;;  %v3012_v52 = vld [vmem:[%s4207_s4 + $0x48] sm:$0xff] (!%p3010_p5)  ;;  %v3013_v47 = vld [vmem:[%s4207_s4 + $0x50] sm:$0xff] (!%p3010_p5)  ;;  %v3014_v48 = vld [vmem:[%s4207_s4 + $0x58] sm:$0xff] (!%p3010_p5) }
 0x203   : > { %v2385_v61 = vadd.f32 %v2384_v5, %v2383_v60  ;;  %v2435_v62 = vrot.slane %v2434_v6, 1  ;;  %v3015_v49 = vld [vmem:[%s4207_s4 + $0x60] sm:$0xff] (!%p3010_p5) }
 0x204   : > { %v2394_v63 = vadd.f32 %v2393_v7, %v2392_v1  ;;  %v2444_v9 = vrot.slane %v2443_v58, 1 }
 0x205   : > { %v2436_v10 = vadd.f32 %v2435_v62, %v2434_v6 }
 0x206   : > { %v2397_v11 = vcombine.low %v2385_v61, %v2394_v63  ;;  %v2445_v12 = vadd.f32 %v2444_v9, %v2443_v58 }
 0x208   : > { %v2404_v13 = vrot.slane %v2397_v11, %v2403_v8  ;;  %v2448_v14 = vcombine.low %v2436_v10, %v2445_v12  ;;  %v3016_v12 = vld [vmem:[%s4207_s4 + $0x68] sm:$0xff] (!%p3010_p5) }
 0x20a   : > { %v2411_v16 = vrot.slane %v2404_v13, %v2403_v8  ;;  %v2455_v17 = vrot.slane %v2448_v14, %v2403_v8  ;;  %2469 = sbr.rel (%p3010_p5) target bundleno = 588 (0x24c), region = 44 }
 0x20c   : > { %v2413_v19 = vadd.f32 %v2411_v16, %v2376_v15  ;;  %v2462_v20 = vrot.slane %v2455_v17, %v2403_v8  ;;  %v3017_v17 = vld [vmem:[%s4207_s4 + $0x70] sm:$0xff] (!%p3010_p5) }
 0x20e   : > { %2418 = vst.msk [vmem:[#allocation2] sm:$0x3] %vm2416_vm1, %v2413_v19  ;;  %v2464_v21 = vadd.f32 %v2462_v20, %v2419_v18  ;;  %v3018_v18 = vld [vmem:[%s4207_s4 + $0x78] sm:$0xff] (!%p3010_p5) }
 0x210   : > { %2465 = vst.msk [vmem:[#allocation3] sm:$0x3] %vm2416_vm1, %v2464_v21 }
 0x215   : > { %v2470_v22 = vld [vmem:[#allocation2] sm:$0x3] }
 0x216   : > { %v2471_v24 = vmul.f32 0.0078125, %v2470_v22 }
 0x217   : > { %v2472_v23 = vld [vmem:[#allocation3] sm:$0x3] }
 0x218   : > { %v2473_v25 = vmul.f32 0.0078125, %v2472_v23  ;;  %v2474_v26 = vmul.f32 %v2471_v24, %v2471_v24 }
 0x21a   : > { %v2475_v27 = vsub.f32 %v2473_v25, %v2474_v26 }
 0x21c   : > { %v2476_v28 = vmax.f32 %v2475_v27, 0.0  ;;  %v3027_v27 = vld [vmem:[%s4207_s4 + $0x80] sm:$0xff] }
 0x21e   : > { %v2478_v29 = vadd.f32 1e-05, %v2476_v28 }
 0x220   : > { %3514 = vrsqrt.f32 %v2478_v29 }
 0x22a   : > { %v3515_v33 = vpop.eup %3514 }
 0x22b   : > { %v2480_v34 = vmul.f32 %v3515_v33, %v2477_v30  ;;  %v3029_v33 = vld [vmem:[%s4207_s4 + $0x90] sm:$0xff] }
 0x22d   : > { %v2482_v40 = vmul.f32 %v2480_v34, %v2471_v24  ;;  %v3948_v41 = vrot.slane %v2480_v34, %v2495_v31  ;;  %v3950_v42 = vrot.slane %v2480_v34, %v2499_v32  ;;  %v3030_v34 = vld [vmem:[%s4207_s4 + $0x98] sm:$0xff] }
 0x22f   : > { %v2483_v53 = vsub.f32 %v2481_v35, %v2482_v40  ;;  %v2503_v54 = vmul.f32 %v3948_v41, %v2484_v36  ;;  %v2504_v55 = vmul.f32 %v3950_v42, %v2485_v37  ;;  %v2505_v44 = vmul.f32 %v3948_v41, %v2486_v38 }
 0x230   : > { %v2506_v56 = vmul.f32 %v3950_v42, %v2487_v39  ;;  %v2507_v57 = vmul.f32 %v3948_v41, %v2488_v43  ;;  %v2508_v59 = vmul.f32 %v3950_v42, %v2489_v45  ;;  %v2509_v60 = vmul.f32 %v3948_v41, %v2490_v46  ;;  %v3031_v39 = vld [vmem:[%s4207_s4 + $0xa0] sm:$0xff] }
 0x231   : > { %v3986_v0 = vrot.slane %v2483_v53, %v2495_v31  ;;  %v3988_v1 = vrot.slane %v2483_v53, %v2499_v32  ;;  %v2510_v2 = vmul.f32 %v3950_v42, %v2491_v50  ;;  %v2555_v3 = vmul.f32 %v3011_v51, %v3948_v41  ;;  %v3028_v32 = vld [vmem:[%s4207_s4 + $0x88] sm:$0xff] }
 0x232   : > { %v2556_v4 = vmul.f32 %v3012_v52, %v3950_v42  ;;  %v2557_v5 = vmul.f32 %v3013_v47, %v3948_v41  ;;  %v2558_v6 = vmul.f32 %v3014_v48, %v3950_v42  ;;  %v2559_v7 = vmul.f32 %v3015_v49, %v3948_v41 }
 0x233   : > { %v2522_v58 = vadd.f32 %v3986_v0, %v2503_v54  ;;  %v2523_v61 = vadd.f32 %v3988_v1, %v2504_v55  ;;  %v2524_v62 = vadd.f32 %v3986_v0, %v2505_v44  ;;  %v2525_v63 = vadd.f32 %v3988_v1, %v2506_v56  ;;  %v3032_v54 = vld [vmem:[%s4207_s4 + $0xa8] sm:$0xff]  ;;  %v3033_v55 = vld [vmem:[%s4207_s4 + $0xb0] sm:$0xff]  ;;  %v3034_v44 = vld [vmem:[%s4207_s4 + $0xb8] sm:$0xff] }
 0x234   : > { %v2526_v8 = vadd.f32 %v3986_v0, %v2507_v57  ;;  %v2527_v9 = vadd.f32 %v3988_v1, %v2508_v59  ;;  %v2528_v10 = vadd.f32 %v3986_v0, %v2509_v60  ;;  %v2529_v11 = vadd.f32 %v3988_v1, %v2510_v2 }
 0x235   : > { %v2530_v13 = vmax.f32 %v2522_v58, 0.0  ;;  %v2531_v14 = vmax.f32 %v2523_v61, 0.0  ;;  %v2532_v15 = vmax.f32 %v2524_v62, 0.0  ;;  %v2533_v16 = vmax.f32 %v2525_v63, 0.0  ;;  %v3044_v58 = vld [vmem:[%s4207_s4 + $0xc8] sm:$0xff]  ;;  %v3045_v61 = vld [vmem:[%s4207_s4 + $0xd0] sm:$0xff] }
 0x236   : > { %v2534_v19 = vmax.f32 %v2526_v8, 0.0  ;;  %v2535_v20 = vmax.f32 %v2527_v9, 0.0  ;;  %v2536_v21 = vmax.f32 %v2528_v10, 0.0  ;;  %v2537_v22 = vmax.f32 %v2529_v11, 0.0  ;;  %v3046_v62 = vld [vmem:[%s4207_s4 + $0xd8] sm:$0xff]  ;;  %v3047_v11 = vld [vmem:[%s4207_s4 + $0xe0] sm:$0xff] }
 0x237   : > { %2538 = vst [vmem:[%s4207_s4] sm:$0xff] %v2530_v13  ;;  %2539 = vst [vmem:[%s4207_s4 + $0x8] sm:$0xff] %v2531_v14  ;;  %v2563_v23 = vadd.f32 %v2555_v3, %v3986_v0  ;;  %v2564_v24 = vadd.f32 %v2556_v4, %v3988_v1  ;;  %v2565_v25 = vadd.f32 %v2557_v5, %v3986_v0  ;;  %v3043_v3 = vld [vmem:[%s4207_s4 + $0xc0] sm:$0xff] }
 0x238   : > { %2540 = vst [vmem:[%s4207_s4 + $0x10] sm:$0xff] %v2532_v15  ;;  %2541 = vst [vmem:[%s4207_s4 + $0x18] sm:$0xff] %v2533_v16  ;;  %v2566_v26 = vadd.f32 %v2558_v6, %v3988_v1  ;;  %v2567_v28 = vadd.f32 %v2559_v7, %v3986_v0  ;;  %v2560_v29 = vmul.f32 %v3016_v12, %v3950_v42 }
 0x239   : > { %2542 = vst [vmem:[%s4207_s4 + $0x20] sm:$0xff] %v2534_v19  ;;  %2543 = vst [vmem:[%s4207_s4 + $0x28] sm:$0xff] %v2535_v20  ;;  %v2561_v30 = vmul.f32 %v3017_v17, %v3948_v41  ;;  %v2562_v31 = vmul.f32 %v3018_v18, %v3950_v42  ;;  %v2571_v35 = vmax.f32 %v2563_v23, 0.0  ;;  %v2572_v36 = vmax.f32 %v2564_v24, 0.0  ;;  %v3048_v20 = vld [vmem:[%s4207_s4 + $0xe8] sm:$0xff] }
 0x23a   : > { %2544 = vst [vmem:[%s4207_s4 + $0x30] sm:$0xff] %v2536_v21  ;;  %2545 = vst [vmem:[%s4207_s4 + $0x38] sm:$0xff] %v2537_v22  ;;  %v2573_v37 = vmax.f32 %v2565_v25, 0.0  ;;  %v2574_v38 = vmax.f32 %v2566_v26, 0.0  ;;  %v2575_v40 = vmax.f32 %v2567_v28, 0.0  ;;  %v2568_v43 = vadd.f32 %v2560_v29, %v3988_v1  ;;  %v3049_v21 = vld [vmem:[%s4207_s4 + $0xf0] sm:$0xff] }
 0x23b   : > { %v2569_v45 = vadd.f32 %v2561_v30, %v3986_v0  ;;  %v2570_v46 = vadd.f32 %v2562_v31, %v3988_v1  ;;  %3019 = vst [vmem:[%s4207_s4 + $0x40] sm:$0xff] %v2571_v35  ;;  %3020 = vst [vmem:[%s4207_s4 + $0x48] sm:$0xff] %v2572_v36  ;;  %v2596_v50 = vmul.f32 %v3027_v27, %v3948_v41  ;;  %v3050_v22 = vld [vmem:[%s4207_s4 + $0xf8] sm:$0xff] }
 0x23c   : > { %3021 = vst [vmem:[%s4207_s4 + $0x50] sm:$0xff] %v2573_v37  ;;  %3022 = vst [vmem:[%s4207_s4 + $0x58] sm:$0xff] %v2574_v38  ;;  %v2597_v51 = vmul.f32 %v3028_v32, %v3950_v42  ;;  %v2598_v52 = vmul.f32 %v3029_v33, %v3948_v41  ;;  %v2599_v53 = vmul.f32 %v3030_v34, %v3950_v42  ;;  %v2576_v47 = vmax.f32 %v2568_v43, 0.0 }
 0x23d   : > { %3023 = vst [vmem:[%s4207_s4 + $0x60] sm:$0xff] %v2575_v40  ;;  %v2577_v48 = vmax.f32 %v2569_v45, 0.0  ;;  %v2578_v49 = vmax.f32 %v2570_v46, 0.0  ;;  %v2600_v56 = vmul.f32 %v3031_v39, %v3948_v41  ;;  %v2604_v57 = vadd.f32 %v2596_v50, %v3986_v0 }
 0x23e   : > { %v2605_v59 = vadd.f32 %v2597_v51, %v3988_v1  ;;  %v2606_v60 = vadd.f32 %v2598_v52, %v3986_v0  ;;  %v2607_v2 = vadd.f32 %v2599_v53, %v3988_v1  ;;  %3024 = vst [vmem:[%s4207_s4 + $0x68] sm:$0xff] %v2576_v47  ;;  %v2601_v5 = vmul.f32 %v3032_v54, %v3950_v42 }
 0x23f   : > { %3025 = vst [vmem:[%s4207_s4 + $0x70] sm:$0xff] %v2577_v48  ;;  %3026 = vst [vmem:[%s4207_s4 + $0x78] sm:$0xff] %v2578_v49  ;;  %v2608_v4 = vadd.f32 %v2600_v56, %v3986_v0  ;;  %v2602_v6 = vmul.f32 %v3033_v55, %v3948_v41  ;;  %v2603_v7 = vmul.f32 %v3034_v44, %v3950_v42  ;;  %v2612_v63 = vmax.f32 %v2604_v57, 0.0 }
 0x240   : > { %v2613_v8 = vmax.f32 %v2605_v59, 0.0  ;;  %v2614_v9 = vmax.f32 %v2606_v60, 0.0  ;;  %v2615_v10 = vmax.f32 %v2607_v2, 0.0  ;;  %v2609_v13 = vadd.f32 %v2601_v5, %v3988_v1 }
 0x241   : > { %v2616_v12 = vmax.f32 %v2608_v4, 0.0  ;;  %v2610_v14 = vadd.f32 %v2602_v6, %v3986_v0  ;;  %v2611_v15 = vadd.f32 %v2603_v7, %v3988_v1  ;;  %3035 = vst [vmem:[%s4207_s4 + $0x80] sm:$0xff] %v2612_v63  ;;  %v2637_v16 = vmul.f32 %v3043_v3, %v3948_v41 }
 0x242   : > { %3036 = vst [vmem:[%s4207_s4 + $0x88] sm:$0xff] %v2613_v8  ;;  %3037 = vst [vmem:[%s4207_s4 + $0x90] sm:$0xff] %v2614_v9  ;;  %v2638_v17 = vmul.f32 %v3044_v58, %v3950_v42  ;;  %v2639_v18 = vmul.f32 %v3045_v61, %v3948_v41  ;;  %v2640_v19 = vmul.f32 %v3046_v62, %v3950_v42  ;;  %v2617_v23 = vmax.f32 %v2609_v13, 0.0 }
 0x243   : > { %3038 = vst [vmem:[%s4207_s4 + $0x98] sm:$0xff] %v2615_v10  ;;  %3039 = vst [vmem:[%s4207_s4 + $0xa0] sm:$0xff] %v2616_v12  ;;  %v2618_v24 = vmax.f32 %v2610_v14, 0.0  ;;  %v2619_v25 = vmax.f32 %v2611_v15, 0.0  ;;  %v2641_v26 = vmul.f32 %v3047_v11, %v3948_v41  ;;  %v2645_v27 = vadd.f32 %v2637_v16, %v3986_v0 }
 0x244   : > { %v2646_v28 = vadd.f32 %v2638_v17, %v3988_v1  ;;  %v2647_v29 = vadd.f32 %v2639_v18, %v3986_v0  ;;  %v2648_v30 = vadd.f32 %v2640_v19, %v3988_v1  ;;  %3040 = vst [vmem:[%s4207_s4 + $0xa8] sm:$0xff] %v2617_v23  ;;  %v2642_v32 = vmul.f32 %v3048_v20, %v3950_v42 }
 0x245   : > { %3041 = vst [vmem:[%s4207_s4 + $0xb0] sm:$0xff] %v2618_v24  ;;  %3042 = vst [vmem:[%s4207_s4 + $0xb8] sm:$0xff] %v2619_v25  ;;  %v2649_v31 = vadd.f32 %v2641_v26, %v3986_v0  ;;  %v2643_v33 = vmul.f32 %v3049_v21, %v3948_v41  ;;  %v2644_v34 = vmul.f32 %v3050_v22, %v3950_v42  ;;  %v2653_v35 = vmax.f32 %v2645_v27, 0.0 }
 0x246   : > { %v2654_v36 = vmax.f32 %v2646_v28, 0.0  ;;  %v2655_v37 = vmax.f32 %v2647_v29, 0.0  ;;  %v2656_v38 = vmax.f32 %v2648_v30, 0.0  ;;  %v2650_v40 = vadd.f32 %v2642_v32, %v3988_v1 }
 0x247   : > { %v2657_v39 = vmax.f32 %v2649_v31, 0.0  ;;  %v2651_v43 = vadd.f32 %v2643_v33, %v3986_v0  ;;  %v2652_v45 = vadd.f32 %v2644_v34, %v3988_v1  ;;  %3051 = vst [vmem:[%s4207_s4 + $0xc0] sm:$0xff] %v2653_v35 }
 0x248   : > { %3052 = vst [vmem:[%s4207_s4 + $0xc8] sm:$0xff] %v2654_v36  ;;  %3053 = vst [vmem:[%s4207_s4 + $0xd0] sm:$0xff] %v2655_v37  ;;  %v2658_v41 = vmax.f32 %v2650_v40, 0.0 }
 0x249   : > { %3054 = vst [vmem:[%s4207_s4 + $0xd8] sm:$0xff] %v2656_v38  ;;  %3055 = vst [vmem:[%s4207_s4 + $0xe0] sm:$0xff] %v2657_v39  ;;  %v2659_v42 = vmax.f32 %v2651_v43, 0.0  ;;  %v2660_v0 = vmax.f32 %v2652_v45, 0.0 }
 0x24a   : > { %3056 = vst [vmem:[%s4207_s4 + $0xe8] sm:$0xff] %v2658_v41 }
 0x24b   : > { %3057 = vst [vmem:[%s4207_s4 + $0xf0] sm:$0xff] %v2659_v42  ;;  %3058 = vst [vmem:[%s4207_s4 + $0xf8] sm:$0xff] %v2660_v0 }
 0x24c PF: > { %s14_s15 = sadd.s32 1, %s3522_s15  }
 0x24d   : > { %p11_p6 = scmp.ge.s32.totalorder %s14_s15, 6  }
 0x24f   :  { %13 = sbr.rel (!%p11_p6) target bundleno = 1 (0x1), region = 77 }

// kernel: generator_forward.7
= control target key start
LH: loop header
LB: loop body
LE: loop exit
PB: predicated region body
PF: predicated region fallthrough
CT: control target
= control target key end

     0   :  { %s2575_s15 = smov 0   ;;  %s3322_s0 = inlined_call_operand.vmem [shape: bf16[4,128,1024], index: 0, kind: input, shape index: {}]   ;;  %s3323_s1 = inlined_call_operand.vmem [shape: bf16[4,1024,128], index: 1, kind: input, shape index: {}]   ;;  %s3324_s2 = inlined_call_operand.vmem [shape: f32[1,128], index: 2, kind: input, shape index: {}]   ;;  %s3325_s3 = inlined_call_operand.vmem [shape: f32[1,128], index: 3, kind: input, shape index: {}]   ;;  %s3326_s4 = inlined_call_operand.vmem [shape: f32[4,128,128], index: 4, kind: output, shape index: {}]  }
   0x1 LB: > { %s2581_s16 = sadd.s32 4294967295, %s2547_s15   ;;  %p1974_p0 = scmp.ge.s32.totalorder %s2547_s15, 1  ;;  %s2547_s15 = sphi %s2575_s15, %s14_s15  }
   0x2   : > { %p167_p1 = scmp.lt.s32.totalorder %s2547_s15, 5 }
   0x4   : > { %p168_p2 = pnand %p1974_p0, %p167_p1 }
   0x5   : > { %p193_p3 = scmp.lt.s32.totalorder (!%p168_p2), %s2581_s16, 3  ;;  %p1979_p4 = scmp.ne.s32.totalorder (!%p168_p2), %s2581_s16, 0 }
   0x6   : > { %171 = sbr.rel (%p168_p2) target bundleno = 499 (0x1f3), region = 36 }
   0xd   : > { %s194_s17 = scalar_select %p193_p3, %s2581_s16, 3 }
   0xe   : > { %207 = sbr.rel (%p1979_p4) target bundleno = 21 (0x15), region = 40  ;;  %v2549_v0 = vmov (!%p1979_p4), 0.0  }
   0xf   : > { %s2208_s18 = sshll.u32 %s194_s17, 9  ;;  %208 = vst [vmem:[#allocation2] sm:$0x1] (!%p1979_p4), %v2549_v0  ;;  %209 = vst [vmem:[#allocation3] sm:$0x1] (!%p1979_p4), %v2549_v0 }
  0x10   : > { %s2590_s21 = scalar_lea.vmem %s3322_s0, %s2208_s18  ;;  %s2595_s24 = scalar_lea.vmem %s3323_s1, %s2208_s18 }
  0x15 PF: > { %v2475_v1 = vld [vmem:[%s2595_s24 + $0x40] sm:$0xff]   ;;  %v2479_v5 = vld [vmem:[%s2595_s24 + $0x48] sm:$0xff]   ;;  %v2483_v9 = vld [vmem:[%s2595_s24 + $0x50] sm:$0xff]   ;;  %s2108_s25 = sshll.u32 %s2581_s16, 7  ;;  %p2109_p5 = scmp.ne.s32.totalorder %s2581_s16, 3 }
  0x16   : > { %v2476_v2 = vld [vmem:[%s2595_s24 + $0xc0] sm:$0xff]   ;;  %2210 = vmatprep.subr.bf16.mxu0 %v2475_v1  ;;  %v2480_v6 = vld [vmem:[%s2595_s24 + $0xc8] sm:$0xff]   ;;  %v2484_v10 = vld [vmem:[%s2595_s24 + $0xd0] sm:$0xff]   ;;  %s2763_s28 = scalar_lea.vmem %s3326_s4, %s2108_s25 }
  0x17   : > { %v2477_v3 = vld [vmem:[%s2595_s24] sm:$0xff]   ;;  %2274 = vmatprep.subr.bf16.mxu1 %v2476_v2  ;;  %v2481_v7 = vld [vmem:[%s2595_s24 + $0x8] sm:$0xff]   ;;  %v2485_v11 = vld [vmem:[%s2595_s24 + $0x10] sm:$0xff]  }
  0x18   : > { %v2478_v4 = vld [vmem:[%s2595_s24 + $0x80] sm:$0xff]   ;;  %2211 = vmatpush3.bf16.msra.mxu0 %v2477_v3  ;;  %v2482_v8 = vld [vmem:[%s2595_s24 + $0x88] sm:$0xff]   ;;  %v2486_v12 = vld [vmem:[%s2595_s24 + $0x90] sm:$0xff]  }
  0x19   : > { %2275 = vmatpush3.bf16.msra.mxu1 %v2478_v4  ;;  %2212 = vmatprep.subr.bf16.mxu0 %v2479_v5  ;;  %v2487_v13 = vld [vmem:[%s2595_s24 + $0x58] sm:$0xff]   ;;  %v2491_v17 = vld [vmem:[%s2595_s24 + $0x60] sm:$0xff]   ;;  %v2495_v21 = vld [vmem:[%s2595_s24 + $0x68] sm:$0xff]  }
  0x1a   : > { %2276 = vmatprep.subr.bf16.mxu1 %v2480_v6  ;;  %v2488_v14 = vld [vmem:[%s2595_s24 + $0xd8] sm:$0xff]   ;;  %v2492_v18 = vld [vmem:[%s2595_s24 + $0xe0] sm:$0xff]   ;;  %v2496_v22 = vld [vmem:[%s2595_s24 + $0xe8] sm:$0xff]  }
  0x1b   : > { %v2489_v15 = vld [vmem:[%s2595_s24 + $0x18] sm:$0xff]   ;;  %v2493_v19 = vld [vmem:[%s2595_s24 + $0x20] sm:$0xff]   ;;  %v2497_v23 = vld [vmem:[%s2595_s24 + $0x28] sm:$0xff]  }
  0x1c   : > { %2213 = vmatpush3.bf16.msra.mxu0 %v2481_v7  ;;  %v2490_v16 = vld [vmem:[%s2595_s24 + $0x98] sm:$0xff]   ;;  %v2494_v20 = vld [vmem:[%s2595_s24 + $0xa0] sm:$0xff]   ;;  %v2498_v24 = vld [vmem:[%s2595_s24 + $0xa8] sm:$0xff]  }
  0x1d   : > { %2277 = vmatpush3.bf16.msra.mxu1 %v2482_v8  ;;  %2214 = vmatprep.subr.bf16.mxu0 %v2483_v9  ;;  %v2499_v25 = vld [vmem:[%s2595_s24 + $0x70] sm:$0xff]   ;;  %v2503_v29 = vld [vmem:[%s2595_s24 + $0x78] sm:$0xff]   ;;  %v210_v33 = vld [vmem:[%s2590_s21] sm:$0xff] }
  0x1e   : > { %2278 = vmatprep.subr.bf16.mxu1 %v2484_v10  ;;  %v2500_v26 = vld [vmem:[%s2595_s24 + $0xf0] sm:$0xff]   ;;  %v2504_v30 = vld [vmem:[%s2595_s24 + $0xf8] sm:$0xff]   ;;  %v214_v34 = vld [vmem:[%s2590_s21 + $0x20] sm:$0xff] }
  0x1f   : > { %v2501_v27 = vld [vmem:[%s2595_s24 + $0x30] sm:$0xff]   ;;  %v2505_v31 = vld [vmem:[%s2595_s24 + $0x38] sm:$0xff]   ;;  %v211_v35 = vld [vmem:[%s2590_s21 + $0x8] sm:$0xff]  ;;  %v1980_v36 = vcombine.low %v210_v33, %v214_v34  ;;  %v1981_v37 = vcombine.high %v210_v33, %v214_v34 }
  0x20   : > { %2215 = vmatpush3.bf16.msra.mxu0 %v2485_v11  ;;  %v2502_v28 = vld [vmem:[%s2595_s24 + $0xb0] sm:$0xff]   ;;  %v2506_v32 = vld [vmem:[%s2595_s24 + $0xb8] sm:$0xff]   ;;  %v215_v38 = vld [vmem:[%s2590_s21 + $0x28] sm:$0xff] }
  0x21   : > { %2279 = vmatpush3.bf16.msra.mxu1 %v2486_v12  ;;  %2216 = vmatprep.subr.bf16.mxu0 %v2487_v13  ;;  %v1982_v39 = vcombine.low %v211_v35, %v215_v38  ;;  %v1983_v40 = vcombine.high %v211_v35, %v215_v38  ;;  %v2507_v41 = vld [vmem:[%s2595_s24 + $0x140] sm:$0xff]   ;;  %v219_v48 = vld [vmem:[%s2590_s21 + $0x48] sm:$0xff]  ;;  %v2515_v63 = vld [vmem:[%s2595_s24 + $0x150] sm:$0xff]  }
  0x22   : > { %2280 = vmatprep.subr.bf16.mxu1 %v2488_v14  ;;  %1138 = vmatprep.mubr.bf16.mxu0 %v1981_v37  ;;  %v2508_v42 = vld [vmem:[%s2595_s24 + $0x100] sm:$0xff]   ;;  %v223_v49 = vld [vmem:[%s2590_s21 + $0x68] sm:$0xff]  ;;  %v2516_v0 = vld [vmem:[%s2595_s24 + $0x110] sm:$0xff]  }
  0x23   : > { %1235 = vmatprep.mubr.bf16.mxu1 %v1983_v40  ;;  %v2509_v43 = vld [vmem:[%s2595_s24 + $0x1c0] sm:$0xff]   ;;  %v1991_v50 = vcombine.high %v219_v48, %v223_v49  ;;  %v2511_v51 = vld [vmem:[%s2595_s24 + $0x148] sm:$0xff]   ;;  %v1990_v54 = vcombine.low %v219_v48, %v223_v49  ;;  %v2517_v1 = vld [vmem:[%s2595_s24 + $0x1d0] sm:$0xff]  }
  0x24   : > { %2217 = vmatpush3.bf16.msra.mxu0 %v2489_v15  ;;  %v2510_v44 = vld [vmem:[%s2595_s24 + $0x180] sm:$0xff]   ;;  %v2512_v53 = vld [vmem:[%s2595_s24 + $0x108] sm:$0xff]   ;;  %v2518_v2 = vld [vmem:[%s2595_s24 + $0x190] sm:$0xff]  }
  0x25   : > { %2281 = vmatpush3.bf16.msra.mxu1 %v2490_v16  ;;  %2218 = vmatprep.subr.bf16.mxu0 %v2491_v17  ;;  %v218_v45 = vld [vmem:[%s2590_s21 + $0x40] sm:$0xff]  ;;  %v2513_v55 = vld [vmem:[%s2595_s24 + $0x1c8] sm:$0xff]   ;;  %v2519_v11 = vld [vmem:[%s2595_s24 + $0x158] sm:$0xff]  }
  0x26   : > { %2282 = vmatprep.subr.bf16.mxu1 %v2492_v18  ;;  %v222_v46 = vld [vmem:[%s2590_s21 + $0x60] sm:$0xff]  ;;  %v2514_v56 = vld [vmem:[%s2595_s24 + $0x188] sm:$0xff]   ;;  %v2520_v12 = vld [vmem:[%s2595_s24 + $0x118] sm:$0xff]  }
  0x27   : > { %v1989_v47 = vcombine.high %v218_v45, %v222_v46  ;;  %v1988_v52 = vcombine.low %v218_v45, %v222_v46  ;;  %v226_v57 = vld [vmem:[%s2590_s21 + $0x80] sm:$0xff]  ;;  %v227_v59 = vld [vmem:[%s2590_s21 + $0x88] sm:$0xff]  ;;  %v2521_v13 = vld [vmem:[%s2595_s24 + $0x1d8] sm:$0xff]  }
  0x28   : > { %2219 = vmatpush3.bf16.msra.mxu0 %v2493_v19  ;;  %v230_v58 = vld [vmem:[%s2590_s21 + $0xa0] sm:$0xff]  ;;  %v231_v60 = vld [vmem:[%s2590_s21 + $0xa8] sm:$0xff]  ;;  %v2522_v14 = vld [vmem:[%s2595_s24 + $0x198] sm:$0xff]  }
  0x29   : > { %2283 = vmatpush3.bf16.msra.mxu1 %v2494_v20  ;;  %2220 = vmatprep.subr.bf16.mxu0 %v2495_v21  ;;  %v1997_v61 = vcombine.high %v226_v57, %v230_v58  ;;  %v1999_v62 = vcombine.high %v227_v59, %v231_v60  ;;  %v1996_v3 = vcombine.low %v226_v57, %v230_v58  ;;  %v234_v4 = vld [vmem:[%s2590_s21 + $0xc0] sm:$0xff]  ;;  %v235_v6 = vld [vmem:[%s2590_s21 + $0xc8] sm:$0xff]  ;;  %v2532_v40 = vld [vmem:[%s2595_s24 + $0x130] sm:$0xff]  }
  0x2a   : > { %2284 = vmatprep.subr.bf16.mxu1 %v2496_v22  ;;  %v238_v5 = vld [vmem:[%s2590_s21 + $0xe0] sm:$0xff]  ;;  %v1998_v7 = vcombine.low %v227_v59, %v231_v60  ;;  %v239_v9 = vld [vmem:[%s2590_s21 + $0xe8] sm:$0xff]  ;;  %v2536_v49 = vld [vmem:[%s2595_s24 + $0x138] sm:$0xff]  }
  0x2b   : > { %v2005_v8 = vcombine.high %v234_v4, %v238_v5  ;;  %v2007_v10 = vcombine.high %v235_v6, %v239_v9  ;;  %v242_v15 = vld [vmem:[%s2590_s21 + $0x100] sm:$0xff]  ;;  %v243_v17 = vld [vmem:[%s2590_s21 + $0x108] sm:$0xff]  ;;  %v2004_v20 = vcombine.low %v234_v4, %v238_v5  ;;  %v2006_v22 = vcombine.low %v235_v6, %v239_v9  ;;  %v221_v9 = vld [vmem:[%s2590_s21 + $0x58] sm:$0xff] }
  0x2c   : > { %2221 = vmatpush3.bf16.msra.mxu0 %v2497_v23  ;;  %v246_v16 = vld [vmem:[%s2590_s21 + $0x120] sm:$0xff]  ;;  %v247_v18 = vld [vmem:[%s2590_s21 + $0x128] sm:$0xff] }
  0x2d   : > { %2285 = vmatpush3.bf16.msra.mxu1 %v2498_v24  ;;  %2222 = vmatprep.subr.bf16.mxu0 %v2499_v25  ;;  %v2523_v19 = vld [vmem:[%s2595_s24 + $0x160] sm:$0xff]   ;;  %v2013_v23 = vcombine.high %v242_v15, %v246_v16  ;;  %v2015_v25 = vcombine.high %v243_v17, %v247_v18  ;;  %v2529_v33 = vld [vmem:[%s2595_s24 + $0x1e8] sm:$0xff]   ;;  %v2012_v35 = vcombine.low %v242_v15, %v246_v16  ;;  %v228_v15 = vld [vmem:[%s2590_s21 + $0x90] sm:$0xff] }
  0x2e   : > { %2286 = vmatprep.subr.bf16.mxu1 %v2500_v26  ;;  %v2524_v21 = vld [vmem:[%s2595_s24 + $0x120] sm:$0xff]   ;;  %v2530_v34 = vld [vmem:[%s2595_s24 + $0x1a8] sm:$0xff]   ;;  %v232_v16 = vld [vmem:[%s2590_s21 + $0xb0] sm:$0xff] }
  0x2f   : > { %v2525_v24 = vld [vmem:[%s2595_s24 + $0x1e0] sm:$0xff]   ;;  %v259_v45 = vld [vmem:[%s2590_s21 + $0x188] sm:$0xff] }
  0x30   : > { %2223 = vmatpush3.bf16.msra.mxu0 %v2501_v27  ;;  %v2526_v26 = vld [vmem:[%s2595_s24 + $0x1a0] sm:$0xff]   ;;  %v263_v46 = vld [vmem:[%s2590_s21 + $0x1a8] sm:$0xff] }
  0x31   : > { %2287 = vmatpush3.bf16.msra.mxu1 %v2502_v28  ;;  %2224 = vmatprep.subr.bf16.mxu0 %v2503_v29  ;;  %v250_v27 = vld [vmem:[%s2590_s21 + $0x140] sm:$0xff]  ;;  %v2527_v29 = vld [vmem:[%s2595_s24 + $0x168] sm:$0xff]   ;;  %v2030_v60 = vcombine.low %v259_v45, %v263_v46 }
  0x32   : > { %2288 = vmatprep.subr.bf16.mxu1 %v2504_v30  ;;  %v254_v28 = vld [vmem:[%s2590_s21 + $0x160] sm:$0xff]  ;;  %v251_v30 = vld [vmem:[%s2590_s21 + $0x148] sm:$0xff] }
  0x33   : > { %v2021_v37 = vcombine.high %v250_v27, %v254_v28  ;;  %v2020_v48 = vcombine.low %v250_v27, %v254_v28  ;;  %v267_v57 = vld [vmem:[%s2590_s21 + $0x1c8] sm:$0xff]  ;;  %v2000_v27 = vcombine.low %v228_v15, %v232_v16 }
  0x34   : > { %2225 = vmatpush3.bf16.msra.mxu0 %v2505_v31  ;;  %v255_v31 = vld [vmem:[%s2590_s21 + $0x168] sm:$0xff] }
  0x35   : > { %2289 = vmatpush3.bf16.msra.mxu1 %v2506_v32  ;;  %2338 = vmatprep.subr.bf16.mxu0 %v2507_v41  ;;  %v2528_v32 = vld [vmem:[%s2595_s24 + $0x128] sm:$0xff]   ;;  %v2023_v38 = vcombine.high %v251_v30, %v255_v31  ;;  %v2533_v41 = vld [vmem:[%s2595_s24 + $0x1f0] sm:$0xff]  }
  0x36   : > { %2402 = vmatprep.subr.bf16.mxu1 %v2509_v43  ;;  %v262_v43 = vld [vmem:[%s2590_s21 + $0x1a0] sm:$0xff]  ;;  %v271_v58 = vld [vmem:[%s2590_s21 + $0x1e8] sm:$0xff] }
  0x37   : > { %1139 = vmatmul.mubr.bf16.vlgmr.msra.gmra.mrb[0].mxu0 %v1980_v36  ;;  %v2014_v36 = vcombine.low %v243_v17, %v247_v18  ;;  %v2038_v4 = vcombine.low %v267_v57, %v271_v58  ;;  %v229_v17 = vld [vmem:[%s2590_s21 + $0x98] sm:$0xff] }
  0x38   : > { %1236 = vmatmul.mubr.bf16.vlgmr.msra.gmra.mrb[0].mxu1 %v1982_v39  ;;  %2339 = vmatpush3.bf16.msra.mxu0 %v2508_v42  ;;  %v2531_v39 = vld [vmem:[%s2595_s24 + $0x170] sm:$0xff]   ;;  %v258_v42 = vld [vmem:[%s2590_s21 + $0x180] sm:$0xff]  ;;  %v233_v18 = vld [vmem:[%s2590_s21 + $0xb8] sm:$0xff] }
  0x39   : > { %2403 = vmatpush3.bf16.msra.mxu1 %v2510_v44  ;;  %1146 = vmatprep.mubr.bf16.mxu0 %v1989_v47  ;;  %v2534_v44 = vld [vmem:[%s2595_s24 + $0x1b0] sm:$0xff]   ;;  %v2535_v47 = vld [vmem:[%s2595_s24 + $0x178] sm:$0xff]   ;;  %v2028_v59 = vcombine.low %v258_v42, %v262_v43  ;;  %v2002_v28 = vcombine.low %v229_v17, %v233_v18 }
  0x3a   : > { %1243 = vmatprep.mubr.bf16.mxu1 %v1991_v50  ;;  %2340 = vmatprep.subr.bf16.mxu0 %v2511_v51  ;;  %v2022_v50 = vcombine.low %v251_v30, %v255_v31  ;;  %v2029_v51 = vcombine.high %v258_v42, %v262_v43  ;;  %v244_v31 = vld [vmem:[%s2590_s21 + $0x110] sm:$0xff]  ;;  %v257_v42 = vld [vmem:[%s2590_s21 + $0x178] sm:$0xff] }
  0x3b   : > { %2404 = vmatprep.subr.bf16.mxu1 %v2513_v55  ;;  %v266_v55 = vld [vmem:[%s2590_s21 + $0x1c0] sm:$0xff] }
  0x3c   : > { %2341 = vmatpush3.bf16.msra.mxu0 %v2512_v53  ;;  %v2031_v53 = vcombine.high %v259_v45, %v263_v46 }
  0x3d   : > { %2405 = vmatpush3.bf16.msra.mxu1 %v2514_v56  ;;  %2342 = vmatprep.subr.bf16.mxu0 %v2515_v63  ;;  %v270_v56 = vld [vmem:[%s2590_s21 + $0x1e0] sm:$0xff]  ;;  %v212_v63 = vld [vmem:[%s2590_s21 + $0x10] sm:$0xff] }
  0x3e   : > { %2406 = vmatprep.subr.bf16.mxu1 %v2517_v1  ;;  %v213_v1 = vld [vmem:[%s2590_s21 + $0x18] sm:$0xff] }
  0x3f   : > { %1147 = vmatmul.mubr.bf16.gmra.mrb[4].mxu0 %v1988_v52  ;;  %v2537_v52 = vld [vmem:[%s2595_s24 + $0x1f8] sm:$0xff]  }
  0x40   : > { %1244 = vmatmul.mubr.bf16.gmra.mrb[4].mxu1 %v1990_v54  ;;  %1154 = vmatprep.mubr.bf16.mxu0 %v1997_v61  ;;  %v2538_v54 = vld [vmem:[%s2595_s24 + $0x1b8] sm:$0xff]   ;;  %v2037_v61 = vcombine.high %v266_v55, %v270_v56 }
  0x41   : > { %1251 = vmatprep.mubr.bf16.mxu1 %v1999_v62  ;;  %2343 = vmatpush3.bf16.msra.mxu0 %v2516_v0  ;;  %v2039_v62 = vcombine.high %v267_v57, %v271_v58  ;;  %v216_v0 = vld [vmem:[%s2590_s21 + $0x30] sm:$0xff]  ;;  %v269_v57 = vld [vmem:[%s2590_s21 + $0x1d8] sm:$0xff] }
  0x42   : > { %2407 = vmatpush3.bf16.msra.mxu1 %v2518_v2  ;;  %2344 = vmatprep.subr.bf16.mxu0 %v2519_v11  ;;  %v217_v2 = vld [vmem:[%s2590_s21 + $0x38] sm:$0xff]  ;;  %v1985_v5 = vcombine.high %v212_v63, %v216_v0  ;;  %v1984_v11 = vcombine.low %v212_v63, %v216_v0 }
  0x43   : > { %2408 = vmatprep.subr.bf16.mxu1 %v2521_v13  ;;  %v1987_v6 = vcombine.high %v213_v1, %v217_v2  ;;  %v273_v58 = vld [vmem:[%s2590_s21 + $0x1f8] sm:$0xff] }
  0x44   : > { %v2042_v0 = vcombine.low %v269_v57, %v273_v58 }
  0x45   : > { %2345 = vmatpush3.bf16.msra.mxu0 %v2520_v12  ;;  %v1986_v12 = vcombine.low %v213_v1, %v217_v2 }
  0x46   : > { %2409 = vmatpush3.bf16.msra.mxu1 %v2522_v14  ;;  %2346 = vmatprep.subr.bf16.mxu0 %v2523_v19 }
  0x47   : > { %1155 = vmatmul.mubr.bf16.gmra.mrb[8].mxu0 %v1996_v3  ;;  %2410 = vmatprep.subr.bf16.mxu1 %v2525_v24  ;;  %v2036_v3 = vcombine.low %v266_v55, %v270_v56  ;;  %v240_v24 = vld [vmem:[%s2590_s21 + $0xf0] sm:$0xff] }
  0x48   : > { %1252 = vmatmul.mubr.bf16.gmra.mrb[8].mxu1 %v1998_v7  ;;  %1162 = vmatprep.mubr.bf16.mxu0 %v2005_v8  ;;  %v220_v7 = vld [vmem:[%s2590_s21 + $0x50] sm:$0xff] }
  0x49   : > { %1259 = vmatprep.mubr.bf16.mxu1 %v2007_v10  ;;  %2347 = vmatpush3.bf16.msra.mxu0 %v2524_v21  ;;  %v224_v8 = vld [vmem:[%s2590_s21 + $0x70] sm:$0xff]  ;;  %v225_v10 = vld [vmem:[%s2590_s21 + $0x78] sm:$0xff]  ;;  %v2001_v21 = vcombine.high %v228_v15, %v232_v16 }
  0x4a   : > { %2411 = vmatpush3.bf16.msra.mxu1 %v2526_v26  ;;  %2348 = vmatprep.subr.bf16.mxu0 %v2527_v29  ;;  %v1993_v13 = vcombine.high %v220_v7, %v224_v8  ;;  %v1995_v14 = vcombine.high %v221_v9, %v225_v10  ;;  %v1992_v19 = vcombine.low %v220_v7, %v224_v8  ;;  %v241_v26 = vld [vmem:[%s2590_s21 + $0xf8] sm:$0xff]  ;;  %v268_v55 = vld [vmem:[%s2590_s21 + $0x1d0] sm:$0xff] }
  0x4b   : > { %2412 = vmatprep.subr.bf16.mxu1 %v2529_v33  ;;  %v245_v33 = vld [vmem:[%s2590_s21 + $0x118] sm:$0xff]  ;;  %v272_v56 = vld [vmem:[%s2590_s21 + $0x1f0] sm:$0xff] }
  0x4c   : > { %v2040_v63 = vcombine.low %v268_v55, %v272_v56 }
  0x4d   : > { %2349 = vmatpush3.bf16.msra.mxu0 %v2528_v32  ;;  %v248_v32 = vld [vmem:[%s2590_s21 + $0x130] sm:$0xff] }
  0x4e   : > { %2413 = vmatpush3.bf16.msra.mxu1 %v2530_v34  ;;  %2350 = vmatprep.subr.bf16.mxu0 %v2531_v39  ;;  %v249_v34 = vld [vmem:[%s2590_s21 + $0x138] sm:$0xff]  ;;  %v252_v39 = vld [vmem:[%s2590_s21 + $0x150] sm:$0xff]  ;;  %v2016_v43 = vcombine.low %v244_v31, %v248_v32 }
  0x4f   : > { %1163 = vmatmul.mubr.bf16.gmra.mrb[12].mxu0 %v2004_v20  ;;  %2414 = vmatprep.subr.bf16.mxu1 %v2533_v41  ;;  %v1994_v20 = vcombine.low %v221_v9, %v225_v10  ;;  %v253_v41 = vld [vmem:[%s2590_s21 + $0x158] sm:$0xff] }
  0x50   : > { %1260 = vmatmul.mubr.bf16.gmra.mrb[12].mxu1 %v2006_v22  ;;  %1170 = vmatprep.mubr.bf16.mxu0 %v2013_v23  ;;  %v2003_v22 = vcombine.high %v229_v17, %v233_v18  ;;  %v236_v23 = vld [vmem:[%s2590_s21 + $0xd0] sm:$0xff]  ;;  %v2027_v46 = vcombine.high %v253_v41, %v257_v42 }
  0x51   : > { %1267 = vmatprep.mubr.bf16.mxu1 %v2015_v25  ;;  %2351 = vmatpush3.bf16.msra.mxu0 %v2532_v40  ;;  %v237_v25 = vld [vmem:[%s2590_s21 + $0xd8] sm:$0xff]  ;;  %v2009_v29 = vcombine.high %v236_v23, %v240_v24  ;;  %v256_v40 = vld [vmem:[%s2590_s21 + $0x170] sm:$0xff] }
  0x52   : > { %2415 = vmatpush3.bf16.msra.mxu1 %v2534_v44  ;;  %2352 = vmatprep.subr.bf16.mxu0 %v2535_v47  ;;  %v2011_v30 = vcombine.high %v237_v25, %v241_v26  ;;  %v2018_v44 = vcombine.low %v245_v33, %v249_v34  ;;  %v2025_v45 = vcombine.high %v252_v39, %v256_v40  ;;  %v260_v47 = vld [vmem:[%s2590_s21 + $0x190] sm:$0xff] }
  0x53   : > { %2416 = vmatprep.subr.bf16.mxu1 %v2537_v52  ;;  %v2026_v52 = vcombine.low %v253_v41, %v257_v42 }
  0x55   : > { %2353 = vmatpush3.bf16.msra.mxu0 %v2536_v49  ;;  %v261_v49 = vld [vmem:[%s2590_s21 + $0x198] sm:$0xff] }
  0x56   : > { %2417 = vmatpush3.bf16.msra.mxu1 %v2538_v54 }
  0x57   : > { %1171 = vmatmul.mubr.bf16.gmra.mrb[16].mxu0 %v2012_v35  ;;  %v2008_v35 = vcombine.low %v236_v23, %v240_v24 }
  0x58   : > { %1268 = vmatmul.mubr.bf16.gmra.mrb[16].mxu1 %v2014_v36  ;;  %1178 = vmatprep.mubr.bf16.mxu0 %v2021_v37  ;;  %v2010_v36 = vcombine.low %v237_v25, %v241_v26  ;;  %v2017_v37 = vcombine.high %v244_v31, %v248_v32 }
  0x59   : > { %1275 = vmatprep.mubr.bf16.mxu1 %v2023_v38  ;;  %v2019_v38 = vcombine.high %v245_v33, %v249_v34 }
  0x5f   : > { %1179 = vmatmul.mubr.bf16.gmra.mrb[20].mxu0 %v2020_v48  ;;  %v264_v48 = vld [vmem:[%s2590_s21 + $0x1b0] sm:$0xff] }
  0x60   : > { %1276 = vmatmul.mubr.bf16.gmra.mrb[20].mxu1 %v2022_v50  ;;  %1186 = vmatprep.mubr.bf16.mxu0 %v2029_v51  ;;  %v265_v50 = vld [vmem:[%s2590_s21 + $0x1b8] sm:$0xff]  ;;  %v2024_v51 = vcombine.low %v252_v39, %v256_v40 }
  0x61   : > { %1283 = vmatprep.mubr.bf16.mxu1 %v2031_v53  ;;  %v2033_v53 = vcombine.high %v260_v47, %v264_v48  ;;  %v2035_v54 = vcombine.high %v261_v49, %v265_v50 }
  0x67   : > { %1187 = vmatmul.mubr.bf16.gmra.mrb[24].mxu0 %v2028_v59  ;;  %v2032_v59 = vcombine.low %v260_v47, %v264_v48 }
  0x68   : > { %1284 = vmatmul.mubr.bf16.gmra.mrb[24].mxu1 %v2030_v60  ;;  %1194 = vmatprep.mubr.bf16.mxu0 %v2037_v61  ;;  %v2034_v60 = vcombine.low %v261_v49, %v265_v50  ;;  %v2041_v61 = vcombine.high %v268_v55, %v272_v56 }
  0x69   : > { %1291 = vmatprep.mubr.bf16.mxu1 %v2039_v62  ;;  %v2043_v62 = vcombine.high %v269_v57, %v273_v58 }
  0x6f   : > { %1195 = vmatmul.mubr.bf16.gmra.mrb[28].mxu0 %v2036_v3 }
  0x70   : > { %1292 = vmatmul.mubr.bf16.gmra.mrb[28].mxu1 %v2038_v4  ;;  %1332 = vmatprep.mubr.bf16.mxu0 %v1985_v5 }
  0x71   : > { %1429 = vmatprep.mubr.bf16.mxu1 %v1987_v6 }
  0x77   : > { %1333 = vmatmul.mubr.bf16.vlgmr.msra.gmra.mrb[32].mxu0 %v1984_v11 }
  0x78   : > { %1430 = vmatmul.mubr.bf16.vlgmr.msra.gmra.mrb[32].mxu1 %v1986_v12  ;;  %1340 = vmatprep.mubr.bf16.mxu0 %v1993_v13 }
  0x79   : > { %1437 = vmatprep.mubr.bf16.mxu1 %v1995_v14 }
  0x7f   : > { %1341 = vmatmul.mubr.bf16.gmra.mrb[36].mxu0 %v1992_v19 }
  0x80   : > { %1438 = vmatmul.mubr.bf16.gmra.mrb[36].mxu1 %v1994_v20  ;;  %1348 = vmatprep.mubr.bf16.mxu0 %v2001_v21 }
  0x81   : > { %1445 = vmatprep.mubr.bf16.mxu1 %v2003_v22 }
  0x87   : > { %1349 = vmatmul.mubr.bf16.gmra.mrb[40].mxu0 %v2000_v27 }
  0x88   : > { %1446 = vmatmul.mubr.bf16.gmra.mrb[40].mxu1 %v2002_v28  ;;  %1356 = vmatprep.mubr.bf16.mxu0 %v2009_v29 }
  0x89   : > { %1453 = vmatprep.mubr.bf16.mxu1 %v2011_v30 }
  0x8f   : > { %1357 = vmatmul.mubr.bf16.gmra.mrb[44].mxu0 %v2008_v35 }
  0x90   : > { %1454 = vmatmul.mubr.bf16.gmra.mrb[44].mxu1 %v2010_v36  ;;  %1364 = vmatprep.mubr.bf16.mxu0 %v2017_v37 }
  0x91   : > { %1461 = vmatprep.mubr.bf16.mxu1 %v2019_v38 }
  0x97   : > { %1365 = vmatmul.mubr.bf16.gmra.mrb[48].mxu0 %v2016_v43 }
  0x98   : > { %1462 = vmatmul.mubr.bf16.gmra.mrb[48].mxu1 %v2018_v44  ;;  %1372 = vmatprep.mubr.bf16.mxu0 %v2025_v45 }
  0x99   : > { %1469 = vmatprep.mubr.bf16.mxu1 %v2027_v46 }
  0x9f   : > { %1373 = vmatmul.mubr.bf16.gmra.mrb[52].mxu0 %v2024_v51 }
  0xa0   : > { %1470 = vmatmul.mubr.bf16.gmra.mrb[52].mxu1 %v2026_v52  ;;  %1380 = vmatprep.mubr.bf16.mxu0 %v2033_v53 }
  0xa1   : > { %1477 = vmatprep.mubr.bf16.mxu1 %v2035_v54 }
  0xa7   : > { %1381 = vmatmul.mubr.bf16.gmra.mrb[56].mxu0 %v2032_v59 }
  0xa8   : > { %1478 = vmatmul.mubr.bf16.gmra.mrb[56].mxu1 %v2034_v60  ;;  %1388 = vmatprep.mubr.bf16.mxu0 %v2041_v61 }
  0xa9   : > { %1485 = vmatprep.mubr.bf16.mxu1 %v2043_v62 }
  0xaf   : > { %1389 = vmatmul.mubr.bf16.gmra.mrb[60].mxu0 %v2040_v63 }
  0xb0   : > { %1486 = vmatmul.mubr.bf16.gmra.mrb[60].mxu1 %v2042_v0 }
 0x10a   : > { %v2226_v1 = vpop.f32.mrb[0].mxu0 }
 0x10b   : > { %v2290_v2 = vpop.f32.mrb[0].mxu1  ;;  %v2227_v3 = vpop.f32.mrb[1].mxu0 }
 0x10c   : > { %v2228_v4 = vadd.f32 %v2227_v3, %v2226_v1  ;;  %v2291_v5 = vpop.f32.mrb[1].mxu1  ;;  %v2229_v6 = vpop.f32.mrb[2].mxu0 }
 0x10d   : > { %v2292_v7 = vadd.f32 %v2291_v5, %v2290_v2  ;;  %v2293_v8 = vpop.f32.mrb[2].mxu1  ;;  %v2230_v9 = vpop.f32.mrb[3].mxu0 }
 0x10e   : > { %v2231_v10 = vadd.f32 %v2230_v9, %v2229_v6  ;;  %v2294_v11 = vpop.f32.mrb[3].mxu1 }
 0x10f   : > { %v2726_v12 = vadd.f32 %v2292_v7, %v2228_v4  ;;  %v2295_v13 = vadd.f32 %v2294_v11, %v2293_v8 }
 0x111   : > { %v2728_v14 = vadd.f32 %v2295_v13, %v2231_v10 }
 0x112   : > { %v2232_v15 = vpop.f32.mrb[4].mxu0 }
 0x113   : > { %v2296_v16 = vpop.f32.mrb[4].mxu1  ;;  %v2233_v17 = vpop.f32.mrb[5].mxu0 }
 0x114   : > { %v2234_v18 = vadd.f32 %v2233_v17, %v2232_v15  ;;  %v2297_v19 = vpop.f32.mrb[5].mxu1  ;;  %v2235_v20 = vpop.f32.mrb[6].mxu0 }
 0x115   : > { %v2298_v21 = vadd.f32 %v2297_v19, %v2296_v16  ;;  %v2299_v22 = vpop.f32.mrb[6].mxu1  ;;  %v2236_v23 = vpop.f32.mrb[7].mxu0 }
 0x116   : > { %v2237_v24 = vadd.f32 %v2236_v23, %v2235_v20  ;;  %v2300_v25 = vpop.f32.mrb[7].mxu1 }
 0x117   : > { %v2730_v26 = vadd.f32 %v2298_v21, %v2234_v18  ;;  %v2301_v27 = vadd.f32 %v2300_v25, %v2299_v22 }
 0x119   : > { %v2732_v28 = vadd.f32 %v2301_v27, %v2237_v24 }
 0x11a   : > { %v2238_v29 = vpop.f32.mrb[8].mxu0 }
 0x11b   : > { %v2302_v30 = vpop.f32.mrb[8].mxu1  ;;  %v2239_v31 = vpop.f32.mrb[9].mxu0 }
 0x11c   : > { %v2240_v32 = vadd.f32 %v2239_v31, %v2238_v29  ;;  %v2303_v33 = vpop.f32.mrb[9].mxu1  ;;  %v2241_v34 = vpop.f32.mrb[10].mxu0 }
 0x11d   : > { %v2304_v35 = vadd.f32 %v2303_v33, %v2302_v30  ;;  %v2305_v36 = vpop.f32.mrb[10].mxu1  ;;  %v2242_v37 = vpop.f32.mrb[11].mxu0 }
 0x11e   : > { %v2243_v38 = vadd.f32 %v2242_v37, %v2241_v34  ;;  %v2306_v39 = vpop.f32.mrb[11].mxu1 }
 0x11f   : > { %v2734_v40 = vadd.f32 %v2304_v35, %v2240_v32  ;;  %v2307_v41 = vadd.f32 %v2306_v39, %v2305_v36 }
 0x121   : > { %v2736_v42 = vadd.f32 %v2307_v41, %v2243_v38 }
 0x122   : > { %v2244_v43 = vpop.f32.mrb[12].mxu0 }
 0x123   : > { %v2308_v44 = vpop.f32.mrb[12].mxu1  ;;  %v2245_v45 = vpop.f32.mrb[13].mxu0 }
 0x124   : > { %v2246_v46 = vadd.f32 %v2245_v45, %v2244_v43  ;;  %v2309_v47 = vpop.f32.mrb[13].mxu1  ;;  %v2247_v48 = vpop.f32.mrb[14].mxu0 }
 0x125   : > { %v2310_v49 = vadd.f32 %v2309_v47, %v2308_v44  ;;  %v2311_v50 = vpop.f32.mrb[14].mxu1  ;;  %v2248_v51 = vpop.f32.mrb[15].mxu0 }
 0x126   : > { %v2249_v52 = vadd.f32 %v2248_v51, %v2247_v48  ;;  %v2312_v53 = vpop.f32.mrb[15].mxu1 }
 0x127   : > { %v2738_v54 = vadd.f32 %v2310_v49, %v2246_v46  ;;  %v2313_v55 = vadd.f32 %v2312_v53, %v2311_v50 }
 0x129   : > { %v2740_v56 = vadd.f32 %v2313_v55, %v2249_v52 }
 0x12a   : > { %v2250_v57 = vpop.f32.mrb[16].mxu0 }
 0x12b   : > { %v2314_v58 = vpop.f32.mrb[16].mxu1  ;;  %v2251_v59 = vpop.f32.mrb[17].mxu0 }
 0x12c   : > { %v2252_v60 = vadd.f32 %v2251_v59, %v2250_v57  ;;  %v2315_v61 = vpop.f32.mrb[17].mxu1  ;;  %v2253_v62 = vpop.f32.mrb[18].mxu0 }
 0x12d   : > { %v2316_v63 = vadd.f32 %v2315_v61, %v2314_v58  ;;  %v2317_v0 = vpop.f32.mrb[18].mxu1  ;;  %v2254_v1 = vpop.f32.mrb[19].mxu0 }
 0x12e   : > { %v2255_v2 = vadd.f32 %v2254_v1, %v2253_v62  ;;  %v2318_v3 = vpop.f32.mrb[19].mxu1 }
 0x12f   : > { %v2742_v4 = vadd.f32 %v2316_v63, %v2252_v60  ;;  %v2319_v5 = vadd.f32 %v2318_v3, %v2317_v0 }
 0x131   : > { %v2744_v6 = vadd.f32 %v2319_v5, %v2255_v2 }
 0x132   : > { %v2256_v7 = vpop.f32.mrb[20].mxu0 }
 0x133   : > { %v2320_v8 = vpop.f32.mrb[20].mxu1  ;;  %v2257_v9 = vpop.f32.mrb[21].mxu0 }
 0x134   : > { %v2258_v10 = vadd.f32 %v2257_v9, %v2256_v7  ;;  %v2321_v11 = vpop.f32.mrb[21].mxu1  ;;  %v2259_v13 = vpop.f32.mrb[22].mxu0 }
 0x135   : > { %v2322_v15 = vadd.f32 %v2321_v11, %v2320_v8  ;;  %v2323_v16 = vpop.f32.mrb[22].mxu1  ;;  %v2260_v17 = vpop.f32.mrb[23].mxu0 }
 0x136   : > { %v2261_v18 = vadd.f32 %v2260_v17, %v2259_v13  ;;  %v2324_v19 = vpop.f32.mrb[23].mxu1 }
 0x137   : > { %v2746_v20 = vadd.f32 %v2322_v15, %v2258_v10  ;;  %v2325_v21 = vadd.f32 %v2324_v19, %v2323_v16 }
 0x139   : > { %v2748_v22 = vadd.f32 %v2325_v21, %v2261_v18 }
 0x13a   : > { %v2262_v23 = vpop.f32.mrb[24].mxu0 }
 0x13b   : > { %v2326_v24 = vpop.f32.mrb[24].mxu1  ;;  %v2263_v25 = vpop.f32.mrb[25].mxu0 }
 0x13c   : > { %v2264_v27 = vadd.f32 %v2263_v25, %v2262_v23  ;;  %v2327_v29 = vpop.f32.mrb[25].mxu1  ;;  %v2265_v30 = vpop.f32.mrb[26].mxu0 }
 0x13d   : > { %v2328_v31 = vadd.f32 %v2327_v29, %v2326_v24  ;;  %v2329_v32 = vpop.f32.mrb[26].mxu1  ;;  %v2266_v33 = vpop.f32.mrb[27].mxu0 }
 0x13e   : > { %v2267_v34 = vadd.f32 %v2266_v33, %v2265_v30  ;;  %v2330_v35 = vpop.f32.mrb[27].mxu1 }
 0x13f   : > { %v2750_v36 = vadd.f32 %v2328_v31, %v2264_v27  ;;  %v2331_v37 = vadd.f32 %v2330_v35, %v2329_v32 }
 0x141   : > { %v2752_v38 = vadd.f32 %v2331_v37, %v2267_v34 }
 0x142   : > { %v2268_v39 = vpop.f32.mrb[28].mxu0 }
 0x143   : > { %v2332_v41 = vpop.f32.mrb[28].mxu1  ;;  %v2269_v43 = vpop.f32.mrb[29].mxu0 }
 0x144   : > { %v2270_v44 = vadd.f32 %v2269_v43, %v2268_v39  ;;  %v2333_v45 = vpop.f32.mrb[29].mxu1  ;;  %v2271_v46 = vpop.f32.mrb[30].mxu0 }
 0x145   : > { %v2334_v47 = vadd.f32 %v2333_v45, %v2332_v41  ;;  %v2335_v48 = vpop.f32.mrb[30].mxu1  ;;  %v2272_v49 = vpop.f32.mrb[31].mxu0 }
 0x146   : > { %v2273_v50 = vadd.f32 %v2272_v49, %v2271_v46  ;;  %v2336_v51 = vpop.f32.mrb[31].mxu1 }
 0x147   : > { %v2754_v52 = vadd.f32 %v2334_v47, %v2270_v44  ;;  %v2337_v53 = vadd.f32 %v2336_v51, %v2335_v48 }
 0x149   : > { %v2756_v55 = vadd.f32 %v2337_v53, %v2273_v50 }
 0x14a   : > { %v2354_v57 = vpop.f32.mrb[32].mxu0 }
 0x14b   : > { %v2418_v58 = vpop.f32.mrb[32].mxu1  ;;  %v2355_v59 = vpop.f32.mrb[33].mxu0 }
 0x14c   : > { %v2356_v60 = vadd.f32 %v2355_v59, %v2354_v57  ;;  %v2419_v61 = vpop.f32.mrb[33].mxu1  ;;  %v2357_v62 = vpop.f32.mrb[34].mxu0 }
 0x14d   : > { %v2420_v63 = vadd.f32 %v2419_v61, %v2418_v58  ;;  %v2421_v0 = vpop.f32.mrb[34].mxu1  ;;  %v2358_v1 = vpop.f32.mrb[35].mxu0 }
 0x14e   : > { %v1335_v2 = vadd.f32 %v2356_v60, %v2726_v12  ;;  %v2359_v3 = vadd.f32 %v2358_v1, %v2357_v62  ;;  %v2422_v5 = vpop.f32.mrb[35].mxu1 }
 0x14f   : > { %v2423_v7 = vadd.f32 %v2422_v5, %v2421_v0 }
 0x150   : > { %v1432_v8 = vadd.f32 %v2420_v63, %v1335_v2  ;;  %v1338_v9 = vadd.f32 %v2359_v3, %v2728_v14 }
 0x152   : > { %1496 = vst [vmem:[%s2763_s28] sm:$0xff] %v1432_v8  ;;  %v1435_v10 = vadd.f32 %v2423_v7, %v1338_v9  ;;  %v2360_v11 = vpop.f32.mrb[36].mxu0  ;;  %v1537_v16 = vmul.f32 %v1432_v8, %v1432_v8 }
 0x153   : > { %v2424_v13 = vpop.f32.mrb[36].mxu1  ;;  %v2361_v15 = vpop.f32.mrb[37].mxu0 }
 0x154   : > { %1497 = vst [vmem:[%s2763_s28 + $0x8] sm:$0xff] %v1435_v10  ;;  %v1513_v12 = vadd.f32 %v1435_v10, %v1432_v8  ;;  %v1538_v17 = vmul.f32 %v1435_v10, %v1435_v10  ;;  %v2362_v18 = vadd.f32 %v2361_v15, %v2360_v11  ;;  %v2425_v19 = vpop.f32.mrb[37].mxu1  ;;  %v2363_v21 = vpop.f32.mrb[38].mxu0 }
 0x155   : > { %v2426_v23 = vadd.f32 %v2425_v19, %v2424_v13  ;;  %v2427_v24 = vpop.f32.mrb[38].mxu1  ;;  %v2364_v25 = vpop.f32.mrb[39].mxu0 }
 0x156   : > { %v1553_v27 = vadd.f32 %v1538_v17, %v1537_v16  ;;  %v1343_v14 = vadd.f32 %v2362_v18, %v2730_v26  ;;  %v2365_v29 = vadd.f32 %v2364_v25, %v2363_v21  ;;  %v2428_v30 = vpop.f32.mrb[39].mxu1 }
 0x157   : > { %v2429_v31 = vadd.f32 %v2428_v30, %v2427_v24 }
 0x158   : > { %v1440_v32 = vadd.f32 %v2426_v23, %v1343_v14  ;;  %v1346_v33 = vadd.f32 %v2365_v29, %v2732_v28 }
 0x15a   : > { %1498 = vst [vmem:[%s2763_s28 + $0x10] sm:$0xff] %v1440_v32  ;;  %v1514_v34 = vadd.f32 %v1513_v12, %v1440_v32  ;;  %v1539_v35 = vmul.f32 %v1440_v32, %v1440_v32  ;;  %v1443_v37 = vadd.f32 %v2429_v31, %v1346_v33  ;;  %v2366_v39 = vpop.f32.mrb[40].mxu0 }
 0x15b   : > { %v2430_v41 = vpop.f32.mrb[40].mxu1  ;;  %v2367_v43 = vpop.f32.mrb[41].mxu0 }
 0x15c   : > { %v1554_v44 = vadd.f32 %v1553_v27, %v1539_v35  ;;  %1499 = vst [vmem:[%s2763_s28 + $0x18] sm:$0xff] %v1443_v37  ;;  %v1515_v45 = vadd.f32 %v1514_v34, %v1443_v37  ;;  %v1540_v46 = vmul.f32 %v1443_v37, %v1443_v37  ;;  %v2368_v47 = vadd.f32 %v2367_v43, %v2366_v39  ;;  %v2431_v26 = vpop.f32.mrb[41].mxu1  ;;  %v2369_v48 = vpop.f32.mrb[42].mxu0 }
 0x15d   : > { %v2432_v49 = vadd.f32 %v2431_v26, %v2430_v41  ;;  %v2433_v50 = vpop.f32.mrb[42].mxu1  ;;  %v2370_v51 = vpop.f32.mrb[43].mxu0 }
 0x15e   : > { %v1555_v28 = vadd.f32 %v1554_v44, %v1540_v46  ;;  %v1351_v53 = vadd.f32 %v2368_v47, %v2734_v40  ;;  %v2371_v57 = vadd.f32 %v2370_v51, %v2369_v48  ;;  %v2434_v58 = vpop.f32.mrb[43].mxu1 }
 0x15f   : > { %v2435_v59 = vadd.f32 %v2434_v58, %v2433_v50 }
 0x160   : > { %v1448_v60 = vadd.f32 %v2432_v49, %v1351_v53  ;;  %v1354_v61 = vadd.f32 %v2371_v57, %v2736_v42 }
 0x162   : > { %1500 = vst [vmem:[%s2763_s28 + $0x20] sm:$0xff] %v1448_v60  ;;  %v1516_v62 = vadd.f32 %v1515_v45, %v1448_v60  ;;  %v1541_v63 = vmul.f32 %v1448_v60, %v1448_v60  ;;  %v1451_v0 = vadd.f32 %v2435_v59, %v1354_v61  ;;  %v2372_v1 = vpop.f32.mrb[44].mxu0 }
 0x163   : > { %v2436_v2 = vpop.f32.mrb[44].mxu1  ;;  %v2373_v3 = vpop.f32.mrb[45].mxu0 }
 0x164   : > { %v1556_v5 = vadd.f32 %v1555_v28, %v1541_v63  ;;  %1501 = vst [vmem:[%s2763_s28 + $0x28] sm:$0xff] %v1451_v0  ;;  %v1517_v7 = vadd.f32 %v1516_v62, %v1451_v0  ;;  %v1542_v8 = vmul.f32 %v1451_v0, %v1451_v0  ;;  %v2374_v9 = vadd.f32 %v2373_v3, %v2372_v1  ;;  %v2437_v40 = vpop.f32.mrb[45].mxu1  ;;  %v2375_v10 = vpop.f32.mrb[46].mxu0 }
 0x165   : > { %v2438_v11 = vadd.f32 %v2437_v40, %v2436_v2  ;;  %v2439_v13 = vpop.f32.mrb[46].mxu1  ;;  %v2376_v15 = vpop.f32.mrb[47].mxu0 }
 0x166   : > { %v1557_v42 = vadd.f32 %v1556_v5, %v1542_v8  ;;  %v1359_v16 = vadd.f32 %v2374_v9, %v2738_v54  ;;  %v2377_v12 = vadd.f32 %v2376_v15, %v2375_v10  ;;  %v2440_v17 = vpop.f32.mrb[47].mxu1 }
 0x167   : > { %v2441_v18 = vadd.f32 %v2440_v17, %v2439_v13 }
 0x168   : > { %v1456_v19 = vadd.f32 %v2438_v11, %v1359_v16  ;;  %v1362_v21 = vadd.f32 %v2377_v12, %v2740_v56 }
 0x16a   : > { %1502 = vst [vmem:[%s2763_s28 + $0x30] sm:$0xff] %v1456_v19  ;;  %v1518_v23 = vadd.f32 %v1517_v7, %v1456_v19  ;;  %v1543_v24 = vmul.f32 %v1456_v19, %v1456_v19  ;;  %v1459_v25 = vadd.f32 %v2441_v18, %v1362_v21  ;;  %v2378_v27 = vpop.f32.mrb[48].mxu0 }
 0x16b   : > { %v2442_v14 = vpop.f32.mrb[48].mxu1  ;;  %v2379_v29 = vpop.f32.mrb[49].mxu0 }
 0x16c   : > { %v1558_v30 = vadd.f32 %v1557_v42, %v1543_v24  ;;  %1503 = vst [vmem:[%s2763_s28 + $0x38] sm:$0xff] %v1459_v25  ;;  %v1519_v31 = vadd.f32 %v1518_v23, %v1459_v25  ;;  %v1544_v32 = vmul.f32 %v1459_v25, %v1459_v25  ;;  %v2380_v33 = vadd.f32 %v2379_v29, %v2378_v27  ;;  %v2443_v54 = vpop.f32.mrb[49].mxu1  ;;  %v2381_v34 = vpop.f32.mrb[50].mxu0 }
 0x16d   : > { %v2444_v35 = vadd.f32 %v2443_v54, %v2442_v14  ;;  %v2445_v37 = vpop.f32.mrb[50].mxu1  ;;  %v2382_v39 = vpop.f32.mrb[51].mxu0 }
 0x16e   : > { %v1559_v56 = vadd.f32 %v1558_v30, %v1544_v32  ;;  %v1367_v41 = vadd.f32 %v2380_v33, %v2742_v4  ;;  %v2383_v43 = vadd.f32 %v2382_v39, %v2381_v34  ;;  %v2446_v44 = vpop.f32.mrb[51].mxu1 }
 0x16f   : > { %v2447_v45 = vadd.f32 %v2446_v44, %v2445_v37 }
 0x170   : > { %v1464_v46 = vadd.f32 %v2444_v35, %v1367_v41  ;;  %v1370_v47 = vadd.f32 %v2383_v43, %v2744_v6 }
 0x172   : > { %1504 = vst [vmem:[%s2763_s28 + $0x40] sm:$0xff] %v1464_v46  ;;  %v1520_v26 = vadd.f32 %v1519_v31, %v1464_v46  ;;  %v1545_v48 = vmul.f32 %v1464_v46, %v1464_v46  ;;  %v1467_v49 = vadd.f32 %v2447_v45, %v1370_v47  ;;  %v2384_v50 = vpop.f32.mrb[52].mxu0 }
 0x173   : > { %v2448_v51 = vpop.f32.mrb[52].mxu1  ;;  %v2385_v28 = vpop.f32.mrb[53].mxu0 }
 0x174   : > { %v1560_v53 = vadd.f32 %v1559_v56, %v1545_v48  ;;  %1505 = vst [vmem:[%s2763_s28 + $0x48] sm:$0xff] %v1467_v49  ;;  %v1521_v57 = vadd.f32 %v1520_v26, %v1467_v49  ;;  %v1546_v58 = vmul.f32 %v1467_v49, %v1467_v49  ;;  %v2386_v59 = vadd.f32 %v2385_v28, %v2384_v50  ;;  %v2449_v4 = vpop.f32.mrb[53].mxu1  ;;  %v2387_v60 = vpop.f32.mrb[54].mxu0 }
 0x175   : > { %v2450_v61 = vadd.f32 %v2449_v4, %v2448_v51  ;;  %v2451_v62 = vpop.f32.mrb[54].mxu1  ;;  %v2388_v63 = vpop.f32.mrb[55].mxu0 }
 0x176   : > { %v1561_v6 = vadd.f32 %v1560_v53, %v1546_v58  ;;  %v1375_v0 = vadd.f32 %v2386_v59, %v2746_v20  ;;  %v2389_v1 = vadd.f32 %v2388_v63, %v2387_v60  ;;  %v2452_v2 = vpop.f32.mrb[55].mxu1 }
 0x177   : > { %v2453_v3 = vadd.f32 %v2452_v2, %v2451_v62 }
 0x178   : > { %v1472_v5 = vadd.f32 %v2450_v61, %v1375_v0  ;;  %v1378_v7 = vadd.f32 %v2389_v1, %v2748_v22 }
 0x17a   : > { %1506 = vst [vmem:[%s2763_s28 + $0x50] sm:$0xff] %v1472_v5  ;;  %v1522_v8 = vadd.f32 %v1521_v57, %v1472_v5  ;;  %v1547_v9 = vmul.f32 %v1472_v5, %v1472_v5  ;;  %v1475_v40 = vadd.f32 %v2453_v3, %v1378_v7  ;;  %v2390_v10 = vpop.f32.mrb[56].mxu0  ;;  %v1512_v3 = vld [vmem:[#allocation2] sm:$0x1]  ;;  %v1536_v7 = vld [vmem:[#allocation3] sm:$0x1] }
 0x17b   : > { %v2454_v11 = vpop.f32.mrb[56].mxu1  ;;  %v2391_v13 = vpop.f32.mrb[57].mxu0 }
 0x17c   : > { %v1562_v15 = vadd.f32 %v1561_v6, %v1547_v9  ;;  %1507 = vst [vmem:[%s2763_s28 + $0x58] sm:$0xff] %v1475_v40  ;;  %v1523_v42 = vadd.f32 %v1522_v8, %v1475_v40  ;;  %v1548_v16 = vmul.f32 %v1475_v40, %v1475_v40  ;;  %v2392_v12 = vadd.f32 %v2391_v13, %v2390_v10  ;;  %v2455_v20 = vpop.f32.mrb[57].mxu1  ;;  %v2393_v17 = vpop.f32.mrb[58].mxu0 }
 0x17d   : > { %v2456_v18 = vadd.f32 %v2455_v20, %v2454_v11  ;;  %v2457_v19 = vpop.f32.mrb[58].mxu1  ;;  %v2394_v21 = vpop.f32.mrb[59].mxu0 }
 0x17e   : > { %v1563_v22 = vadd.f32 %v1562_v15, %v1548_v16  ;;  %v1383_v23 = vadd.f32 %v2392_v12, %v2750_v36  ;;  %v2395_v24 = vadd.f32 %v2394_v21, %v2393_v17  ;;  %v2458_v25 = vpop.f32.mrb[59].mxu1  ;;  %v1611_v17 = vlaneseq (!%p2109_p5) }
 0x17f   : > { %v2459_v27 = vadd.f32 %v2458_v25, %v2457_v19  ;;  %v1587_v19 = vld [vmem:[%s3324_s2] sm:$0x1] (!%p2109_p5) }
 0x180   : > { %v1480_v14 = vadd.f32 %v2456_v18, %v1383_v23  ;;  %v1386_v29 = vadd.f32 %v2395_v24, %v2752_v38  ;;  %v1612_v18 = vshrl.u32 (!%p2109_p5), %v1611_v17, 7  ;;  %v1591_v24 = vld [vmem:[%s3325_s3] sm:$0x1] (!%p2109_p5) }
 0x182   : > { %1508 = vst [vmem:[%s2763_s28 + $0x60] sm:$0xff] %v1480_v14  ;;  %v1524_v30 = vadd.f32 %v1523_v42, %v1480_v14  ;;  %v1549_v31 = vmul.f32 %v1480_v14, %v1480_v14  ;;  %v1483_v32 = vadd.f32 %v2459_v27, %v1386_v29  ;;  %v2396_v33 = vpop.f32.mrb[60].mxu0  ;;  %v1613_v21 = vsub.s32 (!%p2109_p5), 0, %v1612_v18 }
 0x183   : > { %v2460_v54 = vpop.f32.mrb[60].mxu1  ;;  %v2397_v34 = vpop.f32.mrb[61].mxu0 }
 0x184   : > { %v1564_v35 = vadd.f32 %v1563_v22, %v1549_v31  ;;  %1509 = vst [vmem:[%s2763_s28 + $0x68] sm:$0xff] %v1483_v32  ;;  %v1525_v37 = vadd.f32 %v1524_v30, %v1483_v32  ;;  %v1550_v39 = vmul.f32 %v1483_v32, %v1483_v32  ;;  %v2398_v56 = vadd.f32 %v2397_v34, %v2396_v33  ;;  %v2461_v36 = vpop.f32.mrb[61].mxu1  ;;  %v2399_v41 = vpop.f32.mrb[62].mxu0 }
 0x185   : > { %v2462_v43 = vadd.f32 %v2461_v36, %v2460_v54  ;;  %v2463_v44 = vpop.f32.mrb[62].mxu1  ;;  %v2400_v45 = vpop.f32.mrb[63].mxu0 }
 0x186   : > { %v1565_v38 = vadd.f32 %v1564_v35, %v1550_v39  ;;  %v1391_v46 = vadd.f32 %v2398_v56, %v2754_v52  ;;  %v2401_v47 = vadd.f32 %v2400_v45, %v2399_v41  ;;  %v2464_v26 = vpop.f32.mrb[63].mxu1 }
 0x187   : > { %v2465_v48 = vadd.f32 %v2464_v26, %v2463_v44 }
 0x188   : > { %v1488_v49 = vadd.f32 %v2462_v43, %v1391_v46  ;;  %v1394_v50 = vadd.f32 %v2401_v47, %v2756_v55 }
 0x18a   : > { %1510 = vst [vmem:[%s2763_s28 + $0x70] sm:$0xff] %v1488_v49  ;;  %v1526_v51 = vadd.f32 %v1525_v37, %v1488_v49  ;;  %v1551_v28 = vmul.f32 %v1488_v49, %v1488_v49  ;;  %v1491_v53 = vadd.f32 %v2465_v48, %v1394_v50 }
 0x18c   : > { %v1566_v57 = vadd.f32 %v1565_v38, %v1551_v28  ;;  %1511 = vst [vmem:[%s2763_s28 + $0x78] sm:$0xff] %v1491_v53  ;;  %v1527_v58 = vadd.f32 %v1526_v51, %v1491_v53  ;;  %v1552_v59 = vmul.f32 %v1491_v53, %v1491_v53 }
 0x18e   : > { %v1528_v4 = vrot.slane %v1527_v58, 4  ;;  %v1567_v60 = vadd.f32 %v1566_v57, %v1552_v59 }
 0x190   : > { %v1529_v61 = vadd.f32 %v1528_v4, %v1527_v58  ;;  %v1568_v62 = vrot.slane %v1567_v60, 4 }
 0x192   : > { %v1530_v63 = vrot.slane %v1529_v61, 2  ;;  %v1569_v52 = vadd.f32 %v1568_v62, %v1567_v60 }
 0x193   : > { %v1594_v25 = vld [vmem:[%s3326_s4] sm:$0xff] (!%p2109_p5)  ;;  %v1595_v27 = vld [vmem:[%s3326_s4 + $0x8] sm:$0xff] (!%p2109_p5)  ;;  %v1596_v14 = vld [vmem:[%s3326_s4 + $0x10] sm:$0xff] (!%p2109_p5) }
 0x194   : > { %v1531_v6 = vadd.f32 %v1530_v63, %v1529_v61  ;;  %v1570_v0 = vrot.slane %v1569_v52, 2  ;;  %v1597_v29 = vld [vmem:[%s3326_s4 + $0x18] sm:$0xff] (!%p2109_p5)  ;;  %v1598_v30 = vld [vmem:[%s3326_s4 + $0x20] sm:$0xff] (!%p2109_p5)  ;;  %v1599_v33 = vld [vmem:[%s3326_s4 + $0x28] sm:$0xff] (!%p2109_p5) }
 0x195   : > { %v1600_v54 = vld [vmem:[%s3326_s4 + $0x30] sm:$0xff] (!%p2109_p5)  ;;  %v1601_v34 = vld [vmem:[%s3326_s4 + $0x38] sm:$0xff] (!%p2109_p5)  ;;  %v1602_v35 = vld [vmem:[%s3326_s4 + $0x40] sm:$0xff] (!%p2109_p5) }
 0x196   : > { %v1532_v1 = vrot.slane %v1531_v6, 1  ;;  %v1571_v2 = vadd.f32 %v1570_v0, %v1569_v52  ;;  %v1603_v37 = vld [vmem:[%s3326_s4 + $0x48] sm:$0xff] (!%p2109_p5)  ;;  %v1604_v39 = vld [vmem:[%s3326_s4 + $0x50] sm:$0xff] (!%p2109_p5)  ;;  %v1605_v44 = vld [vmem:[%s3326_s4 + $0x58] sm:$0xff] (!%p2109_p5) }
 0x197   : > { %v1606_v45 = vld [vmem:[%s3326_s4 + $0x60] sm:$0xff] (!%p2109_p5)  ;;  %v1607_v38 = vld [vmem:[%s3326_s4 + $0x68] sm:$0xff] (!%p2109_p5) }
 0x198   : > { %v1533_v55 = vadd.f32 %v1532_v1, %v1531_v6  ;;  %v1572_v5 = vrot.slane %v1571_v2, 1  ;;  %1579 = sbr.rel (%p2109_p5) target bundleno = 499 (0x1f3), region = 44 }
 0x19a   : > { %v1534_v8 = vadd.f32 %v1533_v55, %v1512_v3  ;;  %v1573_v9 = vadd.f32 %v1572_v5, %v1571_v2  ;;  %v1608_v5 = vld [vmem:[%s3326_s4 + $0x70] sm:$0xff] (!%p2109_p5) }
 0x19c   : > { %1535 = vst [vmem:[#allocation2] sm:$0x1] %v1534_v8  ;;  %v1574_v40 = vadd.f32 %v1573_v9, %v1536_v7  ;;  %v1609_v7 = vld [vmem:[%s3326_s4 + $0x78] sm:$0xff] (!%p2109_p5) }
 0x19e   : > { %1575 = vst [vmem:[#allocation3] sm:$0x1] %v1574_v40 }
 0x1a3   : > { %v1580_v10 = vld [vmem:[#allocation2] sm:$0x1] }
 0x1a4   : > { %v1581_v13 = vmul.f32 0.001953125, %v1580_v10 }
 0x1a5   : > { %v1582_v11 = vld [vmem:[#allocation3] sm:$0x1] }
 0x1a6   : > { %v1583_v15 = vmul.f32 0.001953125, %v1582_v11  ;;  %v1584_v42 = vmul.f32 %v1581_v13, %v1581_v13 }
 0x1a8   : > { %v1585_v16 = vsub.f32 %v1583_v15, %v1584_v42 }
 0x1aa   : > { %v1586_v12 = vmax.f32 %v1585_v16, 0.0  ;;  %v2110_v16 = vld [vmem:[%s3326_s4 + $0x80] sm:$0xff] }
 0x1ac   : > { %v1588_v20 = vadd.f32 1e-05, %v1586_v12 }
 0x1ae   : > { %2539 = vrsqrt.f32 %v1588_v20 }
 0x1b8   : > { %v2540_v22 = vpop.eup %2539 }
 0x1b9   : > { %v1590_v23 = vmul.f32 %v2540_v22, %v1587_v19  ;;  %v2111_v19 = vld [vmem:[%s3326_s4 + $0x88] sm:$0xff]  ;;  %v2113_v22 = vld [vmem:[%s3326_s4 + $0x98] sm:$0xff] }
 0x1bb   : > { %v1592_v31 = vmul.f32 %v1590_v23, %v1581_v13  ;;  %v2818_v32 = vrot.slane %v1590_v23, %v1613_v21 }
 0x1bd   : > { %v1593_v56 = vsub.f32 %v1591_v24, %v1592_v31  ;;  %v1616_v36 = vmul.f32 %v2818_v32, %v1594_v25  ;;  %v1617_v41 = vmul.f32 %v2818_v32, %v1595_v27  ;;  %v1618_v43 = vmul.f32 %v2818_v32, %v1596_v14  ;;  %v2114_v14 = vld [vmem:[%s3326_s4 + $0xa0] sm:$0xff] }
 0x1be   : > { %v1619_v46 = vmul.f32 %v2818_v32, %v1597_v29  ;;  %v1620_v47 = vmul.f32 %v2818_v32, %v1598_v30  ;;  %v1621_v26 = vmul.f32 %v2818_v32, %v1599_v33  ;;  %v1622_v48 = vmul.f32 %v2818_v32, %v1600_v54  ;;  %v2115_v29 = vld [vmem:[%s3326_s4 + $0xa8] sm:$0xff] }
 0x1bf   : > { %v2854_v49 = vrot.slane %v1593_v56, %v1613_v21  ;;  %v1623_v50 = vmul.f32 %v2818_v32, %v1601_v34  ;;  %v1624_v51 = vmul.f32 %v2818_v32, %v1602_v35  ;;  %v1625_v28 = vmul.f32 %v2818_v32, %v1603_v37  ;;  %v2112_v21 = vld [vmem:[%s3326_s4 + $0x90] sm:$0xff] }
 0x1c0   : > { %v1626_v53 = vmul.f32 %v2818_v32, %v1604_v39  ;;  %v1627_v57 = vmul.f32 %v2818_v32, %v1605_v44  ;;  %v1628_v58 = vmul.f32 %v2818_v32, %v1606_v45  ;;  %v1629_v59 = vmul.f32 %v2818_v32, %v1607_v38  ;;  %v2116_v56 = vld [vmem:[%s3326_s4 + $0xb0] sm:$0xff] }
 0x1c1   : > { %v1638_v4 = vadd.f32 %v2854_v49, %v1616_v36  ;;  %v1639_v60 = vadd.f32 %v2854_v49, %v1617_v41  ;;  %v1640_v61 = vadd.f32 %v2854_v49, %v1618_v43  ;;  %v1641_v62 = vadd.f32 %v2854_v49, %v1619_v46  ;;  %v2117_v36 = vld [vmem:[%s3326_s4 + $0xb8] sm:$0xff] }
 0x1c2   : > { %v1642_v63 = vadd.f32 %v2854_v49, %v1620_v47  ;;  %v1643_v52 = vadd.f32 %v2854_v49, %v1621_v26  ;;  %v1644_v6 = vadd.f32 %v2854_v49, %v1622_v48  ;;  %v1645_v0 = vadd.f32 %v2854_v49, %v1623_v50  ;;  %v2118_v48 = vld [vmem:[%s3326_s4 + $0xc0] sm:$0xff] }
 0x1c3   : > { %v1654_v1 = vmax.f32 %v1638_v4, 0.0  ;;  %v1655_v2 = vmax.f32 %v1639_v60, 0.0  ;;  %v1656_v3 = vmax.f32 %v1640_v61, 0.0  ;;  %v1657_v55 = vmax.f32 %v1641_v62, 0.0 }
 0x1c4   : > { %v1658_v8 = vmax.f32 %v1642_v63, 0.0  ;;  %v1659_v9 = vmax.f32 %v1643_v52, 0.0  ;;  %v1660_v40 = vmax.f32 %v1644_v6, 0.0  ;;  %v1661_v10 = vmax.f32 %v1645_v0, 0.0  ;;  %v2122_v63 = vld [vmem:[%s3326_s4 + $0xe0] sm:$0xff]  ;;  %v2123_v52 = vld [vmem:[%s3326_s4 + $0xe8] sm:$0xff] }
 0x1c5   : > { %1670 = vst [vmem:[%s3326_s4] sm:$0xff] %v1654_v1  ;;  %1671 = vst [vmem:[%s3326_s4 + $0x8] sm:$0xff] %v1655_v2  ;;  %v1646_v11 = vadd.f32 %v2854_v49, %v1624_v51  ;;  %v1647_v13 = vadd.f32 %v2854_v49, %v1625_v28  ;;  %v1648_v15 = vadd.f32 %v2854_v49, %v1626_v53 }
 0x1c6   : > { %1672 = vst [vmem:[%s3326_s4 + $0x10] sm:$0xff] %v1656_v3  ;;  %1673 = vst [vmem:[%s3326_s4 + $0x18] sm:$0xff] %v1657_v55  ;;  %v1649_v42 = vadd.f32 %v2854_v49, %v1627_v57  ;;  %v1650_v12 = vadd.f32 %v2854_v49, %v1628_v58  ;;  %v1651_v20 = vadd.f32 %v2854_v49, %v1629_v59  ;;  %v2119_v57 = vld [vmem:[%s3326_s4 + $0xc8] sm:$0xff]  ;;  %v2120_v58 = vld [vmem:[%s3326_s4 + $0xd0] sm:$0xff] }
 0x1c7   : > { %1674 = vst [vmem:[%s3326_s4 + $0x20] sm:$0xff] %v1658_v8  ;;  %1675 = vst [vmem:[%s3326_s4 + $0x28] sm:$0xff] %v1659_v9  ;;  %v1630_v17 = vmul.f32 %v2818_v32, %v1608_v5  ;;  %v1631_v18 = vmul.f32 %v2818_v32, %v1609_v7  ;;  %v1662_v23 = vmax.f32 %v1646_v11, 0.0  ;;  %v1663_v24 = vmax.f32 %v1647_v13, 0.0  ;;  %v2121_v59 = vld [vmem:[%s3326_s4 + $0xd8] sm:$0xff]  ;;  %v2124_v8 = vld [vmem:[%s3326_s4 + $0xf0] sm:$0xff] }
 0x1c8   : > { %1676 = vst [vmem:[%s3326_s4 + $0x30] sm:$0xff] %v1660_v40  ;;  %1677 = vst [vmem:[%s3326_s4 + $0x38] sm:$0xff] %v1661_v10  ;;  %v1664_v25 = vmax.f32 %v1648_v15, 0.0  ;;  %v1665_v27 = vmax.f32 %v1649_v42, 0.0  ;;  %v1666_v30 = vmax.f32 %v1650_v12, 0.0  ;;  %v1667_v31 = vmax.f32 %v1651_v20, 0.0 }
 0x1c9   : > { %v1652_v33 = vadd.f32 %v2854_v49, %v1630_v17  ;;  %v1653_v54 = vadd.f32 %v2854_v49, %v1631_v18  ;;  %1678 = vst [vmem:[%s3326_s4 + $0x40] sm:$0xff] %v1662_v23  ;;  %1679 = vst [vmem:[%s3326_s4 + $0x48] sm:$0xff] %v1663_v24  ;;  %v1703_v34 = vmul.f32 %v2110_v16, %v2818_v32  ;;  %v2125_v9 = vld [vmem:[%s3326_s4 + $0xf8] sm:$0xff]  ;;  %v2142_v20 = vld [vmem:[%s3326_s4 + $0x100] sm:$0xff] }
 0x1ca   : > { %1680 = vst [vmem:[%s3326_s4 + $0x50] sm:$0xff] %v1664_v25  ;;  %1681 = vst [vmem:[%s3326_s4 + $0x58] sm:$0xff] %v1665_v27  ;;  %v1704_v35 = vmul.f32 %v2111_v19, %v2818_v32  ;;  %v1705_v37 = vmul.f32 %v2112_v21, %v2818_v32  ;;  %v1706_v39 = vmul.f32 %v2113_v22, %v2818_v32  ;;  %v2143_v22 = vld [vmem:[%s3326_s4 + $0x108] sm:$0xff]  ;;  %v2144_v23 = vld [vmem:[%s3326_s4 + $0x110] sm:$0xff] }
 0x1cb   : > { %1682 = vst [vmem:[%s3326_s4 + $0x60] sm:$0xff] %v1666_v30  ;;  %1683 = vst [vmem:[%s3326_s4 + $0x68] sm:$0xff] %v1667_v31  ;;  %v1668_v41 = vmax.f32 %v1652_v33, 0.0  ;;  %v1669_v43 = vmax.f32 %v1653_v54, 0.0  ;;  %v1707_v44 = vmul.f32 %v2114_v14, %v2818_v32  ;;  %v1708_v45 = vmul.f32 %v2115_v29, %v2818_v32  ;;  %v2145_v24 = vld [vmem:[%s3326_s4 + $0x118] sm:$0xff]  ;;  %v2146_v30 = vld [vmem:[%s3326_s4 + $0x120] sm:$0xff] }
 0x1cc   : > { %v1719_v38 = vadd.f32 %v1703_v34, %v2854_v49  ;;  %v1720_v46 = vadd.f32 %v1704_v35, %v2854_v49  ;;  %v1721_v47 = vadd.f32 %v1705_v37, %v2854_v49  ;;  %v1722_v26 = vadd.f32 %v1706_v39, %v2854_v49  ;;  %v2147_v31 = vld [vmem:[%s3326_s4 + $0x128] sm:$0xff] }
 0x1cd   : > { %1684 = vst [vmem:[%s3326_s4 + $0x70] sm:$0xff] %v1668_v41  ;;  %1685 = vst [vmem:[%s3326_s4 + $0x78] sm:$0xff] %v1669_v43  ;;  %v1723_v50 = vadd.f32 %v1707_v44, %v2854_v49  ;;  %v1724_v51 = vadd.f32 %v1708_v45, %v2854_v49  ;;  %v1709_v28 = vmul.f32 %v2116_v56, %v2818_v32  ;;  %v2148_v41 = vld [vmem:[%s3326_s4 + $0x130] sm:$0xff]  ;;  %v2149_v43 = vld [vmem:[%s3326_s4 + $0x138] sm:$0xff] }
 0x1ce   : > { %v1710_v53 = vmul.f32 %v2117_v36, %v2818_v32  ;;  %v1735_v4 = vmax.f32 %v1719_v38, 0.0  ;;  %v1736_v60 = vmax.f32 %v1720_v46, 0.0  ;;  %v1737_v61 = vmax.f32 %v1721_v47, 0.0 }
 0x1cf   : > { %v1738_v62 = vmax.f32 %v1722_v26, 0.0  ;;  %v1739_v6 = vmax.f32 %v1723_v50, 0.0  ;;  %v1740_v0 = vmax.f32 %v1724_v51, 0.0  ;;  %v1725_v1 = vadd.f32 %v1709_v28, %v2854_v49  ;;  %v2150_v51 = vld [vmem:[%s3326_s4 + $0x140] sm:$0xff] }
 0x1d0   : > { %v1726_v2 = vadd.f32 %v1710_v53, %v2854_v49  ;;  %2126 = vst [vmem:[%s3326_s4 + $0x80] sm:$0xff] %v1735_v4  ;;  %2127 = vst [vmem:[%s3326_s4 + $0x88] sm:$0xff] %v1736_v60  ;;  %v1711_v3 = vmul.f32 %v2118_v48, %v2818_v32  ;;  %v1712_v55 = vmul.f32 %v2119_v57, %v2818_v32  ;;  %v2152_v4 = vld [vmem:[%s3326_s4 + $0x150] sm:$0xff]  ;;  %v2153_v60 = vld [vmem:[%s3326_s4 + $0x158] sm:$0xff] }
 0x1d1   : > { %2128 = vst [vmem:[%s3326_s4 + $0x90] sm:$0xff] %v1737_v61  ;;  %2129 = vst [vmem:[%s3326_s4 + $0x98] sm:$0xff] %v1738_v62  ;;  %v1713_v5 = vmul.f32 %v2120_v58, %v2818_v32  ;;  %v1714_v7 = vmul.f32 %v2121_v59, %v2818_v32  ;;  %v1741_v40 = vmax.f32 %v1725_v1, 0.0  ;;  %v1715_v11 = vmul.f32 %v2122_v63, %v2818_v32  ;;  %v2151_v59 = vld [vmem:[%s3326_s4 + $0x148] sm:$0xff] }
 0x1d2   : > { %2130 = vst [vmem:[%s3326_s4 + $0xa0] sm:$0xff] %v1739_v6  ;;  %2131 = vst [vmem:[%s3326_s4 + $0xa8] sm:$0xff] %v1740_v0  ;;  %v1742_v10 = vmax.f32 %v1726_v2, 0.0  ;;  %v1716_v13 = vmul.f32 %v2123_v52, %v2818_v32  ;;  %v1727_v15 = vadd.f32 %v1711_v3, %v2854_v49  ;;  %v1728_v42 = vadd.f32 %v1712_v55, %v2854_v49  ;;  %v2154_v6 = vld [vmem:[%s3326_s4 + $0x160] sm:$0xff]  ;;  %v2155_v0 = vld [vmem:[%s3326_s4 + $0x168] sm:$0xff] }
 0x1d3   : > { %v1729_v16 = vadd.f32 %v1713_v5, %v2854_v49  ;;  %v1730_v12 = vadd.f32 %v1714_v7, %v2854_v49  ;;  %2132 = vst [vmem:[%s3326_s4 + $0xb0] sm:$0xff] %v1741_v40  ;;  %v1731_v17 = vadd.f32 %v1715_v11, %v2854_v49  ;;  %v1717_v19 = vmul.f32 %v2124_v8, %v2818_v32  ;;  %v2156_v40 = vld [vmem:[%s3326_s4 + $0x170] sm:$0xff] }
 0x1d4   : > { %2133 = vst [vmem:[%s3326_s4 + $0xb8] sm:$0xff] %v1742_v10  ;;  %v1732_v18 = vadd.f32 %v1716_v13, %v2854_v49  ;;  %v1718_v21 = vmul.f32 %v2125_v9, %v2818_v32  ;;  %v1743_v25 = vmax.f32 %v1727_v15, 0.0  ;;  %v1744_v27 = vmax.f32 %v1728_v42, 0.0  ;;  %v2157_v10 = vld [vmem:[%s3326_s4 + $0x178] sm:$0xff] }
 0x1d5   : > { %v1745_v14 = vmax.f32 %v1729_v16, 0.0  ;;  %v1746_v29 = vmax.f32 %v1730_v12, 0.0  ;;  %v1747_v33 = vmax.f32 %v1731_v17, 0.0  ;;  %v1733_v34 = vadd.f32 %v1717_v19, %v2854_v49 }
 0x1d6   : > { %v1748_v54 = vmax.f32 %v1732_v18, 0.0  ;;  %v1734_v35 = vadd.f32 %v1718_v21, %v2854_v49  ;;  %2134 = vst [vmem:[%s3326_s4 + $0xc0] sm:$0xff] %v1743_v25  ;;  %2135 = vst [vmem:[%s3326_s4 + $0xc8] sm:$0xff] %v1744_v27  ;;  %v1784_v37 = vmul.f32 %v2142_v20, %v2818_v32  ;;  %v1785_v39 = vmul.f32 %v2143_v22, %v2818_v32  ;;  %v2174_v18 = vld [vmem:[%s3326_s4 + $0x180] sm:$0xff]  ;;  %v2176_v25 = vld [vmem:[%s3326_s4 + $0x190] sm:$0xff] }
 0x1d7   : > { %2136 = vst [vmem:[%s3326_s4 + $0xd0] sm:$0xff] %v1745_v14  ;;  %2137 = vst [vmem:[%s3326_s4 + $0xd8] sm:$0xff] %v1746_v29  ;;  %v1786_v56 = vmul.f32 %v2144_v23, %v2818_v32  ;;  %v1787_v36 = vmul.f32 %v2145_v24, %v2818_v32  ;;  %v1749_v44 = vmax.f32 %v1733_v34, 0.0  ;;  %v1788_v38 = vmul.f32 %v2146_v30, %v2818_v32  ;;  %v2175_v24 = vld [vmem:[%s3326_s4 + $0x188] sm:$0xff]  ;;  %v2177_v27 = vld [vmem:[%s3326_s4 + $0x198] sm:$0xff] }
 0x1d8   : > { %2138 = vst [vmem:[%s3326_s4 + $0xe0] sm:$0xff] %v1747_v33  ;;  %2139 = vst [vmem:[%s3326_s4 + $0xe8] sm:$0xff] %v1748_v54  ;;  %v1750_v45 = vmax.f32 %v1734_v35, 0.0  ;;  %v1789_v46 = vmul.f32 %v2147_v31, %v2818_v32  ;;  %v1800_v47 = vadd.f32 %v1784_v37, %v2854_v49  ;;  %v1801_v26 = vadd.f32 %v1785_v39, %v2854_v49  ;;  %v2178_v33 = vld [vmem:[%s3326_s4 + $0x1a0] sm:$0xff]  ;;  %v2179_v54 = vld [vmem:[%s3326_s4 + $0x1a8] sm:$0xff] }
 0x1d9   : > { %v1802_v48 = vadd.f32 %v1786_v56, %v2854_v49  ;;  %v1803_v50 = vadd.f32 %v1787_v36, %v2854_v49  ;;  %2140 = vst [vmem:[%s3326_s4 + $0xf0] sm:$0xff] %v1749_v44  ;;  %v1804_v28 = vadd.f32 %v1788_v38, %v2854_v49  ;;  %v1790_v57 = vmul.f32 %v2148_v41, %v2818_v32  ;;  %v2180_v44 = vld [vmem:[%s3326_s4 + $0x1b0] sm:$0xff] }
 0x1da   : > { %2141 = vst [vmem:[%s3326_s4 + $0xf8] sm:$0xff] %v1750_v45  ;;  %v1805_v53 = vadd.f32 %v1789_v46, %v2854_v49  ;;  %v1791_v58 = vmul.f32 %v2149_v43, %v2818_v32  ;;  %v1816_v61 = vmax.f32 %v1800_v47, 0.0  ;;  %v1817_v62 = vmax.f32 %v1801_v26, 0.0  ;;  %v2181_v45 = vld [vmem:[%s3326_s4 + $0x1b8] sm:$0xff] }
 0x1db   : > { %v1818_v63 = vmax.f32 %v1802_v48, 0.0  ;;  %v1819_v52 = vmax.f32 %v1803_v50, 0.0  ;;  %v1820_v1 = vmax.f32 %v1804_v28, 0.0  ;;  %v1806_v3 = vadd.f32 %v1790_v57, %v2854_v49 }
 0x1dc   : > { %v1821_v2 = vmax.f32 %v1805_v53, 0.0  ;;  %v1807_v55 = vadd.f32 %v1791_v58, %v2854_v49  ;;  %2158 = vst [vmem:[%s3326_s4 + $0x100] sm:$0xff] %v1816_v61  ;;  %2159 = vst [vmem:[%s3326_s4 + $0x108] sm:$0xff] %v1817_v62  ;;  %v1792_v5 = vmul.f32 %v2150_v51, %v2818_v32  ;;  %v1793_v7 = vmul.f32 %v2151_v59, %v2818_v32  ;;  %v2182_v53 = vld [vmem:[%s3326_s4 + $0x1c0] sm:$0xff]  ;;  %v2184_v61 = vld [vmem:[%s3326_s4 + $0x1d0] sm:$0xff] }
 0x1dd   : > { %2160 = vst [vmem:[%s3326_s4 + $0x110] sm:$0xff] %v1818_v63  ;;  %2161 = vst [vmem:[%s3326_s4 + $0x118] sm:$0xff] %v1819_v52  ;;  %v1794_v8 = vmul.f32 %v2152_v4, %v2818_v32  ;;  %v1795_v9 = vmul.f32 %v2153_v60, %v2818_v32  ;;  %v1822_v11 = vmax.f32 %v1806_v3, 0.0  ;;  %v1796_v15 = vmul.f32 %v2154_v6, %v2818_v32  ;;  %v2183_v60 = vld [vmem:[%s3326_s4 + $0x1c8] sm:$0xff]  ;;  %v2185_v62 = vld [vmem:[%s3326_s4 + $0x1d8] sm:$0xff] }
 0x1de   : > { %2162 = vst [vmem:[%s3326_s4 + $0x120] sm:$0xff] %v1820_v1  ;;  %2163 = vst [vmem:[%s3326_s4 + $0x128] sm:$0xff] %v1821_v2  ;;  %v1823_v13 = vmax.f32 %v1807_v55, 0.0  ;;  %v1797_v42 = vmul.f32 %v2155_v0, %v2818_v32  ;;  %v1808_v16 = vadd.f32 %v1792_v5, %v2854_v49  ;;  %v1809_v12 = vadd.f32 %v1793_v7, %v2854_v49  ;;  %v2186_v1 = vld [vmem:[%s3326_s4 + $0x1e0] sm:$0xff]  ;;  %v2187_v2 = vld [vmem:[%s3326_s4 + $0x1e8] sm:$0xff] }
 0x1df   : > { %v1810_v20 = vadd.f32 %v1794_v8, %v2854_v49  ;;  %v1811_v17 = vadd.f32 %v1795_v9, %v2854_v49  ;;  %2164 = vst [vmem:[%s3326_s4 + $0x130] sm:$0xff] %v1822_v11  ;;  %v1812_v19 = vadd.f32 %v1796_v15, %v2854_v49  ;;  %v1798_v22 = vmul.f32 %v2156_v40, %v2818_v32  ;;  %v2188_v11 = vld [vmem:[%s3326_s4 + $0x1f0] sm:$0xff] }
 0x1e0   : > { %2165 = vst [vmem:[%s3326_s4 + $0x138] sm:$0xff] %v1823_v13  ;;  %v1813_v21 = vadd.f32 %v1797_v42, %v2854_v49  ;;  %v1799_v23 = vmul.f32 %v2157_v10, %v2818_v32  ;;  %v1824_v14 = vmax.f32 %v1808_v16, 0.0  ;;  %v1825_v29 = vmax.f32 %v1809_v12, 0.0  ;;  %v2189_v13 = vld [vmem:[%s3326_s4 + $0x1f8] sm:$0xff] }
 0x1e1   : > { %v1826_v30 = vmax.f32 %v1810_v20, 0.0  ;;  %v1827_v31 = vmax.f32 %v1811_v17, 0.0  ;;  %v1828_v34 = vmax.f32 %v1812_v19, 0.0  ;;  %v1814_v37 = vadd.f32 %v1798_v22, %v2854_v49 }
 0x1e2   : > { %v1829_v35 = vmax.f32 %v1813_v21, 0.0  ;;  %v1815_v39 = vadd.f32 %v1799_v23, %v2854_v49  ;;  %2166 = vst [vmem:[%s3326_s4 + $0x140] sm:$0xff] %v1824_v14  ;;  %2167 = vst [vmem:[%s3326_s4 + $0x148] sm:$0xff] %v1825_v29  ;;  %v1865_v56 = vmul.f32 %v2174_v18, %v2818_v32  ;;  %v1866_v36 = vmul.f32 %v2175_v24, %v2818_v32 }
 0x1e3   : > { %2168 = vst [vmem:[%s3326_s4 + $0x150] sm:$0xff] %v1826_v30  ;;  %2169 = vst [vmem:[%s3326_s4 + $0x158] sm:$0xff] %v1827_v31  ;;  %v1867_v41 = vmul.f32 %v2176_v25, %v2818_v32  ;;  %v1868_v43 = vmul.f32 %v2177_v27, %v2818_v32  ;;  %v1830_v38 = vmax.f32 %v1814_v37, 0.0  ;;  %v1869_v47 = vmul.f32 %v2178_v33, %v2818_v32 }
 0x1e4   : > { %2170 = vst [vmem:[%s3326_s4 + $0x160] sm:$0xff] %v1828_v34  ;;  %2171 = vst [vmem:[%s3326_s4 + $0x168] sm:$0xff] %v1829_v35  ;;  %v1831_v46 = vmax.f32 %v1815_v39, 0.0  ;;  %v1870_v26 = vmul.f32 %v2179_v54, %v2818_v32  ;;  %v1881_v48 = vadd.f32 %v1865_v56, %v2854_v49  ;;  %v1882_v50 = vadd.f32 %v1866_v36, %v2854_v49 }
 0x1e5   : > { %v1883_v51 = vadd.f32 %v1867_v41, %v2854_v49  ;;  %v1884_v28 = vadd.f32 %v1868_v43, %v2854_v49  ;;  %2172 = vst [vmem:[%s3326_s4 + $0x170] sm:$0xff] %v1830_v38  ;;  %v1885_v57 = vadd.f32 %v1869_v47, %v2854_v49  ;;  %v1871_v59 = vmul.f32 %v2180_v44, %v2818_v32 }
 0x1e6   : > { %2173 = vst [vmem:[%s3326_s4 + $0x178] sm:$0xff] %v1831_v46  ;;  %v1886_v58 = vadd.f32 %v1870_v26, %v2854_v49  ;;  %v1872_v4 = vmul.f32 %v2181_v45, %v2818_v32  ;;  %v1897_v63 = vmax.f32 %v1881_v48, 0.0  ;;  %v1898_v52 = vmax.f32 %v1882_v50, 0.0 }
 0x1e7   : > { %v1899_v6 = vmax.f32 %v1883_v51, 0.0  ;;  %v1900_v0 = vmax.f32 %v1884_v28, 0.0  ;;  %v1901_v3 = vmax.f32 %v1885_v57, 0.0  ;;  %v1887_v5 = vadd.f32 %v1871_v59, %v2854_v49 }
 0x1e8   : > { %v1902_v55 = vmax.f32 %v1886_v58, 0.0  ;;  %v1888_v7 = vadd.f32 %v1872_v4, %v2854_v49  ;;  %2190 = vst [vmem:[%s3326_s4 + $0x180] sm:$0xff] %v1897_v63  ;;  %2191 = vst [vmem:[%s3326_s4 + $0x188] sm:$0xff] %v1898_v52  ;;  %v1873_v8 = vmul.f32 %v2182_v53, %v2818_v32  ;;  %v1874_v9 = vmul.f32 %v2183_v60, %v2818_v32 }
 0x1e9   : > { %2192 = vst [vmem:[%s3326_s4 + $0x190] sm:$0xff] %v1899_v6  ;;  %2193 = vst [vmem:[%s3326_s4 + $0x198] sm:$0xff] %v1900_v0  ;;  %v1875_v40 = vmul.f32 %v2184_v61, %v2818_v32  ;;  %v1876_v10 = vmul.f32 %v2185_v62, %v2818_v32  ;;  %v1903_v15 = vmax.f32 %v1887_v5, 0.0  ;;  %v1877_v16 = vmul.f32 %v2186_v1, %v2818_v32 }
 0x1ea   : > { %2194 = vst [vmem:[%s3326_s4 + $0x1a0] sm:$0xff] %v1901_v3  ;;  %2195 = vst [vmem:[%s3326_s4 + $0x1a8] sm:$0xff] %v1902_v55  ;;  %v1904_v42 = vmax.f32 %v1888_v7, 0.0  ;;  %v1878_v12 = vmul.f32 %v2187_v2, %v2818_v32  ;;  %v1889_v20 = vadd.f32 %v1873_v8, %v2854_v49  ;;  %v1890_v17 = vadd.f32 %v1874_v9, %v2854_v49 }
 0x1eb   : > { %v1891_v18 = vadd.f32 %v1875_v40, %v2854_v49  ;;  %v1892_v19 = vadd.f32 %v1876_v10, %v2854_v49  ;;  %2196 = vst [vmem:[%s3326_s4 + $0x1b0] sm:$0xff] %v1903_v15  ;;  %v1893_v21 = vadd.f32 %v1877_v16, %v2854_v49  ;;  %v1879_v23 = vmul.f32 %v2188_v11, %v2818_v32 }
 0x1ec   : > { %2197 = vst [vmem:[%s3326_s4 + $0x1b8] sm:$0xff] %v1904_v42  ;;  %v1894_v22 = vadd.f32 %v1878_v12, %v2854_v49  ;;  %v1880_v24 = vmul.f32 %v2189_v13, %v2818_v32  ;;  %v1905_v25 = vmax.f32 %v1889_v20, 0.0  ;;  %v1906_v27 = vmax.f32 %v1890_v17, 0.0 }
 0x1ed   : > { %v1907_v14 = vmax.f32 %v1891_v18, 0.0  ;;  %v1908_v29 = vmax.f32 %v1892_v19, 0.0  ;;  %v1909_v30 = vmax.f32 %v1893_v21, 0.0  ;;  %v1895_v33 = vadd.f32 %v1879_v23, %v2854_v49 }
 0x1ee   : > { %v1910_v31 = vmax.f32 %v1894_v22, 0.0  ;;  %v1896_v54 = vadd.f32 %v1880_v24, %v2854_v49  ;;  %2198 = vst [vmem:[%s3326_s4 + $0x1c0] sm:$0xff] %v1905_v25  ;;  %2199 = vst [vmem:[%s3326_s4 + $0x1c8] sm:$0xff] %v1906_v27 }
 0x1ef   : > { %2200 = vst [vmem:[%s3326_s4 + $0x1d0] sm:$0xff] %v1907_v14  ;;  %2201 = vst [vmem:[%s3326_s4 + $0x1d8] sm:$0xff] %v1908_v29  ;;  %v1911_v32 = vmax.f32 %v1895_v33, 0.0 }
 0x1f0   : > { %2202 = vst [vmem:[%s3326_s4 + $0x1e0] sm:$0xff] %v1909_v30  ;;  %2203 = vst [vmem:[%s3326_s4 + $0x1e8] sm:$0xff] %v1910_v31  ;;  %v1912_v49 = vmax.f32 %v1896_v54, 0.0 }
 0x1f1   : > { %2204 = vst [vmem:[%s3326_s4 + $0x1f0] sm:$0xff] %v1911_v32 }
 0x1f2   : > { %2205 = vst [vmem:[%s3326_s4 + $0x1f8] sm:$0xff] %v1912_v49 }
 0x1f3 PF: > { %s14_s15 = sadd.s32 1, %s2547_s15  }
 0x1f4   : > { %p11_p6 = scmp.ge.s32.totalorder %s14_s15, 6  }
 0x1f6   :  { %13 = sbr.rel (!%p11_p6) target bundleno = 1 (0x1), region = 77 }

// kernel: generator_forward.8
= control target key start
LH: loop header
LB: loop body
LE: loop exit
PB: predicated region body
PF: predicated region fallthrough
CT: control target
= control target key end

     0   :  { %s4466_s15 = smov 0   ;;  %s7261_s0 = inlined_call_operand.vmem [shape: bf16[4,512,512], index: 0, kind: input, shape index: {}]   ;;  %s7262_s1 = inlined_call_operand.vmem [shape: bf16[4,512,64], index: 1, kind: input, shape index: {}]   ;;  %s7263_s2 = inlined_call_operand.vmem [shape: f32[1,64], index: 2, kind: input, shape index: {}]   ;;  %s7264_s3 = inlined_call_operand.vmem [shape: f32[1,64], index: 3, kind: input, shape index: {}]   ;;  %s7265_s4 = inlined_call_operand.vmem [shape: f32[4,512,64], index: 4, kind: output, shape index: {}]  }
   0x1 LB: > { %s4472_s16 = sadd.s32 4294967295, %s4437_s15   ;;  %p3575_p0 = scmp.ge.s32.totalorder %s4437_s15, 1  ;;  %s4437_s15 = sphi %s4466_s15, %s14_s15  }
   0x2   : > { %p167_p1 = scmp.lt.s32.totalorder %s4437_s15, 5 }
   0x4   : > { %p168_p2 = pnand %p3575_p0, %p167_p1 }
   0x5   : > { %p193_p3 = scmp.lt.s32.totalorder (!%p168_p2), %s4472_s16, 3  ;;  %p3580_p4 = scmp.ne.s32.totalorder (!%p168_p2), %s4472_s16, 0 }
   0x6   : > { %171 = sbr.rel (%p168_p2) target bundleno = 798 (0x31e), region = 36 }
   0xd   : > { %s194_s17 = scalar_select %p193_p3, %s4472_s16, 3 }
   0xe   : > { %207 = sbr.rel (%p3580_p4) target bundleno = 21 (0x15), region = 40  ;;  %vm208_vm0 = vcmask (!%p3580_p4), 516096   ;;  %v4439_v0 = vmov (!%p3580_p4), 0.0  }
   0xf   : > { %s4129_s18 = sshll.u32 %s194_s17, 10  ;;  %s4130_s19 = sshll.u32 %s194_s17, 8  ;;  %209 = vst.msk [vmem:[#allocation2] sm:$0x1] (!%p3580_p4), %vm208_vm0, %v4439_v0  ;;  %210 = vst.msk [vmem:[#allocation3] sm:$0x1] (!%p3580_p4), %vm208_vm0, %v4439_v0 }
  0x10   : > { %s4481_s22 = scalar_lea.vmem %s7261_s0, %s4129_s18  ;;  %s4486_s25 = scalar_lea.vmem %s7262_s1, %s4130_s19 }
  0x15 PF: > { %v4205_v1 = vld [vmem:[%s4486_s25] sm:$0xff]   ;;  %v4440_v2 = vmov 0   ;;  %v4207_v4 = vld [vmem:[%s4486_s25 + $0x8] sm:$0xff]   ;;  %v4209_v6 = vld [vmem:[%s4486_s25 + $0x10] sm:$0xff]   ;;  %s3741_s26 = sshll.u32 %s4472_s16, 9  ;;  %vm1815_vm1 = vcmask 523264  }
  0x16   : > { %1235 = vmatprep.subr.bf16.mxu1 %v4440_v2  ;;  %1524 = vmatprep.subr.bf16.mxu0 %v4440_v2  ;;  %v4206_v3 = vld [vmem:[%s4486_s25 + $0x80] sm:$0xff]   ;;  %v4208_v5 = vld [vmem:[%s4486_s25 + $0x88] sm:$0xff]   ;;  %v4210_v7 = vld [vmem:[%s4486_s25 + $0x90] sm:$0xff]   ;;  %s4667_s29 = scalar_lea.vmem %s7265_s4, %s3741_s26  ;;  %vm2015_vm2 = vcmask 516096   ;;  %p3742_p5 = scmp.ne.s32.totalorder %s4472_s16, 3 }
  0x17   : > { %1236 = vmatpush1.bf16.msra.mxu1 %v4205_v1  ;;  %1525 = vmatpush1.bf16.msra.mxu0 %v4206_v3  ;;  %v4211_v8 = vld [vmem:[%s4486_s25 + $0x18] sm:$0xff]   ;;  %v4213_v10 = vld [vmem:[%s4486_s25 + $0x20] sm:$0xff]   ;;  %v4215_v12 = vld [vmem:[%s4486_s25 + $0x28] sm:$0xff]  }
  0x18   : > { %1237 = vmatprep.subr.bf16.mxu1 %v4440_v2  ;;  %1526 = vmatprep.subr.bf16.mxu0 %v4440_v2  ;;  %v4212_v9 = vld [vmem:[%s4486_s25 + $0x98] sm:$0xff]   ;;  %v4214_v11 = vld [vmem:[%s4486_s25 + $0xa0] sm:$0xff]   ;;  %v4216_v13 = vld [vmem:[%s4486_s25 + $0xa8] sm:$0xff]  }
  0x19   : > { %v4217_v14 = vld [vmem:[%s4486_s25 + $0x30] sm:$0xff]   ;;  %v4219_v16 = vld [vmem:[%s4486_s25 + $0x38] sm:$0xff]   ;;  %v4221_v18 = vld [vmem:[%s4486_s25 + $0x40] sm:$0xff]  }
  0x1a   : > { %v4218_v15 = vld [vmem:[%s4486_s25 + $0xb0] sm:$0xff]   ;;  %v4220_v17 = vld [vmem:[%s4486_s25 + $0xb8] sm:$0xff]   ;;  %v4222_v19 = vld [vmem:[%s4486_s25 + $0xc0] sm:$0xff]  }
  0x1b   : > { %1238 = vmatpush1.bf16.msra.mxu1 %v4207_v4  ;;  %1527 = vmatpush1.bf16.msra.mxu0 %v4208_v5  ;;  %v4239_v20 = vld [vmem:[%s4481_s22 + $0x4] ss:$16 sps:$4 sm:$0xff]   ;;  %v4223_v21 = vld [vmem:[%s4486_s25 + $0x48] sm:$0xff]   ;;  %v4227_v26 = vld [vmem:[%s4486_s25 + $0x58] sm:$0xff]  }
  0x1c   : > { %1239 = vmatprep.subr.bf16.mxu1 %v4440_v2  ;;  %1528 = vmatprep.subr.bf16.mxu0 %v4440_v2  ;;  %v4242_v22 = vld [vmem:[%s4481_s22 + $0xc] ss:$16 sps:$4 sm:$0xff]   ;;  %v4225_v24 = vld [vmem:[%s4486_s25 + $0x50] sm:$0xff]   ;;  %v4229_v28 = vld [vmem:[%s4486_s25 + $0x60] sm:$0xff]  }
  0x1d   : > { %v4224_v23 = vld [vmem:[%s4486_s25 + $0xc8] sm:$0xff]   ;;  %1267 = vmatprep.mubr.bf16.mxu1 %v4239_v20  ;;  %1556 = vmatprep.mubr.bf16.mxu0 %v4242_v22  ;;  %v4226_v25 = vld [vmem:[%s4486_s25 + $0xd0] sm:$0xff]   ;;  %v4228_v27 = vld [vmem:[%s4486_s25 + $0xd8] sm:$0xff]  }
  0x1e   : > { %v4230_v29 = vld [vmem:[%s4486_s25 + $0xe0] sm:$0xff]   ;;  %v4231_v30 = vld [vmem:[%s4486_s25 + $0x68] sm:$0xff]   ;;  %v4233_v32 = vld [vmem:[%s4486_s25 + $0x70] sm:$0xff]  }
  0x1f   : > { %1240 = vmatpush1.bf16.msra.mxu1 %v4209_v6  ;;  %1529 = vmatpush1.bf16.msra.mxu0 %v4210_v7  ;;  %v4232_v31 = vld [vmem:[%s4486_s25 + $0xe8] sm:$0xff]   ;;  %v4234_v33 = vld [vmem:[%s4486_s25 + $0xf0] sm:$0xff]   ;;  %v4235_v34 = vld [vmem:[%s4486_s25 + $0x78] sm:$0xff]  }
  0x20   : > { %1241 = vmatprep.subr.bf16.mxu1 %v4440_v2  ;;  %1530 = vmatprep.subr.bf16.mxu0 %v4440_v2  ;;  %v4236_v35 = vld [vmem:[%s4486_s25 + $0xf8] sm:$0xff]   ;;  %v4237_v36 = vld [vmem:[%s4481_s22] ss:$16 sps:$4 sm:$0xff]   ;;  %v4243_v38 = vld [vmem:[%s4481_s22 + $0x24] ss:$16 sps:$4 sm:$0xff]  }
  0x21   : > { %v4240_v37 = vld [vmem:[%s4481_s22 + $0x8] ss:$16 sps:$4 sm:$0xff]   ;;  %v4245_v39 = vld [vmem:[%s4481_s22 + $0x2c] ss:$16 sps:$4 sm:$0xff]   ;;  %v4247_v40 = vld [vmem:[%s4481_s22 + $0x20] ss:$16 sps:$4 sm:$0xff]  }
  0x22   : > { %v4248_v41 = vld [vmem:[%s4481_s22 + $0x28] ss:$16 sps:$4 sm:$0xff]   ;;  %v4249_v42 = vld [vmem:[%s4481_s22 + $0x44] ss:$16 sps:$4 sm:$0xff]   ;;  %v4251_v43 = vld [vmem:[%s4481_s22 + $0x4c] ss:$16 sps:$4 sm:$0xff]  }
  0x23   : > { %1242 = vmatpush1.bf16.msra.mxu1 %v4211_v8  ;;  %1531 = vmatpush1.bf16.msra.mxu0 %v4212_v9  ;;  %v4253_v44 = vld [vmem:[%s4481_s22 + $0x40] ss:$16 sps:$4 sm:$0xff]   ;;  %v4254_v45 = vld [vmem:[%s4481_s22 + $0x48] ss:$16 sps:$4 sm:$0xff]   ;;  %v4255_v46 = vld [vmem:[%s4481_s22 + $0x64] ss:$16 sps:$4 sm:$0xff]  }
  0x24   : > { %1243 = vmatprep.subr.bf16.mxu1 %v4440_v2  ;;  %1532 = vmatprep.subr.bf16.mxu0 %v4440_v2  ;;  %v4257_v47 = vld [vmem:[%s4481_s22 + $0x6c] ss:$16 sps:$4 sm:$0xff]   ;;  %v4259_v48 = vld [vmem:[%s4481_s22 + $0x60] ss:$16 sps:$4 sm:$0xff]   ;;  %v4260_v49 = vld [vmem:[%s4481_s22 + $0x68] ss:$16 sps:$4 sm:$0xff]  }
  0x25   : > { %v4261_v50 = vld [vmem:[%s4481_s22 + $0x84] ss:$16 sps:$4 sm:$0xff]   ;;  %v4263_v51 = vld [vmem:[%s4481_s22 + $0x8c] ss:$16 sps:$4 sm:$0xff]   ;;  %v4265_v52 = vld [vmem:[%s4481_s22 + $0x80] ss:$16 sps:$4 sm:$0xff]  }
  0x26   : > { %v4266_v53 = vld [vmem:[%s4481_s22 + $0x88] ss:$16 sps:$4 sm:$0xff]   ;;  %v4267_v54 = vld [vmem:[%s4481_s22 + $0xa4] ss:$16 sps:$4 sm:$0xff]   ;;  %v4269_v55 = vld [vmem:[%s4481_s22 + $0xac] ss:$16 sps:$4 sm:$0xff]  }
  0x27   : > { %1244 = vmatpush1.bf16.msra.mxu1 %v4213_v10  ;;  %1533 = vmatpush1.bf16.msra.mxu0 %v4214_v11  ;;  %v4271_v56 = vld [vmem:[%s4481_s22 + $0xa0] ss:$16 sps:$4 sm:$0xff]   ;;  %v4272_v57 = vld [vmem:[%s4481_s22 + $0xa8] ss:$16 sps:$4 sm:$0xff]   ;;  %v4273_v58 = vld [vmem:[%s4481_s22 + $0xc4] ss:$16 sps:$4 sm:$0xff]  }
  0x28   : > { %1245 = vmatprep.subr.bf16.mxu1 %v4440_v2  ;;  %1534 = vmatprep.subr.bf16.mxu0 %v4440_v2  ;;  %v4275_v59 = vld [vmem:[%s4481_s22 + $0xcc] ss:$16 sps:$4 sm:$0xff]   ;;  %v4277_v60 = vld [vmem:[%s4481_s22 + $0xc0] ss:$16 sps:$4 sm:$0xff]   ;;  %v4278_v61 = vld [vmem:[%s4481_s22 + $0xc8] ss:$16 sps:$4 sm:$0xff]  }
  0x29   : > { %v4279_v62 = vld [vmem:[%s4481_s22 + $0xe4] ss:$16 sps:$4 sm:$0xff]   ;;  %v4281_v63 = vld [vmem:[%s4481_s22 + $0xec] ss:$16 sps:$4 sm:$0xff]   ;;  %v4283_v0 = vld [vmem:[%s4481_s22 + $0xe0] ss:$16 sps:$4 sm:$0xff]  }
  0x2a   : > { %v4284_v1 = vld [vmem:[%s4481_s22 + $0xe8] ss:$16 sps:$4 sm:$0xff]   ;;  %v4287_v3 = vld [vmem:[%s4481_s22 + $0x10c] ss:$16 sps:$4 sm:$0xff]   ;;  %v4289_v4 = vld [vmem:[%s4481_s22 + $0x100] ss:$16 sps:$4 sm:$0xff]  }
  0x2b   : > { %1246 = vmatpush1.bf16.msra.mxu1 %v4215_v12  ;;  %1535 = vmatpush1.bf16.msra.mxu0 %v4216_v13  ;;  %v4290_v5 = vld [vmem:[%s4481_s22 + $0x108] ss:$16 sps:$4 sm:$0xff]   ;;  %v4291_v6 = vld [vmem:[%s4481_s22 + $0x124] ss:$16 sps:$4 sm:$0xff]   ;;  %v4293_v7 = vld [vmem:[%s4481_s22 + $0x12c] ss:$16 sps:$4 sm:$0xff]  }
  0x2c   : > { %1247 = vmatprep.subr.bf16.mxu1 %v4440_v2  ;;  %1536 = vmatprep.subr.bf16.mxu0 %v4440_v2  ;;  %v4295_v8 = vld [vmem:[%s4481_s22 + $0x120] ss:$16 sps:$4 sm:$0xff]   ;;  %v4296_v9 = vld [vmem:[%s4481_s22 + $0x128] ss:$16 sps:$4 sm:$0xff]   ;;  %v4297_v10 = vld [vmem:[%s4481_s22 + $0x144] ss:$16 sps:$4 sm:$0xff]  }
  0x2d   : > { %v4299_v11 = vld [vmem:[%s4481_s22 + $0x14c] ss:$16 sps:$4 sm:$0xff]   ;;  %v4301_v12 = vld [vmem:[%s4481_s22 + $0x140] ss:$16 sps:$4 sm:$0xff]   ;;  %v4302_v13 = vld [vmem:[%s4481_s22 + $0x148] ss:$16 sps:$4 sm:$0xff]  }
  0x2e   : > { %v4313_v20 = vld [vmem:[%s4481_s22 + $0x180] ss:$16 sps:$4 sm:$0xff]   ;;  %v4315_v22 = vld [vmem:[%s4481_s22 + $0x1a4] ss:$16 sps:$4 sm:$0xff]  }
  0x2f   : > { %1248 = vmatpush1.bf16.msra.mxu1 %v4217_v14  ;;  %1537 = vmatpush1.bf16.msra.mxu0 %v4218_v15  ;;  %v4303_v14 = vld [vmem:[%s4481_s22 + $0x164] ss:$16 sps:$4 sm:$0xff]   ;;  %v4305_v15 = vld [vmem:[%s4481_s22 + $0x16c] ss:$16 sps:$4 sm:$0xff]  }
  0x30   : > { %1249 = vmatprep.subr.bf16.mxu1 %v4440_v2  ;;  %1538 = vmatprep.subr.bf16.mxu0 %v4440_v2 }
  0x33   : > { %1250 = vmatpush1.bf16.msra.mxu1 %v4219_v16  ;;  %1539 = vmatpush1.bf16.msra.mxu0 %v4220_v17  ;;  %v4307_v16 = vld [vmem:[%s4481_s22 + $0x160] ss:$16 sps:$4 sm:$0xff]   ;;  %v4308_v17 = vld [vmem:[%s4481_s22 + $0x168] ss:$16 sps:$4 sm:$0xff]  }
  0x34   : > { %1251 = vmatprep.subr.bf16.mxu1 %v4440_v2  ;;  %1540 = vmatprep.subr.bf16.mxu0 %v4440_v2 }
  0x37   : > { %1252 = vmatpush1.bf16.msra.mxu1 %v4221_v18  ;;  %1541 = vmatpush1.bf16.msra.mxu0 %v4222_v19  ;;  %v4309_v18 = vld [vmem:[%s4481_s22 + $0x184] ss:$16 sps:$4 sm:$0xff]   ;;  %v4311_v19 = vld [vmem:[%s4481_s22 + $0x18c] ss:$16 sps:$4 sm:$0xff]  }
  0x38   : > { %1253 = vmatprep.subr.bf16.mxu1 %v4440_v2  ;;  %1542 = vmatprep.subr.bf16.mxu0 %v4440_v2 }
  0x3b   : > { %1254 = vmatpush1.bf16.msra.mxu1 %v4223_v21  ;;  %1543 = vmatpush1.bf16.msra.mxu0 %v4224_v23  ;;  %v4314_v21 = vld [vmem:[%s4481_s22 + $0x188] ss:$16 sps:$4 sm:$0xff]   ;;  %v4317_v23 = vld [vmem:[%s4481_s22 + $0x1ac] ss:$16 sps:$4 sm:$0xff]  }
  0x3c   : > { %1255 = vmatprep.subr.bf16.mxu1 %v4440_v2  ;;  %1544 = vmatprep.subr.bf16.mxu0 %v4440_v2 }
  0x3f   : > { %1256 = vmatpush1.bf16.msra.mxu1 %v4225_v24  ;;  %1545 = vmatpush1.bf16.msra.mxu0 %v4226_v25  ;;  %v4319_v24 = vld [vmem:[%s4481_s22 + $0x1a0] ss:$16 sps:$4 sm:$0xff]   ;;  %v4320_v25 = vld [vmem:[%s4481_s22 + $0x1a8] ss:$16 sps:$4 sm:$0xff]  }
  0x40   : > { %1257 = vmatprep.subr.bf16.mxu1 %v4440_v2  ;;  %1546 = vmatprep.subr.bf16.mxu0 %v4440_v2 }
  0x43   : > { %1258 = vmatpush1.bf16.msra.mxu1 %v4227_v26  ;;  %1547 = vmatpush1.bf16.msra.mxu0 %v4228_v27  ;;  %v4321_v26 = vld [vmem:[%s4481_s22 + $0x1c4] ss:$16 sps:$4 sm:$0xff]   ;;  %v4323_v27 = vld [vmem:[%s4481_s22 + $0x1cc] ss:$16 sps:$4 sm:$0xff]  }
  0x44   : > { %1259 = vmatprep.subr.bf16.mxu1 %v4440_v2  ;;  %1548 = vmatprep.subr.bf16.mxu0 %v4440_v2 }
  0x47   : > { %1260 = vmatpush1.bf16.msra.mxu1 %v4229_v28  ;;  %1549 = vmatpush1.bf16.msra.mxu0 %v4230_v29  ;;  %v4325_v28 = vld [vmem:[%s4481_s22 + $0x1c0] ss:$16 sps:$4 sm:$0xff]   ;;  %v4326_v29 = vld [vmem:[%s4481_s22 + $0x1c8] ss:$16 sps:$4 sm:$0xff]  }
  0x48   : > { %1261 = vmatprep.subr.bf16.mxu1 %v4440_v2  ;;  %1550 = vmatprep.subr.bf16.mxu0 %v4440_v2 }
  0x4b   : > { %1262 = vmatpush1.bf16.msra.mxu1 %v4231_v30  ;;  %1551 = vmatpush1.bf16.msra.mxu0 %v4232_v31  ;;  %v4327_v30 = vld [vmem:[%s4481_s22 + $0x1e4] ss:$16 sps:$4 sm:$0xff]   ;;  %v4329_v31 = vld [vmem:[%s4481_s22 + $0x1ec] ss:$16 sps:$4 sm:$0xff]  }
  0x4c   : > { %1263 = vmatprep.subr.bf16.mxu1 %v4440_v2  ;;  %1552 = vmatprep.subr.bf16.mxu0 %v4440_v2 }
  0x4f   : > { %1264 = vmatpush1.bf16.msra.mxu1 %v4233_v32  ;;  %1553 = vmatpush1.bf16.msra.mxu0 %v4234_v33  ;;  %v4331_v32 = vld [vmem:[%s4481_s22 + $0x1e0] ss:$16 sps:$4 sm:$0xff]   ;;  %v4332_v33 = vld [vmem:[%s4481_s22 + $0x1e8] ss:$16 sps:$4 sm:$0xff]  }
  0x50   : > { %1265 = vmatprep.subr.bf16.mxu1 %v4440_v2  ;;  %1554 = vmatprep.subr.bf16.mxu0 %v4440_v2  ;;  %v4285_v2 = vld [vmem:[%s4481_s22 + $0x104] ss:$16 sps:$4 sm:$0xff]  }
  0x53   : > { %1266 = vmatpush1.bf16.msra.mxu1 %v4235_v34  ;;  %1555 = vmatpush1.bf16.msra.mxu0 %v4236_v35  ;;  %v4333_v34 = vld [vmem:[%s4481_s22 + $0x204] ss:$16 sps:$4 sm:$0xff]   ;;  %v4335_v35 = vld [vmem:[%s4481_s22 + $0x20c] ss:$16 sps:$4 sm:$0xff]  }
  0x56   : > { %1268 = vmatmul.mubr.bf16.vlgmr.msra.gmra.mrb[0].mxu1 %v4237_v36  ;;  %1557 = vmatmul.mubr.bf16.vlgmr.msra.gmra.mrb[0].mxu0 %v4240_v37  ;;  %v4337_v36 = vld [vmem:[%s4481_s22 + $0x200] ss:$16 sps:$4 sm:$0xff]   ;;  %v4338_v37 = vld [vmem:[%s4481_s22 + $0x208] ss:$16 sps:$4 sm:$0xff]  }
  0x57   : > { %1275 = vmatprep.mubr.bf16.mxu1 %v4243_v38  ;;  %1564 = vmatprep.mubr.bf16.mxu0 %v4245_v39  ;;  %v4339_v38 = vld [vmem:[%s4481_s22 + $0x224] ss:$16 sps:$4 sm:$0xff]   ;;  %v4341_v39 = vld [vmem:[%s4481_s22 + $0x22c] ss:$16 sps:$4 sm:$0xff]  }
  0x5e   : > { %1276 = vmatmul.mubr.bf16.gmra.mrb[4].mxu1 %v4247_v40  ;;  %1565 = vmatmul.mubr.bf16.gmra.mrb[4].mxu0 %v4248_v41  ;;  %v4343_v40 = vld [vmem:[%s4481_s22 + $0x220] ss:$16 sps:$4 sm:$0xff]   ;;  %v4344_v41 = vld [vmem:[%s4481_s22 + $0x228] ss:$16 sps:$4 sm:$0xff]  }
  0x5f   : > { %1283 = vmatprep.mubr.bf16.mxu1 %v4249_v42  ;;  %1572 = vmatprep.mubr.bf16.mxu0 %v4251_v43  ;;  %v4345_v42 = vld [vmem:[%s4481_s22 + $0x244] ss:$16 sps:$4 sm:$0xff]   ;;  %v4347_v43 = vld [vmem:[%s4481_s22 + $0x24c] ss:$16 sps:$4 sm:$0xff]  }
  0x66   : > { %1284 = vmatmul.mubr.bf16.gmra.mrb[8].mxu1 %v4253_v44  ;;  %1573 = vmatmul.mubr.bf16.gmra.mrb[8].mxu0 %v4254_v45  ;;  %v4349_v44 = vld [vmem:[%s4481_s22 + $0x240] ss:$16 sps:$4 sm:$0xff]   ;;  %v4350_v45 = vld [vmem:[%s4481_s22 + $0x248] ss:$16 sps:$4 sm:$0xff]  }
  0x67   : > { %1291 = vmatprep.mubr.bf16.mxu1 %v4255_v46  ;;  %1580 = vmatprep.mubr.bf16.mxu0 %v4257_v47  ;;  %v4351_v46 = vld [vmem:[%s4481_s22 + $0x264] ss:$16 sps:$4 sm:$0xff]   ;;  %v4353_v47 = vld [vmem:[%s4481_s22 + $0x26c] ss:$16 sps:$4 sm:$0xff]  }
  0x6e   : > { %1292 = vmatmul.mubr.bf16.gmra.mrb[12].mxu1 %v4259_v48  ;;  %1581 = vmatmul.mubr.bf16.gmra.mrb[12].mxu0 %v4260_v49  ;;  %v4355_v48 = vld [vmem:[%s4481_s22 + $0x260] ss:$16 sps:$4 sm:$0xff]   ;;  %v4356_v49 = vld [vmem:[%s4481_s22 + $0x268] ss:$16 sps:$4 sm:$0xff]  }
  0x6f   : > { %1299 = vmatprep.mubr.bf16.mxu1 %v4261_v50  ;;  %1588 = vmatprep.mubr.bf16.mxu0 %v4263_v51  ;;  %v4357_v50 = vld [vmem:[%s4481_s22 + $0x284] ss:$16 sps:$4 sm:$0xff]   ;;  %v4359_v51 = vld [vmem:[%s4481_s22 + $0x28c] ss:$16 sps:$4 sm:$0xff]  }
  0x76   : > { %1300 = vmatmul.mubr.bf16.gmra.mrb[16].mxu1 %v4265_v52  ;;  %1589 = vmatmul.mubr.bf16.gmra.mrb[16].mxu0 %v4266_v53  ;;  %v4361_v52 = vld [vmem:[%s4481_s22 + $0x280] ss:$16 sps:$4 sm:$0xff]   ;;  %v4362_v53 = vld [vmem:[%s4481_s22 + $0x288] ss:$16 sps:$4 sm:$0xff]  }
  0x77   : > { %1307 = vmatprep.mubr.bf16.mxu1 %v4267_v54  ;;  %1596 = vmatprep.mubr.bf16.mxu0 %v4269_v55  ;;  %v4363_v54 = vld [vmem:[%s4481_s22 + $0x2a4] ss:$16 sps:$4 sm:$0xff]   ;;  %v4365_v55 = vld [vmem:[%s4481_s22 + $0x2ac] ss:$16 sps:$4 sm:$0xff]  }
  0x7e   : > { %1308 = vmatmul.mubr.bf16.gmra.mrb[20].mxu1 %v4271_v56  ;;  %1597 = vmatmul.mubr.bf16.gmra.mrb[20].mxu0 %v4272_v57  ;;  %v4367_v56 = vld [vmem:[%s4481_s22 + $0x2a0] ss:$16 sps:$4 sm:$0xff]   ;;  %v4368_v57 = vld [vmem:[%s4481_s22 + $0x2a8] ss:$16 sps:$4 sm:$0xff]  }
  0x7f   : > { %1315 = vmatprep.mubr.bf16.mxu1 %v4273_v58  ;;  %1604 = vmatprep.mubr.bf16.mxu0 %v4275_v59  ;;  %v4369_v58 = vld [vmem:[%s4481_s22 + $0x2c4] ss:$16 sps:$4 sm:$0xff]   ;;  %v4371_v59 = vld [vmem:[%s4481_s22 + $0x2cc] ss:$16 sps:$4 sm:$0xff]  }
  0x86   : > { %1316 = vmatmul.mubr.bf16.gmra.mrb[24].mxu1 %v4277_v60  ;;  %1605 = vmatmul.mubr.bf16.gmra.mrb[24].mxu0 %v4278_v61  ;;  %v4373_v60 = vld [vmem:[%s4481_s22 + $0x2c0] ss:$16 sps:$4 sm:$0xff]   ;;  %v4374_v61 = vld [vmem:[%s4481_s22 + $0x2c8] ss:$16 sps:$4 sm:$0xff]  }
  0x87   : > { %1323 = vmatprep.mubr.bf16.mxu1 %v4279_v62  ;;  %1612 = vmatprep.mubr.bf16.mxu0 %v4281_v63  ;;  %v4375_v62 = vld [vmem:[%s4481_s22 + $0x2e4] ss:$16 sps:$4 sm:$0xff]   ;;  %v4377_v63 = vld [vmem:[%s4481_s22 + $0x2ec] ss:$16 sps:$4 sm:$0xff]  }
  0x8e   : > { %1324 = vmatmul.mubr.bf16.gmra.mrb[28].mxu1 %v4283_v0  ;;  %1613 = vmatmul.mubr.bf16.gmra.mrb[28].mxu0 %v4284_v1  ;;  %v4379_v0 = vld [vmem:[%s4481_s22 + $0x2e0] ss:$16 sps:$4 sm:$0xff]   ;;  %v4380_v1 = vld [vmem:[%s4481_s22 + $0x2e8] ss:$16 sps:$4 sm:$0xff]  }
  0x8f   : > { %1331 = vmatprep.mubr.bf16.mxu1 %v4285_v2  ;;  %1620 = vmatprep.mubr.bf16.mxu0 %v4287_v3  ;;  %v4381_v2 = vld [vmem:[%s4481_s22 + $0x304] ss:$16 sps:$4 sm:$0xff]   ;;  %v4383_v3 = vld [vmem:[%s4481_s22 + $0x30c] ss:$16 sps:$4 sm:$0xff]  }
  0x96   : > { %1332 = vmatmul.mubr.bf16.gmra.mrb[32].mxu1 %v4289_v4  ;;  %1621 = vmatmul.mubr.bf16.gmra.mrb[32].mxu0 %v4290_v5  ;;  %v4385_v4 = vld [vmem:[%s4481_s22 + $0x300] ss:$16 sps:$4 sm:$0xff]   ;;  %v4386_v5 = vld [vmem:[%s4481_s22 + $0x308] ss:$16 sps:$4 sm:$0xff]  }
  0x97   : > { %1339 = vmatprep.mubr.bf16.mxu1 %v4291_v6  ;;  %1628 = vmatprep.mubr.bf16.mxu0 %v4293_v7  ;;  %v4387_v6 = vld [vmem:[%s4481_s22 + $0x324] ss:$16 sps:$4 sm:$0xff]   ;;  %v4389_v7 = vld [vmem:[%s4481_s22 + $0x32c] ss:$16 sps:$4 sm:$0xff]  }
  0x9e   : > { %1340 = vmatmul.mubr.bf16.gmra.mrb[36].mxu1 %v4295_v8  ;;  %1629 = vmatmul.mubr.bf16.gmra.mrb[36].mxu0 %v4296_v9  ;;  %v4391_v8 = vld [vmem:[%s4481_s22 + $0x320] ss:$16 sps:$4 sm:$0xff]   ;;  %v4392_v9 = vld [vmem:[%s4481_s22 + $0x328] ss:$16 sps:$4 sm:$0xff]  }
  0x9f   : > { %1347 = vmatprep.mubr.bf16.mxu1 %v4297_v10  ;;  %1636 = vmatprep.mubr.bf16.mxu0 %v4299_v11  ;;  %v4393_v10 = vld [vmem:[%s4481_s22 + $0x344] ss:$16 sps:$4 sm:$0xff]   ;;  %v4395_v11 = vld [vmem:[%s4481_s22 + $0x34c] ss:$16 sps:$4 sm:$0xff]  }
  0xa6   : > { %1348 = vmatmul.mubr.bf16.gmra.mrb[40].mxu1 %v4301_v12  ;;  %1637 = vmatmul.mubr.bf16.gmra.mrb[40].mxu0 %v4302_v13  ;;  %v4397_v12 = vld [vmem:[%s4481_s22 + $0x340] ss:$16 sps:$4 sm:$0xff]   ;;  %v4398_v13 = vld [vmem:[%s4481_s22 + $0x348] ss:$16 sps:$4 sm:$0xff]  }
  0xa7   : > { %1355 = vmatprep.mubr.bf16.mxu1 %v4303_v14  ;;  %1644 = vmatprep.mubr.bf16.mxu0 %v4305_v15  ;;  %v4399_v14 = vld [vmem:[%s4481_s22 + $0x364] ss:$16 sps:$4 sm:$0xff]   ;;  %v4401_v15 = vld [vmem:[%s4481_s22 + $0x36c] ss:$16 sps:$4 sm:$0xff]  }
  0xae   : > { %1356 = vmatmul.mubr.bf16.gmra.mrb[44].mxu1 %v4307_v16  ;;  %1645 = vmatmul.mubr.bf16.gmra.mrb[44].mxu0 %v4308_v17 }
  0xaf   : > { %1363 = vmatprep.mubr.bf16.mxu1 %v4309_v18  ;;  %1652 = vmatprep.mubr.bf16.mxu0 %v4311_v19  ;;  %v4403_v19 = vld [vmem:[%s4481_s22 + $0x360] ss:$16 sps:$4 sm:$0xff]  }
  0xb6   : > { %1364 = vmatmul.mubr.bf16.gmra.mrb[48].mxu1 %v4313_v20  ;;  %1653 = vmatmul.mubr.bf16.gmra.mrb[48].mxu0 %v4314_v21 }
  0xb7   : > { %1371 = vmatprep.mubr.bf16.mxu1 %v4315_v22  ;;  %1660 = vmatprep.mubr.bf16.mxu0 %v4317_v23  ;;  %v4404_v23 = vld [vmem:[%s4481_s22 + $0x368] ss:$16 sps:$4 sm:$0xff]  }
  0xbe   : > { %1372 = vmatmul.mubr.bf16.gmra.mrb[52].mxu1 %v4319_v24  ;;  %1661 = vmatmul.mubr.bf16.gmra.mrb[52].mxu0 %v4320_v25  ;;  %v4405_v24 = vld [vmem:[%s4481_s22 + $0x384] ss:$16 sps:$4 sm:$0xff]  }
  0xbf   : > { %1379 = vmatprep.mubr.bf16.mxu1 %v4321_v26  ;;  %1668 = vmatprep.mubr.bf16.mxu0 %v4323_v27  ;;  %v4407_v27 = vld [vmem:[%s4481_s22 + $0x38c] ss:$16 sps:$4 sm:$0xff]  }
  0xc6   : > { %1380 = vmatmul.mubr.bf16.gmra.mrb[56].mxu1 %v4325_v28  ;;  %1669 = vmatmul.mubr.bf16.gmra.mrb[56].mxu0 %v4326_v29 }
  0xc7   : > { %1387 = vmatprep.mubr.bf16.mxu1 %v4327_v30  ;;  %1676 = vmatprep.mubr.bf16.mxu0 %v4329_v31 }
  0xce   : > { %1388 = vmatmul.mubr.bf16.gmra.mrb[60].mxu1 %v4331_v32  ;;  %1677 = vmatmul.mubr.bf16.gmra.mrb[60].mxu0 %v4332_v33 }
  0xcf   : > { %1395 = vmatprep.mubr.bf16.mxu1 %v4333_v34  ;;  %1684 = vmatprep.mubr.bf16.mxu0 %v4335_v35 }
  0xd6   : > { %1396 = vmatmul.mubr.bf16.gmra.mrb[64].mxu1 %v4337_v36  ;;  %1685 = vmatmul.mubr.bf16.gmra.mrb[64].mxu0 %v4338_v37 }
  0xd7   : > { %1403 = vmatprep.mubr.bf16.mxu1 %v4339_v38  ;;  %1692 = vmatprep.mubr.bf16.mxu0 %v4341_v39 }
  0xde   : > { %1404 = vmatmul.mubr.bf16.gmra.mrb[68].mxu1 %v4343_v40  ;;  %1693 = vmatmul.mubr.bf16.gmra.mrb[68].mxu0 %v4344_v41  ;;  %v4409_v41 = vld [vmem:[%s4481_s22 + $0x380] ss:$16 sps:$4 sm:$0xff]  }
  0xdf   : > { %1411 = vmatprep.mubr.bf16.mxu1 %v4345_v42  ;;  %1700 = vmatprep.mubr.bf16.mxu0 %v4347_v43 }
  0xe6   : > { %1412 = vmatmul.mubr.bf16.gmra.mrb[72].mxu1 %v4349_v44  ;;  %1701 = vmatmul.mubr.bf16.gmra.mrb[72].mxu0 %v4350_v45  ;;  %v4410_v45 = vld [vmem:[%s4481_s22 + $0x388] ss:$16 sps:$4 sm:$0xff]  }
  0xe7   : > { %1419 = vmatprep.mubr.bf16.mxu1 %v4351_v46  ;;  %1708 = vmatprep.mubr.bf16.mxu0 %v4353_v47  ;;  %v4411_v46 = vld [vmem:[%s4481_s22 + $0x3a4] ss:$16 sps:$4 sm:$0xff]  }
  0xee   : > { %1420 = vmatmul.mubr.bf16.gmra.mrb[76].mxu1 %v4355_v48  ;;  %1709 = vmatmul.mubr.bf16.gmra.mrb[76].mxu0 %v4356_v49  ;;  %v4413_v49 = vld [vmem:[%s4481_s22 + $0x3ac] ss:$16 sps:$4 sm:$0xff]  }
  0xef   : > { %1427 = vmatprep.mubr.bf16.mxu1 %v4357_v50  ;;  %1716 = vmatprep.mubr.bf16.mxu0 %v4359_v51 }
  0xf6   : > { %1428 = vmatmul.mubr.bf16.gmra.mrb[80].mxu1 %v4361_v52  ;;  %1717 = vmatmul.mubr.bf16.gmra.mrb[80].mxu0 %v4362_v53 }
  0xf7   : > { %1435 = vmatprep.mubr.bf16.mxu1 %v4363_v54  ;;  %1724 = vmatprep.mubr.bf16.mxu0 %v4365_v55 }
  0xfe   : > { %1436 = vmatmul.mubr.bf16.gmra.mrb[84].mxu1 %v4367_v56  ;;  %1725 = vmatmul.mubr.bf16.gmra.mrb[84].mxu0 %v4368_v57 }
  0xff   : > { %1443 = vmatprep.mubr.bf16.mxu1 %v4369_v58  ;;  %1732 = vmatprep.mubr.bf16.mxu0 %v4371_v59 }
 0x106   : > { %1444 = vmatmul.mubr.bf16.gmra.mrb[88].mxu1 %v4373_v60  ;;  %1733 = vmatmul.mubr.bf16.gmra.mrb[88].mxu0 %v4374_v61 }
 0x107   : > { %1451 = vmatprep.mubr.bf16.mxu1 %v4375_v62  ;;  %1740 = vmatprep.mubr.bf16.mxu0 %v4377_v63 }
 0x10e   : > { %1452 = vmatmul.mubr.bf16.gmra.mrb[92].mxu1 %v4379_v0  ;;  %1741 = vmatmul.mubr.bf16.gmra.mrb[92].mxu0 %v4380_v1  ;;  %v4415_v1 = vld [vmem:[%s4481_s22 + $0x3a0] ss:$16 sps:$4 sm:$0xff]  }
 0x10f   : > { %1459 = vmatprep.mubr.bf16.mxu1 %v4381_v2  ;;  %1748 = vmatprep.mubr.bf16.mxu0 %v4383_v3 }
 0x116   : > { %1460 = vmatmul.mubr.bf16.gmra.mrb[96].mxu1 %v4385_v4  ;;  %1749 = vmatmul.mubr.bf16.gmra.mrb[96].mxu0 %v4386_v5  ;;  %v4416_v5 = vld [vmem:[%s4481_s22 + $0x3a8] ss:$16 sps:$4 sm:$0xff]  }
 0x117   : > { %1467 = vmatprep.mubr.bf16.mxu1 %v4387_v6  ;;  %1756 = vmatprep.mubr.bf16.mxu0 %v4389_v7  ;;  %v4417_v6 = vld [vmem:[%s4481_s22 + $0x3c4] ss:$16 sps:$4 sm:$0xff]  }
 0x11e   : > { %1468 = vmatmul.mubr.bf16.gmra.mrb[100].mxu1 %v4391_v8  ;;  %1757 = vmatmul.mubr.bf16.gmra.mrb[100].mxu0 %v4392_v9  ;;  %v4419_v9 = vld [vmem:[%s4481_s22 + $0x3cc] ss:$16 sps:$4 sm:$0xff]  }
 0x11f   : > { %1475 = vmatprep.mubr.bf16.mxu1 %v4393_v10  ;;  %1764 = vmatprep.mubr.bf16.mxu0 %v4395_v11 }
 0x126   : > { %1476 = vmatmul.mubr.bf16.gmra.mrb[104].mxu1 %v4397_v12  ;;  %1765 = vmatmul.mubr.bf16.gmra.mrb[104].mxu0 %v4398_v13 }
 0x127   : > { %1483 = vmatprep.mubr.bf16.mxu1 %v4399_v14  ;;  %1772 = vmatprep.mubr.bf16.mxu0 %v4401_v15 }
 0x129   : > { %v1269_v16 = vpop.f32.mrb[0].mxu1  ;;  %v1558_v17 = vpop.f32.mrb[0].mxu0 }
 0x12a   : > { %v1271_v18 = vpop.f32.mrb[1].mxu1  ;;  %v1559_v20 = vadd.f32 %v1558_v17, %v1269_v16  ;;  %v1560_v21 = vpop.f32.mrb[1].mxu0 }
 0x12b   : > { %v1272_v22 = vpop.f32.mrb[2].mxu1  ;;  %v1561_v25 = vpop.f32.mrb[2].mxu0 }
 0x12c   : > { %v1274_v26 = vpop.f32.mrb[3].mxu1  ;;  %1816 = vst.msk [vmem:[%s4667_s29] sm:$0xff] %vm1815_vm1, %v1559_v20  ;;  %v2018_v28 = vmul.f32 %v1559_v20, %v1559_v20  ;;  %v1562_v29 = vadd.f32 %v1561_v25, %v1272_v22  ;;  %v1563_v30 = vpop.f32.mrb[3].mxu0  ;;  %v1881_v31 = vsel %vm1815_vm1, %v1559_v20, 0.0  ;;  %v4421_v25 = vld [vmem:[%s4481_s22 + $0x3c0] ss:$16 sps:$4 sm:$0xff]  }
 0x12d   : > { %v4423_v30 = vld [vmem:[%s4481_s22 + $0x3e4] ss:$16 sps:$4 sm:$0xff]  }
 0x12e   : > { %1484 = vmatmul.mubr.bf16.gmra.mrb[108].mxu1 %v4403_v19  ;;  %1817 = vst.msk [vmem:[%s4667_s29 + $0x8] sm:$0xff] %vm1815_vm1, %v1562_v29  ;;  %v1882_v32 = vsel %vm1815_vm1, %v1562_v29, 0.0  ;;  %v2019_v33 = vmul.f32 %v1562_v29, %v1562_v29  ;;  %1773 = vmatmul.mubr.bf16.gmra.mrb[108].mxu0 %v4404_v23  ;;  %v2082_v35 = vsel %vm1815_vm1, %v2018_v28, 0.0  ;;  %v4422_v29 = vld [vmem:[%s4481_s22 + $0x3c8] ss:$16 sps:$4 sm:$0xff]  }
 0x12f   : > { %1491 = vmatprep.mubr.bf16.mxu1 %v4405_v24  ;;  %v1883_v34 = vadd.f32 %v1882_v32, %v1881_v31  ;;  %1780 = vmatprep.mubr.bf16.mxu0 %v4407_v27 }
 0x130   : > { %v2083_v36 = vsel %vm1815_vm1, %v2019_v33, 0.0  ;;  %v4425_v33 = vld [vmem:[%s4481_s22 + $0x3ec] ss:$16 sps:$4 sm:$0xff]  }
 0x131   : > { %v1277_v37 = vpop.f32.mrb[4].mxu1  ;;  %v2084_v38 = vadd.f32 %v2083_v36, %v2082_v35  ;;  %v1566_v39 = vpop.f32.mrb[4].mxu0 }
 0x132   : > { %v1279_v40 = vpop.f32.mrb[5].mxu1  ;;  %v1567_v42 = vadd.f32 %v1566_v39, %v1277_v37  ;;  %v1568_v43 = vpop.f32.mrb[5].mxu0 }
 0x133   : > { %v1280_v44 = vpop.f32.mrb[6].mxu1  ;;  %v1569_v47 = vpop.f32.mrb[6].mxu0 }
 0x134   : > { %v1282_v48 = vpop.f32.mrb[7].mxu1  ;;  %1818 = vst.msk [vmem:[%s4667_s29 + $0x10] sm:$0xff] %vm1815_vm1, %v1567_v42  ;;  %v1884_v50 = vsel %vm1815_vm1, %v1567_v42, 0.0  ;;  %v2020_v51 = vmul.f32 %v1567_v42, %v1567_v42  ;;  %v1570_v52 = vadd.f32 %v1569_v47, %v1280_v44  ;;  %v1571_v53 = vpop.f32.mrb[7].mxu0 }
 0x135   : > { %v1885_v54 = vadd.f32 %v1884_v50, %v1883_v34  ;;  %v4428_v53 = vld [vmem:[%s4481_s22 + $0x3e8] ss:$16 sps:$4 sm:$0xff]  }
 0x136   : > { %1492 = vmatmul.mubr.bf16.gmra.mrb[112].mxu1 %v4409_v41  ;;  %v2085_v55 = vsel %vm1815_vm1, %v2020_v51, 0.0  ;;  %1819 = vst.msk [vmem:[%s4667_s29 + $0x18] sm:$0xff] %vm1815_vm1, %v1570_v52  ;;  %v1886_v56 = vsel %vm1815_vm1, %v1570_v52, 0.0  ;;  %v2021_v57 = vmul.f32 %v1570_v52, %v1570_v52  ;;  %1781 = vmatmul.mubr.bf16.gmra.mrb[112].mxu0 %v4410_v45 }
 0x137   : > { %1499 = vmatprep.mubr.bf16.mxu1 %v4411_v46  ;;  %v2086_v58 = vadd.f32 %v2085_v55, %v2084_v38  ;;  %v1887_v59 = vadd.f32 %v1886_v56, %v1885_v54  ;;  %1788 = vmatprep.mubr.bf16.mxu0 %v4413_v49  ;;  %v4427_v49 = vld [vmem:[%s4481_s22 + $0x3e0] ss:$16 sps:$4 sm:$0xff]  }
 0x138   : > { %v2087_v60 = vsel %vm1815_vm1, %v2021_v57, 0.0 }
 0x139   : > { %v1285_v61 = vpop.f32.mrb[8].mxu1  ;;  %v2088_v62 = vadd.f32 %v2087_v60, %v2086_v58  ;;  %v1574_v63 = vpop.f32.mrb[8].mxu0 }
 0x13a   : > { %v1287_v0 = vpop.f32.mrb[9].mxu1  ;;  %v1575_v2 = vadd.f32 %v1574_v63, %v1285_v61  ;;  %v1576_v3 = vpop.f32.mrb[9].mxu0 }
 0x13b   : > { %v1288_v4 = vpop.f32.mrb[10].mxu1  ;;  %v1577_v7 = vpop.f32.mrb[10].mxu0 }
 0x13c   : > { %v1290_v8 = vpop.f32.mrb[11].mxu1  ;;  %1820 = vst.msk [vmem:[%s4667_s29 + $0x20] sm:$0xff] %vm1815_vm1, %v1575_v2  ;;  %v1888_v10 = vsel %vm1815_vm1, %v1575_v2, 0.0  ;;  %v2022_v11 = vmul.f32 %v1575_v2, %v1575_v2  ;;  %v1578_v12 = vadd.f32 %v1577_v7, %v1288_v4  ;;  %v1579_v13 = vpop.f32.mrb[11].mxu0 }
 0x13d   : > { %v1889_v14 = vadd.f32 %v1888_v10, %v1887_v59 }
 0x13e   : > { %1500 = vmatmul.mubr.bf16.gmra.mrb[116].mxu1 %v4415_v1  ;;  %v2089_v15 = vsel %vm1815_vm1, %v2022_v11, 0.0  ;;  %1821 = vst.msk [vmem:[%s4667_s29 + $0x28] sm:$0xff] %vm1815_vm1, %v1578_v12  ;;  %v1890_v16 = vsel %vm1815_vm1, %v1578_v12, 0.0  ;;  %v2023_v17 = vmul.f32 %v1578_v12, %v1578_v12  ;;  %1789 = vmatmul.mubr.bf16.gmra.mrb[116].mxu0 %v4416_v5 }
 0x13f   : > { %1507 = vmatprep.mubr.bf16.mxu1 %v4417_v6  ;;  %v2090_v18 = vadd.f32 %v2089_v15, %v2088_v62  ;;  %v1891_v19 = vadd.f32 %v1890_v16, %v1889_v14  ;;  %1796 = vmatprep.mubr.bf16.mxu0 %v4419_v9 }
 0x140   : > { %v2091_v20 = vsel %vm1815_vm1, %v2023_v17, 0.0 }
 0x141   : > { %v1293_v21 = vpop.f32.mrb[12].mxu1  ;;  %v2092_v22 = vadd.f32 %v2091_v20, %v2090_v18  ;;  %v1582_v23 = vpop.f32.mrb[12].mxu0 }
 0x142   : > { %v1295_v24 = vpop.f32.mrb[13].mxu1  ;;  %v1583_v26 = vadd.f32 %v1582_v23, %v1293_v21  ;;  %v1584_v27 = vpop.f32.mrb[13].mxu0 }
 0x143   : > { %v1296_v28 = vpop.f32.mrb[14].mxu1  ;;  %v1585_v31 = vpop.f32.mrb[14].mxu0 }
 0x144   : > { %v1298_v32 = vpop.f32.mrb[15].mxu1  ;;  %1822 = vst.msk [vmem:[%s4667_s29 + $0x30] sm:$0xff] %vm1815_vm1, %v1583_v26  ;;  %v1892_v34 = vsel %vm1815_vm1, %v1583_v26, 0.0  ;;  %v2024_v35 = vmul.f32 %v1583_v26, %v1583_v26  ;;  %v1586_v36 = vadd.f32 %v1585_v31, %v1296_v28  ;;  %v1587_v37 = vpop.f32.mrb[15].mxu0 }
 0x145   : > { %v1893_v38 = vadd.f32 %v1892_v34, %v1891_v19 }
 0x146   : > { %1508 = vmatmul.mubr.bf16.gmra.mrb[120].mxu1 %v4421_v25  ;;  %v2093_v39 = vsel %vm1815_vm1, %v2024_v35, 0.0  ;;  %1823 = vst.msk [vmem:[%s4667_s29 + $0x38] sm:$0xff] %vm1815_vm1, %v1586_v36  ;;  %v1894_v40 = vsel %vm1815_vm1, %v1586_v36, 0.0  ;;  %v2025_v41 = vmul.f32 %v1586_v36, %v1586_v36  ;;  %1797 = vmatmul.mubr.bf16.gmra.mrb[120].mxu0 %v4422_v29 }
 0x147   : > { %1515 = vmatprep.mubr.bf16.mxu1 %v4423_v30  ;;  %v2094_v42 = vadd.f32 %v2093_v39, %v2092_v22  ;;  %v1895_v43 = vadd.f32 %v1894_v40, %v1893_v38  ;;  %1804 = vmatprep.mubr.bf16.mxu0 %v4425_v33 }
 0x148   : > { %v2095_v44 = vsel %vm1815_vm1, %v2025_v41, 0.0 }
 0x149   : > { %v1301_v45 = vpop.f32.mrb[16].mxu1  ;;  %v2096_v46 = vadd.f32 %v2095_v44, %v2094_v42  ;;  %v1590_v47 = vpop.f32.mrb[16].mxu0 }
 0x14a   : > { %v1303_v48 = vpop.f32.mrb[17].mxu1  ;;  %v1591_v50 = vadd.f32 %v1590_v47, %v1301_v45  ;;  %v1592_v51 = vpop.f32.mrb[17].mxu0 }
 0x14b   : > { %v1304_v52 = vpop.f32.mrb[18].mxu1  ;;  %v1593_v54 = vpop.f32.mrb[18].mxu0 }
 0x14c   : > { %v1306_v55 = vpop.f32.mrb[19].mxu1  ;;  %1824 = vst.msk [vmem:[%s4667_s29 + $0x40] sm:$0xff] %vm1815_vm1, %v1591_v50  ;;  %v1896_v56 = vsel %vm1815_vm1, %v1591_v50, 0.0  ;;  %v2026_v57 = vmul.f32 %v1591_v50, %v1591_v50  ;;  %v1594_v58 = vadd.f32 %v1593_v54, %v1304_v52  ;;  %v1595_v59 = vpop.f32.mrb[19].mxu0 }
 0x14d   : > { %v1897_v60 = vadd.f32 %v1896_v56, %v1895_v43 }
 0x14e   : > { %1516 = vmatmul.mubr.bf16.gmra.mrb[124].mxu1 %v4427_v49  ;;  %v2097_v61 = vsel %vm1815_vm1, %v2026_v57, 0.0  ;;  %1825 = vst.msk [vmem:[%s4667_s29 + $0x48] sm:$0xff] %vm1815_vm1, %v1594_v58  ;;  %v1898_v62 = vsel %vm1815_vm1, %v1594_v58, 0.0  ;;  %v2027_v63 = vmul.f32 %v1594_v58, %v1594_v58  ;;  %1805 = vmatmul.mubr.bf16.gmra.mrb[124].mxu0 %v4428_v53 }
 0x14f   : > { %v2098_v0 = vadd.f32 %v2097_v61, %v2096_v46  ;;  %v1899_v1 = vadd.f32 %v1898_v62, %v1897_v60 }
 0x150   : > { %v2099_v2 = vsel %vm1815_vm1, %v2027_v63, 0.0 }
 0x151   : > { %v1309_v3 = vpop.f32.mrb[20].mxu1  ;;  %v2100_v4 = vadd.f32 %v2099_v2, %v2098_v0  ;;  %v1598_v5 = vpop.f32.mrb[20].mxu0 }
 0x152   : > { %v1311_v6 = vpop.f32.mrb[21].mxu1  ;;  %v1599_v7 = vadd.f32 %v1598_v5, %v1309_v3  ;;  %v1600_v8 = vpop.f32.mrb[21].mxu0 }
 0x153   : > { %v1312_v9 = vpop.f32.mrb[22].mxu1  ;;  %v1601_v10 = vpop.f32.mrb[22].mxu0 }
 0x154   : > { %v1314_v11 = vpop.f32.mrb[23].mxu1  ;;  %1826 = vst.msk [vmem:[%s4667_s29 + $0x50] sm:$0xff] %vm1815_vm1, %v1599_v7  ;;  %v1900_v12 = vsel %vm1815_vm1, %v1599_v7, 0.0  ;;  %v2028_v13 = vmul.f32 %v1599_v7, %v1599_v7  ;;  %v1602_v14 = vadd.f32 %v1601_v10, %v1312_v9  ;;  %v1603_v15 = vpop.f32.mrb[23].mxu0 }
 0x155   : > { %v1901_v16 = vadd.f32 %v1900_v12, %v1899_v1 }
 0x156   : > { %v2101_v17 = vsel %vm1815_vm1, %v2028_v13, 0.0  ;;  %1827 = vst.msk [vmem:[%s4667_s29 + $0x58] sm:$0xff] %vm1815_vm1, %v1602_v14  ;;  %v1902_v18 = vsel %vm1815_vm1, %v1602_v14, 0.0  ;;  %v2029_v19 = vmul.f32 %v1602_v14, %v1602_v14 }
 0x157   : > { %v2102_v20 = vadd.f32 %v2101_v17, %v2100_v4  ;;  %v1903_v21 = vadd.f32 %v1902_v18, %v1901_v16 }
 0x158   : > { %v2103_v22 = vsel %vm1815_vm1, %v2029_v19, 0.0 }
 0x159   : > { %v1317_v23 = vpop.f32.mrb[24].mxu1  ;;  %v2104_v24 = vadd.f32 %v2103_v22, %v2102_v20  ;;  %v1606_v25 = vpop.f32.mrb[24].mxu0 }
 0x15a   : > { %v1319_v26 = vpop.f32.mrb[25].mxu1  ;;  %v1607_v27 = vadd.f32 %v1606_v25, %v1317_v23  ;;  %v1608_v28 = vpop.f32.mrb[25].mxu0 }
 0x15b   : > { %v1320_v29 = vpop.f32.mrb[26].mxu1  ;;  %v1609_v30 = vpop.f32.mrb[26].mxu0 }
 0x15c   : > { %v1322_v31 = vpop.f32.mrb[27].mxu1  ;;  %1828 = vst.msk [vmem:[%s4667_s29 + $0x60] sm:$0xff] %vm1815_vm1, %v1607_v27  ;;  %v1904_v32 = vsel %vm1815_vm1, %v1607_v27, 0.0  ;;  %v2030_v33 = vmul.f32 %v1607_v27, %v1607_v27  ;;  %v1610_v34 = vadd.f32 %v1609_v30, %v1320_v29  ;;  %v1611_v35 = vpop.f32.mrb[27].mxu0 }
 0x15d   : > { %v1905_v36 = vadd.f32 %v1904_v32, %v1903_v21 }
 0x15e   : > { %v2105_v37 = vsel %vm1815_vm1, %v2030_v33, 0.0  ;;  %1829 = vst.msk [vmem:[%s4667_s29 + $0x68] sm:$0xff] %vm1815_vm1, %v1610_v34  ;;  %v1906_v38 = vsel %vm1815_vm1, %v1610_v34, 0.0  ;;  %v2031_v39 = vmul.f32 %v1610_v34, %v1610_v34 }
 0x15f   : > { %v2106_v40 = vadd.f32 %v2105_v37, %v2104_v24  ;;  %v1907_v41 = vadd.f32 %v1906_v38, %v1905_v36 }
 0x160   : > { %v2107_v42 = vsel %vm1815_vm1, %v2031_v39, 0.0 }
 0x161   : > { %v1325_v43 = vpop.f32.mrb[28].mxu1  ;;  %v2108_v44 = vadd.f32 %v2107_v42, %v2106_v40  ;;  %v1614_v45 = vpop.f32.mrb[28].mxu0 }
 0x162   : > { %v1327_v46 = vpop.f32.mrb[29].mxu1  ;;  %v1615_v47 = vadd.f32 %v1614_v45, %v1325_v43  ;;  %v1616_v48 = vpop.f32.mrb[29].mxu0 }
 0x163   : > { %v1328_v49 = vpop.f32.mrb[30].mxu1  ;;  %v1617_v50 = vpop.f32.mrb[30].mxu0 }
 0x164   : > { %v1330_v51 = vpop.f32.mrb[31].mxu1  ;;  %1830 = vst.msk [vmem:[%s4667_s29 + $0x70] sm:$0xff] %vm1815_vm1, %v1615_v47  ;;  %v1908_v52 = vsel %vm1815_vm1, %v1615_v47, 0.0  ;;  %v2032_v53 = vmul.f32 %v1615_v47, %v1615_v47  ;;  %v1618_v54 = vadd.f32 %v1617_v50, %v1328_v49  ;;  %v1619_v55 = vpop.f32.mrb[31].mxu0 }
 0x165   : > { %v1909_v56 = vadd.f32 %v1908_v52, %v1907_v41 }
 0x166   : > { %v2109_v57 = vsel %vm1815_vm1, %v2032_v53, 0.0  ;;  %1831 = vst.msk [vmem:[%s4667_s29 + $0x78] sm:$0xff] %vm1815_vm1, %v1618_v54  ;;  %v1910_v58 = vsel %vm1815_vm1, %v1618_v54, 0.0  ;;  %v2033_v59 = vmul.f32 %v1618_v54, %v1618_v54 }
 0x167   : > { %v2110_v60 = vadd.f32 %v2109_v57, %v2108_v44  ;;  %v1911_v61 = vadd.f32 %v1910_v58, %v1909_v56 }
 0x168   : > { %v2111_v62 = vsel %vm1815_vm1, %v2033_v59, 0.0 }
 0x169   : > { %v1333_v63 = vpop.f32.mrb[32].mxu1  ;;  %v2112_v0 = vadd.f32 %v2111_v62, %v2110_v60  ;;  %v1622_v1 = vpop.f32.mrb[32].mxu0 }
 0x16a   : > { %v1335_v2 = vpop.f32.mrb[33].mxu1  ;;  %v1623_v3 = vadd.f32 %v1622_v1, %v1333_v63  ;;  %v1624_v4 = vpop.f32.mrb[33].mxu0 }
 0x16b   : > { %v1336_v5 = vpop.f32.mrb[34].mxu1  ;;  %v1625_v6 = vpop.f32.mrb[34].mxu0 }
 0x16c   : > { %v1338_v7 = vpop.f32.mrb[35].mxu1  ;;  %1832 = vst.msk [vmem:[%s4667_s29 + $0x80] sm:$0xff] %vm1815_vm1, %v1623_v3  ;;  %v1912_v8 = vsel %vm1815_vm1, %v1623_v3, 0.0  ;;  %v2034_v9 = vmul.f32 %v1623_v3, %v1623_v3  ;;  %v1626_v10 = vadd.f32 %v1625_v6, %v1336_v5  ;;  %v1627_v11 = vpop.f32.mrb[35].mxu0 }
 0x16d   : > { %v1913_v12 = vadd.f32 %v1912_v8, %v1911_v61 }
 0x16e   : > { %v2113_v13 = vsel %vm1815_vm1, %v2034_v9, 0.0  ;;  %1833 = vst.msk [vmem:[%s4667_s29 + $0x88] sm:$0xff] %vm1815_vm1, %v1626_v10  ;;  %v1914_v14 = vsel %vm1815_vm1, %v1626_v10, 0.0  ;;  %v2035_v15 = vmul.f32 %v1626_v10, %v1626_v10 }
 0x16f   : > { %v2114_v16 = vadd.f32 %v2113_v13, %v2112_v0  ;;  %v1915_v17 = vadd.f32 %v1914_v14, %v1913_v12 }
 0x170   : > { %v2115_v18 = vsel %vm1815_vm1, %v2035_v15, 0.0 }
 0x171   : > { %v1341_v19 = vpop.f32.mrb[36].mxu1  ;;  %v2116_v20 = vadd.f32 %v2115_v18, %v2114_v16  ;;  %v1630_v21 = vpop.f32.mrb[36].mxu0 }
 0x172   : > { %v1343_v22 = vpop.f32.mrb[37].mxu1  ;;  %v1631_v23 = vadd.f32 %v1630_v21, %v1341_v19  ;;  %v1632_v24 = vpop.f32.mrb[37].mxu0 }
 0x173   : > { %v1344_v25 = vpop.f32.mrb[38].mxu1  ;;  %v1633_v26 = vpop.f32.mrb[38].mxu0 }
 0x174   : > { %v1346_v27 = vpop.f32.mrb[39].mxu1  ;;  %1834 = vst.msk [vmem:[%s4667_s29 + $0x90] sm:$0xff] %vm1815_vm1, %v1631_v23  ;;  %v1916_v28 = vsel %vm1815_vm1, %v1631_v23, 0.0  ;;  %v2036_v29 = vmul.f32 %v1631_v23, %v1631_v23  ;;  %v1634_v30 = vadd.f32 %v1633_v26, %v1344_v25  ;;  %v1635_v31 = vpop.f32.mrb[39].mxu0 }
 0x175   : > { %v1917_v32 = vadd.f32 %v1916_v28, %v1915_v17 }
 0x176   : > { %v2117_v33 = vsel %vm1815_vm1, %v2036_v29, 0.0  ;;  %1835 = vst.msk [vmem:[%s4667_s29 + $0x98] sm:$0xff] %vm1815_vm1, %v1634_v30  ;;  %v1918_v34 = vsel %vm1815_vm1, %v1634_v30, 0.0  ;;  %v2037_v35 = vmul.f32 %v1634_v30, %v1634_v30 }
 0x177   : > { %v2118_v36 = vadd.f32 %v2117_v33, %v2116_v20  ;;  %v1919_v37 = vadd.f32 %v1918_v34, %v1917_v32 }
 0x178   : > { %v2119_v38 = vsel %vm1815_vm1, %v2037_v35, 0.0 }
 0x179   : > { %v1349_v39 = vpop.f32.mrb[40].mxu1  ;;  %v2120_v40 = vadd.f32 %v2119_v38, %v2118_v36  ;;  %v1638_v41 = vpop.f32.mrb[40].mxu0 }
 0x17a   : > { %v1351_v42 = vpop.f32.mrb[41].mxu1  ;;  %v1639_v43 = vadd.f32 %v1638_v41, %v1349_v39  ;;  %v1640_v44 = vpop.f32.mrb[41].mxu0 }
 0x17b   : > { %v1352_v45 = vpop.f32.mrb[42].mxu1  ;;  %v1641_v46 = vpop.f32.mrb[42].mxu0 }
 0x17c   : > { %v1354_v47 = vpop.f32.mrb[43].mxu1  ;;  %1836 = vst.msk [vmem:[%s4667_s29 + $0xa0] sm:$0xff] %vm1815_vm1, %v1639_v43  ;;  %v1920_v48 = vsel %vm1815_vm1, %v1639_v43, 0.0  ;;  %v2038_v49 = vmul.f32 %v1639_v43, %v1639_v43  ;;  %v1642_v50 = vadd.f32 %v1641_v46, %v1352_v45  ;;  %v1643_v51 = vpop.f32.mrb[43].mxu0 }
 0x17d   : > { %v1921_v52 = vadd.f32 %v1920_v48, %v1919_v37 }
 0x17e   : > { %v2121_v53 = vsel %vm1815_vm1, %v2038_v49, 0.0  ;;  %1837 = vst.msk [vmem:[%s4667_s29 + $0xa8] sm:$0xff] %vm1815_vm1, %v1642_v50  ;;  %v1922_v54 = vsel %vm1815_vm1, %v1642_v50, 0.0  ;;  %v2039_v55 = vmul.f32 %v1642_v50, %v1642_v50 }
 0x17f   : > { %v2122_v56 = vadd.f32 %v2121_v53, %v2120_v40  ;;  %v1923_v57 = vadd.f32 %v1922_v54, %v1921_v52 }
 0x180   : > { %v2123_v58 = vsel %vm1815_vm1, %v2039_v55, 0.0 }
 0x181   : > { %v1357_v59 = vpop.f32.mrb[44].mxu1  ;;  %v2124_v60 = vadd.f32 %v2123_v58, %v2122_v56  ;;  %v1646_v61 = vpop.f32.mrb[44].mxu0 }
 0x182   : > { %v1359_v62 = vpop.f32.mrb[45].mxu1  ;;  %v1647_v63 = vadd.f32 %v1646_v61, %v1357_v59  ;;  %v1648_v0 = vpop.f32.mrb[45].mxu0 }
 0x183   : > { %v1360_v1 = vpop.f32.mrb[46].mxu1  ;;  %v1649_v2 = vpop.f32.mrb[46].mxu0 }
 0x184   : > { %v1362_v3 = vpop.f32.mrb[47].mxu1  ;;  %1838 = vst.msk [vmem:[%s4667_s29 + $0xb0] sm:$0xff] %vm1815_vm1, %v1647_v63  ;;  %v1924_v4 = vsel %vm1815_vm1, %v1647_v63, 0.0  ;;  %v2040_v5 = vmul.f32 %v1647_v63, %v1647_v63  ;;  %v1650_v6 = vadd.f32 %v1649_v2, %v1360_v1  ;;  %v1651_v7 = vpop.f32.mrb[47].mxu0 }
 0x185   : > { %v1925_v8 = vadd.f32 %v1924_v4, %v1923_v57 }
 0x186   : > { %v2125_v9 = vsel %vm1815_vm1, %v2040_v5, 0.0  ;;  %1839 = vst.msk [vmem:[%s4667_s29 + $0xb8] sm:$0xff] %vm1815_vm1, %v1650_v6  ;;  %v1926_v10 = vsel %vm1815_vm1, %v1650_v6, 0.0  ;;  %v2041_v11 = vmul.f32 %v1650_v6, %v1650_v6 }
 0x187   : > { %v2126_v12 = vadd.f32 %v2125_v9, %v2124_v60  ;;  %v1927_v13 = vadd.f32 %v1926_v10, %v1925_v8 }
 0x188   : > { %v2127_v14 = vsel %vm1815_vm1, %v2041_v11, 0.0 }
 0x189   : > { %v1365_v15 = vpop.f32.mrb[48].mxu1  ;;  %v2128_v16 = vadd.f32 %v2127_v14, %v2126_v12  ;;  %v1654_v17 = vpop.f32.mrb[48].mxu0 }
 0x18a   : > { %v1367_v18 = vpop.f32.mrb[49].mxu1  ;;  %v1655_v19 = vadd.f32 %v1654_v17, %v1365_v15  ;;  %v1656_v20 = vpop.f32.mrb[49].mxu0 }
 0x18b   : > { %v1368_v21 = vpop.f32.mrb[50].mxu1  ;;  %v1657_v22 = vpop.f32.mrb[50].mxu0 }
 0x18c   : > { %v1370_v23 = vpop.f32.mrb[51].mxu1  ;;  %1840 = vst.msk [vmem:[%s4667_s29 + $0xc0] sm:$0xff] %vm1815_vm1, %v1655_v19  ;;  %v1928_v24 = vsel %vm1815_vm1, %v1655_v19, 0.0  ;;  %v2042_v25 = vmul.f32 %v1655_v19, %v1655_v19  ;;  %v1658_v26 = vadd.f32 %v1657_v22, %v1368_v21  ;;  %v1659_v27 = vpop.f32.mrb[51].mxu0 }
 0x18d   : > { %v1929_v28 = vadd.f32 %v1928_v24, %v1927_v13 }
 0x18e   : > { %v2129_v29 = vsel %vm1815_vm1, %v2042_v25, 0.0  ;;  %1841 = vst.msk [vmem:[%s4667_s29 + $0xc8] sm:$0xff] %vm1815_vm1, %v1658_v26  ;;  %v1930_v30 = vsel %vm1815_vm1, %v1658_v26, 0.0  ;;  %v2043_v31 = vmul.f32 %v1658_v26, %v1658_v26 }
 0x18f   : > { %v2130_v32 = vadd.f32 %v2129_v29, %v2128_v16  ;;  %v1931_v33 = vadd.f32 %v1930_v30, %v1929_v28 }
 0x190   : > { %v2131_v34 = vsel %vm1815_vm1, %v2043_v31, 0.0 }
 0x191   : > { %v1373_v35 = vpop.f32.mrb[52].mxu1  ;;  %v2132_v36 = vadd.f32 %v2131_v34, %v2130_v32  ;;  %v1662_v37 = vpop.f32.mrb[52].mxu0 }
 0x192   : > { %v1375_v38 = vpop.f32.mrb[53].mxu1  ;;  %v1663_v39 = vadd.f32 %v1662_v37, %v1373_v35  ;;  %v1664_v40 = vpop.f32.mrb[53].mxu0 }
 0x193   : > { %v1376_v41 = vpop.f32.mrb[54].mxu1  ;;  %v1665_v42 = vpop.f32.mrb[54].mxu0 }
 0x194   : > { %v1378_v43 = vpop.f32.mrb[55].mxu1  ;;  %1842 = vst.msk [vmem:[%s4667_s29 + $0xd0] sm:$0xff] %vm1815_vm1, %v1663_v39  ;;  %v1932_v44 = vsel %vm1815_vm1, %v1663_v39, 0.0  ;;  %v2044_v45 = vmul.f32 %v1663_v39, %v1663_v39  ;;  %v1666_v46 = vadd.f32 %v1665_v42, %v1376_v41  ;;  %v1667_v47 = vpop.f32.mrb[55].mxu0 }
 0x195   : > { %v1933_v48 = vadd.f32 %v1932_v44, %v1931_v33 }
 0x196   : > { %v2133_v49 = vsel %vm1815_vm1, %v2044_v45, 0.0  ;;  %1843 = vst.msk [vmem:[%s4667_s29 + $0xd8] sm:$0xff] %vm1815_vm1, %v1666_v46  ;;  %v1934_v50 = vsel %vm1815_vm1, %v1666_v46, 0.0  ;;  %v2045_v51 = vmul.f32 %v1666_v46, %v1666_v46 }
 0x197   : > { %v2134_v52 = vadd.f32 %v2133_v49, %v2132_v36  ;;  %v1935_v53 = vadd.f32 %v1934_v50, %v1933_v48 }
 0x198   : > { %v2135_v54 = vsel %vm1815_vm1, %v2045_v51, 0.0 }
 0x199   : > { %v1381_v55 = vpop.f32.mrb[56].mxu1  ;;  %v2136_v56 = vadd.f32 %v2135_v54, %v2134_v52  ;;  %v1670_v57 = vpop.f32.mrb[56].mxu0 }
 0x19a   : > { %v1383_v58 = vpop.f32.mrb[57].mxu1  ;;  %v1671_v59 = vadd.f32 %v1670_v57, %v1381_v55  ;;  %v1672_v60 = vpop.f32.mrb[57].mxu0 }
 0x19b   : > { %v1384_v61 = vpop.f32.mrb[58].mxu1  ;;  %v1673_v62 = vpop.f32.mrb[58].mxu0 }
 0x19c   : > { %v1386_v63 = vpop.f32.mrb[59].mxu1  ;;  %1844 = vst.msk [vmem:[%s4667_s29 + $0xe0] sm:$0xff] %vm1815_vm1, %v1671_v59  ;;  %v1936_v0 = vsel %vm1815_vm1, %v1671_v59, 0.0  ;;  %v2046_v1 = vmul.f32 %v1671_v59, %v1671_v59  ;;  %v1674_v2 = vadd.f32 %v1673_v62, %v1384_v61  ;;  %v1675_v3 = vpop.f32.mrb[59].mxu0 }
 0x19d   : > { %v1937_v4 = vadd.f32 %v1936_v0, %v1935_v53 }
 0x19e   : > { %v2137_v5 = vsel %vm1815_vm1, %v2046_v1, 0.0  ;;  %1845 = vst.msk [vmem:[%s4667_s29 + $0xe8] sm:$0xff] %vm1815_vm1, %v1674_v2  ;;  %v1938_v6 = vsel %vm1815_vm1, %v1674_v2, 0.0  ;;  %v2047_v7 = vmul.f32 %v1674_v2, %v1674_v2 }
 0x19f   : > { %v2138_v8 = vadd.f32 %v2137_v5, %v2136_v56  ;;  %v1939_v9 = vadd.f32 %v1938_v6, %v1937_v4 }
 0x1a0   : > { %v2139_v10 = vsel %vm1815_vm1, %v2047_v7, 0.0 }
 0x1a1   : > { %v1389_v11 = vpop.f32.mrb[60].mxu1  ;;  %v2140_v12 = vadd.f32 %v2139_v10, %v2138_v8  ;;  %v1678_v13 = vpop.f32.mrb[60].mxu0 }
 0x1a2   : > { %v1391_v14 = vpop.f32.mrb[61].mxu1  ;;  %v1679_v15 = vadd.f32 %v1678_v13, %v1389_v11  ;;  %v1680_v16 = vpop.f32.mrb[61].mxu0 }
 0x1a3   : > { %v1392_v17 = vpop.f32.mrb[62].mxu1  ;;  %v1681_v18 = vpop.f32.mrb[62].mxu0 }
 0x1a4   : > { %v1394_v19 = vpop.f32.mrb[63].mxu1  ;;  %1846 = vst.msk [vmem:[%s4667_s29 + $0xf0] sm:$0xff] %vm1815_vm1, %v1679_v15  ;;  %v1940_v20 = vsel %vm1815_vm1, %v1679_v15, 0.0  ;;  %v2048_v21 = vmul.f32 %v1679_v15, %v1679_v15  ;;  %v1682_v22 = vadd.f32 %v1681_v18, %v1392_v17  ;;  %v1683_v23 = vpop.f32.mrb[63].mxu0 }
 0x1a5   : > { %v1941_v24 = vadd.f32 %v1940_v20, %v1939_v9 }
 0x1a6   : > { %v2141_v25 = vsel %vm1815_vm1, %v2048_v21, 0.0  ;;  %1847 = vst.msk [vmem:[%s4667_s29 + $0xf8] sm:$0xff] %vm1815_vm1, %v1682_v22  ;;  %v1942_v26 = vsel %vm1815_vm1, %v1682_v22, 0.0  ;;  %v2049_v27 = vmul.f32 %v1682_v22, %v1682_v22 }
 0x1a7   : > { %v2142_v28 = vadd.f32 %v2141_v25, %v2140_v12  ;;  %v1943_v29 = vadd.f32 %v1942_v26, %v1941_v24 }
 0x1a8   : > { %v2143_v30 = vsel %vm1815_vm1, %v2049_v27, 0.0 }
 0x1a9   : > { %v1397_v31 = vpop.f32.mrb[64].mxu1  ;;  %v2144_v32 = vadd.f32 %v2143_v30, %v2142_v28  ;;  %v1686_v33 = vpop.f32.mrb[64].mxu0 }
 0x1aa   : > { %v1399_v34 = vpop.f32.mrb[65].mxu1  ;;  %v1687_v35 = vadd.f32 %v1686_v33, %v1397_v31  ;;  %v1688_v36 = vpop.f32.mrb[65].mxu0 }
 0x1ab   : > { %v1400_v37 = vpop.f32.mrb[66].mxu1  ;;  %v1689_v38 = vpop.f32.mrb[66].mxu0 }
 0x1ac   : > { %v1402_v39 = vpop.f32.mrb[67].mxu1  ;;  %1848 = vst.msk [vmem:[%s4667_s29 + $0x100] sm:$0xff] %vm1815_vm1, %v1687_v35  ;;  %v1944_v40 = vsel %vm1815_vm1, %v1687_v35, 0.0  ;;  %v2050_v41 = vmul.f32 %v1687_v35, %v1687_v35  ;;  %v1690_v42 = vadd.f32 %v1689_v38, %v1400_v37  ;;  %v1691_v43 = vpop.f32.mrb[67].mxu0 }
 0x1ad   : > { %v1945_v44 = vadd.f32 %v1944_v40, %v1943_v29 }
 0x1ae   : > { %v2145_v45 = vsel %vm1815_vm1, %v2050_v41, 0.0  ;;  %1849 = vst.msk [vmem:[%s4667_s29 + $0x108] sm:$0xff] %vm1815_vm1, %v1690_v42  ;;  %v1946_v46 = vsel %vm1815_vm1, %v1690_v42, 0.0  ;;  %v2051_v47 = vmul.f32 %v1690_v42, %v1690_v42 }
 0x1af   : > { %v2146_v48 = vadd.f32 %v2145_v45, %v2144_v32  ;;  %v1947_v49 = vadd.f32 %v1946_v46, %v1945_v44 }
 0x1b0   : > { %v2147_v50 = vsel %vm1815_vm1, %v2051_v47, 0.0 }
 0x1b1   : > { %v1405_v51 = vpop.f32.mrb[68].mxu1  ;;  %v2148_v52 = vadd.f32 %v2147_v50, %v2146_v48  ;;  %v1694_v53 = vpop.f32.mrb[68].mxu0 }
 0x1b2   : > { %v1407_v54 = vpop.f32.mrb[69].mxu1  ;;  %v1695_v55 = vadd.f32 %v1694_v53, %v1405_v51  ;;  %v1696_v56 = vpop.f32.mrb[69].mxu0 }
 0x1b3   : > { %v1408_v57 = vpop.f32.mrb[70].mxu1  ;;  %v1697_v58 = vpop.f32.mrb[70].mxu0 }
 0x1b4   : > { %v1410_v59 = vpop.f32.mrb[71].mxu1  ;;  %1850 = vst.msk [vmem:[%s4667_s29 + $0x110] sm:$0xff] %vm1815_vm1, %v1695_v55  ;;  %v1948_v60 = vsel %vm1815_vm1, %v1695_v55, 0.0  ;;  %v2052_v61 = vmul.f32 %v1695_v55, %v1695_v55  ;;  %v1698_v62 = vadd.f32 %v1697_v58, %v1408_v57  ;;  %v1699_v63 = vpop.f32.mrb[71].mxu0 }
 0x1b5   : > { %v1949_v0 = vadd.f32 %v1948_v60, %v1947_v49 }
 0x1b6   : > { %v2149_v1 = vsel %vm1815_vm1, %v2052_v61, 0.0  ;;  %1851 = vst.msk [vmem:[%s4667_s29 + $0x118] sm:$0xff] %vm1815_vm1, %v1698_v62  ;;  %v1950_v2 = vsel %vm1815_vm1, %v1698_v62, 0.0  ;;  %v2053_v3 = vmul.f32 %v1698_v62, %v1698_v62 }
 0x1b7   : > { %v2150_v4 = vadd.f32 %v2149_v1, %v2148_v52  ;;  %v1951_v5 = vadd.f32 %v1950_v2, %v1949_v0 }
 0x1b8   : > { %v2151_v6 = vsel %vm1815_vm1, %v2053_v3, 0.0 }
 0x1b9   : > { %v1413_v7 = vpop.f32.mrb[72].mxu1  ;;  %v2152_v8 = vadd.f32 %v2151_v6, %v2150_v4  ;;  %v1702_v9 = vpop.f32.mrb[72].mxu0 }
 0x1ba   : > { %v1415_v10 = vpop.f32.mrb[73].mxu1  ;;  %v1703_v11 = vadd.f32 %v1702_v9, %v1413_v7  ;;  %v1704_v12 = vpop.f32.mrb[73].mxu0 }
 0x1bb   : > { %v1416_v13 = vpop.f32.mrb[74].mxu1  ;;  %v1705_v14 = vpop.f32.mrb[74].mxu0 }
 0x1bc   : > { %v1418_v15 = vpop.f32.mrb[75].mxu1  ;;  %1852 = vst.msk [vmem:[%s4667_s29 + $0x120] sm:$0xff] %vm1815_vm1, %v1703_v11  ;;  %v1952_v16 = vsel %vm1815_vm1, %v1703_v11, 0.0  ;;  %v2054_v17 = vmul.f32 %v1703_v11, %v1703_v11  ;;  %v1706_v18 = vadd.f32 %v1705_v14, %v1416_v13  ;;  %v1707_v19 = vpop.f32.mrb[75].mxu0 }
 0x1bd   : > { %v1953_v20 = vadd.f32 %v1952_v16, %v1951_v5 }
 0x1be   : > { %v2153_v21 = vsel %vm1815_vm1, %v2054_v17, 0.0  ;;  %1853 = vst.msk [vmem:[%s4667_s29 + $0x128] sm:$0xff] %vm1815_vm1, %v1706_v18  ;;  %v1954_v22 = vsel %vm1815_vm1, %v1706_v18, 0.0  ;;  %v2055_v23 = vmul.f32 %v1706_v18, %v1706_v18 }
 0x1bf   : > { %v2154_v24 = vadd.f32 %v2153_v21, %v2152_v8  ;;  %v1955_v25 = vadd.f32 %v1954_v22, %v1953_v20 }
 0x1c0   : > { %v2155_v26 = vsel %vm1815_vm1, %v2055_v23, 0.0 }
 0x1c1   : > { %v1421_v27 = vpop.f32.mrb[76].mxu1  ;;  %v2156_v28 = vadd.f32 %v2155_v26, %v2154_v24  ;;  %v1710_v29 = vpop.f32.mrb[76].mxu0 }
 0x1c2   : > { %v1423_v30 = vpop.f32.mrb[77].mxu1  ;;  %v1711_v31 = vadd.f32 %v1710_v29, %v1421_v27  ;;  %v1712_v32 = vpop.f32.mrb[77].mxu0 }
 0x1c3   : > { %v1424_v33 = vpop.f32.mrb[78].mxu1  ;;  %v1713_v34 = vpop.f32.mrb[78].mxu0 }
 0x1c4   : > { %v1426_v35 = vpop.f32.mrb[79].mxu1  ;;  %1854 = vst.msk [vmem:[%s4667_s29 + $0x130] sm:$0xff] %vm1815_vm1, %v1711_v31  ;;  %v1956_v36 = vsel %vm1815_vm1, %v1711_v31, 0.0  ;;  %v2056_v37 = vmul.f32 %v1711_v31, %v1711_v31  ;;  %v1714_v38 = vadd.f32 %v1713_v34, %v1424_v33  ;;  %v1715_v39 = vpop.f32.mrb[79].mxu0 }
 0x1c5   : > { %v1957_v40 = vadd.f32 %v1956_v36, %v1955_v25 }
 0x1c6   : > { %v2157_v41 = vsel %vm1815_vm1, %v2056_v37, 0.0  ;;  %1855 = vst.msk [vmem:[%s4667_s29 + $0x138] sm:$0xff] %vm1815_vm1, %v1714_v38  ;;  %v1958_v42 = vsel %vm1815_vm1, %v1714_v38, 0.0  ;;  %v2057_v43 = vmul.f32 %v1714_v38, %v1714_v38 }
 0x1c7   : > { %v2158_v44 = vadd.f32 %v2157_v41, %v2156_v28  ;;  %v1959_v45 = vadd.f32 %v1958_v42, %v1957_v40 }
 0x1c8   : > { %v2159_v46 = vsel %vm1815_vm1, %v2057_v43, 0.0 }
 0x1c9   : > { %v1429_v47 = vpop.f32.mrb[80].mxu1  ;;  %v2160_v48 = vadd.f32 %v2159_v46, %v2158_v44  ;;  %v1718_v49 = vpop.f32.mrb[80].mxu0 }
 0x1ca   : > { %v1431_v50 = vpop.f32.mrb[81].mxu1  ;;  %v1719_v51 = vadd.f32 %v1718_v49, %v1429_v47  ;;  %v1720_v52 = vpop.f32.mrb[81].mxu0 }
 0x1cb   : > { %v1432_v53 = vpop.f32.mrb[82].mxu1  ;;  %v1721_v54 = vpop.f32.mrb[82].mxu0 }
 0x1cc   : > { %v1434_v55 = vpop.f32.mrb[83].mxu1  ;;  %1856 = vst.msk [vmem:[%s4667_s29 + $0x140] sm:$0xff] %vm1815_vm1, %v1719_v51  ;;  %v1960_v56 = vsel %vm1815_vm1, %v1719_v51, 0.0  ;;  %v2058_v57 = vmul.f32 %v1719_v51, %v1719_v51  ;;  %v1722_v58 = vadd.f32 %v1721_v54, %v1432_v53  ;;  %v1723_v59 = vpop.f32.mrb[83].mxu0 }
 0x1cd   : > { %v1961_v60 = vadd.f32 %v1960_v56, %v1959_v45 }
 0x1ce   : > { %v2161_v61 = vsel %vm1815_vm1, %v2058_v57, 0.0  ;;  %1857 = vst.msk [vmem:[%s4667_s29 + $0x148] sm:$0xff] %vm1815_vm1, %v1722_v58  ;;  %v1962_v62 = vsel %vm1815_vm1, %v1722_v58, 0.0  ;;  %v2059_v63 = vmul.f32 %v1722_v58, %v1722_v58 }
 0x1cf   : > { %v2162_v0 = vadd.f32 %v2161_v61, %v2160_v48  ;;  %v1963_v1 = vadd.f32 %v1962_v62, %v1961_v60 }
 0x1d0   : > { %v2163_v2 = vsel %vm1815_vm1, %v2059_v63, 0.0 }
 0x1d1   : > { %v1437_v3 = vpop.f32.mrb[84].mxu1  ;;  %v2164_v4 = vadd.f32 %v2163_v2, %v2162_v0  ;;  %v1726_v5 = vpop.f32.mrb[84].mxu0 }
 0x1d2   : > { %v1439_v6 = vpop.f32.mrb[85].mxu1  ;;  %v1727_v7 = vadd.f32 %v1726_v5, %v1437_v3  ;;  %v1728_v8 = vpop.f32.mrb[85].mxu0 }
 0x1d3   : > { %v1440_v9 = vpop.f32.mrb[86].mxu1  ;;  %v1729_v10 = vpop.f32.mrb[86].mxu0 }
 0x1d4   : > { %v1442_v11 = vpop.f32.mrb[87].mxu1  ;;  %1858 = vst.msk [vmem:[%s4667_s29 + $0x150] sm:$0xff] %vm1815_vm1, %v1727_v7  ;;  %v1964_v12 = vsel %vm1815_vm1, %v1727_v7, 0.0  ;;  %v2060_v13 = vmul.f32 %v1727_v7, %v1727_v7  ;;  %v1730_v14 = vadd.f32 %v1729_v10, %v1440_v9  ;;  %v1731_v15 = vpop.f32.mrb[87].mxu0 }
 0x1d5   : > { %v1965_v16 = vadd.f32 %v1964_v12, %v1963_v1 }
 0x1d6   : > { %v2165_v17 = vsel %vm1815_vm1, %v2060_v13, 0.0  ;;  %1859 = vst.msk [vmem:[%s4667_s29 + $0x158] sm:$0xff] %vm1815_vm1, %v1730_v14  ;;  %v1966_v18 = vsel %vm1815_vm1, %v1730_v14, 0.0  ;;  %v2061_v19 = vmul.f32 %v1730_v14, %v1730_v14 }
 0x1d7   : > { %v2166_v20 = vadd.f32 %v2165_v17, %v2164_v4  ;;  %v1967_v21 = vadd.f32 %v1966_v18, %v1965_v16 }
 0x1d8   : > { %v2167_v22 = vsel %vm1815_vm1, %v2061_v19, 0.0 }
 0x1d9   : > { %v1445_v23 = vpop.f32.mrb[88].mxu1  ;;  %v2168_v24 = vadd.f32 %v2167_v22, %v2166_v20  ;;  %v1734_v25 = vpop.f32.mrb[88].mxu0 }
 0x1da   : > { %v1447_v26 = vpop.f32.mrb[89].mxu1  ;;  %v1735_v27 = vadd.f32 %v1734_v25, %v1445_v23  ;;  %v1736_v28 = vpop.f32.mrb[89].mxu0 }
 0x1db   : > { %v1448_v29 = vpop.f32.mrb[90].mxu1  ;;  %v1737_v30 = vpop.f32.mrb[90].mxu0 }
 0x1dc   : > { %v1450_v31 = vpop.f32.mrb[91].mxu1  ;;  %1860 = vst.msk [vmem:[%s4667_s29 + $0x160] sm:$0xff] %vm1815_vm1, %v1735_v27  ;;  %v1968_v32 = vsel %vm1815_vm1, %v1735_v27, 0.0  ;;  %v2062_v33 = vmul.f32 %v1735_v27, %v1735_v27  ;;  %v1738_v34 = vadd.f32 %v1737_v30, %v1448_v29  ;;  %v1739_v35 = vpop.f32.mrb[91].mxu0 }
 0x1dd   : > { %v1969_v36 = vadd.f32 %v1968_v32, %v1967_v21 }
 0x1de   : > { %v2169_v37 = vsel %vm1815_vm1, %v2062_v33, 0.0  ;;  %1861 = vst.msk [vmem:[%s4667_s29 + $0x168] sm:$0xff] %vm1815_vm1, %v1738_v34  ;;  %v1970_v38 = vsel %vm1815_vm1, %v1738_v34, 0.0  ;;  %v2063_v39 = vmul.f32 %v1738_v34, %v1738_v34 }
 0x1df   : > { %v2170_v40 = vadd.f32 %v2169_v37, %v2168_v24  ;;  %v1971_v41 = vadd.f32 %v1970_v38, %v1969_v36 }
 0x1e0   : > { %v2171_v42 = vsel %vm1815_vm1, %v2063_v39, 0.0 }
 0x1e1   : > { %v1453_v43 = vpop.f32.mrb[92].mxu1  ;;  %v2172_v44 = vadd.f32 %v2171_v42, %v2170_v40  ;;  %v1742_v45 = vpop.f32.mrb[92].mxu0 }
 0x1e2   : > { %v1455_v46 = vpop.f32.mrb[93].mxu1  ;;  %v1743_v47 = vadd.f32 %v1742_v45, %v1453_v43  ;;  %v1744_v48 = vpop.f32.mrb[93].mxu0 }
 0x1e3   : > { %v1456_v49 = vpop.f32.mrb[94].mxu1  ;;  %v1745_v50 = vpop.f32.mrb[94].mxu0 }
 0x1e4   : > { %v1458_v51 = vpop.f32.mrb[95].mxu1  ;;  %1862 = vst.msk [vmem:[%s4667_s29 + $0x170] sm:$0xff] %vm1815_vm1, %v1743_v47  ;;  %v1972_v52 = vsel %vm1815_vm1, %v1743_v47, 0.0  ;;  %v2064_v53 = vmul.f32 %v1743_v47, %v1743_v47  ;;  %v1746_v54 = vadd.f32 %v1745_v50, %v1456_v49  ;;  %v1747_v55 = vpop.f32.mrb[95].mxu0 }
 0x1e5   : > { %v1973_v56 = vadd.f32 %v1972_v52, %v1971_v41 }
 0x1e6   : > { %v2173_v57 = vsel %vm1815_vm1, %v2064_v53, 0.0  ;;  %1863 = vst.msk [vmem:[%s4667_s29 + $0x178] sm:$0xff] %vm1815_vm1, %v1746_v54  ;;  %v1974_v58 = vsel %vm1815_vm1, %v1746_v54, 0.0  ;;  %v2065_v59 = vmul.f32 %v1746_v54, %v1746_v54 }
 0x1e7   : > { %v2174_v60 = vadd.f32 %v2173_v57, %v2172_v44  ;;  %v1975_v61 = vadd.f32 %v1974_v58, %v1973_v56 }
 0x1e8   : > { %v2175_v62 = vsel %vm1815_vm1, %v2065_v59, 0.0 }
 0x1e9   : > { %v1461_v63 = vpop.f32.mrb[96].mxu1  ;;  %v2176_v0 = vadd.f32 %v2175_v62, %v2174_v60  ;;  %v1750_v1 = vpop.f32.mrb[96].mxu0 }
 0x1ea   : > { %v1463_v2 = vpop.f32.mrb[97].mxu1  ;;  %v1751_v3 = vadd.f32 %v1750_v1, %v1461_v63  ;;  %v1752_v4 = vpop.f32.mrb[97].mxu0 }
 0x1eb   : > { %v1464_v5 = vpop.f32.mrb[98].mxu1  ;;  %v1753_v6 = vpop.f32.mrb[98].mxu0 }
 0x1ec   : > { %v1466_v7 = vpop.f32.mrb[99].mxu1  ;;  %1864 = vst.msk [vmem:[%s4667_s29 + $0x180] sm:$0xff] %vm1815_vm1, %v1751_v3  ;;  %v1976_v8 = vsel %vm1815_vm1, %v1751_v3, 0.0  ;;  %v2066_v9 = vmul.f32 %v1751_v3, %v1751_v3  ;;  %v1754_v10 = vadd.f32 %v1753_v6, %v1464_v5  ;;  %v1755_v11 = vpop.f32.mrb[99].mxu0 }
 0x1ed   : > { %v1977_v12 = vadd.f32 %v1976_v8, %v1975_v61 }
 0x1ee   : > { %v2177_v13 = vsel %vm1815_vm1, %v2066_v9, 0.0  ;;  %1865 = vst.msk [vmem:[%s4667_s29 + $0x188] sm:$0xff] %vm1815_vm1, %v1754_v10  ;;  %v1978_v14 = vsel %vm1815_vm1, %v1754_v10, 0.0  ;;  %v2067_v15 = vmul.f32 %v1754_v10, %v1754_v10 }
 0x1ef   : > { %v2178_v16 = vadd.f32 %v2177_v13, %v2176_v0  ;;  %v1979_v17 = vadd.f32 %v1978_v14, %v1977_v12 }
 0x1f0   : > { %v2179_v18 = vsel %vm1815_vm1, %v2067_v15, 0.0 }
 0x1f1   : > { %v1469_v19 = vpop.f32.mrb[100].mxu1  ;;  %v2180_v20 = vadd.f32 %v2179_v18, %v2178_v16  ;;  %v1758_v21 = vpop.f32.mrb[100].mxu0 }
 0x1f2   : > { %v1471_v22 = vpop.f32.mrb[101].mxu1  ;;  %v1759_v23 = vadd.f32 %v1758_v21, %v1469_v19  ;;  %v1760_v24 = vpop.f32.mrb[101].mxu0 }
 0x1f3   : > { %v1472_v25 = vpop.f32.mrb[102].mxu1  ;;  %v1761_v26 = vpop.f32.mrb[102].mxu0 }
 0x1f4   : > { %v1474_v27 = vpop.f32.mrb[103].mxu1  ;;  %1866 = vst.msk [vmem:[%s4667_s29 + $0x190] sm:$0xff] %vm1815_vm1, %v1759_v23  ;;  %v1980_v28 = vsel %vm1815_vm1, %v1759_v23, 0.0  ;;  %v2068_v29 = vmul.f32 %v1759_v23, %v1759_v23  ;;  %v1762_v30 = vadd.f32 %v1761_v26, %v1472_v25  ;;  %v1763_v31 = vpop.f32.mrb[103].mxu0 }
 0x1f5   : > { %v1981_v32 = vadd.f32 %v1980_v28, %v1979_v17 }
 0x1f6   : > { %v2181_v33 = vsel %vm1815_vm1, %v2068_v29, 0.0  ;;  %1867 = vst.msk [vmem:[%s4667_s29 + $0x198] sm:$0xff] %vm1815_vm1, %v1762_v30  ;;  %v1982_v34 = vsel %vm1815_vm1, %v1762_v30, 0.0  ;;  %v2069_v35 = vmul.f32 %v1762_v30, %v1762_v30 }
 0x1f7   : > { %v2182_v36 = vadd.f32 %v2181_v33, %v2180_v20  ;;  %v1983_v37 = vadd.f32 %v1982_v34, %v1981_v32 }
 0x1f8   : > { %v2183_v38 = vsel %vm1815_vm1, %v2069_v35, 0.0 }
 0x1f9   : > { %v1477_v39 = vpop.f32.mrb[104].mxu1  ;;  %v2184_v40 = vadd.f32 %v2183_v38, %v2182_v36  ;;  %v1766_v41 = vpop.f32.mrb[104].mxu0 }
 0x1fa   : > { %v1479_v42 = vpop.f32.mrb[105].mxu1  ;;  %v1767_v43 = vadd.f32 %v1766_v41, %v1477_v39  ;;  %v1768_v44 = vpop.f32.mrb[105].mxu0 }
 0x1fb   : > { %v1480_v45 = vpop.f32.mrb[106].mxu1  ;;  %v1769_v46 = vpop.f32.mrb[106].mxu0 }
 0x1fc   : > { %v1482_v47 = vpop.f32.mrb[107].mxu1  ;;  %1868 = vst.msk [vmem:[%s4667_s29 + $0x1a0] sm:$0xff] %vm1815_vm1, %v1767_v43  ;;  %v1984_v48 = vsel %vm1815_vm1, %v1767_v43, 0.0  ;;  %v2070_v49 = vmul.f32 %v1767_v43, %v1767_v43  ;;  %v1770_v50 = vadd.f32 %v1769_v46, %v1480_v45  ;;  %v1771_v51 = vpop.f32.mrb[107].mxu0 }
 0x1fd   : > { %v1985_v52 = vadd.f32 %v1984_v48, %v1983_v37 }
 0x1fe   : > { %v2185_v53 = vsel %vm1815_vm1, %v2070_v49, 0.0  ;;  %1869 = vst.msk [vmem:[%s4667_s29 + $0x1a8] sm:$0xff] %vm1815_vm1, %v1770_v50  ;;  %v1986_v54 = vsel %vm1815_vm1, %v1770_v50, 0.0  ;;  %v2071_v55 = vmul.f32 %v1770_v50, %v1770_v50 }
 0x1ff   : > { %v2186_v56 = vadd.f32 %v2185_v53, %v2184_v40  ;;  %v1987_v57 = vadd.f32 %v1986_v54, %v1985_v52 }
 0x200   : > { %v2187_v58 = vsel %vm1815_vm1, %v2071_v55, 0.0 }
 0x201   : > { %v1485_v59 = vpop.f32.mrb[108].mxu1  ;;  %v2188_v60 = vadd.f32 %v2187_v58, %v2186_v56  ;;  %v1774_v61 = vpop.f32.mrb[108].mxu0 }
 0x202   : > { %v1487_v62 = vpop.f32.mrb[109].mxu1  ;;  %v1775_v63 = vadd.f32 %v1774_v61, %v1485_v59  ;;  %v1776_v0 = vpop.f32.mrb[109].mxu0 }
 0x203   : > { %v1488_v1 = vpop.f32.mrb[110].mxu1  ;;  %v1777_v2 = vpop.f32.mrb[110].mxu0 }
 0x204   : > { %v1490_v3 = vpop.f32.mrb[111].mxu1  ;;  %1870 = vst.msk [vmem:[%s4667_s29 + $0x1b0] sm:$0xff] %vm1815_vm1, %v1775_v63  ;;  %v1988_v4 = vsel %vm1815_vm1, %v1775_v63, 0.0  ;;  %v2072_v5 = vmul.f32 %v1775_v63, %v1775_v63  ;;  %v1778_v6 = vadd.f32 %v1777_v2, %v1488_v1  ;;  %v1779_v7 = vpop.f32.mrb[111].mxu0 }
 0x205   : > { %v1989_v8 = vadd.f32 %v1988_v4, %v1987_v57 }
 0x206   : > { %v2189_v9 = vsel %vm1815_vm1, %v2072_v5, 0.0  ;;  %1871 = vst.msk [vmem:[%s4667_s29 + $0x1b8] sm:$0xff] %vm1815_vm1, %v1778_v6  ;;  %v1990_v10 = vsel %vm1815_vm1, %v1778_v6, 0.0  ;;  %v2073_v11 = vmul.f32 %v1778_v6, %v1778_v6 }
 0x207   : > { %v2190_v12 = vadd.f32 %v2189_v9, %v2188_v60  ;;  %v1991_v13 = vadd.f32 %v1990_v10, %v1989_v8 }
 0x208   : > { %v2191_v14 = vsel %vm1815_vm1, %v2073_v11, 0.0 }
 0x209   : > { %v1493_v15 = vpop.f32.mrb[112].mxu1  ;;  %v2192_v16 = vadd.f32 %v2191_v14, %v2190_v12  ;;  %v1782_v17 = vpop.f32.mrb[112].mxu0 }
 0x20a   : > { %v1495_v18 = vpop.f32.mrb[113].mxu1  ;;  %v1783_v19 = vadd.f32 %v1782_v17, %v1493_v15  ;;  %v1784_v20 = vpop.f32.mrb[113].mxu0 }
 0x20b   : > { %v1496_v21 = vpop.f32.mrb[114].mxu1  ;;  %v1785_v22 = vpop.f32.mrb[114].mxu0 }
 0x20c   : > { %v1498_v23 = vpop.f32.mrb[115].mxu1  ;;  %1872 = vst.msk [vmem:[%s4667_s29 + $0x1c0] sm:$0xff] %vm1815_vm1, %v1783_v19  ;;  %v1992_v24 = vsel %vm1815_vm1, %v1783_v19, 0.0  ;;  %v2074_v25 = vmul.f32 %v1783_v19, %v1783_v19  ;;  %v1786_v26 = vadd.f32 %v1785_v22, %v1496_v21  ;;  %v1787_v27 = vpop.f32.mrb[115].mxu0 }
 0x20d   : > { %v1993_v28 = vadd.f32 %v1992_v24, %v1991_v13 }
 0x20e   : > { %v2193_v29 = vsel %vm1815_vm1, %v2074_v25, 0.0  ;;  %1873 = vst.msk [vmem:[%s4667_s29 + $0x1c8] sm:$0xff] %vm1815_vm1, %v1786_v26  ;;  %v1994_v30 = vsel %vm1815_vm1, %v1786_v26, 0.0  ;;  %v2075_v31 = vmul.f32 %v1786_v26, %v1786_v26 }
 0x20f   : > { %v2194_v32 = vadd.f32 %v2193_v29, %v2192_v16  ;;  %v1995_v33 = vadd.f32 %v1994_v30, %v1993_v28 }
 0x210   : > { %v2195_v34 = vsel %vm1815_vm1, %v2075_v31, 0.0 }
 0x211   : > { %v1501_v35 = vpop.f32.mrb[116].mxu1  ;;  %v2196_v36 = vadd.f32 %v2195_v34, %v2194_v32  ;;  %v1790_v37 = vpop.f32.mrb[116].mxu0 }
 0x212   : > { %v1503_v38 = vpop.f32.mrb[117].mxu1  ;;  %v1791_v39 = vadd.f32 %v1790_v37, %v1501_v35  ;;  %v1792_v40 = vpop.f32.mrb[117].mxu0 }
 0x213   : > { %v1504_v41 = vpop.f32.mrb[118].mxu1  ;;  %v1793_v42 = vpop.f32.mrb[118].mxu0 }
 0x214   : > { %v1506_v43 = vpop.f32.mrb[119].mxu1  ;;  %1874 = vst.msk [vmem:[%s4667_s29 + $0x1d0] sm:$0xff] %vm1815_vm1, %v1791_v39  ;;  %v1996_v44 = vsel %vm1815_vm1, %v1791_v39, 0.0  ;;  %v2076_v45 = vmul.f32 %v1791_v39, %v1791_v39  ;;  %v1794_v46 = vadd.f32 %v1793_v42, %v1504_v41  ;;  %v1795_v47 = vpop.f32.mrb[119].mxu0  ;;  %v1880_v41 = vld [vmem:[#allocation2] sm:$0x1] }
 0x215   : > { %v1997_v48 = vadd.f32 %v1996_v44, %v1995_v33  ;;  %v2017_v44 = vld [vmem:[#allocation3] sm:$0x1] }
 0x216   : > { %v2197_v49 = vsel %vm1815_vm1, %v2076_v45, 0.0  ;;  %1875 = vst.msk [vmem:[%s4667_s29 + $0x1d8] sm:$0xff] %vm1815_vm1, %v1794_v46  ;;  %v1998_v50 = vsel %vm1815_vm1, %v1794_v46, 0.0  ;;  %v2077_v51 = vmul.f32 %v1794_v46, %v1794_v46 }
 0x217   : > { %v2198_v52 = vadd.f32 %v2197_v49, %v2196_v36  ;;  %v1999_v53 = vadd.f32 %v1998_v50, %v1997_v48 }
 0x218   : > { %v2199_v54 = vsel %vm1815_vm1, %v2077_v51, 0.0 }
 0x219   : > { %v1509_v55 = vpop.f32.mrb[120].mxu1  ;;  %v2200_v56 = vadd.f32 %v2199_v54, %v2198_v52  ;;  %v1798_v57 = vpop.f32.mrb[120].mxu0 }
 0x21a   : > { %v1511_v58 = vpop.f32.mrb[121].mxu1  ;;  %v1799_v59 = vadd.f32 %v1798_v57, %v1509_v55  ;;  %v1800_v60 = vpop.f32.mrb[121].mxu0 }
 0x21b   : > { %v1512_v61 = vpop.f32.mrb[122].mxu1  ;;  %v1801_v62 = vpop.f32.mrb[122].mxu0  ;;  %v2228_v58 = vld [vmem:[%s7263_s2] sm:$0x1] (!%p3742_p5) }
 0x21c   : > { %v1514_v63 = vpop.f32.mrb[123].mxu1  ;;  %1876 = vst.msk [vmem:[%s4667_s29 + $0x1e0] sm:$0xff] %vm1815_vm1, %v1799_v59  ;;  %v2000_v0 = vsel %vm1815_vm1, %v1799_v59, 0.0  ;;  %v2078_v1 = vmul.f32 %v1799_v59, %v1799_v59  ;;  %v1802_v2 = vadd.f32 %v1801_v62, %v1512_v61  ;;  %v1803_v3 = vpop.f32.mrb[123].mxu0  ;;  %v2232_v62 = vld [vmem:[%s7264_s3] sm:$0x1] (!%p3742_p5) }
 0x21d   : > { %v2001_v4 = vadd.f32 %v2000_v0, %v1999_v53 }
 0x21e   : > { %v2201_v5 = vsel %vm1815_vm1, %v2078_v1, 0.0  ;;  %1877 = vst.msk [vmem:[%s4667_s29 + $0x1e8] sm:$0xff] %vm1815_vm1, %v1802_v2  ;;  %v2002_v6 = vsel %vm1815_vm1, %v1802_v2, 0.0  ;;  %v2079_v7 = vmul.f32 %v1802_v2, %v1802_v2 }
 0x21f   : > { %v2202_v8 = vadd.f32 %v2201_v5, %v2200_v56  ;;  %v2003_v9 = vadd.f32 %v2002_v6, %v2001_v4  ;;  %v2300_v56 = vlaneseq (!%p3742_p5) }
 0x220   : > { %v2203_v10 = vsel %vm1815_vm1, %v2079_v7, 0.0 }
 0x221   : > { %v1517_v11 = vpop.f32.mrb[124].mxu1  ;;  %v2204_v12 = vadd.f32 %v2203_v10, %v2202_v8  ;;  %v1806_v13 = vpop.f32.mrb[124].mxu0  ;;  %v2301_v57 = vshrl.u32 (!%p3742_p5), %v2300_v56, 7 }
 0x222   : > { %v1519_v14 = vpop.f32.mrb[125].mxu1  ;;  %v1807_v15 = vadd.f32 %v1806_v13, %v1517_v11  ;;  %v1808_v16 = vpop.f32.mrb[125].mxu0 }
 0x223   : > { %v1520_v17 = vpop.f32.mrb[126].mxu1  ;;  %v1809_v18 = vpop.f32.mrb[126].mxu0  ;;  %v2302_v59 = vsub.s32 (!%p3742_p5), 0, %v2301_v57 }
 0x224   : > { %v1522_v19 = vpop.f32.mrb[127].mxu1  ;;  %1878 = vst.msk [vmem:[%s4667_s29 + $0x1f0] sm:$0xff] %vm1815_vm1, %v1807_v15  ;;  %v2004_v20 = vsel %vm1815_vm1, %v1807_v15, 0.0  ;;  %v2080_v21 = vmul.f32 %v1807_v15, %v1807_v15  ;;  %v1810_v22 = vadd.f32 %v1809_v18, %v1520_v17  ;;  %v1811_v23 = vpop.f32.mrb[127].mxu0 }
 0x225   : > { %v2005_v24 = vadd.f32 %v2004_v20, %v2003_v9 }
 0x226   : > { %v2205_v25 = vsel %vm1815_vm1, %v2080_v21, 0.0  ;;  %1879 = vst.msk [vmem:[%s4667_s29 + $0x1f8] sm:$0xff] %vm1815_vm1, %v1810_v22  ;;  %v2006_v26 = vsel %vm1815_vm1, %v1810_v22, 0.0  ;;  %v2081_v27 = vmul.f32 %v1810_v22, %v1810_v22 }
 0x227   : > { %v2206_v28 = vadd.f32 %v2205_v25, %v2204_v12  ;;  %v2007_v29 = vadd.f32 %v2006_v26, %v2005_v24 }
 0x228   : > { %v2207_v30 = vsel %vm1815_vm1, %v2081_v27, 0.0 }
 0x229   : > { %v2008_v31 = vrot.slane %v2007_v29, 4  ;;  %v2208_v32 = vadd.f32 %v2207_v30, %v2206_v28 }
 0x22b   : > { %v2009_v33 = vadd.f32 %v2008_v31, %v2007_v29  ;;  %v2209_v34 = vrot.slane %v2208_v32, 4 }
 0x22d   : > { %v2010_v35 = vrot.slane %v2009_v33, 2  ;;  %v2210_v36 = vadd.f32 %v2209_v34, %v2208_v32  ;;  %v2235_v63 = vld [vmem:[%s7265_s4] sm:$0xff] (!%p3742_p5)  ;;  %v2236_v0 = vld [vmem:[%s7265_s4 + $0x8] sm:$0xff] (!%p3742_p5)  ;;  %v2237_v1 = vld [vmem:[%s7265_s4 + $0x10] sm:$0xff] (!%p3742_p5) }
 0x22e   : > { %v2238_v2 = vld [vmem:[%s7265_s4 + $0x18] sm:$0xff] (!%p3742_p5)  ;;  %v2239_v3 = vld [vmem:[%s7265_s4 + $0x20] sm:$0xff] (!%p3742_p5)  ;;  %v2240_v6 = vld [vmem:[%s7265_s4 + $0x28] sm:$0xff] (!%p3742_p5) }
 0x22f   : > { %v2011_v37 = vadd.f32 %v2010_v35, %v2009_v33  ;;  %v2211_v38 = vrot.slane %v2210_v36, 2  ;;  %v2241_v7 = vld [vmem:[%s7265_s4 + $0x30] sm:$0xff] (!%p3742_p5)  ;;  %v2242_v8 = vld [vmem:[%s7265_s4 + $0x38] sm:$0xff] (!%p3742_p5)  ;;  %v2243_v9 = vld [vmem:[%s7265_s4 + $0x40] sm:$0xff] (!%p3742_p5) }
 0x230   : > { %v2244_v10 = vld [vmem:[%s7265_s4 + $0x48] sm:$0xff] (!%p3742_p5)  ;;  %v2245_v11 = vld [vmem:[%s7265_s4 + $0x50] sm:$0xff] (!%p3742_p5)  ;;  %v2246_v16 = vld [vmem:[%s7265_s4 + $0x58] sm:$0xff] (!%p3742_p5) }
 0x231   : > { %v2012_v39 = vrot.slane %v2011_v37, 1  ;;  %v2212_v40 = vadd.f32 %v2211_v38, %v2210_v36  ;;  %v2247_v17 = vld [vmem:[%s7265_s4 + $0x60] sm:$0xff] (!%p3742_p5)  ;;  %v2248_v18 = vld [vmem:[%s7265_s4 + $0x68] sm:$0xff] (!%p3742_p5) }
 0x233   : > { %v2013_v42 = vadd.f32 %v2012_v39, %v2011_v37  ;;  %v2213_v43 = vrot.slane %v2212_v40, 1  ;;  %2220 = sbr.rel (%p3742_p5) target bundleno = 798 (0x31e), region = 44 }
 0x235   : > { %v2014_v45 = vadd.f32 %v2013_v42, %v1880_v41  ;;  %v2214_v46 = vadd.f32 %v2213_v43, %v2212_v40  ;;  %v2249_v43 = vld [vmem:[%s7265_s4 + $0x70] sm:$0xff] (!%p3742_p5) }
 0x237   : > { %2016 = vst.msk [vmem:[#allocation2] sm:$0x1] %vm2015_vm2, %v2014_v45  ;;  %v2215_v47 = vadd.f32 %v2214_v46, %v2017_v44  ;;  %v2250_v44 = vld [vmem:[%s7265_s4 + $0x78] sm:$0xff] (!%p3742_p5) }
 0x239   : > { %2216 = vst.msk [vmem:[#allocation3] sm:$0x1] %vm2015_vm2, %v2215_v47 }
 0x23e   : > { %v2221_v48 = vld [vmem:[#allocation2] sm:$0x1] }
 0x23f   : > { %v2222_v50 = vmul.f32 0.00048828125, %v2221_v48 }
 0x240   : > { %v2223_v49 = vld [vmem:[#allocation3] sm:$0x1] }
 0x241   : > { %v2224_v51 = vmul.f32 0.00048828125, %v2223_v49  ;;  %v2225_v52 = vmul.f32 %v2222_v50, %v2222_v50 }
 0x243   : > { %v2226_v53 = vsub.f32 %v2224_v51, %v2225_v52 }
 0x245   : > { %v2227_v54 = vmax.f32 %v2226_v53, 0.0  ;;  %v2251_v53 = vld [vmem:[%s7265_s4 + $0x80] sm:$0xff] }
 0x247   : > { %v2229_v55 = vadd.f32 1e-05, %v2227_v54 }
 0x249   : > { %4429 = vrsqrt.f32 %v2229_v55 }
 0x253   : > { %v4430_v60 = vpop.eup %4429 }
 0x254   : > { %v2231_v61 = vmul.f32 %v4430_v60, %v2228_v58  ;;  %v2252_v58 = vld [vmem:[%s7265_s4 + $0x88] sm:$0xff]  ;;  %v2254_v60 = vld [vmem:[%s7265_s4 + $0x98] sm:$0xff] }
 0x256   : > { %v2233_v4 = vmul.f32 %v2231_v61, %v2222_v50  ;;  %v4965_v5 = vrot.slane %v2231_v61, %v2302_v59 }
 0x258   : > { %v2234_v12 = vsub.f32 %v2232_v62, %v2233_v4  ;;  %v2305_v13 = vmul.f32 %v4965_v5, %v2235_v63  ;;  %v2306_v14 = vmul.f32 %v4965_v5, %v2236_v0  ;;  %v2307_v15 = vmul.f32 %v4965_v5, %v2237_v1  ;;  %v2255_v1 = vld [vmem:[%s7265_s4 + $0xa0] sm:$0xff] }
 0x259   : > { %v2308_v19 = vmul.f32 %v4965_v5, %v2238_v2  ;;  %v2309_v20 = vmul.f32 %v4965_v5, %v2239_v3  ;;  %v2310_v21 = vmul.f32 %v4965_v5, %v2240_v6  ;;  %v2311_v22 = vmul.f32 %v4965_v5, %v2241_v7  ;;  %v2256_v2 = vld [vmem:[%s7265_s4 + $0xa8] sm:$0xff] }
 0x25a   : > { %v5001_v23 = vrot.slane %v2234_v12, %v2302_v59  ;;  %v2312_v24 = vmul.f32 %v4965_v5, %v2242_v8  ;;  %v2313_v25 = vmul.f32 %v4965_v5, %v2243_v9  ;;  %v2314_v26 = vmul.f32 %v4965_v5, %v2244_v10  ;;  %v2253_v59 = vld [vmem:[%s7265_s4 + $0x90] sm:$0xff] }
 0x25b   : > { %v2315_v27 = vmul.f32 %v4965_v5, %v2245_v11  ;;  %v2316_v28 = vmul.f32 %v4965_v5, %v2246_v16  ;;  %v2317_v29 = vmul.f32 %v4965_v5, %v2247_v17  ;;  %v2318_v30 = vmul.f32 %v4965_v5, %v2248_v18  ;;  %v2257_v12 = vld [vmem:[%s7265_s4 + $0xb0] sm:$0xff] }
 0x25c   : > { %v2375_v31 = vadd.f32 %v5001_v23, %v2305_v13  ;;  %v2376_v32 = vadd.f32 %v5001_v23, %v2306_v14  ;;  %v2377_v33 = vadd.f32 %v5001_v23, %v2307_v15  ;;  %v2378_v34 = vadd.f32 %v5001_v23, %v2308_v19  ;;  %v2258_v13 = vld [vmem:[%s7265_s4 + $0xb8] sm:$0xff] }
 0x25d   : > { %v2379_v35 = vadd.f32 %v5001_v23, %v2309_v20  ;;  %v2380_v36 = vadd.f32 %v5001_v23, %v2310_v21  ;;  %v2381_v37 = vadd.f32 %v5001_v23, %v2311_v22  ;;  %v2382_v38 = vadd.f32 %v5001_v23, %v2312_v24  ;;  %v2259_v22 = vld [vmem:[%s7265_s4 + $0xc0] sm:$0xff] }
 0x25e   : > { %v2439_v39 = vmax.f32 %v2375_v31, 0.0  ;;  %v2440_v40 = vmax.f32 %v2376_v32, 0.0  ;;  %v2441_v41 = vmax.f32 %v2377_v33, 0.0  ;;  %v2442_v42 = vmax.f32 %v2378_v34, 0.0 }
 0x25f   : > { %v2443_v45 = vmax.f32 %v2379_v35, 0.0  ;;  %v2444_v46 = vmax.f32 %v2380_v36, 0.0  ;;  %v2445_v47 = vmax.f32 %v2381_v37, 0.0  ;;  %v2446_v48 = vmax.f32 %v2382_v38, 0.0  ;;  %v2263_v35 = vld [vmem:[%s7265_s4 + $0xe0] sm:$0xff]  ;;  %v2264_v36 = vld [vmem:[%s7265_s4 + $0xe8] sm:$0xff] }
 0x260   : > { %2503 = vst.msk [vmem:[%s7265_s4] sm:$0xff] %vm1815_vm1, %v2439_v39  ;;  %2504 = vst.msk [vmem:[%s7265_s4 + $0x8] sm:$0xff] %vm1815_vm1, %v2440_v40  ;;  %v2383_v49 = vadd.f32 %v5001_v23, %v2313_v25  ;;  %v2384_v50 = vadd.f32 %v5001_v23, %v2314_v26  ;;  %v2385_v51 = vadd.f32 %v5001_v23, %v2315_v27 }
 0x261   : > { %2505 = vst.msk [vmem:[%s7265_s4 + $0x10] sm:$0xff] %vm1815_vm1, %v2441_v41  ;;  %2506 = vst.msk [vmem:[%s7265_s4 + $0x18] sm:$0xff] %vm1815_vm1, %v2442_v42  ;;  %v2386_v52 = vadd.f32 %v5001_v23, %v2316_v28  ;;  %v2387_v54 = vadd.f32 %v5001_v23, %v2317_v29  ;;  %v2388_v55 = vadd.f32 %v5001_v23, %v2318_v30  ;;  %v2260_v28 = vld [vmem:[%s7265_s4 + $0xc8] sm:$0xff]  ;;  %v2261_v29 = vld [vmem:[%s7265_s4 + $0xd0] sm:$0xff] }
 0x262   : > { %2507 = vst.msk [vmem:[%s7265_s4 + $0x20] sm:$0xff] %vm1815_vm1, %v2443_v45  ;;  %2508 = vst.msk [vmem:[%s7265_s4 + $0x28] sm:$0xff] %vm1815_vm1, %v2444_v46  ;;  %v2319_v56 = vmul.f32 %v4965_v5, %v2249_v43  ;;  %v2320_v57 = vmul.f32 %v4965_v5, %v2250_v44  ;;  %v2447_v61 = vmax.f32 %v2383_v49, 0.0  ;;  %v2448_v62 = vmax.f32 %v2384_v50, 0.0  ;;  %v2262_v30 = vld [vmem:[%s7265_s4 + $0xd8] sm:$0xff]  ;;  %v2265_v45 = vld [vmem:[%s7265_s4 + $0xf0] sm:$0xff] }
 0x263   : > { %2509 = vst.msk [vmem:[%s7265_s4 + $0x30] sm:$0xff] %vm1815_vm1, %v2445_v47  ;;  %2510 = vst.msk [vmem:[%s7265_s4 + $0x38] sm:$0xff] %vm1815_vm1, %v2446_v48  ;;  %v2449_v63 = vmax.f32 %v2385_v51, 0.0  ;;  %v2450_v0 = vmax.f32 %v2386_v52, 0.0  ;;  %v2451_v3 = vmax.f32 %v2387_v54, 0.0  ;;  %v2452_v4 = vmax.f32 %v2388_v55, 0.0 }
 0x264   : > { %v2389_v6 = vadd.f32 %v5001_v23, %v2319_v56  ;;  %v2390_v7 = vadd.f32 %v5001_v23, %v2320_v57  ;;  %2511 = vst.msk [vmem:[%s7265_s4 + $0x40] sm:$0xff] %vm1815_vm1, %v2447_v61  ;;  %2512 = vst.msk [vmem:[%s7265_s4 + $0x48] sm:$0xff] %vm1815_vm1, %v2448_v62  ;;  %v2321_v8 = vmul.f32 %v4965_v5, %v2251_v53  ;;  %v2266_v46 = vld [vmem:[%s7265_s4 + $0xf8] sm:$0xff]  ;;  %v2267_v55 = vld [vmem:[%s7265_s4 + $0x100] sm:$0xff] }
 0x265   : > { %2513 = vst.msk [vmem:[%s7265_s4 + $0x50] sm:$0xff] %vm1815_vm1, %v2449_v63  ;;  %2514 = vst.msk [vmem:[%s7265_s4 + $0x58] sm:$0xff] %vm1815_vm1, %v2450_v0  ;;  %v2322_v9 = vmul.f32 %v4965_v5, %v2252_v58  ;;  %v2323_v10 = vmul.f32 %v4965_v5, %v2253_v59  ;;  %v2324_v11 = vmul.f32 %v4965_v5, %v2254_v60  ;;  %v2268_v60 = vld [vmem:[%s7265_s4 + $0x108] sm:$0xff]  ;;  %v2269_v61 = vld [vmem:[%s7265_s4 + $0x110] sm:$0xff] }
 0x266   : > { %2515 = vst.msk [vmem:[%s7265_s4 + $0x60] sm:$0xff] %vm1815_vm1, %v2451_v3  ;;  %2516 = vst.msk [vmem:[%s7265_s4 + $0x68] sm:$0xff] %vm1815_vm1, %v2452_v4  ;;  %v2453_v14 = vmax.f32 %v2389_v6, 0.0  ;;  %v2454_v15 = vmax.f32 %v2390_v7, 0.0  ;;  %v2325_v16 = vmul.f32 %v4965_v5, %v2255_v1  ;;  %v2326_v17 = vmul.f32 %v4965_v5, %v2256_v2  ;;  %v2270_v62 = vld [vmem:[%s7265_s4 + $0x118] sm:$0xff]  ;;  %v2271_v3 = vld [vmem:[%s7265_s4 + $0x120] sm:$0xff] }
 0x267   : > { %v2391_v18 = vadd.f32 %v5001_v23, %v2321_v8  ;;  %v2392_v19 = vadd.f32 %v5001_v23, %v2322_v9  ;;  %v2393_v20 = vadd.f32 %v5001_v23, %v2323_v10  ;;  %v2394_v21 = vadd.f32 %v5001_v23, %v2324_v11  ;;  %v2272_v4 = vld [vmem:[%s7265_s4 + $0x128] sm:$0xff] }
 0x268   : > { %2517 = vst.msk [vmem:[%s7265_s4 + $0x70] sm:$0xff] %vm1815_vm1, %v2453_v14  ;;  %2518 = vst.msk [vmem:[%s7265_s4 + $0x78] sm:$0xff] %vm1815_vm1, %v2454_v15  ;;  %v2395_v24 = vadd.f32 %v5001_v23, %v2325_v16  ;;  %v2396_v25 = vadd.f32 %v5001_v23, %v2326_v17  ;;  %v2327_v26 = vmul.f32 %v4965_v5, %v2257_v12  ;;  %v2273_v14 = vld [vmem:[%s7265_s4 + $0x130] sm:$0xff]  ;;  %v2274_v15 = vld [vmem:[%s7265_s4 + $0x138] sm:$0xff] }
 0x269   : > { %v2328_v27 = vmul.f32 %v4965_v5, %v2258_v13  ;;  %v2455_v31 = vmax.f32 %v2391_v18, 0.0  ;;  %v2456_v32 = vmax.f32 %v2392_v19, 0.0  ;;  %v2457_v33 = vmax.f32 %v2393_v20, 0.0 }
 0x26a   : > { %v2458_v34 = vmax.f32 %v2394_v21, 0.0  ;;  %v2459_v37 = vmax.f32 %v2395_v24, 0.0  ;;  %v2460_v38 = vmax.f32 %v2396_v25, 0.0  ;;  %v2397_v39 = vadd.f32 %v5001_v23, %v2327_v26  ;;  %v2275_v25 = vld [vmem:[%s7265_s4 + $0x140] sm:$0xff] }
 0x26b   : > { %v2398_v40 = vadd.f32 %v5001_v23, %v2328_v27  ;;  %2519 = vst.msk [vmem:[%s7265_s4 + $0x80] sm:$0xff] %vm1815_vm1, %v2455_v31  ;;  %2520 = vst.msk [vmem:[%s7265_s4 + $0x88] sm:$0xff] %vm1815_vm1, %v2456_v32  ;;  %v2329_v41 = vmul.f32 %v4965_v5, %v2259_v22  ;;  %v2330_v42 = vmul.f32 %v4965_v5, %v2260_v28  ;;  %v2277_v31 = vld [vmem:[%s7265_s4 + $0x150] sm:$0xff]  ;;  %v2278_v32 = vld [vmem:[%s7265_s4 + $0x158] sm:$0xff] }
 0x26c   : > { %2521 = vst.msk [vmem:[%s7265_s4 + $0x90] sm:$0xff] %vm1815_vm1, %v2457_v33  ;;  %2522 = vst.msk [vmem:[%s7265_s4 + $0x98] sm:$0xff] %vm1815_vm1, %v2458_v34  ;;  %v2331_v43 = vmul.f32 %v4965_v5, %v2261_v29  ;;  %v2332_v44 = vmul.f32 %v4965_v5, %v2262_v30  ;;  %v2461_v47 = vmax.f32 %v2397_v39, 0.0  ;;  %v2333_v49 = vmul.f32 %v4965_v5, %v2263_v35  ;;  %v2276_v30 = vld [vmem:[%s7265_s4 + $0x148] sm:$0xff] }
 0x26d   : > { %2523 = vst.msk [vmem:[%s7265_s4 + $0xa0] sm:$0xff] %vm1815_vm1, %v2459_v37  ;;  %2524 = vst.msk [vmem:[%s7265_s4 + $0xa8] sm:$0xff] %vm1815_vm1, %v2460_v38  ;;  %v2462_v48 = vmax.f32 %v2398_v40, 0.0  ;;  %v2334_v50 = vmul.f32 %v4965_v5, %v2264_v36  ;;  %v2399_v51 = vadd.f32 %v5001_v23, %v2329_v41  ;;  %v2400_v52 = vadd.f32 %v5001_v23, %v2330_v42  ;;  %v2279_v37 = vld [vmem:[%s7265_s4 + $0x160] sm:$0xff]  ;;  %v2280_v38 = vld [vmem:[%s7265_s4 + $0x168] sm:$0xff] }
 0x26e   : > { %v2401_v53 = vadd.f32 %v5001_v23, %v2331_v43  ;;  %v2402_v54 = vadd.f32 %v5001_v23, %v2332_v44  ;;  %2525 = vst.msk [vmem:[%s7265_s4 + $0xb0] sm:$0xff] %vm1815_vm1, %v2461_v47  ;;  %v2403_v56 = vadd.f32 %v5001_v23, %v2333_v49  ;;  %v2335_v58 = vmul.f32 %v4965_v5, %v2265_v45  ;;  %v2281_v47 = vld [vmem:[%s7265_s4 + $0x170] sm:$0xff] }
 0x26f   : > { %2526 = vst.msk [vmem:[%s7265_s4 + $0xb8] sm:$0xff] %vm1815_vm1, %v2462_v48  ;;  %v2404_v57 = vadd.f32 %v5001_v23, %v2334_v50  ;;  %v2336_v59 = vmul.f32 %v4965_v5, %v2266_v46  ;;  %v2463_v63 = vmax.f32 %v2399_v51, 0.0  ;;  %v2464_v0 = vmax.f32 %v2400_v52, 0.0  ;;  %v2282_v48 = vld [vmem:[%s7265_s4 + $0x178] sm:$0xff] }
 0x270   : > { %v2465_v1 = vmax.f32 %v2401_v53, 0.0  ;;  %v2466_v2 = vmax.f32 %v2402_v54, 0.0  ;;  %v2467_v6 = vmax.f32 %v2403_v56, 0.0  ;;  %v2405_v8 = vadd.f32 %v5001_v23, %v2335_v58 }
 0x271   : > { %v2468_v7 = vmax.f32 %v2404_v57, 0.0  ;;  %v2406_v9 = vadd.f32 %v5001_v23, %v2336_v59  ;;  %2527 = vst.msk [vmem:[%s7265_s4 + $0xc0] sm:$0xff] %vm1815_vm1, %v2463_v63  ;;  %2528 = vst.msk [vmem:[%s7265_s4 + $0xc8] sm:$0xff] %vm1815_vm1, %v2464_v0  ;;  %v2337_v10 = vmul.f32 %v4965_v5, %v2267_v55  ;;  %v2338_v11 = vmul.f32 %v4965_v5, %v2268_v60  ;;  %v2283_v57 = vld [vmem:[%s7265_s4 + $0x180] sm:$0xff]  ;;  %v2285_v63 = vld [vmem:[%s7265_s4 + $0x190] sm:$0xff] }
 0x272   : > { %2529 = vst.msk [vmem:[%s7265_s4 + $0xd0] sm:$0xff] %vm1815_vm1, %v2465_v1  ;;  %2530 = vst.msk [vmem:[%s7265_s4 + $0xd8] sm:$0xff] %vm1815_vm1, %v2466_v2  ;;  %v2339_v12 = vmul.f32 %v4965_v5, %v2269_v61  ;;  %v2340_v13 = vmul.f32 %v4965_v5, %v2270_v62  ;;  %v2469_v16 = vmax.f32 %v2405_v8, 0.0  ;;  %v2341_v18 = vmul.f32 %v4965_v5, %v2271_v3  ;;  %v2284_v62 = vld [vmem:[%s7265_s4 + $0x188] sm:$0xff]  ;;  %v2286_v0 = vld [vmem:[%s7265_s4 + $0x198] sm:$0xff] }
 0x273   : > { %2531 = vst.msk [vmem:[%s7265_s4 + $0xe0] sm:$0xff] %vm1815_vm1, %v2467_v6  ;;  %2532 = vst.msk [vmem:[%s7265_s4 + $0xe8] sm:$0xff] %vm1815_vm1, %v2468_v7  ;;  %v2470_v17 = vmax.f32 %v2406_v9, 0.0  ;;  %v2342_v19 = vmul.f32 %v4965_v5, %v2272_v4  ;;  %v2407_v20 = vadd.f32 %v5001_v23, %v2337_v10  ;;  %v2408_v21 = vadd.f32 %v5001_v23, %v2338_v11  ;;  %v2287_v6 = vld [vmem:[%s7265_s4 + $0x1a0] sm:$0xff]  ;;  %v2288_v7 = vld [vmem:[%s7265_s4 + $0x1a8] sm:$0xff] }
 0x274   : > { %v2409_v22 = vadd.f32 %v5001_v23, %v2339_v12  ;;  %v2410_v24 = vadd.f32 %v5001_v23, %v2340_v13  ;;  %2533 = vst.msk [vmem:[%s7265_s4 + $0xf0] sm:$0xff] %vm1815_vm1, %v2469_v16  ;;  %v2411_v26 = vadd.f32 %v5001_v23, %v2341_v18  ;;  %v2343_v28 = vmul.f32 %v4965_v5, %v2273_v14  ;;  %v2289_v16 = vld [vmem:[%s7265_s4 + $0x1b0] sm:$0xff] }
 0x275   : > { %2534 = vst.msk [vmem:[%s7265_s4 + $0xf8] sm:$0xff] %vm1815_vm1, %v2470_v17  ;;  %v2412_v27 = vadd.f32 %v5001_v23, %v2342_v19  ;;  %v2344_v29 = vmul.f32 %v4965_v5, %v2274_v15  ;;  %v2471_v33 = vmax.f32 %v2407_v20, 0.0  ;;  %v2472_v34 = vmax.f32 %v2408_v21, 0.0  ;;  %v2290_v17 = vld [vmem:[%s7265_s4 + $0x1b8] sm:$0xff] }
 0x276   : > { %v2473_v35 = vmax.f32 %v2409_v22, 0.0  ;;  %v2474_v36 = vmax.f32 %v2410_v24, 0.0  ;;  %v2475_v39 = vmax.f32 %v2411_v26, 0.0  ;;  %v2413_v41 = vadd.f32 %v5001_v23, %v2343_v28 }
 0x277   : > { %v2476_v40 = vmax.f32 %v2412_v27, 0.0  ;;  %v2414_v42 = vadd.f32 %v5001_v23, %v2344_v29  ;;  %2535 = vst.msk [vmem:[%s7265_s4 + $0x100] sm:$0xff] %vm1815_vm1, %v2471_v33  ;;  %2536 = vst.msk [vmem:[%s7265_s4 + $0x108] sm:$0xff] %vm1815_vm1, %v2472_v34  ;;  %v2345_v43 = vmul.f32 %v4965_v5, %v2275_v25  ;;  %v2346_v44 = vmul.f32 %v4965_v5, %v2276_v30  ;;  %v2291_v27 = vld [vmem:[%s7265_s4 + $0x1c0] sm:$0xff]  ;;  %v2293_v33 = vld [vmem:[%s7265_s4 + $0x1d0] sm:$0xff] }
 0x278   : > { %2537 = vst.msk [vmem:[%s7265_s4 + $0x110] sm:$0xff] %vm1815_vm1, %v2473_v35  ;;  %2538 = vst.msk [vmem:[%s7265_s4 + $0x118] sm:$0xff] %vm1815_vm1, %v2474_v36  ;;  %v2347_v45 = vmul.f32 %v4965_v5, %v2277_v31  ;;  %v2348_v46 = vmul.f32 %v4965_v5, %v2278_v32  ;;  %v2477_v49 = vmax.f32 %v2413_v41, 0.0  ;;  %v2349_v51 = vmul.f32 %v4965_v5, %v2279_v37  ;;  %v2292_v32 = vld [vmem:[%s7265_s4 + $0x1c8] sm:$0xff]  ;;  %v2294_v34 = vld [vmem:[%s7265_s4 + $0x1d8] sm:$0xff] }
 0x279   : > { %2539 = vst.msk [vmem:[%s7265_s4 + $0x120] sm:$0xff] %vm1815_vm1, %v2475_v39  ;;  %2540 = vst.msk [vmem:[%s7265_s4 + $0x128] sm:$0xff] %vm1815_vm1, %v2476_v40  ;;  %v2478_v50 = vmax.f32 %v2414_v42, 0.0  ;;  %v2350_v52 = vmul.f32 %v4965_v5, %v2280_v38  ;;  %v2415_v53 = vadd.f32 %v5001_v23, %v2345_v43  ;;  %v2416_v54 = vadd.f32 %v5001_v23, %v2346_v44  ;;  %v2295_v39 = vld [vmem:[%s7265_s4 + $0x1e0] sm:$0xff]  ;;  %v2296_v40 = vld [vmem:[%s7265_s4 + $0x1e8] sm:$0xff] }
 0x27a   : > { %v2417_v55 = vadd.f32 %v5001_v23, %v2347_v45  ;;  %v2418_v56 = vadd.f32 %v5001_v23, %v2348_v46  ;;  %2541 = vst.msk [vmem:[%s7265_s4 + $0x130] sm:$0xff] %vm1815_vm1, %v2477_v49  ;;  %v2419_v58 = vadd.f32 %v5001_v23, %v2349_v51  ;;  %v2351_v60 = vmul.f32 %v4965_v5, %v2281_v47  ;;  %v2297_v49 = vld [vmem:[%s7265_s4 + $0x1f0] sm:$0xff] }
 0x27b   : > { %2542 = vst.msk [vmem:[%s7265_s4 + $0x138] sm:$0xff] %vm1815_vm1, %v2478_v50  ;;  %v2420_v59 = vadd.f32 %v5001_v23, %v2350_v52  ;;  %v2352_v61 = vmul.f32 %v4965_v5, %v2282_v48  ;;  %v2479_v1 = vmax.f32 %v2415_v53, 0.0  ;;  %v2480_v2 = vmax.f32 %v2416_v54, 0.0  ;;  %v2298_v50 = vld [vmem:[%s7265_s4 + $0x1f8] sm:$0xff] }
 0x27c   : > { %v2481_v3 = vmax.f32 %v2417_v55, 0.0  ;;  %v2482_v4 = vmax.f32 %v2418_v56, 0.0  ;;  %v2483_v8 = vmax.f32 %v2419_v58, 0.0  ;;  %v2421_v10 = vadd.f32 %v5001_v23, %v2351_v60 }
 0x27d   : > { %v2484_v9 = vmax.f32 %v2420_v59, 0.0  ;;  %v2422_v11 = vadd.f32 %v5001_v23, %v2352_v61  ;;  %2543 = vst.msk [vmem:[%s7265_s4 + $0x140] sm:$0xff] %vm1815_vm1, %v2479_v1  ;;  %2544 = vst.msk [vmem:[%s7265_s4 + $0x148] sm:$0xff] %vm1815_vm1, %v2480_v2  ;;  %v2353_v12 = vmul.f32 %v4965_v5, %v2283_v57  ;;  %v2354_v13 = vmul.f32 %v4965_v5, %v2284_v62  ;;  %v3743_v59 = vld [vmem:[%s7265_s4 + $0x200] sm:$0xff]  ;;  %v3745_v1 = vld [vmem:[%s7265_s4 + $0x210] sm:$0xff] }
 0x27e   : > { %2545 = vst.msk [vmem:[%s7265_s4 + $0x150] sm:$0xff] %vm1815_vm1, %v2481_v3  ;;  %2546 = vst.msk [vmem:[%s7265_s4 + $0x158] sm:$0xff] %vm1815_vm1, %v2482_v4  ;;  %v2355_v14 = vmul.f32 %v4965_v5, %v2285_v63  ;;  %v2356_v15 = vmul.f32 %v4965_v5, %v2286_v0  ;;  %v2485_v18 = vmax.f32 %v2421_v10, 0.0  ;;  %v2357_v20 = vmul.f32 %v4965_v5, %v2287_v6  ;;  %v3744_v0 = vld [vmem:[%s7265_s4 + $0x208] sm:$0xff]  ;;  %v3746_v2 = vld [vmem:[%s7265_s4 + $0x218] sm:$0xff] }
 0x27f   : > { %2547 = vst.msk [vmem:[%s7265_s4 + $0x160] sm:$0xff] %vm1815_vm1, %v2483_v8  ;;  %2548 = vst.msk [vmem:[%s7265_s4 + $0x168] sm:$0xff] %vm1815_vm1, %v2484_v9  ;;  %v2486_v19 = vmax.f32 %v2422_v11, 0.0  ;;  %v2358_v21 = vmul.f32 %v4965_v5, %v2288_v7  ;;  %v2423_v22 = vadd.f32 %v5001_v23, %v2353_v12  ;;  %v2424_v24 = vadd.f32 %v5001_v23, %v2354_v13  ;;  %v3747_v8 = vld [vmem:[%s7265_s4 + $0x220] sm:$0xff]  ;;  %v3748_v9 = vld [vmem:[%s7265_s4 + $0x228] sm:$0xff] }
 0x280   : > { %v2425_v25 = vadd.f32 %v5001_v23, %v2355_v14  ;;  %v2426_v26 = vadd.f32 %v5001_v23, %v2356_v15  ;;  %2549 = vst.msk [vmem:[%s7265_s4 + $0x170] sm:$0xff] %vm1815_vm1, %v2485_v18  ;;  %v2427_v28 = vadd.f32 %v5001_v23, %v2357_v20  ;;  %v2359_v30 = vmul.f32 %v4965_v5, %v2289_v16  ;;  %v3749_v18 = vld [vmem:[%s7265_s4 + $0x230] sm:$0xff] }
 0x281   : > { %2550 = vst.msk [vmem:[%s7265_s4 + $0x178] sm:$0xff] %vm1815_vm1, %v2486_v19  ;;  %v2428_v29 = vadd.f32 %v5001_v23, %v2358_v21  ;;  %v2360_v31 = vmul.f32 %v4965_v5, %v2290_v17  ;;  %v2487_v35 = vmax.f32 %v2423_v22, 0.0  ;;  %v2488_v36 = vmax.f32 %v2424_v24, 0.0  ;;  %v3750_v19 = vld [vmem:[%s7265_s4 + $0x238] sm:$0xff] }
 0x282   : > { %v2489_v37 = vmax.f32 %v2425_v25, 0.0  ;;  %v2490_v38 = vmax.f32 %v2426_v26, 0.0  ;;  %v2491_v41 = vmax.f32 %v2427_v28, 0.0  ;;  %v2429_v43 = vadd.f32 %v5001_v23, %v2359_v30 }
 0x283   : > { %v2492_v42 = vmax.f32 %v2428_v29, 0.0  ;;  %v2430_v44 = vadd.f32 %v5001_v23, %v2360_v31  ;;  %2551 = vst.msk [vmem:[%s7265_s4 + $0x180] sm:$0xff] %vm1815_vm1, %v2487_v35  ;;  %2552 = vst.msk [vmem:[%s7265_s4 + $0x188] sm:$0xff] %vm1815_vm1, %v2488_v36  ;;  %v2361_v45 = vmul.f32 %v4965_v5, %v2291_v27  ;;  %v2362_v46 = vmul.f32 %v4965_v5, %v2292_v32  ;;  %v3751_v29 = vld [vmem:[%s7265_s4 + $0x240] sm:$0xff]  ;;  %v3753_v35 = vld [vmem:[%s7265_s4 + $0x250] sm:$0xff] }
 0x284   : > { %2553 = vst.msk [vmem:[%s7265_s4 + $0x190] sm:$0xff] %vm1815_vm1, %v2489_v37  ;;  %2554 = vst.msk [vmem:[%s7265_s4 + $0x198] sm:$0xff] %vm1815_vm1, %v2490_v38  ;;  %v2363_v47 = vmul.f32 %v4965_v5, %v2293_v33  ;;  %v2364_v48 = vmul.f32 %v4965_v5, %v2294_v34  ;;  %v2493_v51 = vmax.f32 %v2429_v43, 0.0  ;;  %v2365_v53 = vmul.f32 %v4965_v5, %v2295_v39  ;;  %v3752_v34 = vld [vmem:[%s7265_s4 + $0x248] sm:$0xff]  ;;  %v3754_v36 = vld [vmem:[%s7265_s4 + $0x258] sm:$0xff] }
 0x285   : > { %2555 = vst.msk [vmem:[%s7265_s4 + $0x1a0] sm:$0xff] %vm1815_vm1, %v2491_v41  ;;  %2556 = vst.msk [vmem:[%s7265_s4 + $0x1a8] sm:$0xff] %vm1815_vm1, %v2492_v42  ;;  %v2494_v52 = vmax.f32 %v2430_v44, 0.0  ;;  %v2366_v54 = vmul.f32 %v4965_v5, %v2296_v40  ;;  %v2431_v55 = vadd.f32 %v5001_v23, %v2361_v45  ;;  %v2432_v56 = vadd.f32 %v5001_v23, %v2362_v46  ;;  %v3755_v41 = vld [vmem:[%s7265_s4 + $0x260] sm:$0xff]  ;;  %v3756_v42 = vld [vmem:[%s7265_s4 + $0x268] sm:$0xff] }
 0x286   : > { %v2433_v57 = vadd.f32 %v5001_v23, %v2363_v47  ;;  %v2434_v58 = vadd.f32 %v5001_v23, %v2364_v48  ;;  %2557 = vst.msk [vmem:[%s7265_s4 + $0x1b0] sm:$0xff] %vm1815_vm1, %v2493_v51  ;;  %v2435_v60 = vadd.f32 %v5001_v23, %v2365_v53  ;;  %v2367_v62 = vmul.f32 %v4965_v5, %v2297_v49  ;;  %v3757_v51 = vld [vmem:[%s7265_s4 + $0x270] sm:$0xff] }
 0x287   : > { %2558 = vst.msk [vmem:[%s7265_s4 + $0x1b8] sm:$0xff] %vm1815_vm1, %v2494_v52  ;;  %v2436_v61 = vadd.f32 %v5001_v23, %v2366_v54  ;;  %v2368_v63 = vmul.f32 %v4965_v5, %v2298_v50  ;;  %v2495_v3 = vmax.f32 %v2431_v55, 0.0  ;;  %v2496_v4 = vmax.f32 %v2432_v56, 0.0  ;;  %v3758_v52 = vld [vmem:[%s7265_s4 + $0x278] sm:$0xff] }
 0x288   : > { %v2497_v6 = vmax.f32 %v2433_v57, 0.0  ;;  %v2498_v7 = vmax.f32 %v2434_v58, 0.0  ;;  %v2499_v10 = vmax.f32 %v2435_v60, 0.0  ;;  %v2437_v12 = vadd.f32 %v5001_v23, %v2367_v62 }
 0x289   : > { %v2500_v11 = vmax.f32 %v2436_v61, 0.0  ;;  %v2438_v13 = vadd.f32 %v5001_v23, %v2368_v63  ;;  %2559 = vst.msk [vmem:[%s7265_s4 + $0x1c0] sm:$0xff] %vm1815_vm1, %v2495_v3  ;;  %2560 = vst.msk [vmem:[%s7265_s4 + $0x1c8] sm:$0xff] %vm1815_vm1, %v2496_v4  ;;  %v2632_v14 = vmul.f32 %v3743_v59, %v4965_v5  ;;  %v2633_v15 = vmul.f32 %v3744_v0, %v4965_v5  ;;  %v3759_v61 = vld [vmem:[%s7265_s4 + $0x280] sm:$0xff]  ;;  %v3761_v3 = vld [vmem:[%s7265_s4 + $0x290] sm:$0xff] }
 0x28a   : > { %2561 = vst.msk [vmem:[%s7265_s4 + $0x1d0] sm:$0xff] %vm1815_vm1, %v2497_v6  ;;  %2562 = vst.msk [vmem:[%s7265_s4 + $0x1d8] sm:$0xff] %vm1815_vm1, %v2498_v7  ;;  %v2634_v16 = vmul.f32 %v3745_v1, %v4965_v5  ;;  %v2635_v17 = vmul.f32 %v3746_v2, %v4965_v5  ;;  %v2501_v20 = vmax.f32 %v2437_v12, 0.0  ;;  %v2636_v22 = vmul.f32 %v3747_v8, %v4965_v5  ;;  %v3760_v2 = vld [vmem:[%s7265_s4 + $0x288] sm:$0xff]  ;;  %v3762_v4 = vld [vmem:[%s7265_s4 + $0x298] sm:$0xff] }
 0x28b   : > { %2563 = vst.msk [vmem:[%s7265_s4 + $0x1e0] sm:$0xff] %vm1815_vm1, %v2499_v10  ;;  %2564 = vst.msk [vmem:[%s7265_s4 + $0x1e8] sm:$0xff] %vm1815_vm1, %v2500_v11  ;;  %v2502_v21 = vmax.f32 %v2438_v13, 0.0  ;;  %v2637_v24 = vmul.f32 %v3748_v9, %v4965_v5  ;;  %v2696_v25 = vadd.f32 %v2632_v14, %v5001_v23  ;;  %v2697_v26 = vadd.f32 %v2633_v15, %v5001_v23  ;;  %v3763_v10 = vld [vmem:[%s7265_s4 + $0x2a0] sm:$0xff]  ;;  %v3764_v11 = vld [vmem:[%s7265_s4 + $0x2a8] sm:$0xff] }
 0x28c   : > { %v2698_v27 = vadd.f32 %v2634_v16, %v5001_v23  ;;  %v2699_v28 = vadd.f32 %v2635_v17, %v5001_v23  ;;  %2565 = vst.msk [vmem:[%s7265_s4 + $0x1f0] sm:$0xff] %vm1815_vm1, %v2501_v20  ;;  %v2700_v30 = vadd.f32 %v2636_v22, %v5001_v23  ;;  %v2638_v32 = vmul.f32 %v3749_v18, %v4965_v5  ;;  %v3765_v20 = vld [vmem:[%s7265_s4 + $0x2b0] sm:$0xff] }
 0x28d   : > { %2566 = vst.msk [vmem:[%s7265_s4 + $0x1f8] sm:$0xff] %vm1815_vm1, %v2502_v21  ;;  %v2701_v31 = vadd.f32 %v2637_v24, %v5001_v23  ;;  %v2639_v33 = vmul.f32 %v3750_v19, %v4965_v5  ;;  %v2760_v37 = vmax.f32 %v2696_v25, 0.0  ;;  %v2761_v38 = vmax.f32 %v2697_v26, 0.0  ;;  %v3766_v21 = vld [vmem:[%s7265_s4 + $0x2b8] sm:$0xff] }
 0x28e   : > { %v2762_v39 = vmax.f32 %v2698_v27, 0.0  ;;  %v2763_v40 = vmax.f32 %v2699_v28, 0.0  ;;  %v2764_v43 = vmax.f32 %v2700_v30, 0.0  ;;  %v2702_v45 = vadd.f32 %v2638_v32, %v5001_v23 }
 0x28f   : > { %v2765_v44 = vmax.f32 %v2701_v31, 0.0  ;;  %v2703_v46 = vadd.f32 %v2639_v33, %v5001_v23  ;;  %3807 = vst.msk [vmem:[%s7265_s4 + $0x200] sm:$0xff] %vm1815_vm1, %v2760_v37  ;;  %3808 = vst.msk [vmem:[%s7265_s4 + $0x208] sm:$0xff] %vm1815_vm1, %v2761_v38  ;;  %v2640_v47 = vmul.f32 %v3751_v29, %v4965_v5  ;;  %v2641_v48 = vmul.f32 %v3752_v34, %v4965_v5  ;;  %v3767_v31 = vld [vmem:[%s7265_s4 + $0x2c0] sm:$0xff]  ;;  %v3769_v37 = vld [vmem:[%s7265_s4 + $0x2d0] sm:$0xff] }
 0x290   : > { %3809 = vst.msk [vmem:[%s7265_s4 + $0x210] sm:$0xff] %vm1815_vm1, %v2762_v39  ;;  %3810 = vst.msk [vmem:[%s7265_s4 + $0x218] sm:$0xff] %vm1815_vm1, %v2763_v40  ;;  %v2642_v49 = vmul.f32 %v3753_v35, %v4965_v5  ;;  %v2643_v50 = vmul.f32 %v3754_v36, %v4965_v5  ;;  %v2766_v53 = vmax.f32 %v2702_v45, 0.0  ;;  %v2644_v55 = vmul.f32 %v3755_v41, %v4965_v5  ;;  %v3768_v36 = vld [vmem:[%s7265_s4 + $0x2c8] sm:$0xff]  ;;  %v3770_v38 = vld [vmem:[%s7265_s4 + $0x2d8] sm:$0xff] }
 0x291   : > { %3811 = vst.msk [vmem:[%s7265_s4 + $0x220] sm:$0xff] %vm1815_vm1, %v2764_v43  ;;  %3812 = vst.msk [vmem:[%s7265_s4 + $0x228] sm:$0xff] %vm1815_vm1, %v2765_v44  ;;  %v2767_v54 = vmax.f32 %v2703_v46, 0.0  ;;  %v2645_v56 = vmul.f32 %v3756_v42, %v4965_v5  ;;  %v2704_v57 = vadd.f32 %v2640_v47, %v5001_v23  ;;  %v2705_v58 = vadd.f32 %v2641_v48, %v5001_v23  ;;  %v3771_v43 = vld [vmem:[%s7265_s4 + $0x2e0] sm:$0xff]  ;;  %v3772_v44 = vld [vmem:[%s7265_s4 + $0x2e8] sm:$0xff] }
 0x292   : > { %v2706_v59 = vadd.f32 %v2642_v49, %v5001_v23  ;;  %v2707_v60 = vadd.f32 %v2643_v50, %v5001_v23  ;;  %3813 = vst.msk [vmem:[%s7265_s4 + $0x230] sm:$0xff] %vm1815_vm1, %v2766_v53  ;;  %v2708_v62 = vadd.f32 %v2644_v55, %v5001_v23  ;;  %v2646_v0 = vmul.f32 %v3757_v51, %v4965_v5  ;;  %v3773_v53 = vld [vmem:[%s7265_s4 + $0x2f0] sm:$0xff] }
 0x293   : > { %3814 = vst.msk [vmem:[%s7265_s4 + $0x238] sm:$0xff] %vm1815_vm1, %v2767_v54  ;;  %v2709_v63 = vadd.f32 %v2645_v56, %v5001_v23  ;;  %v2647_v1 = vmul.f32 %v3758_v52, %v4965_v5  ;;  %v2768_v6 = vmax.f32 %v2704_v57, 0.0  ;;  %v2769_v7 = vmax.f32 %v2705_v58, 0.0  ;;  %v3774_v54 = vld [vmem:[%s7265_s4 + $0x2f8] sm:$0xff] }
 0x294   : > { %v2770_v8 = vmax.f32 %v2706_v59, 0.0  ;;  %v2771_v9 = vmax.f32 %v2707_v60, 0.0  ;;  %v2772_v12 = vmax.f32 %v2708_v62, 0.0  ;;  %v2710_v14 = vadd.f32 %v2646_v0, %v5001_v23 }
 0x295   : > { %v2773_v13 = vmax.f32 %v2709_v63, 0.0  ;;  %v2711_v15 = vadd.f32 %v2647_v1, %v5001_v23  ;;  %3815 = vst.msk [vmem:[%s7265_s4 + $0x240] sm:$0xff] %vm1815_vm1, %v2768_v6  ;;  %3816 = vst.msk [vmem:[%s7265_s4 + $0x248] sm:$0xff] %vm1815_vm1, %v2769_v7  ;;  %v2648_v16 = vmul.f32 %v3759_v61, %v4965_v5  ;;  %v2649_v17 = vmul.f32 %v3760_v2, %v4965_v5  ;;  %v3775_v63 = vld [vmem:[%s7265_s4 + $0x300] sm:$0xff]  ;;  %v3777_v6 = vld [vmem:[%s7265_s4 + $0x310] sm:$0xff] }
 0x296   : > { %3817 = vst.msk [vmem:[%s7265_s4 + $0x250] sm:$0xff] %vm1815_vm1, %v2770_v8  ;;  %3818 = vst.msk [vmem:[%s7265_s4 + $0x258] sm:$0xff] %vm1815_vm1, %v2771_v9  ;;  %v2650_v18 = vmul.f32 %v3761_v3, %v4965_v5  ;;  %v2651_v19 = vmul.f32 %v3762_v4, %v4965_v5  ;;  %v2774_v22 = vmax.f32 %v2710_v14, 0.0  ;;  %v2652_v25 = vmul.f32 %v3763_v10, %v4965_v5  ;;  %v3776_v4 = vld [vmem:[%s7265_s4 + $0x308] sm:$0xff]  ;;  %v3778_v7 = vld [vmem:[%s7265_s4 + $0x318] sm:$0xff] }
 0x297   : > { %3819 = vst.msk [vmem:[%s7265_s4 + $0x260] sm:$0xff] %vm1815_vm1, %v2772_v12  ;;  %3820 = vst.msk [vmem:[%s7265_s4 + $0x268] sm:$0xff] %vm1815_vm1, %v2773_v13  ;;  %v2775_v24 = vmax.f32 %v2711_v15, 0.0  ;;  %v2653_v26 = vmul.f32 %v3764_v11, %v4965_v5  ;;  %v2712_v27 = vadd.f32 %v2648_v16, %v5001_v23  ;;  %v2713_v28 = vadd.f32 %v2649_v17, %v5001_v23  ;;  %v3779_v12 = vld [vmem:[%s7265_s4 + $0x320] sm:$0xff]  ;;  %v3780_v13 = vld [vmem:[%s7265_s4 + $0x328] sm:$0xff] }
 0x298   : > { %v2714_v29 = vadd.f32 %v2650_v18, %v5001_v23  ;;  %v2715_v30 = vadd.f32 %v2651_v19, %v5001_v23  ;;  %3821 = vst.msk [vmem:[%s7265_s4 + $0x270] sm:$0xff] %vm1815_vm1, %v2774_v22  ;;  %v2716_v32 = vadd.f32 %v2652_v25, %v5001_v23  ;;  %v2654_v34 = vmul.f32 %v3765_v20, %v4965_v5  ;;  %v3781_v22 = vld [vmem:[%s7265_s4 + $0x330] sm:$0xff] }
 0x299   : > { %3822 = vst.msk [vmem:[%s7265_s4 + $0x278] sm:$0xff] %vm1815_vm1, %v2775_v24  ;;  %v2717_v33 = vadd.f32 %v2653_v26, %v5001_v23  ;;  %v2655_v35 = vmul.f32 %v3766_v21, %v4965_v5  ;;  %v2776_v39 = vmax.f32 %v2712_v27, 0.0  ;;  %v2777_v40 = vmax.f32 %v2713_v28, 0.0  ;;  %v3782_v24 = vld [vmem:[%s7265_s4 + $0x338] sm:$0xff] }
 0x29a   : > { %v2778_v41 = vmax.f32 %v2714_v29, 0.0  ;;  %v2779_v42 = vmax.f32 %v2715_v30, 0.0  ;;  %v2780_v45 = vmax.f32 %v2716_v32, 0.0  ;;  %v2718_v47 = vadd.f32 %v2654_v34, %v5001_v23 }
 0x29b   : > { %v2781_v46 = vmax.f32 %v2717_v33, 0.0  ;;  %v2719_v48 = vadd.f32 %v2655_v35, %v5001_v23  ;;  %3823 = vst.msk [vmem:[%s7265_s4 + $0x280] sm:$0xff] %vm1815_vm1, %v2776_v39  ;;  %3824 = vst.msk [vmem:[%s7265_s4 + $0x288] sm:$0xff] %vm1815_vm1, %v2777_v40  ;;  %v2656_v49 = vmul.f32 %v3767_v31, %v4965_v5  ;;  %v2657_v50 = vmul.f32 %v3768_v36, %v4965_v5  ;;  %v3783_v33 = vld [vmem:[%s7265_s4 + $0x340] sm:$0xff]  ;;  %v3785_v39 = vld [vmem:[%s7265_s4 + $0x350] sm:$0xff] }
 0x29c   : > { %3825 = vst.msk [vmem:[%s7265_s4 + $0x290] sm:$0xff] %vm1815_vm1, %v2778_v41  ;;  %3826 = vst.msk [vmem:[%s7265_s4 + $0x298] sm:$0xff] %vm1815_vm1, %v2779_v42  ;;  %v2658_v51 = vmul.f32 %v3769_v37, %v4965_v5  ;;  %v2659_v52 = vmul.f32 %v3770_v38, %v4965_v5  ;;  %v2782_v55 = vmax.f32 %v2718_v47, 0.0  ;;  %v2660_v57 = vmul.f32 %v3771_v43, %v4965_v5  ;;  %v3784_v38 = vld [vmem:[%s7265_s4 + $0x348] sm:$0xff]  ;;  %v3786_v40 = vld [vmem:[%s7265_s4 + $0x358] sm:$0xff] }
 0x29d   : > { %3827 = vst.msk [vmem:[%s7265_s4 + $0x2a0] sm:$0xff] %vm1815_vm1, %v2780_v45  ;;  %3828 = vst.msk [vmem:[%s7265_s4 + $0x2a8] sm:$0xff] %vm1815_vm1, %v2781_v46  ;;  %v2783_v56 = vmax.f32 %v2719_v48, 0.0  ;;  %v2661_v58 = vmul.f32 %v3772_v44, %v4965_v5  ;;  %v2720_v59 = vadd.f32 %v2656_v49, %v5001_v23  ;;  %v2721_v60 = vadd.f32 %v2657_v50, %v5001_v23  ;;  %v3787_v45 = vld [vmem:[%s7265_s4 + $0x360] sm:$0xff]  ;;  %v3788_v46 = vld [vmem:[%s7265_s4 + $0x368] sm:$0xff] }
 0x29e   : > { %v2722_v61 = vadd.f32 %v2658_v51, %v5001_v23  ;;  %v2723_v62 = vadd.f32 %v2659_v52, %v5001_v23  ;;  %3829 = vst.msk [vmem:[%s7265_s4 + $0x2b0] sm:$0xff] %vm1815_vm1, %v2782_v55  ;;  %v2724_v0 = vadd.f32 %v2660_v57, %v5001_v23  ;;  %v2662_v2 = vmul.f32 %v3773_v53, %v4965_v5  ;;  %v3789_v55 = vld [vmem:[%s7265_s4 + $0x370] sm:$0xff] }
 0x29f   : > { %3830 = vst.msk [vmem:[%s7265_s4 + $0x2b8] sm:$0xff] %vm1815_vm1, %v2783_v56  ;;  %v2725_v1 = vadd.f32 %v2661_v58, %v5001_v23  ;;  %v2663_v3 = vmul.f32 %v3774_v54, %v4965_v5  ;;  %v2784_v8 = vmax.f32 %v2720_v59, 0.0  ;;  %v2785_v9 = vmax.f32 %v2721_v60, 0.0  ;;  %v3790_v56 = vld [vmem:[%s7265_s4 + $0x378] sm:$0xff] }
 0x2a0   : > { %v2786_v10 = vmax.f32 %v2722_v61, 0.0  ;;  %v2787_v11 = vmax.f32 %v2723_v62, 0.0  ;;  %v2788_v14 = vmax.f32 %v2724_v0, 0.0  ;;  %v2726_v16 = vadd.f32 %v2662_v2, %v5001_v23 }
 0x2a1   : > { %v2789_v15 = vmax.f32 %v2725_v1, 0.0  ;;  %v2727_v17 = vadd.f32 %v2663_v3, %v5001_v23  ;;  %3831 = vst.msk [vmem:[%s7265_s4 + $0x2c0] sm:$0xff] %vm1815_vm1, %v2784_v8  ;;  %3832 = vst.msk [vmem:[%s7265_s4 + $0x2c8] sm:$0xff] %vm1815_vm1, %v2785_v9  ;;  %v2664_v18 = vmul.f32 %v3775_v63, %v4965_v5  ;;  %v2665_v19 = vmul.f32 %v3776_v4, %v4965_v5  ;;  %v3791_v1 = vld [vmem:[%s7265_s4 + $0x380] sm:$0xff]  ;;  %v3793_v8 = vld [vmem:[%s7265_s4 + $0x390] sm:$0xff] }
 0x2a2   : > { %3833 = vst.msk [vmem:[%s7265_s4 + $0x2d0] sm:$0xff] %vm1815_vm1, %v2786_v10  ;;  %3834 = vst.msk [vmem:[%s7265_s4 + $0x2d8] sm:$0xff] %vm1815_vm1, %v2787_v11  ;;  %v2666_v20 = vmul.f32 %v3777_v6, %v4965_v5  ;;  %v2667_v21 = vmul.f32 %v3778_v7, %v4965_v5  ;;  %v2790_v25 = vmax.f32 %v2726_v16, 0.0  ;;  %v2668_v27 = vmul.f32 %v3779_v12, %v4965_v5  ;;  %v3792_v7 = vld [vmem:[%s7265_s4 + $0x388] sm:$0xff]  ;;  %v3794_v9 = vld [vmem:[%s7265_s4 + $0x398] sm:$0xff] }
 0x2a3   : > { %3835 = vst.msk [vmem:[%s7265_s4 + $0x2e0] sm:$0xff] %vm1815_vm1, %v2788_v14  ;;  %3836 = vst.msk [vmem:[%s7265_s4 + $0x2e8] sm:$0xff] %vm1815_vm1, %v2789_v15  ;;  %v2791_v26 = vmax.f32 %v2727_v17, 0.0  ;;  %v2669_v28 = vmul.f32 %v3780_v13, %v4965_v5  ;;  %v2728_v29 = vadd.f32 %v2664_v18, %v5001_v23  ;;  %v2729_v30 = vadd.f32 %v2665_v19, %v5001_v23  ;;  %v3795_v14 = vld [vmem:[%s7265_s4 + $0x3a0] sm:$0xff]  ;;  %v3796_v15 = vld [vmem:[%s7265_s4 + $0x3a8] sm:$0xff] }
 0x2a4   : > { %v2730_v31 = vadd.f32 %v2666_v20, %v5001_v23  ;;  %v2731_v32 = vadd.f32 %v2667_v21, %v5001_v23  ;;  %3837 = vst.msk [vmem:[%s7265_s4 + $0x2f0] sm:$0xff] %vm1815_vm1, %v2790_v25  ;;  %v2732_v34 = vadd.f32 %v2668_v27, %v5001_v23  ;;  %v2670_v36 = vmul.f32 %v3781_v22, %v4965_v5  ;;  %v3797_v25 = vld [vmem:[%s7265_s4 + $0x3b0] sm:$0xff] }
 0x2a5   : > { %3838 = vst.msk [vmem:[%s7265_s4 + $0x2f8] sm:$0xff] %vm1815_vm1, %v2791_v26  ;;  %v2733_v35 = vadd.f32 %v2669_v28, %v5001_v23  ;;  %v2671_v37 = vmul.f32 %v3782_v24, %v4965_v5  ;;  %v2792_v41 = vmax.f32 %v2728_v29, 0.0  ;;  %v2793_v42 = vmax.f32 %v2729_v30, 0.0  ;;  %v3798_v26 = vld [vmem:[%s7265_s4 + $0x3b8] sm:$0xff] }
 0x2a6   : > { %v2794_v43 = vmax.f32 %v2730_v31, 0.0  ;;  %v2795_v44 = vmax.f32 %v2731_v32, 0.0  ;;  %v2796_v47 = vmax.f32 %v2732_v34, 0.0  ;;  %v2734_v49 = vadd.f32 %v2670_v36, %v5001_v23 }
 0x2a7   : > { %v2797_v48 = vmax.f32 %v2733_v35, 0.0  ;;  %v2735_v50 = vadd.f32 %v2671_v37, %v5001_v23  ;;  %3839 = vst.msk [vmem:[%s7265_s4 + $0x300] sm:$0xff] %vm1815_vm1, %v2792_v41  ;;  %3840 = vst.msk [vmem:[%s7265_s4 + $0x308] sm:$0xff] %vm1815_vm1, %v2793_v42  ;;  %v2672_v51 = vmul.f32 %v3783_v33, %v4965_v5  ;;  %v2673_v52 = vmul.f32 %v3784_v38, %v4965_v5  ;;  %v3799_v35 = vld [vmem:[%s7265_s4 + $0x3c0] sm:$0xff]  ;;  %v3801_v41 = vld [vmem:[%s7265_s4 + $0x3d0] sm:$0xff] }
 0x2a8   : > { %3841 = vst.msk [vmem:[%s7265_s4 + $0x310] sm:$0xff] %vm1815_vm1, %v2794_v43  ;;  %3842 = vst.msk [vmem:[%s7265_s4 + $0x318] sm:$0xff] %vm1815_vm1, %v2795_v44  ;;  %v2674_v53 = vmul.f32 %v3785_v39, %v4965_v5  ;;  %v2675_v54 = vmul.f32 %v3786_v40, %v4965_v5  ;;  %v2798_v57 = vmax.f32 %v2734_v49, 0.0  ;;  %v2676_v59 = vmul.f32 %v3787_v45, %v4965_v5  ;;  %v3800_v40 = vld [vmem:[%s7265_s4 + $0x3c8] sm:$0xff]  ;;  %v3802_v42 = vld [vmem:[%s7265_s4 + $0x3d8] sm:$0xff] }
 0x2a9   : > { %3843 = vst.msk [vmem:[%s7265_s4 + $0x320] sm:$0xff] %vm1815_vm1, %v2796_v47  ;;  %3844 = vst.msk [vmem:[%s7265_s4 + $0x328] sm:$0xff] %vm1815_vm1, %v2797_v48  ;;  %v2799_v58 = vmax.f32 %v2735_v50, 0.0  ;;  %v2677_v60 = vmul.f32 %v3788_v46, %v4965_v5  ;;  %v2736_v61 = vadd.f32 %v2672_v51, %v5001_v23  ;;  %v2737_v62 = vadd.f32 %v2673_v52, %v5001_v23  ;;  %v3803_v47 = vld [vmem:[%s7265_s4 + $0x3e0] sm:$0xff]  ;;  %v3804_v48 = vld [vmem:[%s7265_s4 + $0x3e8] sm:$0xff] }
 0x2aa   : > { %v2738_v63 = vadd.f32 %v2674_v53, %v5001_v23  ;;  %v2739_v0 = vadd.f32 %v2675_v54, %v5001_v23  ;;  %3845 = vst.msk [vmem:[%s7265_s4 + $0x330] sm:$0xff] %vm1815_vm1, %v2798_v57  ;;  %v2740_v2 = vadd.f32 %v2676_v59, %v5001_v23  ;;  %v2678_v4 = vmul.f32 %v3789_v55, %v4965_v5  ;;  %v3805_v57 = vld [vmem:[%s7265_s4 + $0x3f0] sm:$0xff] }
 0x2ab   : > { %3846 = vst.msk [vmem:[%s7265_s4 + $0x338] sm:$0xff] %vm1815_vm1, %v2799_v58  ;;  %v2741_v3 = vadd.f32 %v2677_v60, %v5001_v23  ;;  %v2679_v6 = vmul.f32 %v3790_v56, %v4965_v5  ;;  %v2800_v10 = vmax.f32 %v2736_v61, 0.0  ;;  %v2801_v11 = vmax.f32 %v2737_v62, 0.0  ;;  %v3806_v58 = vld [vmem:[%s7265_s4 + $0x3f8] sm:$0xff] }
 0x2ac   : > { %v2802_v12 = vmax.f32 %v2738_v63, 0.0  ;;  %v2803_v13 = vmax.f32 %v2739_v0, 0.0  ;;  %v2804_v16 = vmax.f32 %v2740_v2, 0.0  ;;  %v2742_v18 = vadd.f32 %v2678_v4, %v5001_v23 }
 0x2ad   : > { %v2805_v17 = vmax.f32 %v2741_v3, 0.0  ;;  %v2743_v19 = vadd.f32 %v2679_v6, %v5001_v23  ;;  %3847 = vst.msk [vmem:[%s7265_s4 + $0x340] sm:$0xff] %vm1815_vm1, %v2800_v10  ;;  %3848 = vst.msk [vmem:[%s7265_s4 + $0x348] sm:$0xff] %vm1815_vm1, %v2801_v11  ;;  %v2680_v20 = vmul.f32 %v3791_v1, %v4965_v5  ;;  %v2681_v21 = vmul.f32 %v3792_v7, %v4965_v5  ;;  %v3871_v3 = vld [vmem:[%s7265_s4 + $0x400] sm:$0xff]  ;;  %v3873_v10 = vld [vmem:[%s7265_s4 + $0x410] sm:$0xff] }
 0x2ae   : > { %3849 = vst.msk [vmem:[%s7265_s4 + $0x350] sm:$0xff] %vm1815_vm1, %v2802_v12  ;;  %3850 = vst.msk [vmem:[%s7265_s4 + $0x358] sm:$0xff] %vm1815_vm1, %v2803_v13  ;;  %v2682_v22 = vmul.f32 %v3793_v8, %v4965_v5  ;;  %v2683_v24 = vmul.f32 %v3794_v9, %v4965_v5  ;;  %v2806_v27 = vmax.f32 %v2742_v18, 0.0  ;;  %v2684_v29 = vmul.f32 %v3795_v14, %v4965_v5  ;;  %v3872_v9 = vld [vmem:[%s7265_s4 + $0x408] sm:$0xff]  ;;  %v3874_v11 = vld [vmem:[%s7265_s4 + $0x418] sm:$0xff] }
 0x2af   : > { %3851 = vst.msk [vmem:[%s7265_s4 + $0x360] sm:$0xff] %vm1815_vm1, %v2804_v16  ;;  %3852 = vst.msk [vmem:[%s7265_s4 + $0x368] sm:$0xff] %vm1815_vm1, %v2805_v17  ;;  %v2807_v28 = vmax.f32 %v2743_v19, 0.0  ;;  %v2685_v30 = vmul.f32 %v3796_v15, %v4965_v5  ;;  %v2744_v31 = vadd.f32 %v2680_v20, %v5001_v23  ;;  %v2745_v32 = vadd.f32 %v2681_v21, %v5001_v23  ;;  %v3875_v16 = vld [vmem:[%s7265_s4 + $0x420] sm:$0xff]  ;;  %v3876_v17 = vld [vmem:[%s7265_s4 + $0x428] sm:$0xff] }
 0x2b0   : > { %v2746_v33 = vadd.f32 %v2682_v22, %v5001_v23  ;;  %v2747_v34 = vadd.f32 %v2683_v24, %v5001_v23  ;;  %3853 = vst.msk [vmem:[%s7265_s4 + $0x370] sm:$0xff] %vm1815_vm1, %v2806_v27  ;;  %v2748_v36 = vadd.f32 %v2684_v29, %v5001_v23  ;;  %v2686_v38 = vmul.f32 %v3797_v25, %v4965_v5  ;;  %v3877_v27 = vld [vmem:[%s7265_s4 + $0x430] sm:$0xff] }
 0x2b1   : > { %3854 = vst.msk [vmem:[%s7265_s4 + $0x378] sm:$0xff] %vm1815_vm1, %v2807_v28  ;;  %v2749_v37 = vadd.f32 %v2685_v30, %v5001_v23  ;;  %v2687_v39 = vmul.f32 %v3798_v26, %v4965_v5  ;;  %v2808_v43 = vmax.f32 %v2744_v31, 0.0  ;;  %v2809_v44 = vmax.f32 %v2745_v32, 0.0  ;;  %v3878_v28 = vld [vmem:[%s7265_s4 + $0x438] sm:$0xff] }
 0x2b2   : > { %v2810_v45 = vmax.f32 %v2746_v33, 0.0  ;;  %v2811_v46 = vmax.f32 %v2747_v34, 0.0  ;;  %v2812_v49 = vmax.f32 %v2748_v36, 0.0  ;;  %v2750_v51 = vadd.f32 %v2686_v38, %v5001_v23 }
 0x2b3   : > { %v2813_v50 = vmax.f32 %v2749_v37, 0.0  ;;  %v2751_v52 = vadd.f32 %v2687_v39, %v5001_v23  ;;  %3855 = vst.msk [vmem:[%s7265_s4 + $0x380] sm:$0xff] %vm1815_vm1, %v2808_v43  ;;  %3856 = vst.msk [vmem:[%s7265_s4 + $0x388] sm:$0xff] %vm1815_vm1, %v2809_v44  ;;  %v2688_v53 = vmul.f32 %v3799_v35, %v4965_v5  ;;  %v2689_v54 = vmul.f32 %v3800_v40, %v4965_v5  ;;  %v3879_v37 = vld [vmem:[%s7265_s4 + $0x440] sm:$0xff]  ;;  %v3881_v43 = vld [vmem:[%s7265_s4 + $0x450] sm:$0xff] }
 0x2b4   : > { %3857 = vst.msk [vmem:[%s7265_s4 + $0x390] sm:$0xff] %vm1815_vm1, %v2810_v45  ;;  %3858 = vst.msk [vmem:[%s7265_s4 + $0x398] sm:$0xff] %vm1815_vm1, %v2811_v46  ;;  %v2690_v55 = vmul.f32 %v3801_v41, %v4965_v5  ;;  %v2691_v56 = vmul.f32 %v3802_v42, %v4965_v5  ;;  %v2814_v59 = vmax.f32 %v2750_v51, 0.0  ;;  %v2692_v61 = vmul.f32 %v3803_v47, %v4965_v5  ;;  %v3880_v42 = vld [vmem:[%s7265_s4 + $0x448] sm:$0xff]  ;;  %v3882_v44 = vld [vmem:[%s7265_s4 + $0x458] sm:$0xff] }
 0x2b5   : > { %3859 = vst.msk [vmem:[%s7265_s4 + $0x3a0] sm:$0xff] %vm1815_vm1, %v2812_v49  ;;  %3860 = vst.msk [vmem:[%s7265_s4 + $0x3a8] sm:$0xff] %vm1815_vm1, %v2813_v50  ;;  %v2815_v60 = vmax.f32 %v2751_v52, 0.0  ;;  %v2693_v62 = vmul.f32 %v3804_v48, %v4965_v5  ;;  %v2752_v63 = vadd.f32 %v2688_v53, %v5001_v23  ;;  %v2753_v0 = vadd.f32 %v2689_v54, %v5001_v23  ;;  %v3883_v49 = vld [vmem:[%s7265_s4 + $0x460] sm:$0xff]  ;;  %v3884_v50 = vld [vmem:[%s7265_s4 + $0x468] sm:$0xff] }
 0x2b6   : > { %v2754_v1 = vadd.f32 %v2690_v55, %v5001_v23  ;;  %v2755_v2 = vadd.f32 %v2691_v56, %v5001_v23  ;;  %3861 = vst.msk [vmem:[%s7265_s4 + $0x3b0] sm:$0xff] %vm1815_vm1, %v2814_v59  ;;  %v2756_v4 = vadd.f32 %v2692_v61, %v5001_v23  ;;  %v2694_v7 = vmul.f32 %v3805_v57, %v4965_v5  ;;  %v3885_v59 = vld [vmem:[%s7265_s4 + $0x470] sm:$0xff] }
 0x2b7   : > { %3862 = vst.msk [vmem:[%s7265_s4 + $0x3b8] sm:$0xff] %vm1815_vm1, %v2815_v60  ;;  %v2757_v6 = vadd.f32 %v2693_v62, %v5001_v23  ;;  %v2695_v8 = vmul.f32 %v3806_v58, %v4965_v5  ;;  %v2816_v12 = vmax.f32 %v2752_v63, 0.0  ;;  %v2817_v13 = vmax.f32 %v2753_v0, 0.0  ;;  %v3886_v60 = vld [vmem:[%s7265_s4 + $0x478] sm:$0xff] }
 0x2b8   : > { %v2818_v14 = vmax.f32 %v2754_v1, 0.0  ;;  %v2819_v15 = vmax.f32 %v2755_v2, 0.0  ;;  %v2820_v18 = vmax.f32 %v2756_v4, 0.0  ;;  %v2758_v20 = vadd.f32 %v2694_v7, %v5001_v23 }
 0x2b9   : > { %v2821_v19 = vmax.f32 %v2757_v6, 0.0  ;;  %v2759_v21 = vadd.f32 %v2695_v8, %v5001_v23  ;;  %3863 = vst.msk [vmem:[%s7265_s4 + $0x3c0] sm:$0xff] %vm1815_vm1, %v2816_v12  ;;  %3864 = vst.msk [vmem:[%s7265_s4 + $0x3c8] sm:$0xff] %vm1815_vm1, %v2817_v13  ;;  %v2953_v22 = vmul.f32 %v3871_v3, %v4965_v5  ;;  %v2954_v24 = vmul.f32 %v3872_v9, %v4965_v5  ;;  %v3887_v6 = vld [vmem:[%s7265_s4 + $0x480] sm:$0xff]  ;;  %v3889_v12 = vld [vmem:[%s7265_s4 + $0x490] sm:$0xff] }
 0x2ba   : > { %3865 = vst.msk [vmem:[%s7265_s4 + $0x3d0] sm:$0xff] %vm1815_vm1, %v2818_v14  ;;  %3866 = vst.msk [vmem:[%s7265_s4 + $0x3d8] sm:$0xff] %vm1815_vm1, %v2819_v15  ;;  %v2955_v25 = vmul.f32 %v3873_v10, %v4965_v5  ;;  %v2956_v26 = vmul.f32 %v3874_v11, %v4965_v5  ;;  %v2822_v29 = vmax.f32 %v2758_v20, 0.0  ;;  %v2957_v31 = vmul.f32 %v3875_v16, %v4965_v5  ;;  %v3888_v11 = vld [vmem:[%s7265_s4 + $0x488] sm:$0xff]  ;;  %v3890_v13 = vld [vmem:[%s7265_s4 + $0x498] sm:$0xff] }
 0x2bb   : > { %3867 = vst.msk [vmem:[%s7265_s4 + $0x3e0] sm:$0xff] %vm1815_vm1, %v2820_v18  ;;  %3868 = vst.msk [vmem:[%s7265_s4 + $0x3e8] sm:$0xff] %vm1815_vm1, %v2821_v19  ;;  %v2823_v30 = vmax.f32 %v2759_v21, 0.0  ;;  %v2958_v32 = vmul.f32 %v3876_v17, %v4965_v5  ;;  %v3017_v33 = vadd.f32 %v2953_v22, %v5001_v23  ;;  %v3018_v34 = vadd.f32 %v2954_v24, %v5001_v23  ;;  %v3891_v18 = vld [vmem:[%s7265_s4 + $0x4a0] sm:$0xff]  ;;  %v3892_v19 = vld [vmem:[%s7265_s4 + $0x4a8] sm:$0xff] }
 0x2bc   : > { %v3019_v35 = vadd.f32 %v2955_v25, %v5001_v23  ;;  %v3020_v36 = vadd.f32 %v2956_v26, %v5001_v23  ;;  %3869 = vst.msk [vmem:[%s7265_s4 + $0x3f0] sm:$0xff] %vm1815_vm1, %v2822_v29  ;;  %v3021_v38 = vadd.f32 %v2957_v31, %v5001_v23  ;;  %v2959_v40 = vmul.f32 %v3877_v27, %v4965_v5  ;;  %v3893_v29 = vld [vmem:[%s7265_s4 + $0x4b0] sm:$0xff] }
 0x2bd   : > { %3870 = vst.msk [vmem:[%s7265_s4 + $0x3f8] sm:$0xff] %vm1815_vm1, %v2823_v30  ;;  %v3022_v39 = vadd.f32 %v2958_v32, %v5001_v23  ;;  %v2960_v41 = vmul.f32 %v3878_v28, %v4965_v5  ;;  %v3081_v45 = vmax.f32 %v3017_v33, 0.0  ;;  %v3082_v46 = vmax.f32 %v3018_v34, 0.0  ;;  %v3894_v30 = vld [vmem:[%s7265_s4 + $0x4b8] sm:$0xff] }
 0x2be   : > { %v3083_v47 = vmax.f32 %v3019_v35, 0.0  ;;  %v3084_v48 = vmax.f32 %v3020_v36, 0.0  ;;  %v3085_v51 = vmax.f32 %v3021_v38, 0.0  ;;  %v3023_v53 = vadd.f32 %v2959_v40, %v5001_v23 }
 0x2bf   : > { %v3086_v52 = vmax.f32 %v3022_v39, 0.0  ;;  %v3024_v54 = vadd.f32 %v2960_v41, %v5001_v23  ;;  %3935 = vst.msk [vmem:[%s7265_s4 + $0x400] sm:$0xff] %vm1815_vm1, %v3081_v45  ;;  %3936 = vst.msk [vmem:[%s7265_s4 + $0x408] sm:$0xff] %vm1815_vm1, %v3082_v46  ;;  %v2961_v55 = vmul.f32 %v3879_v37, %v4965_v5  ;;  %v2962_v56 = vmul.f32 %v3880_v42, %v4965_v5  ;;  %v3895_v39 = vld [vmem:[%s7265_s4 + $0x4c0] sm:$0xff]  ;;  %v3897_v45 = vld [vmem:[%s7265_s4 + $0x4d0] sm:$0xff] }
 0x2c0   : > { %3937 = vst.msk [vmem:[%s7265_s4 + $0x410] sm:$0xff] %vm1815_vm1, %v3083_v47  ;;  %3938 = vst.msk [vmem:[%s7265_s4 + $0x418] sm:$0xff] %vm1815_vm1, %v3084_v48  ;;  %v2963_v57 = vmul.f32 %v3881_v43, %v4965_v5  ;;  %v2964_v58 = vmul.f32 %v3882_v44, %v4965_v5  ;;  %v3087_v61 = vmax.f32 %v3023_v53, 0.0  ;;  %v2965_v63 = vmul.f32 %v3883_v49, %v4965_v5  ;;  %v3896_v44 = vld [vmem:[%s7265_s4 + $0x4c8] sm:$0xff]  ;;  %v3898_v46 = vld [vmem:[%s7265_s4 + $0x4d8] sm:$0xff] }
 0x2c1   : > { %3939 = vst.msk [vmem:[%s7265_s4 + $0x420] sm:$0xff] %vm1815_vm1, %v3085_v51  ;;  %3940 = vst.msk [vmem:[%s7265_s4 + $0x428] sm:$0xff] %vm1815_vm1, %v3086_v52  ;;  %v3088_v62 = vmax.f32 %v3024_v54, 0.0  ;;  %v2966_v0 = vmul.f32 %v3884_v50, %v4965_v5  ;;  %v3025_v1 = vadd.f32 %v2961_v55, %v5001_v23  ;;  %v3026_v2 = vadd.f32 %v2962_v56, %v5001_v23  ;;  %v3899_v51 = vld [vmem:[%s7265_s4 + $0x4e0] sm:$0xff]  ;;  %v3900_v52 = vld [vmem:[%s7265_s4 + $0x4e8] sm:$0xff] }
 0x2c2   : > { %v3027_v3 = vadd.f32 %v2963_v57, %v5001_v23  ;;  %v3028_v4 = vadd.f32 %v2964_v58, %v5001_v23  ;;  %3941 = vst.msk [vmem:[%s7265_s4 + $0x430] sm:$0xff] %vm1815_vm1, %v3087_v61  ;;  %v3029_v7 = vadd.f32 %v2965_v63, %v5001_v23  ;;  %v2967_v9 = vmul.f32 %v3885_v59, %v4965_v5  ;;  %v3901_v61 = vld [vmem:[%s7265_s4 + $0x4f0] sm:$0xff] }
 0x2c3   : > { %3942 = vst.msk [vmem:[%s7265_s4 + $0x438] sm:$0xff] %vm1815_vm1, %v3088_v62  ;;  %v3030_v8 = vadd.f32 %v2966_v0, %v5001_v23  ;;  %v2968_v10 = vmul.f32 %v3886_v60, %v4965_v5  ;;  %v3089_v14 = vmax.f32 %v3025_v1, 0.0  ;;  %v3090_v15 = vmax.f32 %v3026_v2, 0.0  ;;  %v3902_v62 = vld [vmem:[%s7265_s4 + $0x4f8] sm:$0xff] }
 0x2c4   : > { %v3091_v16 = vmax.f32 %v3027_v3, 0.0  ;;  %v3092_v17 = vmax.f32 %v3028_v4, 0.0  ;;  %v3093_v20 = vmax.f32 %v3029_v7, 0.0  ;;  %v3031_v22 = vadd.f32 %v2967_v9, %v5001_v23 }
 0x2c5   : > { %v3094_v21 = vmax.f32 %v3030_v8, 0.0  ;;  %v3032_v24 = vadd.f32 %v2968_v10, %v5001_v23  ;;  %3943 = vst.msk [vmem:[%s7265_s4 + $0x440] sm:$0xff] %vm1815_vm1, %v3089_v14  ;;  %3944 = vst.msk [vmem:[%s7265_s4 + $0x448] sm:$0xff] %vm1815_vm1, %v3090_v15  ;;  %v2969_v25 = vmul.f32 %v3887_v6, %v4965_v5  ;;  %v2970_v26 = vmul.f32 %v3888_v11, %v4965_v5  ;;  %v3903_v8 = vld [vmem:[%s7265_s4 + $0x500] sm:$0xff]  ;;  %v3905_v14 = vld [vmem:[%s7265_s4 + $0x510] sm:$0xff] }
 0x2c6   : > { %3945 = vst.msk [vmem:[%s7265_s4 + $0x450] sm:$0xff] %vm1815_vm1, %v3091_v16  ;;  %3946 = vst.msk [vmem:[%s7265_s4 + $0x458] sm:$0xff] %vm1815_vm1, %v3092_v17  ;;  %v2971_v27 = vmul.f32 %v3889_v12, %v4965_v5  ;;  %v2972_v28 = vmul.f32 %v3890_v13, %v4965_v5  ;;  %v3095_v31 = vmax.f32 %v3031_v22, 0.0  ;;  %v2973_v33 = vmul.f32 %v3891_v18, %v4965_v5  ;;  %v3904_v13 = vld [vmem:[%s7265_s4 + $0x508] sm:$0xff]  ;;  %v3906_v15 = vld [vmem:[%s7265_s4 + $0x518] sm:$0xff] }
 0x2c7   : > { %3947 = vst.msk [vmem:[%s7265_s4 + $0x460] sm:$0xff] %vm1815_vm1, %v3093_v20  ;;  %3948 = vst.msk [vmem:[%s7265_s4 + $0x468] sm:$0xff] %vm1815_vm1, %v3094_v21  ;;  %v3096_v32 = vmax.f32 %v3032_v24, 0.0  ;;  %v2974_v34 = vmul.f32 %v3892_v19, %v4965_v5  ;;  %v3033_v35 = vadd.f32 %v2969_v25, %v5001_v23  ;;  %v3034_v36 = vadd.f32 %v2970_v26, %v5001_v23  ;;  %v3907_v20 = vld [vmem:[%s7265_s4 + $0x520] sm:$0xff]  ;;  %v3908_v21 = vld [vmem:[%s7265_s4 + $0x528] sm:$0xff] }
 0x2c8   : > { %v3035_v37 = vadd.f32 %v2971_v27, %v5001_v23  ;;  %v3036_v38 = vadd.f32 %v2972_v28, %v5001_v23  ;;  %3949 = vst.msk [vmem:[%s7265_s4 + $0x470] sm:$0xff] %vm1815_vm1, %v3095_v31  ;;  %v3037_v40 = vadd.f32 %v2973_v33, %v5001_v23  ;;  %v2975_v42 = vmul.f32 %v3893_v29, %v4965_v5  ;;  %v3909_v31 = vld [vmem:[%s7265_s4 + $0x530] sm:$0xff] }
 0x2c9   : > { %3950 = vst.msk [vmem:[%s7265_s4 + $0x478] sm:$0xff] %vm1815_vm1, %v3096_v32  ;;  %v3038_v41 = vadd.f32 %v2974_v34, %v5001_v23  ;;  %v2976_v43 = vmul.f32 %v3894_v30, %v4965_v5  ;;  %v3097_v47 = vmax.f32 %v3033_v35, 0.0  ;;  %v3098_v48 = vmax.f32 %v3034_v36, 0.0  ;;  %v3910_v32 = vld [vmem:[%s7265_s4 + $0x538] sm:$0xff] }
 0x2ca   : > { %v3099_v49 = vmax.f32 %v3035_v37, 0.0  ;;  %v3100_v50 = vmax.f32 %v3036_v38, 0.0  ;;  %v3101_v53 = vmax.f32 %v3037_v40, 0.0  ;;  %v3039_v55 = vadd.f32 %v2975_v42, %v5001_v23 }
 0x2cb   : > { %v3102_v54 = vmax.f32 %v3038_v41, 0.0  ;;  %v3040_v56 = vadd.f32 %v2976_v43, %v5001_v23  ;;  %3951 = vst.msk [vmem:[%s7265_s4 + $0x480] sm:$0xff] %vm1815_vm1, %v3097_v47  ;;  %3952 = vst.msk [vmem:[%s7265_s4 + $0x488] sm:$0xff] %vm1815_vm1, %v3098_v48  ;;  %v2977_v57 = vmul.f32 %v3895_v39, %v4965_v5  ;;  %v2978_v58 = vmul.f32 %v3896_v44, %v4965_v5  ;;  %v3911_v41 = vld [vmem:[%s7265_s4 + $0x540] sm:$0xff]  ;;  %v3913_v47 = vld [vmem:[%s7265_s4 + $0x550] sm:$0xff] }
 0x2cc   : > { %3953 = vst.msk [vmem:[%s7265_s4 + $0x490] sm:$0xff] %vm1815_vm1, %v3099_v49  ;;  %3954 = vst.msk [vmem:[%s7265_s4 + $0x498] sm:$0xff] %vm1815_vm1, %v3100_v50  ;;  %v2979_v59 = vmul.f32 %v3897_v45, %v4965_v5  ;;  %v2980_v60 = vmul.f32 %v3898_v46, %v4965_v5  ;;  %v3103_v63 = vmax.f32 %v3039_v55, 0.0  ;;  %v2981_v1 = vmul.f32 %v3899_v51, %v4965_v5  ;;  %v3912_v46 = vld [vmem:[%s7265_s4 + $0x548] sm:$0xff]  ;;  %v3914_v48 = vld [vmem:[%s7265_s4 + $0x558] sm:$0xff] }
 0x2cd   : > { %3955 = vst.msk [vmem:[%s7265_s4 + $0x4a0] sm:$0xff] %vm1815_vm1, %v3101_v53  ;;  %3956 = vst.msk [vmem:[%s7265_s4 + $0x4a8] sm:$0xff] %vm1815_vm1, %v3102_v54  ;;  %v3104_v0 = vmax.f32 %v3040_v56, 0.0  ;;  %v2982_v2 = vmul.f32 %v3900_v52, %v4965_v5  ;;  %v3041_v3 = vadd.f32 %v2977_v57, %v5001_v23  ;;  %v3042_v4 = vadd.f32 %v2978_v58, %v5001_v23  ;;  %v3915_v53 = vld [vmem:[%s7265_s4 + $0x560] sm:$0xff]  ;;  %v3916_v54 = vld [vmem:[%s7265_s4 + $0x568] sm:$0xff] }
 0x2ce   : > { %v3043_v6 = vadd.f32 %v2979_v59, %v5001_v23  ;;  %v3044_v7 = vadd.f32 %v2980_v60, %v5001_v23  ;;  %3957 = vst.msk [vmem:[%s7265_s4 + $0x4b0] sm:$0xff] %vm1815_vm1, %v3103_v63  ;;  %v3045_v9 = vadd.f32 %v2981_v1, %v5001_v23  ;;  %v2983_v11 = vmul.f32 %v3901_v61, %v4965_v5  ;;  %v3917_v63 = vld [vmem:[%s7265_s4 + $0x570] sm:$0xff] }
 0x2cf   : > { %3958 = vst.msk [vmem:[%s7265_s4 + $0x4b8] sm:$0xff] %vm1815_vm1, %v3104_v0  ;;  %v3046_v10 = vadd.f32 %v2982_v2, %v5001_v23  ;;  %v2984_v12 = vmul.f32 %v3902_v62, %v4965_v5  ;;  %v3105_v16 = vmax.f32 %v3041_v3, 0.0  ;;  %v3106_v17 = vmax.f32 %v3042_v4, 0.0  ;;  %v3918_v0 = vld [vmem:[%s7265_s4 + $0x578] sm:$0xff] }
 0x2d0   : > { %v3107_v18 = vmax.f32 %v3043_v6, 0.0  ;;  %v3108_v19 = vmax.f32 %v3044_v7, 0.0  ;;  %v3109_v22 = vmax.f32 %v3045_v9, 0.0  ;;  %v3047_v25 = vadd.f32 %v2983_v11, %v5001_v23 }
 0x2d1   : > { %v3110_v24 = vmax.f32 %v3046_v10, 0.0  ;;  %v3048_v26 = vadd.f32 %v2984_v12, %v5001_v23  ;;  %3959 = vst.msk [vmem:[%s7265_s4 + $0x4c0] sm:$0xff] %vm1815_vm1, %v3105_v16  ;;  %3960 = vst.msk [vmem:[%s7265_s4 + $0x4c8] sm:$0xff] %vm1815_vm1, %v3106_v17  ;;  %v2985_v27 = vmul.f32 %v3903_v8, %v4965_v5  ;;  %v2986_v28 = vmul.f32 %v3904_v13, %v4965_v5  ;;  %v3919_v10 = vld [vmem:[%s7265_s4 + $0x580] sm:$0xff]  ;;  %v3921_v16 = vld [vmem:[%s7265_s4 + $0x590] sm:$0xff] }
 0x2d2   : > { %3961 = vst.msk [vmem:[%s7265_s4 + $0x4d0] sm:$0xff] %vm1815_vm1, %v3107_v18  ;;  %3962 = vst.msk [vmem:[%s7265_s4 + $0x4d8] sm:$0xff] %vm1815_vm1, %v3108_v19  ;;  %v2987_v29 = vmul.f32 %v3905_v14, %v4965_v5  ;;  %v2988_v30 = vmul.f32 %v3906_v15, %v4965_v5  ;;  %v3111_v33 = vmax.f32 %v3047_v25, 0.0  ;;  %v2989_v35 = vmul.f32 %v3907_v20, %v4965_v5  ;;  %v3920_v15 = vld [vmem:[%s7265_s4 + $0x588] sm:$0xff]  ;;  %v3922_v17 = vld [vmem:[%s7265_s4 + $0x598] sm:$0xff] }
 0x2d3   : > { %3963 = vst.msk [vmem:[%s7265_s4 + $0x4e0] sm:$0xff] %vm1815_vm1, %v3109_v22  ;;  %3964 = vst.msk [vmem:[%s7265_s4 + $0x4e8] sm:$0xff] %vm1815_vm1, %v3110_v24  ;;  %v3112_v34 = vmax.f32 %v3048_v26, 0.0  ;;  %v2990_v36 = vmul.f32 %v3908_v21, %v4965_v5  ;;  %v3049_v37 = vadd.f32 %v2985_v27, %v5001_v23  ;;  %v3050_v38 = vadd.f32 %v2986_v28, %v5001_v23  ;;  %v3923_v22 = vld [vmem:[%s7265_s4 + $0x5a0] sm:$0xff]  ;;  %v3924_v24 = vld [vmem:[%s7265_s4 + $0x5a8] sm:$0xff] }
 0x2d4   : > { %v3051_v39 = vadd.f32 %v2987_v29, %v5001_v23  ;;  %v3052_v40 = vadd.f32 %v2988_v30, %v5001_v23  ;;  %3965 = vst.msk [vmem:[%s7265_s4 + $0x4f0] sm:$0xff] %vm1815_vm1, %v3111_v33  ;;  %v3053_v42 = vadd.f32 %v2989_v35, %v5001_v23  ;;  %v2991_v44 = vmul.f32 %v3909_v31, %v4965_v5  ;;  %v3925_v33 = vld [vmem:[%s7265_s4 + $0x5b0] sm:$0xff] }
 0x2d5   : > { %3966 = vst.msk [vmem:[%s7265_s4 + $0x4f8] sm:$0xff] %vm1815_vm1, %v3112_v34  ;;  %v3054_v43 = vadd.f32 %v2990_v36, %v5001_v23  ;;  %v2992_v45 = vmul.f32 %v3910_v32, %v4965_v5  ;;  %v3113_v49 = vmax.f32 %v3049_v37, 0.0  ;;  %v3114_v50 = vmax.f32 %v3050_v38, 0.0  ;;  %v3926_v34 = vld [vmem:[%s7265_s4 + $0x5b8] sm:$0xff] }
 0x2d6   : > { %v3115_v51 = vmax.f32 %v3051_v39, 0.0  ;;  %v3116_v52 = vmax.f32 %v3052_v40, 0.0  ;;  %v3117_v55 = vmax.f32 %v3053_v42, 0.0  ;;  %v3055_v57 = vadd.f32 %v2991_v44, %v5001_v23 }
 0x2d7   : > { %v3118_v56 = vmax.f32 %v3054_v43, 0.0  ;;  %v3056_v58 = vadd.f32 %v2992_v45, %v5001_v23  ;;  %3967 = vst.msk [vmem:[%s7265_s4 + $0x500] sm:$0xff] %vm1815_vm1, %v3113_v49  ;;  %3968 = vst.msk [vmem:[%s7265_s4 + $0x508] sm:$0xff] %vm1815_vm1, %v3114_v50  ;;  %v2993_v59 = vmul.f32 %v3911_v41, %v4965_v5  ;;  %v2994_v60 = vmul.f32 %v3912_v46, %v4965_v5  ;;  %v3927_v43 = vld [vmem:[%s7265_s4 + $0x5c0] sm:$0xff]  ;;  %v3929_v49 = vld [vmem:[%s7265_s4 + $0x5d0] sm:$0xff] }
 0x2d8   : > { %3969 = vst.msk [vmem:[%s7265_s4 + $0x510] sm:$0xff] %vm1815_vm1, %v3115_v51  ;;  %3970 = vst.msk [vmem:[%s7265_s4 + $0x518] sm:$0xff] %vm1815_vm1, %v3116_v52  ;;  %v2995_v61 = vmul.f32 %v3913_v47, %v4965_v5  ;;  %v2996_v62 = vmul.f32 %v3914_v48, %v4965_v5  ;;  %v3119_v1 = vmax.f32 %v3055_v57, 0.0  ;;  %v2997_v3 = vmul.f32 %v3915_v53, %v4965_v5  ;;  %v3928_v48 = vld [vmem:[%s7265_s4 + $0x5c8] sm:$0xff]  ;;  %v3930_v50 = vld [vmem:[%s7265_s4 + $0x5d8] sm:$0xff] }
 0x2d9   : > { %3971 = vst.msk [vmem:[%s7265_s4 + $0x520] sm:$0xff] %vm1815_vm1, %v3117_v55  ;;  %3972 = vst.msk [vmem:[%s7265_s4 + $0x528] sm:$0xff] %vm1815_vm1, %v3118_v56  ;;  %v3120_v2 = vmax.f32 %v3056_v58, 0.0  ;;  %v2998_v4 = vmul.f32 %v3916_v54, %v4965_v5  ;;  %v3057_v6 = vadd.f32 %v2993_v59, %v5001_v23  ;;  %v3058_v7 = vadd.f32 %v2994_v60, %v5001_v23  ;;  %v3931_v55 = vld [vmem:[%s7265_s4 + $0x5e0] sm:$0xff]  ;;  %v3932_v56 = vld [vmem:[%s7265_s4 + $0x5e8] sm:$0xff] }
 0x2da   : > { %v3059_v8 = vadd.f32 %v2995_v61, %v5001_v23  ;;  %v3060_v9 = vadd.f32 %v2996_v62, %v5001_v23  ;;  %3973 = vst.msk [vmem:[%s7265_s4 + $0x530] sm:$0xff] %vm1815_vm1, %v3119_v1  ;;  %v3061_v11 = vadd.f32 %v2997_v3, %v5001_v23  ;;  %v2999_v13 = vmul.f32 %v3917_v63, %v4965_v5  ;;  %v3933_v1 = vld [vmem:[%s7265_s4 + $0x5f0] sm:$0xff] }
 0x2db   : > { %3974 = vst.msk [vmem:[%s7265_s4 + $0x538] sm:$0xff] %vm1815_vm1, %v3120_v2  ;;  %v3062_v12 = vadd.f32 %v2998_v4, %v5001_v23  ;;  %v3000_v14 = vmul.f32 %v3918_v0, %v4965_v5  ;;  %v3121_v18 = vmax.f32 %v3057_v6, 0.0  ;;  %v3122_v19 = vmax.f32 %v3058_v7, 0.0  ;;  %v3934_v2 = vld [vmem:[%s7265_s4 + $0x5f8] sm:$0xff] }
 0x2dc   : > { %v3123_v20 = vmax.f32 %v3059_v8, 0.0  ;;  %v3124_v21 = vmax.f32 %v3060_v9, 0.0  ;;  %v3125_v25 = vmax.f32 %v3061_v11, 0.0  ;;  %v3063_v27 = vadd.f32 %v2999_v13, %v5001_v23 }
 0x2dd   : > { %v3126_v26 = vmax.f32 %v3062_v12, 0.0  ;;  %v3064_v28 = vadd.f32 %v3000_v14, %v5001_v23  ;;  %3975 = vst.msk [vmem:[%s7265_s4 + $0x540] sm:$0xff] %vm1815_vm1, %v3121_v18  ;;  %3976 = vst.msk [vmem:[%s7265_s4 + $0x548] sm:$0xff] %vm1815_vm1, %v3122_v19  ;;  %v3001_v29 = vmul.f32 %v3919_v10, %v4965_v5  ;;  %v3002_v30 = vmul.f32 %v3920_v15, %v4965_v5  ;;  %v3999_v12 = vld [vmem:[%s7265_s4 + $0x600] sm:$0xff]  ;;  %v4001_v18 = vld [vmem:[%s7265_s4 + $0x610] sm:$0xff] }
 0x2de   : > { %3977 = vst.msk [vmem:[%s7265_s4 + $0x550] sm:$0xff] %vm1815_vm1, %v3123_v20  ;;  %3978 = vst.msk [vmem:[%s7265_s4 + $0x558] sm:$0xff] %vm1815_vm1, %v3124_v21  ;;  %v3003_v31 = vmul.f32 %v3921_v16, %v4965_v5  ;;  %v3004_v32 = vmul.f32 %v3922_v17, %v4965_v5  ;;  %v3127_v35 = vmax.f32 %v3063_v27, 0.0  ;;  %v3005_v37 = vmul.f32 %v3923_v22, %v4965_v5  ;;  %v4000_v17 = vld [vmem:[%s7265_s4 + $0x608] sm:$0xff]  ;;  %v4002_v19 = vld [vmem:[%s7265_s4 + $0x618] sm:$0xff] }
 0x2df   : > { %3979 = vst.msk [vmem:[%s7265_s4 + $0x560] sm:$0xff] %vm1815_vm1, %v3125_v25  ;;  %3980 = vst.msk [vmem:[%s7265_s4 + $0x568] sm:$0xff] %vm1815_vm1, %v3126_v26  ;;  %v3128_v36 = vmax.f32 %v3064_v28, 0.0  ;;  %v3006_v38 = vmul.f32 %v3924_v24, %v4965_v5  ;;  %v3065_v39 = vadd.f32 %v3001_v29, %v5001_v23  ;;  %v3066_v40 = vadd.f32 %v3002_v30, %v5001_v23  ;;  %v4003_v25 = vld [vmem:[%s7265_s4 + $0x620] sm:$0xff]  ;;  %v4004_v26 = vld [vmem:[%s7265_s4 + $0x628] sm:$0xff] }
 0x2e0   : > { %v3067_v41 = vadd.f32 %v3003_v31, %v5001_v23  ;;  %v3068_v42 = vadd.f32 %v3004_v32, %v5001_v23  ;;  %3981 = vst.msk [vmem:[%s7265_s4 + $0x570] sm:$0xff] %vm1815_vm1, %v3127_v35  ;;  %v3069_v44 = vadd.f32 %v3005_v37, %v5001_v23  ;;  %v3007_v46 = vmul.f32 %v3925_v33, %v4965_v5  ;;  %v4005_v35 = vld [vmem:[%s7265_s4 + $0x630] sm:$0xff] }
 0x2e1   : > { %3982 = vst.msk [vmem:[%s7265_s4 + $0x578] sm:$0xff] %vm1815_vm1, %v3128_v36  ;;  %v3070_v45 = vadd.f32 %v3006_v38, %v5001_v23  ;;  %v3008_v47 = vmul.f32 %v3926_v34, %v4965_v5  ;;  %v3129_v51 = vmax.f32 %v3065_v39, 0.0  ;;  %v3130_v52 = vmax.f32 %v3066_v40, 0.0  ;;  %v4006_v36 = vld [vmem:[%s7265_s4 + $0x638] sm:$0xff] }
 0x2e2   : > { %v3131_v53 = vmax.f32 %v3067_v41, 0.0  ;;  %v3132_v54 = vmax.f32 %v3068_v42, 0.0  ;;  %v3133_v57 = vmax.f32 %v3069_v44, 0.0  ;;  %v3071_v59 = vadd.f32 %v3007_v46, %v5001_v23 }
 0x2e3   : > { %v3134_v58 = vmax.f32 %v3070_v45, 0.0  ;;  %v3072_v60 = vadd.f32 %v3008_v47, %v5001_v23  ;;  %3983 = vst.msk [vmem:[%s7265_s4 + $0x580] sm:$0xff] %vm1815_vm1, %v3129_v51  ;;  %3984 = vst.msk [vmem:[%s7265_s4 + $0x588] sm:$0xff] %vm1815_vm1, %v3130_v52  ;;  %v3009_v61 = vmul.f32 %v3927_v43, %v4965_v5  ;;  %v3010_v62 = vmul.f32 %v3928_v48, %v4965_v5  ;;  %v4007_v45 = vld [vmem:[%s7265_s4 + $0x640] sm:$0xff]  ;;  %v4009_v51 = vld [vmem:[%s7265_s4 + $0x650] sm:$0xff] }
 0x2e4   : > { %3985 = vst.msk [vmem:[%s7265_s4 + $0x590] sm:$0xff] %vm1815_vm1, %v3131_v53  ;;  %3986 = vst.msk [vmem:[%s7265_s4 + $0x598] sm:$0xff] %vm1815_vm1, %v3132_v54  ;;  %v3011_v63 = vmul.f32 %v3929_v49, %v4965_v5  ;;  %v3012_v0 = vmul.f32 %v3930_v50, %v4965_v5  ;;  %v3135_v3 = vmax.f32 %v3071_v59, 0.0  ;;  %v3013_v6 = vmul.f32 %v3931_v55, %v4965_v5  ;;  %v4008_v50 = vld [vmem:[%s7265_s4 + $0x648] sm:$0xff]  ;;  %v4010_v52 = vld [vmem:[%s7265_s4 + $0x658] sm:$0xff] }
 0x2e5   : > { %3987 = vst.msk [vmem:[%s7265_s4 + $0x5a0] sm:$0xff] %vm1815_vm1, %v3133_v57  ;;  %3988 = vst.msk [vmem:[%s7265_s4 + $0x5a8] sm:$0xff] %vm1815_vm1, %v3134_v58  ;;  %v3136_v4 = vmax.f32 %v3072_v60, 0.0  ;;  %v3014_v7 = vmul.f32 %v3932_v56, %v4965_v5  ;;  %v3073_v8 = vadd.f32 %v3009_v61, %v5001_v23  ;;  %v3074_v9 = vadd.f32 %v3010_v62, %v5001_v23  ;;  %v4011_v57 = vld [vmem:[%s7265_s4 + $0x660] sm:$0xff]  ;;  %v4012_v58 = vld [vmem:[%s7265_s4 + $0x668] sm:$0xff] }
 0x2e6   : > { %v3075_v10 = vadd.f32 %v3011_v63, %v5001_v23  ;;  %v3076_v11 = vadd.f32 %v3012_v0, %v5001_v23  ;;  %3989 = vst.msk [vmem:[%s7265_s4 + $0x5b0] sm:$0xff] %vm1815_vm1, %v3135_v3  ;;  %v3077_v13 = vadd.f32 %v3013_v6, %v5001_v23  ;;  %v3015_v15 = vmul.f32 %v3933_v1, %v4965_v5  ;;  %v4013_v3 = vld [vmem:[%s7265_s4 + $0x670] sm:$0xff] }
 0x2e7   : > { %3990 = vst.msk [vmem:[%s7265_s4 + $0x5b8] sm:$0xff] %vm1815_vm1, %v3136_v4  ;;  %v3078_v14 = vadd.f32 %v3014_v7, %v5001_v23  ;;  %v3016_v16 = vmul.f32 %v3934_v2, %v4965_v5  ;;  %v3137_v20 = vmax.f32 %v3073_v8, 0.0  ;;  %v3138_v21 = vmax.f32 %v3074_v9, 0.0  ;;  %v4014_v4 = vld [vmem:[%s7265_s4 + $0x678] sm:$0xff] }
 0x2e8   : > { %v3139_v22 = vmax.f32 %v3075_v10, 0.0  ;;  %v3140_v24 = vmax.f32 %v3076_v11, 0.0  ;;  %v3141_v27 = vmax.f32 %v3077_v13, 0.0  ;;  %v3079_v29 = vadd.f32 %v3015_v15, %v5001_v23 }
 0x2e9   : > { %v3142_v28 = vmax.f32 %v3078_v14, 0.0  ;;  %v3080_v30 = vadd.f32 %v3016_v16, %v5001_v23  ;;  %3991 = vst.msk [vmem:[%s7265_s4 + $0x5c0] sm:$0xff] %vm1815_vm1, %v3137_v20  ;;  %3992 = vst.msk [vmem:[%s7265_s4 + $0x5c8] sm:$0xff] %vm1815_vm1, %v3138_v21  ;;  %v3274_v31 = vmul.f32 %v3999_v12, %v4965_v5  ;;  %v3275_v32 = vmul.f32 %v4000_v17, %v4965_v5  ;;  %v4015_v14 = vld [vmem:[%s7265_s4 + $0x680] sm:$0xff]  ;;  %v4017_v20 = vld [vmem:[%s7265_s4 + $0x690] sm:$0xff] }
 0x2ea   : > { %3993 = vst.msk [vmem:[%s7265_s4 + $0x5d0] sm:$0xff] %vm1815_vm1, %v3139_v22  ;;  %3994 = vst.msk [vmem:[%s7265_s4 + $0x5d8] sm:$0xff] %vm1815_vm1, %v3140_v24  ;;  %v3276_v33 = vmul.f32 %v4001_v18, %v4965_v5  ;;  %v3277_v34 = vmul.f32 %v4002_v19, %v4965_v5  ;;  %v3143_v37 = vmax.f32 %v3079_v29, 0.0  ;;  %v3278_v39 = vmul.f32 %v4003_v25, %v4965_v5  ;;  %v4016_v19 = vld [vmem:[%s7265_s4 + $0x688] sm:$0xff]  ;;  %v4018_v21 = vld [vmem:[%s7265_s4 + $0x698] sm:$0xff] }
 0x2eb   : > { %3995 = vst.msk [vmem:[%s7265_s4 + $0x5e0] sm:$0xff] %vm1815_vm1, %v3141_v27  ;;  %3996 = vst.msk [vmem:[%s7265_s4 + $0x5e8] sm:$0xff] %vm1815_vm1, %v3142_v28  ;;  %v3144_v38 = vmax.f32 %v3080_v30, 0.0  ;;  %v3279_v40 = vmul.f32 %v4004_v26, %v4965_v5  ;;  %v3338_v41 = vadd.f32 %v3274_v31, %v5001_v23  ;;  %v3339_v42 = vadd.f32 %v3275_v32, %v5001_v23  ;;  %v4019_v27 = vld [vmem:[%s7265_s4 + $0x6a0] sm:$0xff]  ;;  %v4020_v28 = vld [vmem:[%s7265_s4 + $0x6a8] sm:$0xff] }
 0x2ec   : > { %v3340_v43 = vadd.f32 %v3276_v33, %v5001_v23  ;;  %v3341_v44 = vadd.f32 %v3277_v34, %v5001_v23  ;;  %3997 = vst.msk [vmem:[%s7265_s4 + $0x5f0] sm:$0xff] %vm1815_vm1, %v3143_v37  ;;  %v3342_v46 = vadd.f32 %v3278_v39, %v5001_v23  ;;  %v3280_v48 = vmul.f32 %v4005_v35, %v4965_v5  ;;  %v4021_v37 = vld [vmem:[%s7265_s4 + $0x6b0] sm:$0xff] }
 0x2ed   : > { %3998 = vst.msk [vmem:[%s7265_s4 + $0x5f8] sm:$0xff] %vm1815_vm1, %v3144_v38  ;;  %v3343_v47 = vadd.f32 %v3279_v40, %v5001_v23  ;;  %v3281_v49 = vmul.f32 %v4006_v36, %v4965_v5  ;;  %v3402_v53 = vmax.f32 %v3338_v41, 0.0  ;;  %v3403_v54 = vmax.f32 %v3339_v42, 0.0  ;;  %v4022_v38 = vld [vmem:[%s7265_s4 + $0x6b8] sm:$0xff] }
 0x2ee   : > { %v3404_v55 = vmax.f32 %v3340_v43, 0.0  ;;  %v3405_v56 = vmax.f32 %v3341_v44, 0.0  ;;  %v3406_v59 = vmax.f32 %v3342_v46, 0.0  ;;  %v3344_v61 = vadd.f32 %v3280_v48, %v5001_v23 }
 0x2ef   : > { %v3407_v60 = vmax.f32 %v3343_v47, 0.0  ;;  %v3345_v62 = vadd.f32 %v3281_v49, %v5001_v23  ;;  %4063 = vst.msk [vmem:[%s7265_s4 + $0x600] sm:$0xff] %vm1815_vm1, %v3402_v53  ;;  %4064 = vst.msk [vmem:[%s7265_s4 + $0x608] sm:$0xff] %vm1815_vm1, %v3403_v54  ;;  %v3282_v63 = vmul.f32 %v4007_v45, %v4965_v5  ;;  %v3283_v0 = vmul.f32 %v4008_v50, %v4965_v5  ;;  %v4023_v47 = vld [vmem:[%s7265_s4 + $0x6c0] sm:$0xff]  ;;  %v4025_v53 = vld [vmem:[%s7265_s4 + $0x6d0] sm:$0xff] }
 0x2f0   : > { %4065 = vst.msk [vmem:[%s7265_s4 + $0x610] sm:$0xff] %vm1815_vm1, %v3404_v55  ;;  %4066 = vst.msk [vmem:[%s7265_s4 + $0x618] sm:$0xff] %vm1815_vm1, %v3405_v56  ;;  %v3284_v1 = vmul.f32 %v4009_v51, %v4965_v5  ;;  %v3285_v2 = vmul.f32 %v4010_v52, %v4965_v5  ;;  %v3408_v6 = vmax.f32 %v3344_v61, 0.0  ;;  %v3286_v8 = vmul.f32 %v4011_v57, %v4965_v5  ;;  %v4024_v52 = vld [vmem:[%s7265_s4 + $0x6c8] sm:$0xff]  ;;  %v4026_v54 = vld [vmem:[%s7265_s4 + $0x6d8] sm:$0xff] }
 0x2f1   : > { %4067 = vst.msk [vmem:[%s7265_s4 + $0x620] sm:$0xff] %vm1815_vm1, %v3406_v59  ;;  %4068 = vst.msk [vmem:[%s7265_s4 + $0x628] sm:$0xff] %vm1815_vm1, %v3407_v60  ;;  %v3409_v7 = vmax.f32 %v3345_v62, 0.0  ;;  %v3287_v9 = vmul.f32 %v4012_v58, %v4965_v5  ;;  %v3346_v10 = vadd.f32 %v3282_v63, %v5001_v23  ;;  %v3347_v11 = vadd.f32 %v3283_v0, %v5001_v23  ;;  %v4027_v59 = vld [vmem:[%s7265_s4 + $0x6e0] sm:$0xff]  ;;  %v4028_v60 = vld [vmem:[%s7265_s4 + $0x6e8] sm:$0xff] }
 0x2f2   : > { %v3348_v12 = vadd.f32 %v3284_v1, %v5001_v23  ;;  %v3349_v13 = vadd.f32 %v3285_v2, %v5001_v23  ;;  %4069 = vst.msk [vmem:[%s7265_s4 + $0x630] sm:$0xff] %vm1815_vm1, %v3408_v6  ;;  %v3350_v15 = vadd.f32 %v3286_v8, %v5001_v23  ;;  %v3288_v17 = vmul.f32 %v4013_v3, %v4965_v5  ;;  %v4029_v6 = vld [vmem:[%s7265_s4 + $0x6f0] sm:$0xff] }
 0x2f3   : > { %4070 = vst.msk [vmem:[%s7265_s4 + $0x638] sm:$0xff] %vm1815_vm1, %v3409_v7  ;;  %v3351_v16 = vadd.f32 %v3287_v9, %v5001_v23  ;;  %v3289_v18 = vmul.f32 %v4014_v4, %v4965_v5  ;;  %v3410_v22 = vmax.f32 %v3346_v10, 0.0  ;;  %v3411_v24 = vmax.f32 %v3347_v11, 0.0  ;;  %v4030_v7 = vld [vmem:[%s7265_s4 + $0x6f8] sm:$0xff] }
 0x2f4   : > { %v3412_v25 = vmax.f32 %v3348_v12, 0.0  ;;  %v3413_v26 = vmax.f32 %v3349_v13, 0.0  ;;  %v3414_v29 = vmax.f32 %v3350_v15, 0.0  ;;  %v3352_v31 = vadd.f32 %v3288_v17, %v5001_v23 }
 0x2f5   : > { %v3415_v30 = vmax.f32 %v3351_v16, 0.0  ;;  %v3353_v32 = vadd.f32 %v3289_v18, %v5001_v23  ;;  %4071 = vst.msk [vmem:[%s7265_s4 + $0x640] sm:$0xff] %vm1815_vm1, %v3410_v22  ;;  %4072 = vst.msk [vmem:[%s7265_s4 + $0x648] sm:$0xff] %vm1815_vm1, %v3411_v24  ;;  %v3290_v33 = vmul.f32 %v4015_v14, %v4965_v5  ;;  %v3291_v34 = vmul.f32 %v4016_v19, %v4965_v5  ;;  %v4031_v16 = vld [vmem:[%s7265_s4 + $0x700] sm:$0xff]  ;;  %v4033_v22 = vld [vmem:[%s7265_s4 + $0x710] sm:$0xff] }
 0x2f6   : > { %4073 = vst.msk [vmem:[%s7265_s4 + $0x650] sm:$0xff] %vm1815_vm1, %v3412_v25  ;;  %4074 = vst.msk [vmem:[%s7265_s4 + $0x658] sm:$0xff] %vm1815_vm1, %v3413_v26  ;;  %v3292_v35 = vmul.f32 %v4017_v20, %v4965_v5  ;;  %v3293_v36 = vmul.f32 %v4018_v21, %v4965_v5  ;;  %v3416_v39 = vmax.f32 %v3352_v31, 0.0  ;;  %v3294_v41 = vmul.f32 %v4019_v27, %v4965_v5  ;;  %v4032_v21 = vld [vmem:[%s7265_s4 + $0x708] sm:$0xff]  ;;  %v4034_v24 = vld [vmem:[%s7265_s4 + $0x718] sm:$0xff] }
 0x2f7   : > { %4075 = vst.msk [vmem:[%s7265_s4 + $0x660] sm:$0xff] %vm1815_vm1, %v3414_v29  ;;  %4076 = vst.msk [vmem:[%s7265_s4 + $0x668] sm:$0xff] %vm1815_vm1, %v3415_v30  ;;  %v3417_v40 = vmax.f32 %v3353_v32, 0.0  ;;  %v3295_v42 = vmul.f32 %v4020_v28, %v4965_v5  ;;  %v3354_v43 = vadd.f32 %v3290_v33, %v5001_v23  ;;  %v3355_v44 = vadd.f32 %v3291_v34, %v5001_v23  ;;  %v4035_v29 = vld [vmem:[%s7265_s4 + $0x720] sm:$0xff]  ;;  %v4036_v30 = vld [vmem:[%s7265_s4 + $0x728] sm:$0xff] }
 0x2f8   : > { %v3356_v45 = vadd.f32 %v3292_v35, %v5001_v23  ;;  %v3357_v46 = vadd.f32 %v3293_v36, %v5001_v23  ;;  %4077 = vst.msk [vmem:[%s7265_s4 + $0x670] sm:$0xff] %vm1815_vm1, %v3416_v39  ;;  %v3358_v48 = vadd.f32 %v3294_v41, %v5001_v23  ;;  %v3296_v50 = vmul.f32 %v4021_v37, %v4965_v5  ;;  %v4037_v39 = vld [vmem:[%s7265_s4 + $0x730] sm:$0xff] }
 0x2f9   : > { %4078 = vst.msk [vmem:[%s7265_s4 + $0x678] sm:$0xff] %vm1815_vm1, %v3417_v40  ;;  %v3359_v49 = vadd.f32 %v3295_v42, %v5001_v23  ;;  %v3297_v51 = vmul.f32 %v4022_v38, %v4965_v5  ;;  %v3418_v55 = vmax.f32 %v3354_v43, 0.0  ;;  %v3419_v56 = vmax.f32 %v3355_v44, 0.0  ;;  %v4038_v40 = vld [vmem:[%s7265_s4 + $0x738] sm:$0xff] }
 0x2fa   : > { %v3420_v57 = vmax.f32 %v3356_v45, 0.0  ;;  %v3421_v58 = vmax.f32 %v3357_v46, 0.0  ;;  %v3422_v61 = vmax.f32 %v3358_v48, 0.0  ;;  %v3360_v63 = vadd.f32 %v3296_v50, %v5001_v23 }
 0x2fb   : > { %v3423_v62 = vmax.f32 %v3359_v49, 0.0  ;;  %v3361_v0 = vadd.f32 %v3297_v51, %v5001_v23  ;;  %4079 = vst.msk [vmem:[%s7265_s4 + $0x680] sm:$0xff] %vm1815_vm1, %v3418_v55  ;;  %4080 = vst.msk [vmem:[%s7265_s4 + $0x688] sm:$0xff] %vm1815_vm1, %v3419_v56  ;;  %v3298_v1 = vmul.f32 %v4023_v47, %v4965_v5  ;;  %v3299_v2 = vmul.f32 %v4024_v52, %v4965_v5  ;;  %v4039_v49 = vld [vmem:[%s7265_s4 + $0x740] sm:$0xff]  ;;  %v4041_v55 = vld [vmem:[%s7265_s4 + $0x750] sm:$0xff] }
 0x2fc   : > { %4081 = vst.msk [vmem:[%s7265_s4 + $0x690] sm:$0xff] %vm1815_vm1, %v3420_v57  ;;  %4082 = vst.msk [vmem:[%s7265_s4 + $0x698] sm:$0xff] %vm1815_vm1, %v3421_v58  ;;  %v3300_v3 = vmul.f32 %v4025_v53, %v4965_v5  ;;  %v3301_v4 = vmul.f32 %v4026_v54, %v4965_v5  ;;  %v3424_v8 = vmax.f32 %v3360_v63, 0.0  ;;  %v3302_v10 = vmul.f32 %v4027_v59, %v4965_v5  ;;  %v4040_v54 = vld [vmem:[%s7265_s4 + $0x748] sm:$0xff]  ;;  %v4042_v56 = vld [vmem:[%s7265_s4 + $0x758] sm:$0xff] }
 0x2fd   : > { %4083 = vst.msk [vmem:[%s7265_s4 + $0x6a0] sm:$0xff] %vm1815_vm1, %v3422_v61  ;;  %4084 = vst.msk [vmem:[%s7265_s4 + $0x6a8] sm:$0xff] %vm1815_vm1, %v3423_v62  ;;  %v3425_v9 = vmax.f32 %v3361_v0, 0.0  ;;  %v3303_v11 = vmul.f32 %v4028_v60, %v4965_v5  ;;  %v3362_v12 = vadd.f32 %v3298_v1, %v5001_v23  ;;  %v3363_v13 = vadd.f32 %v3299_v2, %v5001_v23  ;;  %v4043_v61 = vld [vmem:[%s7265_s4 + $0x760] sm:$0xff]  ;;  %v4044_v62 = vld [vmem:[%s7265_s4 + $0x768] sm:$0xff] }
 0x2fe   : > { %v3364_v14 = vadd.f32 %v3300_v3, %v5001_v23  ;;  %v3365_v15 = vadd.f32 %v3301_v4, %v5001_v23  ;;  %4085 = vst.msk [vmem:[%s7265_s4 + $0x6b0] sm:$0xff] %vm1815_vm1, %v3424_v8  ;;  %v3366_v17 = vadd.f32 %v3302_v10, %v5001_v23  ;;  %v3304_v19 = vmul.f32 %v4029_v6, %v4965_v5  ;;  %v4045_v8 = vld [vmem:[%s7265_s4 + $0x770] sm:$0xff] }
 0x2ff   : > { %4086 = vst.msk [vmem:[%s7265_s4 + $0x6b8] sm:$0xff] %vm1815_vm1, %v3425_v9  ;;  %v3367_v18 = vadd.f32 %v3303_v11, %v5001_v23  ;;  %v3305_v20 = vmul.f32 %v4030_v7, %v4965_v5  ;;  %v3426_v25 = vmax.f32 %v3362_v12, 0.0  ;;  %v3427_v26 = vmax.f32 %v3363_v13, 0.0  ;;  %v4046_v9 = vld [vmem:[%s7265_s4 + $0x778] sm:$0xff] }
 0x300   : > { %v3428_v27 = vmax.f32 %v3364_v14, 0.0  ;;  %v3429_v28 = vmax.f32 %v3365_v15, 0.0  ;;  %v3430_v31 = vmax.f32 %v3366_v17, 0.0  ;;  %v3368_v33 = vadd.f32 %v3304_v19, %v5001_v23 }
 0x301   : > { %v3431_v32 = vmax.f32 %v3367_v18, 0.0  ;;  %v3369_v34 = vadd.f32 %v3305_v20, %v5001_v23  ;;  %4087 = vst.msk [vmem:[%s7265_s4 + $0x6c0] sm:$0xff] %vm1815_vm1, %v3426_v25  ;;  %4088 = vst.msk [vmem:[%s7265_s4 + $0x6c8] sm:$0xff] %vm1815_vm1, %v3427_v26  ;;  %v3306_v35 = vmul.f32 %v4031_v16, %v4965_v5  ;;  %v3307_v36 = vmul.f32 %v4032_v21, %v4965_v5  ;;  %v4047_v18 = vld [vmem:[%s7265_s4 + $0x780] sm:$0xff]  ;;  %v4049_v25 = vld [vmem:[%s7265_s4 + $0x790] sm:$0xff] }
 0x302   : > { %4089 = vst.msk [vmem:[%s7265_s4 + $0x6d0] sm:$0xff] %vm1815_vm1, %v3428_v27  ;;  %4090 = vst.msk [vmem:[%s7265_s4 + $0x6d8] sm:$0xff] %vm1815_vm1, %v3429_v28  ;;  %v3308_v37 = vmul.f32 %v4033_v22, %v4965_v5  ;;  %v3309_v38 = vmul.f32 %v4034_v24, %v4965_v5  ;;  %v3432_v41 = vmax.f32 %v3368_v33, 0.0  ;;  %v3310_v43 = vmul.f32 %v4035_v29, %v4965_v5  ;;  %v4048_v24 = vld [vmem:[%s7265_s4 + $0x788] sm:$0xff]  ;;  %v4050_v26 = vld [vmem:[%s7265_s4 + $0x798] sm:$0xff] }
 0x303   : > { %4091 = vst.msk [vmem:[%s7265_s4 + $0x6e0] sm:$0xff] %vm1815_vm1, %v3430_v31  ;;  %4092 = vst.msk [vmem:[%s7265_s4 + $0x6e8] sm:$0xff] %vm1815_vm1, %v3431_v32  ;;  %v3433_v42 = vmax.f32 %v3369_v34, 0.0  ;;  %v3311_v44 = vmul.f32 %v4036_v30, %v4965_v5  ;;  %v3370_v45 = vadd.f32 %v3306_v35, %v5001_v23  ;;  %v3371_v46 = vadd.f32 %v3307_v36, %v5001_v23  ;;  %v4051_v31 = vld [vmem:[%s7265_s4 + $0x7a0] sm:$0xff]  ;;  %v4052_v32 = vld [vmem:[%s7265_s4 + $0x7a8] sm:$0xff] }
 0x304   : > { %v3372_v47 = vadd.f32 %v3308_v37, %v5001_v23  ;;  %v3373_v48 = vadd.f32 %v3309_v38, %v5001_v23  ;;  %4093 = vst.msk [vmem:[%s7265_s4 + $0x6f0] sm:$0xff] %vm1815_vm1, %v3432_v41  ;;  %v3374_v50 = vadd.f32 %v3310_v43, %v5001_v23  ;;  %v3312_v52 = vmul.f32 %v4037_v39, %v4965_v5  ;;  %v4053_v41 = vld [vmem:[%s7265_s4 + $0x7b0] sm:$0xff] }
 0x305   : > { %4094 = vst.msk [vmem:[%s7265_s4 + $0x6f8] sm:$0xff] %vm1815_vm1, %v3433_v42  ;;  %v3375_v51 = vadd.f32 %v3311_v44, %v5001_v23  ;;  %v3313_v53 = vmul.f32 %v4038_v40, %v4965_v5  ;;  %v3434_v57 = vmax.f32 %v3370_v45, 0.0  ;;  %v3435_v58 = vmax.f32 %v3371_v46, 0.0  ;;  %v4054_v42 = vld [vmem:[%s7265_s4 + $0x7b8] sm:$0xff] }
 0x306   : > { %v3436_v59 = vmax.f32 %v3372_v47, 0.0  ;;  %v3437_v60 = vmax.f32 %v3373_v48, 0.0  ;;  %v3438_v63 = vmax.f32 %v3374_v50, 0.0  ;;  %v3376_v1 = vadd.f32 %v3312_v52, %v5001_v23 }
 0x307   : > { %v3439_v0 = vmax.f32 %v3375_v51, 0.0  ;;  %v3377_v2 = vadd.f32 %v3313_v53, %v5001_v23  ;;  %4095 = vst.msk [vmem:[%s7265_s4 + $0x700] sm:$0xff] %vm1815_vm1, %v3434_v57  ;;  %4096 = vst.msk [vmem:[%s7265_s4 + $0x708] sm:$0xff] %vm1815_vm1, %v3435_v58  ;;  %v3314_v3 = vmul.f32 %v4039_v49, %v4965_v5  ;;  %v3315_v4 = vmul.f32 %v4040_v54, %v4965_v5  ;;  %v4055_v51 = vld [vmem:[%s7265_s4 + $0x7c0] sm:$0xff]  ;;  %v4057_v57 = vld [vmem:[%s7265_s4 + $0x7d0] sm:$0xff] }
 0x308   : > { %4097 = vst.msk [vmem:[%s7265_s4 + $0x710] sm:$0xff] %vm1815_vm1, %v3436_v59  ;;  %4098 = vst.msk [vmem:[%s7265_s4 + $0x718] sm:$0xff] %vm1815_vm1, %v3437_v60  ;;  %v3316_v6 = vmul.f32 %v4041_v55, %v4965_v5  ;;  %v3317_v7 = vmul.f32 %v4042_v56, %v4965_v5  ;;  %v3440_v10 = vmax.f32 %v3376_v1, 0.0  ;;  %v3318_v12 = vmul.f32 %v4043_v61, %v4965_v5  ;;  %v4056_v56 = vld [vmem:[%s7265_s4 + $0x7c8] sm:$0xff]  ;;  %v4058_v58 = vld [vmem:[%s7265_s4 + $0x7d8] sm:$0xff] }
 0x309   : > { %4099 = vst.msk [vmem:[%s7265_s4 + $0x720] sm:$0xff] %vm1815_vm1, %v3438_v63  ;;  %4100 = vst.msk [vmem:[%s7265_s4 + $0x728] sm:$0xff] %vm1815_vm1, %v3439_v0  ;;  %v3441_v11 = vmax.f32 %v3377_v2, 0.0  ;;  %v3319_v13 = vmul.f32 %v4044_v62, %v4965_v5  ;;  %v3378_v14 = vadd.f32 %v3314_v3, %v5001_v23  ;;  %v3379_v15 = vadd.f32 %v3315_v4, %v5001_v23  ;;  %v4059_v63 = vld [vmem:[%s7265_s4 + $0x7e0] sm:$0xff]  ;;  %v4060_v0 = vld [vmem:[%s7265_s4 + $0x7e8] sm:$0xff] }
 0x30a   : > { %v3380_v16 = vadd.f32 %v3316_v6, %v5001_v23  ;;  %v3381_v17 = vadd.f32 %v3317_v7, %v5001_v23  ;;  %4101 = vst.msk [vmem:[%s7265_s4 + $0x730] sm:$0xff] %vm1815_vm1, %v3440_v10  ;;  %v3382_v19 = vadd.f32 %v3318_v12, %v5001_v23  ;;  %v3320_v21 = vmul.f32 %v4045_v8, %v4965_v5  ;;  %v4061_v10 = vld [vmem:[%s7265_s4 + $0x7f0] sm:$0xff] }
 0x30b   : > { %4102 = vst.msk [vmem:[%s7265_s4 + $0x738] sm:$0xff] %vm1815_vm1, %v3441_v11  ;;  %v3383_v20 = vadd.f32 %v3319_v13, %v5001_v23  ;;  %v3321_v22 = vmul.f32 %v4046_v9, %v4965_v5  ;;  %v3442_v27 = vmax.f32 %v3378_v14, 0.0  ;;  %v3443_v28 = vmax.f32 %v3379_v15, 0.0  ;;  %v4062_v11 = vld [vmem:[%s7265_s4 + $0x7f8] sm:$0xff] }
 0x30c   : > { %v3444_v29 = vmax.f32 %v3380_v16, 0.0  ;;  %v3445_v30 = vmax.f32 %v3381_v17, 0.0  ;;  %v3446_v33 = vmax.f32 %v3382_v19, 0.0  ;;  %v3384_v35 = vadd.f32 %v3320_v21, %v5001_v23 }
 0x30d   : > { %v3447_v34 = vmax.f32 %v3383_v20, 0.0  ;;  %v3385_v36 = vadd.f32 %v3321_v22, %v5001_v23  ;;  %4103 = vst.msk [vmem:[%s7265_s4 + $0x740] sm:$0xff] %vm1815_vm1, %v3442_v27  ;;  %4104 = vst.msk [vmem:[%s7265_s4 + $0x748] sm:$0xff] %vm1815_vm1, %v3443_v28  ;;  %v3322_v37 = vmul.f32 %v4047_v18, %v4965_v5  ;;  %v3323_v38 = vmul.f32 %v4048_v24, %v4965_v5 }
 0x30e   : > { %4105 = vst.msk [vmem:[%s7265_s4 + $0x750] sm:$0xff] %vm1815_vm1, %v3444_v29  ;;  %4106 = vst.msk [vmem:[%s7265_s4 + $0x758] sm:$0xff] %vm1815_vm1, %v3445_v30  ;;  %v3324_v39 = vmul.f32 %v4049_v25, %v4965_v5  ;;  %v3325_v40 = vmul.f32 %v4050_v26, %v4965_v5  ;;  %v3448_v43 = vmax.f32 %v3384_v35, 0.0  ;;  %v3326_v45 = vmul.f32 %v4051_v31, %v4965_v5 }
 0x30f   : > { %4107 = vst.msk [vmem:[%s7265_s4 + $0x760] sm:$0xff] %vm1815_vm1, %v3446_v33  ;;  %4108 = vst.msk [vmem:[%s7265_s4 + $0x768] sm:$0xff] %vm1815_vm1, %v3447_v34  ;;  %v3449_v44 = vmax.f32 %v3385_v36, 0.0  ;;  %v3327_v46 = vmul.f32 %v4052_v32, %v4965_v5  ;;  %v3386_v47 = vadd.f32 %v3322_v37, %v5001_v23  ;;  %v3387_v48 = vadd.f32 %v3323_v38, %v5001_v23 }
 0x310   : > { %v3388_v49 = vadd.f32 %v3324_v39, %v5001_v23  ;;  %v3389_v50 = vadd.f32 %v3325_v40, %v5001_v23  ;;  %4109 = vst.msk [vmem:[%s7265_s4 + $0x770] sm:$0xff] %vm1815_vm1, %v3448_v43  ;;  %v3390_v52 = vadd.f32 %v3326_v45, %v5001_v23  ;;  %v3328_v54 = vmul.f32 %v4053_v41, %v4965_v5 }
 0x311   : > { %4110 = vst.msk [vmem:[%s7265_s4 + $0x778] sm:$0xff] %vm1815_vm1, %v3449_v44  ;;  %v3391_v53 = vadd.f32 %v3327_v46, %v5001_v23  ;;  %v3329_v55 = vmul.f32 %v4054_v42, %v4965_v5  ;;  %v3450_v59 = vmax.f32 %v3386_v47, 0.0  ;;  %v3451_v60 = vmax.f32 %v3387_v48, 0.0 }
 0x312   : > { %v3452_v61 = vmax.f32 %v3388_v49, 0.0  ;;  %v3453_v62 = vmax.f32 %v3389_v50, 0.0  ;;  %v3454_v1 = vmax.f32 %v3390_v52, 0.0  ;;  %v3392_v3 = vadd.f32 %v3328_v54, %v5001_v23 }
 0x313   : > { %v3455_v2 = vmax.f32 %v3391_v53, 0.0  ;;  %v3393_v4 = vadd.f32 %v3329_v55, %v5001_v23  ;;  %4111 = vst.msk [vmem:[%s7265_s4 + $0x780] sm:$0xff] %vm1815_vm1, %v3450_v59  ;;  %4112 = vst.msk [vmem:[%s7265_s4 + $0x788] sm:$0xff] %vm1815_vm1, %v3451_v60  ;;  %v3330_v6 = vmul.f32 %v4055_v51, %v4965_v5  ;;  %v3331_v7 = vmul.f32 %v4056_v56, %v4965_v5 }
 0x314   : > { %4113 = vst.msk [vmem:[%s7265_s4 + $0x790] sm:$0xff] %vm1815_vm1, %v3452_v61  ;;  %4114 = vst.msk [vmem:[%s7265_s4 + $0x798] sm:$0xff] %vm1815_vm1, %v3453_v62  ;;  %v3332_v8 = vmul.f32 %v4057_v57, %v4965_v5  ;;  %v3333_v9 = vmul.f32 %v4058_v58, %v4965_v5  ;;  %v3456_v12 = vmax.f32 %v3392_v3, 0.0  ;;  %v3334_v14 = vmul.f32 %v4059_v63, %v4965_v5 }
 0x315   : > { %4115 = vst.msk [vmem:[%s7265_s4 + $0x7a0] sm:$0xff] %vm1815_vm1, %v3454_v1  ;;  %4116 = vst.msk [vmem:[%s7265_s4 + $0x7a8] sm:$0xff] %vm1815_vm1, %v3455_v2  ;;  %v3457_v13 = vmax.f32 %v3393_v4, 0.0  ;;  %v3335_v15 = vmul.f32 %v4060_v0, %v4965_v5  ;;  %v3394_v16 = vadd.f32 %v3330_v6, %v5001_v23  ;;  %v3395_v17 = vadd.f32 %v3331_v7, %v5001_v23 }
 0x316   : > { %v3396_v18 = vadd.f32 %v3332_v8, %v5001_v23  ;;  %v3397_v19 = vadd.f32 %v3333_v9, %v5001_v23  ;;  %4117 = vst.msk [vmem:[%s7265_s4 + $0x7b0] sm:$0xff] %vm1815_vm1, %v3456_v12  ;;  %v3398_v20 = vadd.f32 %v3334_v14, %v5001_v23  ;;  %v3336_v22 = vmul.f32 %v4061_v10, %v4965_v5 }
 0x317   : > { %4118 = vst.msk [vmem:[%s7265_s4 + $0x7b8] sm:$0xff] %vm1815_vm1, %v3457_v13  ;;  %v3399_v21 = vadd.f32 %v3335_v15, %v5001_v23  ;;  %v3337_v24 = vmul.f32 %v4062_v11, %v4965_v5  ;;  %v3458_v25 = vmax.f32 %v3394_v16, 0.0  ;;  %v3459_v26 = vmax.f32 %v3395_v17, 0.0 }
 0x318   : > { %v3460_v27 = vmax.f32 %v3396_v18, 0.0  ;;  %v3461_v28 = vmax.f32 %v3397_v19, 0.0  ;;  %v3462_v29 = vmax.f32 %v3398_v20, 0.0  ;;  %v3400_v31 = vadd.f32 %v3336_v22, %v5001_v23 }
 0x319   : > { %v3463_v30 = vmax.f32 %v3399_v21, 0.0  ;;  %v3401_v32 = vadd.f32 %v3337_v24, %v5001_v23  ;;  %4119 = vst.msk [vmem:[%s7265_s4 + $0x7c0] sm:$0xff] %vm1815_vm1, %v3458_v25  ;;  %4120 = vst.msk [vmem:[%s7265_s4 + $0x7c8] sm:$0xff] %vm1815_vm1, %v3459_v26 }
 0x31a   : > { %4121 = vst.msk [vmem:[%s7265_s4 + $0x7d0] sm:$0xff] %vm1815_vm1, %v3460_v27  ;;  %4122 = vst.msk [vmem:[%s7265_s4 + $0x7d8] sm:$0xff] %vm1815_vm1, %v3461_v28  ;;  %v3464_v5 = vmax.f32 %v3400_v31, 0.0 }
 0x31b   : > { %4123 = vst.msk [vmem:[%s7265_s4 + $0x7e0] sm:$0xff] %vm1815_vm1, %v3462_v29  ;;  %4124 = vst.msk [vmem:[%s7265_s4 + $0x7e8] sm:$0xff] %vm1815_vm1, %v3463_v30  ;;  %v3465_v23 = vmax.f32 %v3401_v32, 0.0 }
 0x31c   : > { %4125 = vst.msk [vmem:[%s7265_s4 + $0x7f0] sm:$0xff] %vm1815_vm1, %v3464_v5 }
 0x31d   : > { %4126 = vst.msk [vmem:[%s7265_s4 + $0x7f8] sm:$0xff] %vm1815_vm1, %v3465_v23 }
 0x31e PF: > { %s14_s15 = sadd.s32 1, %s4437_s15  }
 0x31f   : > { %p11_p6 = scmp.ge.s32.totalorder %s14_s15, 6  }
 0x321   :  { %13 = sbr.rel (!%p11_p6) target bundleno = 1 (0x1), region = 77 }

// kernel: generator_forward.9
= control target key start
LH: loop header
LB: loop body
LE: loop exit
PB: predicated region body
PF: predicated region fallthrough
CT: control target
= control target key end

     0   :  { %s4730_s9 = smov 0   ;;  %s5324_s0 = inlined_call_operand.vmem [shape: bf16[4,2048,256], index: 0, kind: input, shape index: {}]   ;;  %s5325_s1 = inlined_call_operand.vmem [shape: bf16[4,256,128], index: 1, kind: input, shape index: {}]   ;;  %s5326_s2 = inlined_call_operand.vmem [shape: f32[4,2048,128], index: 2, kind: output, shape index: {}]  }
   0x1 LB: > { %s3465_s10 = sadd.s32 4294967295, %s4712_s9   ;;  %p3469_p0 = scmp.ge.s32.totalorder %s4712_s9, 1  ;;  %s4712_s9 = sphi %s4730_s9, %s12_s9  }
   0x2   : > { %p122_p1 = scmp.lt.s32.totalorder %s4712_s9, 5 }
   0x4   : > { %p123_p2 = pnand %p3469_p0, %p122_p1 }
   0x5   : > { %p149_p3 = scmp.lt.s32.totalorder (!%p123_p2), %s3465_s10, 3  ;;  %v4714_v0 = vmov (!%p123_p2), 0  }
   0x6   : > { %126 = sbr.rel (%p123_p2) target bundleno = 811 (0x32b), region = 28  ;;  %1829 = vmatprep.subr.bf16.mxu0 (!%p123_p2), %v4714_v0  ;;  %3753 = vmatprep.subr.bf16.mxu1 (!%p123_p2), %v4714_v0 }
   0xd   : > { %s5328_s10 = smov (!%p149_p3, %s3465_s10), 3 }
   0xe   : > { %s3751_s11 = sshll.u32 %s5328_s10, 7  ;;  %s3750_s15 = sshll.u32 %s5328_s10, 11 }
   0xf   : > { %s4746_s14 = scalar_lea.vmem %s5325_s1, %s3751_s11  ;;  %s4765_s18 = scalar_lea.vmem %s5324_s0, %s3750_s15 }
  0x10   : > { %v3794_v1 = vld [vmem:[%s4746_s14] sm:$0xff]   ;;  %v3795_v2 = vld [vmem:[%s4746_s14 + $0x8] sm:$0xff]   ;;  %v3796_v3 = vld [vmem:[%s4746_s14 + $0x10] sm:$0xff]   ;;  %s4921_s21 = scalar_lea.vmem %s5326_s2, %s3750_s15 }
  0x11   : > { %1830 = vmatpush1.bf16.msra.mxu0 %v3794_v1  ;;  %3769 = vmatpush1.bf16.msra.mxu1 %v3794_v1  ;;  %v3797_v4 = vld [vmem:[%s4746_s14 + $0x18] sm:$0xff]   ;;  %v3798_v5 = vld [vmem:[%s4746_s14 + $0x20] sm:$0xff]   ;;  %v3799_v7 = vld [vmem:[%s4746_s14 + $0x28] sm:$0xff]  }
  0x12   : > { %1831 = vmatprep.subr.bf16.mxu0 %v4714_v0  ;;  %3754 = vmatprep.subr.bf16.mxu1 %v4714_v0  ;;  %v3812_v6 = vld [vmem:[%s4765_s18 + $0x4] ss:$8 sps:$4 sm:$0xff]   ;;  %v3800_v9 = vld [vmem:[%s4746_s14 + $0x30] sm:$0xff]   ;;  %v3801_v10 = vld [vmem:[%s4746_s14 + $0x38] sm:$0xff]  }
  0x13   : > { %v3815_v8 = vld [vmem:[%s4765_s18 + $0x404] ss:$8 sps:$4 sm:$0xff]   ;;  %1861 = vmatprep.mubr.bf16.mxu0 %v3812_v6  ;;  %v3804_v13 = vld [vmem:[%s4746_s14 + $0x50] sm:$0xff]   ;;  %v3805_v14 = vld [vmem:[%s4746_s14 + $0x58] sm:$0xff]  }
  0x14   : > { %2373 = vmatprep.mubr.bf16.mxu1 %v3815_v8  ;;  %v3802_v11 = vld [vmem:[%s4746_s14 + $0x40] sm:$0xff]   ;;  %v3803_v12 = vld [vmem:[%s4746_s14 + $0x48] sm:$0xff]   ;;  %v3808_v17 = vld [vmem:[%s4746_s14 + $0x70] sm:$0xff]  }
  0x15   : > { %1832 = vmatpush1.bf16.msra.mxu0 %v3795_v2  ;;  %3770 = vmatpush1.bf16.msra.mxu1 %v3795_v2  ;;  %v3806_v15 = vld [vmem:[%s4746_s14 + $0x60] sm:$0xff]   ;;  %v3807_v16 = vld [vmem:[%s4746_s14 + $0x68] sm:$0xff]   ;;  %v3809_v18 = vld [vmem:[%s4746_s14 + $0x78] sm:$0xff]  }
  0x16   : > { %1833 = vmatprep.subr.bf16.mxu0 %v4714_v0  ;;  %3755 = vmatprep.subr.bf16.mxu1 %v4714_v0  ;;  %v3810_v19 = vld [vmem:[%s4765_s18] ss:$8 sps:$4 sm:$0xff]   ;;  %v3816_v21 = vld [vmem:[%s4765_s18 + $0x14] ss:$8 sps:$4 sm:$0xff]   ;;  %v3820_v23 = vld [vmem:[%s4765_s18 + $0x10] ss:$8 sps:$4 sm:$0xff]  }
  0x17   : > { %v3813_v20 = vld [vmem:[%s4765_s18 + $0x400] ss:$8 sps:$4 sm:$0xff]   ;;  %v3818_v22 = vld [vmem:[%s4765_s18 + $0x414] ss:$8 sps:$4 sm:$0xff]   ;;  %v3821_v24 = vld [vmem:[%s4765_s18 + $0x410] ss:$8 sps:$4 sm:$0xff]  }
  0x18   : > { %v3822_v25 = vld [vmem:[%s4765_s18 + $0x24] ss:$8 sps:$4 sm:$0xff]   ;;  %v3826_v27 = vld [vmem:[%s4765_s18 + $0x20] ss:$8 sps:$4 sm:$0xff]   ;;  %v3828_v29 = vld [vmem:[%s4765_s18 + $0x34] ss:$8 sps:$4 sm:$0xff]  }
  0x19   : > { %1834 = vmatpush1.bf16.msra.mxu0 %v3796_v3  ;;  %3771 = vmatpush1.bf16.msra.mxu1 %v3796_v3  ;;  %v3824_v26 = vld [vmem:[%s4765_s18 + $0x424] ss:$8 sps:$4 sm:$0xff]   ;;  %v3827_v28 = vld [vmem:[%s4765_s18 + $0x420] ss:$8 sps:$4 sm:$0xff]   ;;  %v3830_v30 = vld [vmem:[%s4765_s18 + $0x434] ss:$8 sps:$4 sm:$0xff]  }
  0x1a   : > { %1835 = vmatprep.subr.bf16.mxu0 %v4714_v0  ;;  %3756 = vmatprep.subr.bf16.mxu1 %v4714_v0  ;;  %v3832_v31 = vld [vmem:[%s4765_s18 + $0x30] ss:$8 sps:$4 sm:$0xff]   ;;  %v3834_v33 = vld [vmem:[%s4765_s18 + $0x44] ss:$8 sps:$4 sm:$0xff]   ;;  %v3838_v35 = vld [vmem:[%s4765_s18 + $0x40] ss:$8 sps:$4 sm:$0xff]  }
  0x1b   : > { %v3833_v32 = vld [vmem:[%s4765_s18 + $0x430] ss:$8 sps:$4 sm:$0xff]   ;;  %v3836_v34 = vld [vmem:[%s4765_s18 + $0x444] ss:$8 sps:$4 sm:$0xff]   ;;  %v3839_v36 = vld [vmem:[%s4765_s18 + $0x440] ss:$8 sps:$4 sm:$0xff]  }
  0x1c   : > { %v3840_v37 = vld [vmem:[%s4765_s18 + $0x54] ss:$8 sps:$4 sm:$0xff]   ;;  %v3844_v39 = vld [vmem:[%s4765_s18 + $0x50] ss:$8 sps:$4 sm:$0xff]   ;;  %v3846_v41 = vld [vmem:[%s4765_s18 + $0x64] ss:$8 sps:$4 sm:$0xff]  }
  0x1d   : > { %1836 = vmatpush1.bf16.msra.mxu0 %v3797_v4  ;;  %3772 = vmatpush1.bf16.msra.mxu1 %v3797_v4  ;;  %v3842_v38 = vld [vmem:[%s4765_s18 + $0x454] ss:$8 sps:$4 sm:$0xff]   ;;  %v3845_v40 = vld [vmem:[%s4765_s18 + $0x450] ss:$8 sps:$4 sm:$0xff]   ;;  %v3848_v42 = vld [vmem:[%s4765_s18 + $0x464] ss:$8 sps:$4 sm:$0xff]  }
  0x1e   : > { %1837 = vmatprep.subr.bf16.mxu0 %v4714_v0  ;;  %3757 = vmatprep.subr.bf16.mxu1 %v4714_v0  ;;  %v3850_v43 = vld [vmem:[%s4765_s18 + $0x60] ss:$8 sps:$4 sm:$0xff]   ;;  %v3852_v45 = vld [vmem:[%s4765_s18 + $0x74] ss:$8 sps:$4 sm:$0xff]   ;;  %v3856_v47 = vld [vmem:[%s4765_s18 + $0x70] ss:$8 sps:$4 sm:$0xff]  }
  0x1f   : > { %v3851_v44 = vld [vmem:[%s4765_s18 + $0x460] ss:$8 sps:$4 sm:$0xff]   ;;  %v3854_v46 = vld [vmem:[%s4765_s18 + $0x474] ss:$8 sps:$4 sm:$0xff]   ;;  %v3857_v48 = vld [vmem:[%s4765_s18 + $0x470] ss:$8 sps:$4 sm:$0xff]  }
  0x20   : > { %v3858_v49 = vld [vmem:[%s4765_s18 + $0x84] ss:$8 sps:$4 sm:$0xff]   ;;  %v3862_v51 = vld [vmem:[%s4765_s18 + $0x80] ss:$8 sps:$4 sm:$0xff]   ;;  %v3864_v53 = vld [vmem:[%s4765_s18 + $0x94] ss:$8 sps:$4 sm:$0xff]  }
  0x21   : > { %1838 = vmatpush1.bf16.msra.mxu0 %v3798_v5  ;;  %3773 = vmatpush1.bf16.msra.mxu1 %v3798_v5  ;;  %v3860_v50 = vld [vmem:[%s4765_s18 + $0x484] ss:$8 sps:$4 sm:$0xff]   ;;  %v3863_v52 = vld [vmem:[%s4765_s18 + $0x480] ss:$8 sps:$4 sm:$0xff]   ;;  %v3866_v54 = vld [vmem:[%s4765_s18 + $0x494] ss:$8 sps:$4 sm:$0xff]  }
  0x22   : > { %1839 = vmatprep.subr.bf16.mxu0 %v4714_v0  ;;  %3758 = vmatprep.subr.bf16.mxu1 %v4714_v0  ;;  %v3868_v55 = vld [vmem:[%s4765_s18 + $0x90] ss:$8 sps:$4 sm:$0xff]   ;;  %v3870_v57 = vld [vmem:[%s4765_s18 + $0xa4] ss:$8 sps:$4 sm:$0xff]   ;;  %v3874_v59 = vld [vmem:[%s4765_s18 + $0xa0] ss:$8 sps:$4 sm:$0xff]  }
  0x23   : > { %v3869_v56 = vld [vmem:[%s4765_s18 + $0x490] ss:$8 sps:$4 sm:$0xff]   ;;  %v3872_v58 = vld [vmem:[%s4765_s18 + $0x4a4] ss:$8 sps:$4 sm:$0xff]   ;;  %v3875_v60 = vld [vmem:[%s4765_s18 + $0x4a0] ss:$8 sps:$4 sm:$0xff]  }
  0x24   : > { %v3876_v61 = vld [vmem:[%s4765_s18 + $0xb4] ss:$8 sps:$4 sm:$0xff]   ;;  %v3880_v63 = vld [vmem:[%s4765_s18 + $0xb0] ss:$8 sps:$4 sm:$0xff]   ;;  %v3882_v1 = vld [vmem:[%s4765_s18 + $0xc4] ss:$8 sps:$4 sm:$0xff]  }
  0x25   : > { %1840 = vmatpush1.bf16.msra.mxu0 %v3799_v7  ;;  %3774 = vmatpush1.bf16.msra.mxu1 %v3799_v7  ;;  %v3878_v62 = vld [vmem:[%s4765_s18 + $0x4b4] ss:$8 sps:$4 sm:$0xff]   ;;  %v3884_v2 = vld [vmem:[%s4765_s18 + $0x4c4] ss:$8 sps:$4 sm:$0xff]   ;;  %v3886_v3 = vld [vmem:[%s4765_s18 + $0xc0] ss:$8 sps:$4 sm:$0xff]  }
  0x26   : > { %1841 = vmatprep.subr.bf16.mxu0 %v4714_v0  ;;  %3759 = vmatprep.subr.bf16.mxu1 %v4714_v0  ;;  %v3887_v4 = vld [vmem:[%s4765_s18 + $0x4c0] ss:$8 sps:$4 sm:$0xff]   ;;  %v3888_v5 = vld [vmem:[%s4765_s18 + $0xd4] ss:$8 sps:$4 sm:$0xff]   ;;  %v3892_v7 = vld [vmem:[%s4765_s18 + $0xd0] ss:$8 sps:$4 sm:$0xff]  }
  0x27   : > { %v3890_v6 = vld [vmem:[%s4765_s18 + $0x4d4] ss:$8 sps:$4 sm:$0xff]   ;;  %v3893_v8 = vld [vmem:[%s4765_s18 + $0x4d0] ss:$8 sps:$4 sm:$0xff]  }
  0x29   : > { %1842 = vmatpush1.bf16.msra.mxu0 %v3800_v9  ;;  %3775 = vmatpush1.bf16.msra.mxu1 %v3800_v9  ;;  %v3894_v9 = vld [vmem:[%s4765_s18 + $0xe4] ss:$8 sps:$4 sm:$0xff]  }
  0x2a   : > { %1843 = vmatprep.subr.bf16.mxu0 %v4714_v0  ;;  %3760 = vmatprep.subr.bf16.mxu1 %v4714_v0 }
  0x2d   : > { %1844 = vmatpush1.bf16.msra.mxu0 %v3801_v10  ;;  %3776 = vmatpush1.bf16.msra.mxu1 %v3801_v10  ;;  %v3896_v10 = vld [vmem:[%s4765_s18 + $0x4e4] ss:$8 sps:$4 sm:$0xff]  }
  0x2e   : > { %1845 = vmatprep.subr.bf16.mxu0 %v4714_v0  ;;  %3761 = vmatprep.subr.bf16.mxu1 %v4714_v0 }
  0x31   : > { %1846 = vmatpush1.bf16.msra.mxu0 %v3802_v11  ;;  %3777 = vmatpush1.bf16.msra.mxu1 %v3802_v11  ;;  %v3898_v11 = vld [vmem:[%s4765_s18 + $0xe0] ss:$8 sps:$4 sm:$0xff]  }
  0x32   : > { %1847 = vmatprep.subr.bf16.mxu0 %v4714_v0  ;;  %3762 = vmatprep.subr.bf16.mxu1 %v4714_v0 }
  0x35   : > { %1848 = vmatpush1.bf16.msra.mxu0 %v3803_v12  ;;  %3778 = vmatpush1.bf16.msra.mxu1 %v3803_v12  ;;  %v3899_v12 = vld [vmem:[%s4765_s18 + $0x4e0] ss:$8 sps:$4 sm:$0xff]  }
  0x36   : > { %1849 = vmatprep.subr.bf16.mxu0 %v4714_v0  ;;  %3763 = vmatprep.subr.bf16.mxu1 %v4714_v0 }
  0x39   : > { %1850 = vmatpush1.bf16.msra.mxu0 %v3804_v13  ;;  %3779 = vmatpush1.bf16.msra.mxu1 %v3804_v13  ;;  %v3900_v13 = vld [vmem:[%s4765_s18 + $0xf4] ss:$8 sps:$4 sm:$0xff]  }
  0x3a   : > { %1851 = vmatprep.subr.bf16.mxu0 %v4714_v0  ;;  %3764 = vmatprep.subr.bf16.mxu1 %v4714_v0 }
  0x3d   : > { %1852 = vmatpush1.bf16.msra.mxu0 %v3805_v14  ;;  %3780 = vmatpush1.bf16.msra.mxu1 %v3805_v14  ;;  %v3902_v14 = vld [vmem:[%s4765_s18 + $0x4f4] ss:$8 sps:$4 sm:$0xff]  }
  0x3e   : > { %1853 = vmatprep.subr.bf16.mxu0 %v4714_v0  ;;  %3765 = vmatprep.subr.bf16.mxu1 %v4714_v0 }
  0x41   : > { %1854 = vmatpush1.bf16.msra.mxu0 %v3806_v15  ;;  %3781 = vmatpush1.bf16.msra.mxu1 %v3806_v15  ;;  %v3904_v15 = vld [vmem:[%s4765_s18 + $0xf0] ss:$8 sps:$4 sm:$0xff]  }
  0x42   : > { %1855 = vmatprep.subr.bf16.mxu0 %v4714_v0  ;;  %3766 = vmatprep.subr.bf16.mxu1 %v4714_v0 }
  0x45   : > { %1856 = vmatpush1.bf16.msra.mxu0 %v3807_v16  ;;  %3782 = vmatpush1.bf16.msra.mxu1 %v3807_v16  ;;  %v3905_v16 = vld [vmem:[%s4765_s18 + $0x4f0] ss:$8 sps:$4 sm:$0xff]  }
  0x46   : > { %1857 = vmatprep.subr.bf16.mxu0 %v4714_v0  ;;  %3767 = vmatprep.subr.bf16.mxu1 %v4714_v0 }
  0x49   : > { %1858 = vmatpush1.bf16.msra.mxu0 %v3808_v17  ;;  %3783 = vmatpush1.bf16.msra.mxu1 %v3808_v17  ;;  %v3906_v17 = vld [vmem:[%s4765_s18 + $0x104] ss:$8 sps:$4 sm:$0xff]  }
  0x4a   : > { %1859 = vmatprep.subr.bf16.mxu0 %v4714_v0  ;;  %3768 = vmatprep.subr.bf16.mxu1 %v4714_v0  ;;  %v3881_v0 = vld [vmem:[%s4765_s18 + $0x4b0] ss:$8 sps:$4 sm:$0xff]  }
  0x4d   : > { %1860 = vmatpush1.bf16.msra.mxu0 %v3809_v18  ;;  %3784 = vmatpush1.bf16.msra.mxu1 %v3809_v18  ;;  %v3908_v18 = vld [vmem:[%s4765_s18 + $0x504] ss:$8 sps:$4 sm:$0xff]  }
  0x50   : > { %1862 = vmatmul.mubr.bf16.vlgmr.msra.gmra.mrb[0].mxu0 %v3810_v19  ;;  %2374 = vmatmul.mubr.bf16.vlgmr.msra.gmra.mrb[0].mxu1 %v3813_v20  ;;  %v3910_v19 = vld [vmem:[%s4765_s18 + $0x100] ss:$8 sps:$4 sm:$0xff]  }
  0x51   : > { %1869 = vmatprep.mubr.bf16.mxu0 %v3816_v21  ;;  %2381 = vmatprep.mubr.bf16.mxu1 %v3818_v22  ;;  %v3911_v20 = vld [vmem:[%s4765_s18 + $0x500] ss:$8 sps:$4 sm:$0xff]   ;;  %v3912_v21 = vld [vmem:[%s4765_s18 + $0x114] ss:$8 sps:$4 sm:$0xff]  }
  0x52   : > { %v3914_v22 = vld [vmem:[%s4765_s18 + $0x514] ss:$8 sps:$4 sm:$0xff]  }
  0x58   : > { %1870 = vmatmul.mubr.bf16.gmra.mrb[4].mxu0 %v3820_v23  ;;  %2382 = vmatmul.mubr.bf16.gmra.mrb[4].mxu1 %v3821_v24  ;;  %v3916_v23 = vld [vmem:[%s4765_s18 + $0x110] ss:$8 sps:$4 sm:$0xff]  }
  0x59   : > { %1877 = vmatprep.mubr.bf16.mxu0 %v3822_v25  ;;  %2389 = vmatprep.mubr.bf16.mxu1 %v3824_v26  ;;  %v3917_v24 = vld [vmem:[%s4765_s18 + $0x510] ss:$8 sps:$4 sm:$0xff]   ;;  %v3918_v25 = vld [vmem:[%s4765_s18 + $0x124] ss:$8 sps:$4 sm:$0xff]  }
  0x5a   : > { %v3920_v26 = vld [vmem:[%s4765_s18 + $0x524] ss:$8 sps:$4 sm:$0xff]  }
  0x60   : > { %1878 = vmatmul.mubr.bf16.gmra.mrb[8].mxu0 %v3826_v27  ;;  %2390 = vmatmul.mubr.bf16.gmra.mrb[8].mxu1 %v3827_v28  ;;  %v3922_v27 = vld [vmem:[%s4765_s18 + $0x120] ss:$8 sps:$4 sm:$0xff]  }
  0x61   : > { %1885 = vmatprep.mubr.bf16.mxu0 %v3828_v29  ;;  %2397 = vmatprep.mubr.bf16.mxu1 %v3830_v30  ;;  %v3923_v28 = vld [vmem:[%s4765_s18 + $0x520] ss:$8 sps:$4 sm:$0xff]   ;;  %v3924_v29 = vld [vmem:[%s4765_s18 + $0x134] ss:$8 sps:$4 sm:$0xff]  }
  0x62   : > { %v3926_v30 = vld [vmem:[%s4765_s18 + $0x534] ss:$8 sps:$4 sm:$0xff]  }
  0x68   : > { %1886 = vmatmul.mubr.bf16.gmra.mrb[12].mxu0 %v3832_v31  ;;  %2398 = vmatmul.mubr.bf16.gmra.mrb[12].mxu1 %v3833_v32  ;;  %v3928_v31 = vld [vmem:[%s4765_s18 + $0x130] ss:$8 sps:$4 sm:$0xff]  }
  0x69   : > { %1893 = vmatprep.mubr.bf16.mxu0 %v3834_v33  ;;  %2405 = vmatprep.mubr.bf16.mxu1 %v3836_v34  ;;  %v3929_v32 = vld [vmem:[%s4765_s18 + $0x530] ss:$8 sps:$4 sm:$0xff]   ;;  %v3930_v33 = vld [vmem:[%s4765_s18 + $0x144] ss:$8 sps:$4 sm:$0xff]  }
  0x6a   : > { %v3932_v34 = vld [vmem:[%s4765_s18 + $0x544] ss:$8 sps:$4 sm:$0xff]  }
  0x70   : > { %1894 = vmatmul.mubr.bf16.gmra.mrb[16].mxu0 %v3838_v35  ;;  %2406 = vmatmul.mubr.bf16.gmra.mrb[16].mxu1 %v3839_v36  ;;  %v3934_v35 = vld [vmem:[%s4765_s18 + $0x140] ss:$8 sps:$4 sm:$0xff]  }
  0x71   : > { %1901 = vmatprep.mubr.bf16.mxu0 %v3840_v37  ;;  %2413 = vmatprep.mubr.bf16.mxu1 %v3842_v38  ;;  %v3935_v36 = vld [vmem:[%s4765_s18 + $0x540] ss:$8 sps:$4 sm:$0xff]   ;;  %v3936_v37 = vld [vmem:[%s4765_s18 + $0x154] ss:$8 sps:$4 sm:$0xff]  }
  0x72   : > { %v3938_v38 = vld [vmem:[%s4765_s18 + $0x554] ss:$8 sps:$4 sm:$0xff]  }
  0x78   : > { %1902 = vmatmul.mubr.bf16.gmra.mrb[20].mxu0 %v3844_v39  ;;  %2414 = vmatmul.mubr.bf16.gmra.mrb[20].mxu1 %v3845_v40  ;;  %v3940_v39 = vld [vmem:[%s4765_s18 + $0x150] ss:$8 sps:$4 sm:$0xff]  }
  0x79   : > { %1909 = vmatprep.mubr.bf16.mxu0 %v3846_v41  ;;  %2421 = vmatprep.mubr.bf16.mxu1 %v3848_v42  ;;  %v3941_v40 = vld [vmem:[%s4765_s18 + $0x550] ss:$8 sps:$4 sm:$0xff]   ;;  %v3942_v41 = vld [vmem:[%s4765_s18 + $0x164] ss:$8 sps:$4 sm:$0xff]  }
  0x7a   : > { %v3944_v42 = vld [vmem:[%s4765_s18 + $0x564] ss:$8 sps:$4 sm:$0xff]  }
  0x80   : > { %1910 = vmatmul.mubr.bf16.gmra.mrb[24].mxu0 %v3850_v43  ;;  %2422 = vmatmul.mubr.bf16.gmra.mrb[24].mxu1 %v3851_v44  ;;  %v3946_v43 = vld [vmem:[%s4765_s18 + $0x160] ss:$8 sps:$4 sm:$0xff]  }
  0x81   : > { %1917 = vmatprep.mubr.bf16.mxu0 %v3852_v45  ;;  %2429 = vmatprep.mubr.bf16.mxu1 %v3854_v46  ;;  %v3947_v44 = vld [vmem:[%s4765_s18 + $0x560] ss:$8 sps:$4 sm:$0xff]   ;;  %v3948_v45 = vld [vmem:[%s4765_s18 + $0x174] ss:$8 sps:$4 sm:$0xff]  }
  0x82   : > { %v3950_v46 = vld [vmem:[%s4765_s18 + $0x574] ss:$8 sps:$4 sm:$0xff]  }
  0x88   : > { %1918 = vmatmul.mubr.bf16.gmra.mrb[28].mxu0 %v3856_v47  ;;  %2430 = vmatmul.mubr.bf16.gmra.mrb[28].mxu1 %v3857_v48  ;;  %v3952_v47 = vld [vmem:[%s4765_s18 + $0x170] ss:$8 sps:$4 sm:$0xff]  }
  0x89   : > { %1925 = vmatprep.mubr.bf16.mxu0 %v3858_v49  ;;  %2437 = vmatprep.mubr.bf16.mxu1 %v3860_v50  ;;  %v3953_v48 = vld [vmem:[%s4765_s18 + $0x570] ss:$8 sps:$4 sm:$0xff]   ;;  %v3954_v49 = vld [vmem:[%s4765_s18 + $0x184] ss:$8 sps:$4 sm:$0xff]  }
  0x8a   : > { %v3956_v50 = vld [vmem:[%s4765_s18 + $0x584] ss:$8 sps:$4 sm:$0xff]  }
  0x90   : > { %1926 = vmatmul.mubr.bf16.gmra.mrb[32].mxu0 %v3862_v51  ;;  %2438 = vmatmul.mubr.bf16.gmra.mrb[32].mxu1 %v3863_v52  ;;  %v3958_v51 = vld [vmem:[%s4765_s18 + $0x180] ss:$8 sps:$4 sm:$0xff]  }
  0x91   : > { %1933 = vmatprep.mubr.bf16.mxu0 %v3864_v53  ;;  %2445 = vmatprep.mubr.bf16.mxu1 %v3866_v54  ;;  %v3959_v52 = vld [vmem:[%s4765_s18 + $0x580] ss:$8 sps:$4 sm:$0xff]   ;;  %v3960_v53 = vld [vmem:[%s4765_s18 + $0x194] ss:$8 sps:$4 sm:$0xff]  }
  0x92   : > { %v3962_v54 = vld [vmem:[%s4765_s18 + $0x594] ss:$8 sps:$4 sm:$0xff]  }
  0x98   : > { %1934 = vmatmul.mubr.bf16.gmra.mrb[36].mxu0 %v3868_v55  ;;  %2446 = vmatmul.mubr.bf16.gmra.mrb[36].mxu1 %v3869_v56  ;;  %v3964_v55 = vld [vmem:[%s4765_s18 + $0x190] ss:$8 sps:$4 sm:$0xff]  }
  0x99   : > { %1941 = vmatprep.mubr.bf16.mxu0 %v3870_v57  ;;  %2453 = vmatprep.mubr.bf16.mxu1 %v3872_v58  ;;  %v3965_v56 = vld [vmem:[%s4765_s18 + $0x590] ss:$8 sps:$4 sm:$0xff]   ;;  %v3966_v57 = vld [vmem:[%s4765_s18 + $0x1a4] ss:$8 sps:$4 sm:$0xff]  }
  0x9a   : > { %v3968_v58 = vld [vmem:[%s4765_s18 + $0x5a4] ss:$8 sps:$4 sm:$0xff]  }
  0xa0   : > { %1942 = vmatmul.mubr.bf16.gmra.mrb[40].mxu0 %v3874_v59  ;;  %2454 = vmatmul.mubr.bf16.gmra.mrb[40].mxu1 %v3875_v60  ;;  %v3970_v59 = vld [vmem:[%s4765_s18 + $0x1a0] ss:$8 sps:$4 sm:$0xff]  }
  0xa1   : > { %1949 = vmatprep.mubr.bf16.mxu0 %v3876_v61  ;;  %2461 = vmatprep.mubr.bf16.mxu1 %v3878_v62  ;;  %v3971_v60 = vld [vmem:[%s4765_s18 + $0x5a0] ss:$8 sps:$4 sm:$0xff]   ;;  %v3972_v61 = vld [vmem:[%s4765_s18 + $0x1b4] ss:$8 sps:$4 sm:$0xff]  }
  0xa2   : > { %v3974_v62 = vld [vmem:[%s4765_s18 + $0x5b4] ss:$8 sps:$4 sm:$0xff]  }
  0xa8   : > { %1950 = vmatmul.mubr.bf16.gmra.mrb[44].mxu0 %v3880_v63  ;;  %2462 = vmatmul.mubr.bf16.gmra.mrb[44].mxu1 %v3881_v0 }
  0xa9   : > { %1957 = vmatprep.mubr.bf16.mxu0 %v3882_v1  ;;  %2469 = vmatprep.mubr.bf16.mxu1 %v3884_v2 }
  0xb0   : > { %1958 = vmatmul.mubr.bf16.gmra.mrb[48].mxu0 %v3886_v3  ;;  %2470 = vmatmul.mubr.bf16.gmra.mrb[48].mxu1 %v3887_v4  ;;  %v3976_v3 = vld [vmem:[%s4765_s18 + $0x1b0] ss:$8 sps:$4 sm:$0xff]  }
  0xb1   : > { %1965 = vmatprep.mubr.bf16.mxu0 %v3888_v5  ;;  %2477 = vmatprep.mubr.bf16.mxu1 %v3890_v6  ;;  %v3977_v4 = vld [vmem:[%s4765_s18 + $0x5b0] ss:$8 sps:$4 sm:$0xff]  }
  0xb8   : > { %1966 = vmatmul.mubr.bf16.gmra.mrb[52].mxu0 %v3892_v7  ;;  %2478 = vmatmul.mubr.bf16.gmra.mrb[52].mxu1 %v3893_v8  ;;  %v3978_v7 = vld [vmem:[%s4765_s18 + $0x1c4] ss:$8 sps:$4 sm:$0xff]  }
  0xb9   : > { %1973 = vmatprep.mubr.bf16.mxu0 %v3894_v9  ;;  %2485 = vmatprep.mubr.bf16.mxu1 %v3896_v10  ;;  %v3980_v8 = vld [vmem:[%s4765_s18 + $0x5c4] ss:$8 sps:$4 sm:$0xff]  }
  0xc0   : > { %1974 = vmatmul.mubr.bf16.gmra.mrb[56].mxu0 %v3898_v11  ;;  %2486 = vmatmul.mubr.bf16.gmra.mrb[56].mxu1 %v3899_v12 }
  0xc1   : > { %1981 = vmatprep.mubr.bf16.mxu0 %v3900_v13  ;;  %2493 = vmatprep.mubr.bf16.mxu1 %v3902_v14 }
  0xc8   : > { %1982 = vmatmul.mubr.bf16.gmra.mrb[60].mxu0 %v3904_v15  ;;  %2494 = vmatmul.mubr.bf16.gmra.mrb[60].mxu1 %v3905_v16  ;;  %v3982_v15 = vld [vmem:[%s4765_s18 + $0x1c0] ss:$8 sps:$4 sm:$0xff]  }
  0xc9   : > { %1989 = vmatprep.mubr.bf16.mxu0 %v3906_v17  ;;  %2501 = vmatprep.mubr.bf16.mxu1 %v3908_v18  ;;  %v3983_v16 = vld [vmem:[%s4765_s18 + $0x5c0] ss:$8 sps:$4 sm:$0xff]  }
  0xd0   : > { %1990 = vmatmul.mubr.bf16.gmra.mrb[64].mxu0 %v3910_v19  ;;  %2502 = vmatmul.mubr.bf16.gmra.mrb[64].mxu1 %v3911_v20  ;;  %v3984_v19 = vld [vmem:[%s4765_s18 + $0x1d4] ss:$8 sps:$4 sm:$0xff]  }
  0xd1   : > { %1997 = vmatprep.mubr.bf16.mxu0 %v3912_v21  ;;  %2509 = vmatprep.mubr.bf16.mxu1 %v3914_v22  ;;  %v3986_v20 = vld [vmem:[%s4765_s18 + $0x5d4] ss:$8 sps:$4 sm:$0xff]  }
  0xd8   : > { %1998 = vmatmul.mubr.bf16.gmra.mrb[68].mxu0 %v3916_v23  ;;  %2510 = vmatmul.mubr.bf16.gmra.mrb[68].mxu1 %v3917_v24 }
  0xd9   : > { %2005 = vmatprep.mubr.bf16.mxu0 %v3918_v25  ;;  %2517 = vmatprep.mubr.bf16.mxu1 %v3920_v26 }
  0xe0   : > { %2006 = vmatmul.mubr.bf16.gmra.mrb[72].mxu0 %v3922_v27  ;;  %2518 = vmatmul.mubr.bf16.gmra.mrb[72].mxu1 %v3923_v28 }
  0xe1   : > { %2013 = vmatprep.mubr.bf16.mxu0 %v3924_v29  ;;  %2525 = vmatprep.mubr.bf16.mxu1 %v3926_v30 }
  0xe8   : > { %2014 = vmatmul.mubr.bf16.gmra.mrb[76].mxu0 %v3928_v31  ;;  %2526 = vmatmul.mubr.bf16.gmra.mrb[76].mxu1 %v3929_v32  ;;  %v3988_v31 = vld [vmem:[%s4765_s18 + $0x1d0] ss:$8 sps:$4 sm:$0xff]  }
  0xe9   : > { %2021 = vmatprep.mubr.bf16.mxu0 %v3930_v33  ;;  %2533 = vmatprep.mubr.bf16.mxu1 %v3932_v34  ;;  %v3989_v32 = vld [vmem:[%s4765_s18 + $0x5d0] ss:$8 sps:$4 sm:$0xff]  }
  0xf0   : > { %2022 = vmatmul.mubr.bf16.gmra.mrb[80].mxu0 %v3934_v35  ;;  %2534 = vmatmul.mubr.bf16.gmra.mrb[80].mxu1 %v3935_v36  ;;  %v3990_v35 = vld [vmem:[%s4765_s18 + $0x1e4] ss:$8 sps:$4 sm:$0xff]  }
  0xf1   : > { %2029 = vmatprep.mubr.bf16.mxu0 %v3936_v37  ;;  %2541 = vmatprep.mubr.bf16.mxu1 %v3938_v38  ;;  %v3992_v36 = vld [vmem:[%s4765_s18 + $0x5e4] ss:$8 sps:$4 sm:$0xff]  }
  0xf8   : > { %2030 = vmatmul.mubr.bf16.gmra.mrb[84].mxu0 %v3940_v39  ;;  %2542 = vmatmul.mubr.bf16.gmra.mrb[84].mxu1 %v3941_v40 }
  0xf9   : > { %2037 = vmatprep.mubr.bf16.mxu0 %v3942_v41  ;;  %2549 = vmatprep.mubr.bf16.mxu1 %v3944_v42 }
 0x100   : > { %2038 = vmatmul.mubr.bf16.gmra.mrb[88].mxu0 %v3946_v43  ;;  %2550 = vmatmul.mubr.bf16.gmra.mrb[88].mxu1 %v3947_v44 }
 0x101   : > { %2045 = vmatprep.mubr.bf16.mxu0 %v3948_v45  ;;  %2557 = vmatprep.mubr.bf16.mxu1 %v3950_v46 }
 0x108   : > { %2046 = vmatmul.mubr.bf16.gmra.mrb[92].mxu0 %v3952_v47  ;;  %2558 = vmatmul.mubr.bf16.gmra.mrb[92].mxu1 %v3953_v48  ;;  %v3994_v47 = vld [vmem:[%s4765_s18 + $0x1e0] ss:$8 sps:$4 sm:$0xff]  }
 0x109   : > { %2053 = vmatprep.mubr.bf16.mxu0 %v3954_v49  ;;  %2565 = vmatprep.mubr.bf16.mxu1 %v3956_v50  ;;  %v3995_v48 = vld [vmem:[%s4765_s18 + $0x5e0] ss:$8 sps:$4 sm:$0xff]  }
 0x110   : > { %2054 = vmatmul.mubr.bf16.gmra.mrb[96].mxu0 %v3958_v51  ;;  %2566 = vmatmul.mubr.bf16.gmra.mrb[96].mxu1 %v3959_v52  ;;  %v3996_v51 = vld [vmem:[%s4765_s18 + $0x1f4] ss:$8 sps:$4 sm:$0xff]  }
 0x111   : > { %2061 = vmatprep.mubr.bf16.mxu0 %v3960_v53  ;;  %2573 = vmatprep.mubr.bf16.mxu1 %v3962_v54  ;;  %v3998_v52 = vld [vmem:[%s4765_s18 + $0x5f4] ss:$8 sps:$4 sm:$0xff]  }
 0x118   : > { %2062 = vmatmul.mubr.bf16.gmra.mrb[100].mxu0 %v3964_v55  ;;  %2574 = vmatmul.mubr.bf16.gmra.mrb[100].mxu1 %v3965_v56 }
 0x119   : > { %2069 = vmatprep.mubr.bf16.mxu0 %v3966_v57  ;;  %2581 = vmatprep.mubr.bf16.mxu1 %v3968_v58 }
 0x120   : > { %2070 = vmatmul.mubr.bf16.gmra.mrb[104].mxu0 %v3970_v59  ;;  %2582 = vmatmul.mubr.bf16.gmra.mrb[104].mxu1 %v3971_v60 }
 0x121   : > { %2077 = vmatprep.mubr.bf16.mxu0 %v3972_v61  ;;  %2589 = vmatprep.mubr.bf16.mxu1 %v3974_v62 }
 0x123   : > { %v1863_v63 = vpop.f32.mrb[0].mxu0  ;;  %v2375_v0 = vpop.f32.mrb[0].mxu1 }
 0x124   : > { %4194 = vtanh.f32 %v1863_v63  ;;  %v1865_v1 = vpop.f32.mrb[1].mxu0  ;;  %v2377_v2 = vpop.f32.mrb[1].mxu1  ;;  %v4000_v63 = vld [vmem:[%s4765_s18 + $0x1f0] ss:$8 sps:$4 sm:$0xff]  }
 0x125   : > { %4196 = vtanh.f32 %v2375_v0  ;;  %v1866_v5 = vpop.f32.mrb[2].mxu0  ;;  %v2378_v6 = vpop.f32.mrb[2].mxu1  ;;  %v4001_v0 = vld [vmem:[%s4765_s18 + $0x5f0] ss:$8 sps:$4 sm:$0xff]  }
 0x126   : > { %4198 = vtanh.f32 %v1866_v5  ;;  %v1868_v9 = vpop.f32.mrb[3].mxu0  ;;  %v2380_v10 = vpop.f32.mrb[3].mxu1 }
 0x127   : > { %4200 = vtanh.f32 %v2378_v6 }
 0x128   : > { %2078 = vmatmul.mubr.bf16.gmra.mrb[108].mxu0 %v3976_v3  ;;  %2590 = vmatmul.mubr.bf16.gmra.mrb[108].mxu1 %v3977_v4  ;;  %v4002_v3 = vld [vmem:[%s4765_s18 + $0x204] ss:$8 sps:$4 sm:$0xff]  }
 0x129   : > { %2085 = vmatprep.mubr.bf16.mxu0 %v3978_v7  ;;  %2597 = vmatprep.mubr.bf16.mxu1 %v3980_v8  ;;  %v4004_v4 = vld [vmem:[%s4765_s18 + $0x604] ss:$8 sps:$4 sm:$0xff]  }
 0x12b   : > { %v1871_v11 = vpop.f32.mrb[4].mxu0  ;;  %v2383_v12 = vpop.f32.mrb[4].mxu1 }
 0x12c   : > { %4202 = vtanh.f32 %v1871_v11  ;;  %v1873_v13 = vpop.f32.mrb[5].mxu0  ;;  %v2385_v14 = vpop.f32.mrb[5].mxu1 }
 0x12d   : > { %4204 = vtanh.f32 %v2383_v12  ;;  %v1874_v17 = vpop.f32.mrb[6].mxu0  ;;  %v2386_v18 = vpop.f32.mrb[6].mxu1 }
 0x12e   : > { %v4195_v21 = vpop.eup %4194  ;;  %4206 = vtanh.f32 %v1874_v17  ;;  %v1876_v22 = vpop.f32.mrb[7].mxu0 }
 0x12f   : > { %v2388_v23 = vpop.f32.mrb[7].mxu1  ;;  %v4197_v24 = vpop.eup %4196  ;;  %3142 = vst [vmem:[%s4921_s21] sm:$0xff] %v4195_v21  ;;  %4208 = vtanh.f32 %v2386_v18 }
 0x130   : > { %v4199_v25 = vpop.eup %4198  ;;  %3270 = vst [vmem:[%s4921_s21 + $0x400] sm:$0xff] %v4197_v24  ;;  %2086 = vmatmul.mubr.bf16.gmra.mrb[112].mxu0 %v3982_v15  ;;  %2598 = vmatmul.mubr.bf16.gmra.mrb[112].mxu1 %v3983_v16  ;;  %v4006_v15 = vld [vmem:[%s4765_s18 + $0x200] ss:$8 sps:$4 sm:$0xff]  }
 0x131   : > { %v4201_v26 = vpop.eup %4200  ;;  %3143 = vst [vmem:[%s4921_s21 + $0x8] sm:$0xff] %v4199_v25  ;;  %2093 = vmatprep.mubr.bf16.mxu0 %v3984_v19  ;;  %2605 = vmatprep.mubr.bf16.mxu1 %v3986_v20  ;;  %v4007_v16 = vld [vmem:[%s4765_s18 + $0x600] ss:$8 sps:$4 sm:$0xff]   ;;  %v4008_v19 = vld [vmem:[%s4765_s18 + $0x214] ss:$8 sps:$4 sm:$0xff]  }
 0x132   : > { %3271 = vst [vmem:[%s4921_s21 + $0x408] sm:$0xff] %v4201_v26  ;;  %v4010_v20 = vld [vmem:[%s4765_s18 + $0x614] ss:$8 sps:$4 sm:$0xff]  }
 0x133   : > { %v1879_v27 = vpop.f32.mrb[8].mxu0  ;;  %v2391_v28 = vpop.f32.mrb[8].mxu1 }
 0x134   : > { %4210 = vtanh.f32 %v1879_v27  ;;  %v1881_v29 = vpop.f32.mrb[9].mxu0  ;;  %v2393_v30 = vpop.f32.mrb[9].mxu1 }
 0x135   : > { %4212 = vtanh.f32 %v2391_v28  ;;  %v1882_v33 = vpop.f32.mrb[10].mxu0  ;;  %v2394_v34 = vpop.f32.mrb[10].mxu1 }
 0x136   : > { %v4203_v37 = vpop.eup %4202  ;;  %4214 = vtanh.f32 %v1882_v33  ;;  %v1884_v38 = vpop.f32.mrb[11].mxu0 }
 0x137   : > { %v2396_v39 = vpop.f32.mrb[11].mxu1  ;;  %v4205_v40 = vpop.eup %4204  ;;  %3144 = vst [vmem:[%s4921_s21 + $0x10] sm:$0xff] %v4203_v37  ;;  %4216 = vtanh.f32 %v2394_v34 }
 0x138   : > { %v4207_v41 = vpop.eup %4206  ;;  %3272 = vst [vmem:[%s4921_s21 + $0x410] sm:$0xff] %v4205_v40  ;;  %2094 = vmatmul.mubr.bf16.gmra.mrb[116].mxu0 %v3988_v31  ;;  %2606 = vmatmul.mubr.bf16.gmra.mrb[116].mxu1 %v3989_v32  ;;  %v4012_v31 = vld [vmem:[%s4765_s18 + $0x210] ss:$8 sps:$4 sm:$0xff]  }
 0x139   : > { %v4209_v42 = vpop.eup %4208  ;;  %3145 = vst [vmem:[%s4921_s21 + $0x18] sm:$0xff] %v4207_v41  ;;  %2101 = vmatprep.mubr.bf16.mxu0 %v3990_v35  ;;  %2613 = vmatprep.mubr.bf16.mxu1 %v3992_v36  ;;  %v4013_v32 = vld [vmem:[%s4765_s18 + $0x610] ss:$8 sps:$4 sm:$0xff]   ;;  %v4014_v35 = vld [vmem:[%s4765_s18 + $0x224] ss:$8 sps:$4 sm:$0xff]  }
 0x13a   : > { %3273 = vst [vmem:[%s4921_s21 + $0x418] sm:$0xff] %v4209_v42  ;;  %v4016_v36 = vld [vmem:[%s4765_s18 + $0x624] ss:$8 sps:$4 sm:$0xff]  }
 0x13b   : > { %v1887_v43 = vpop.f32.mrb[12].mxu0  ;;  %v2399_v44 = vpop.f32.mrb[12].mxu1 }
 0x13c   : > { %4218 = vtanh.f32 %v1887_v43  ;;  %v1889_v45 = vpop.f32.mrb[13].mxu0  ;;  %v2401_v46 = vpop.f32.mrb[13].mxu1 }
 0x13d   : > { %4220 = vtanh.f32 %v2399_v44  ;;  %v1890_v49 = vpop.f32.mrb[14].mxu0  ;;  %v2402_v50 = vpop.f32.mrb[14].mxu1 }
 0x13e   : > { %v4211_v53 = vpop.eup %4210  ;;  %4222 = vtanh.f32 %v1890_v49  ;;  %v1892_v54 = vpop.f32.mrb[15].mxu0 }
 0x13f   : > { %v2404_v55 = vpop.f32.mrb[15].mxu1  ;;  %v4213_v56 = vpop.eup %4212  ;;  %3146 = vst [vmem:[%s4921_s21 + $0x20] sm:$0xff] %v4211_v53  ;;  %4224 = vtanh.f32 %v2402_v50 }
 0x140   : > { %v4215_v57 = vpop.eup %4214  ;;  %3274 = vst [vmem:[%s4921_s21 + $0x420] sm:$0xff] %v4213_v56  ;;  %2102 = vmatmul.mubr.bf16.gmra.mrb[120].mxu0 %v3994_v47  ;;  %2614 = vmatmul.mubr.bf16.gmra.mrb[120].mxu1 %v3995_v48  ;;  %v4018_v47 = vld [vmem:[%s4765_s18 + $0x220] ss:$8 sps:$4 sm:$0xff]  }
 0x141   : > { %v4217_v58 = vpop.eup %4216  ;;  %3147 = vst [vmem:[%s4921_s21 + $0x28] sm:$0xff] %v4215_v57  ;;  %2109 = vmatprep.mubr.bf16.mxu0 %v3996_v51  ;;  %2621 = vmatprep.mubr.bf16.mxu1 %v3998_v52  ;;  %v4019_v48 = vld [vmem:[%s4765_s18 + $0x620] ss:$8 sps:$4 sm:$0xff]   ;;  %v4020_v51 = vld [vmem:[%s4765_s18 + $0x234] ss:$8 sps:$4 sm:$0xff]  }
 0x142   : > { %3275 = vst [vmem:[%s4921_s21 + $0x428] sm:$0xff] %v4217_v58  ;;  %v4022_v52 = vld [vmem:[%s4765_s18 + $0x634] ss:$8 sps:$4 sm:$0xff]  }
 0x143   : > { %v1895_v59 = vpop.f32.mrb[16].mxu0  ;;  %v2407_v60 = vpop.f32.mrb[16].mxu1 }
 0x144   : > { %4226 = vtanh.f32 %v1895_v59  ;;  %v1897_v61 = vpop.f32.mrb[17].mxu0  ;;  %v2409_v62 = vpop.f32.mrb[17].mxu1 }
 0x145   : > { %4228 = vtanh.f32 %v2407_v60  ;;  %v1898_v1 = vpop.f32.mrb[18].mxu0  ;;  %v2410_v2 = vpop.f32.mrb[18].mxu1 }
 0x146   : > { %v4219_v5 = vpop.eup %4218  ;;  %4230 = vtanh.f32 %v1898_v1  ;;  %v1900_v6 = vpop.f32.mrb[19].mxu0 }
 0x147   : > { %v2412_v7 = vpop.f32.mrb[19].mxu1  ;;  %v4221_v8 = vpop.eup %4220  ;;  %3148 = vst [vmem:[%s4921_s21 + $0x30] sm:$0xff] %v4219_v5  ;;  %4232 = vtanh.f32 %v2410_v2 }
 0x148   : > { %v4223_v9 = vpop.eup %4222  ;;  %3276 = vst [vmem:[%s4921_s21 + $0x430] sm:$0xff] %v4221_v8  ;;  %2110 = vmatmul.mubr.bf16.gmra.mrb[124].mxu0 %v4000_v63  ;;  %2622 = vmatmul.mubr.bf16.gmra.mrb[124].mxu1 %v4001_v0  ;;  %v4024_v63 = vld [vmem:[%s4765_s18 + $0x230] ss:$8 sps:$4 sm:$0xff]  }
 0x149   : > { %v4225_v10 = vpop.eup %4224  ;;  %3149 = vst [vmem:[%s4921_s21 + $0x38] sm:$0xff] %v4223_v9  ;;  %2117 = vmatprep.mubr.bf16.mxu0 %v4002_v3  ;;  %2629 = vmatprep.mubr.bf16.mxu1 %v4004_v4  ;;  %v4025_v0 = vld [vmem:[%s4765_s18 + $0x630] ss:$8 sps:$4 sm:$0xff]   ;;  %v4026_v3 = vld [vmem:[%s4765_s18 + $0x244] ss:$8 sps:$4 sm:$0xff]  }
 0x14a   : > { %3277 = vst [vmem:[%s4921_s21 + $0x438] sm:$0xff] %v4225_v10  ;;  %v4028_v4 = vld [vmem:[%s4765_s18 + $0x644] ss:$8 sps:$4 sm:$0xff]  }
 0x14b   : > { %v1903_v11 = vpop.f32.mrb[20].mxu0  ;;  %v2415_v12 = vpop.f32.mrb[20].mxu1 }
 0x14c   : > { %4234 = vtanh.f32 %v1903_v11  ;;  %v1905_v13 = vpop.f32.mrb[21].mxu0  ;;  %v2417_v14 = vpop.f32.mrb[21].mxu1 }
 0x14d   : > { %4236 = vtanh.f32 %v2415_v12  ;;  %v1906_v17 = vpop.f32.mrb[22].mxu0  ;;  %v2418_v18 = vpop.f32.mrb[22].mxu1 }
 0x14e   : > { %v4227_v21 = vpop.eup %4226  ;;  %4238 = vtanh.f32 %v1906_v17  ;;  %v1908_v22 = vpop.f32.mrb[23].mxu0 }
 0x14f   : > { %v2420_v23 = vpop.f32.mrb[23].mxu1  ;;  %v4229_v24 = vpop.eup %4228  ;;  %3150 = vst [vmem:[%s4921_s21 + $0x40] sm:$0xff] %v4227_v21  ;;  %4240 = vtanh.f32 %v2418_v18 }
 0x150   : > { %v4231_v25 = vpop.eup %4230  ;;  %3278 = vst [vmem:[%s4921_s21 + $0x440] sm:$0xff] %v4229_v24  ;;  %2118 = vmatmul.mubr.bf16.gmra.mrb[128].mxu0 %v4006_v15  ;;  %2630 = vmatmul.mubr.bf16.gmra.mrb[128].mxu1 %v4007_v16  ;;  %v4030_v15 = vld [vmem:[%s4765_s18 + $0x240] ss:$8 sps:$4 sm:$0xff]  }
 0x151   : > { %v4233_v26 = vpop.eup %4232  ;;  %3151 = vst [vmem:[%s4921_s21 + $0x48] sm:$0xff] %v4231_v25  ;;  %2125 = vmatprep.mubr.bf16.mxu0 %v4008_v19  ;;  %2637 = vmatprep.mubr.bf16.mxu1 %v4010_v20  ;;  %v4031_v16 = vld [vmem:[%s4765_s18 + $0x640] ss:$8 sps:$4 sm:$0xff]   ;;  %v4032_v19 = vld [vmem:[%s4765_s18 + $0x254] ss:$8 sps:$4 sm:$0xff]  }
 0x152   : > { %3279 = vst [vmem:[%s4921_s21 + $0x448] sm:$0xff] %v4233_v26  ;;  %v4034_v20 = vld [vmem:[%s4765_s18 + $0x654] ss:$8 sps:$4 sm:$0xff]  }
 0x153   : > { %v1911_v27 = vpop.f32.mrb[24].mxu0  ;;  %v2423_v28 = vpop.f32.mrb[24].mxu1 }
 0x154   : > { %4242 = vtanh.f32 %v1911_v27  ;;  %v1913_v29 = vpop.f32.mrb[25].mxu0  ;;  %v2425_v30 = vpop.f32.mrb[25].mxu1 }
 0x155   : > { %4244 = vtanh.f32 %v2423_v28  ;;  %v1914_v33 = vpop.f32.mrb[26].mxu0  ;;  %v2426_v34 = vpop.f32.mrb[26].mxu1 }
 0x156   : > { %v4235_v37 = vpop.eup %4234  ;;  %4246 = vtanh.f32 %v1914_v33  ;;  %v1916_v38 = vpop.f32.mrb[27].mxu0 }
 0x157   : > { %v2428_v39 = vpop.f32.mrb[27].mxu1  ;;  %v4237_v40 = vpop.eup %4236  ;;  %3152 = vst [vmem:[%s4921_s21 + $0x50] sm:$0xff] %v4235_v37  ;;  %4248 = vtanh.f32 %v2426_v34 }
 0x158   : > { %v4239_v41 = vpop.eup %4238  ;;  %3280 = vst [vmem:[%s4921_s21 + $0x450] sm:$0xff] %v4237_v40  ;;  %2126 = vmatmul.mubr.bf16.gmra.mrb[132].mxu0 %v4012_v31  ;;  %2638 = vmatmul.mubr.bf16.gmra.mrb[132].mxu1 %v4013_v32  ;;  %v4036_v31 = vld [vmem:[%s4765_s18 + $0x250] ss:$8 sps:$4 sm:$0xff]  }
 0x159   : > { %v4241_v42 = vpop.eup %4240  ;;  %3153 = vst [vmem:[%s4921_s21 + $0x58] sm:$0xff] %v4239_v41  ;;  %2133 = vmatprep.mubr.bf16.mxu0 %v4014_v35  ;;  %2645 = vmatprep.mubr.bf16.mxu1 %v4016_v36  ;;  %v4037_v32 = vld [vmem:[%s4765_s18 + $0x650] ss:$8 sps:$4 sm:$0xff]   ;;  %v4038_v35 = vld [vmem:[%s4765_s18 + $0x264] ss:$8 sps:$4 sm:$0xff]  }
 0x15a   : > { %3281 = vst [vmem:[%s4921_s21 + $0x458] sm:$0xff] %v4241_v42  ;;  %v4040_v36 = vld [vmem:[%s4765_s18 + $0x664] ss:$8 sps:$4 sm:$0xff]  }
 0x15b   : > { %v1919_v43 = vpop.f32.mrb[28].mxu0  ;;  %v2431_v44 = vpop.f32.mrb[28].mxu1 }
 0x15c   : > { %4250 = vtanh.f32 %v1919_v43  ;;  %v1921_v45 = vpop.f32.mrb[29].mxu0  ;;  %v2433_v46 = vpop.f32.mrb[29].mxu1 }
 0x15d   : > { %4252 = vtanh.f32 %v2431_v44  ;;  %v1922_v49 = vpop.f32.mrb[30].mxu0  ;;  %v2434_v50 = vpop.f32.mrb[30].mxu1 }
 0x15e   : > { %v4243_v53 = vpop.eup %4242  ;;  %4254 = vtanh.f32 %v1922_v49  ;;  %v1924_v54 = vpop.f32.mrb[31].mxu0 }
 0x15f   : > { %v2436_v55 = vpop.f32.mrb[31].mxu1  ;;  %v4245_v56 = vpop.eup %4244  ;;  %3154 = vst [vmem:[%s4921_s21 + $0x60] sm:$0xff] %v4243_v53  ;;  %4256 = vtanh.f32 %v2434_v50 }
 0x160   : > { %v4247_v57 = vpop.eup %4246  ;;  %3282 = vst [vmem:[%s4921_s21 + $0x460] sm:$0xff] %v4245_v56  ;;  %2134 = vmatmul.mubr.bf16.gmra.mrb[136].mxu0 %v4018_v47  ;;  %2646 = vmatmul.mubr.bf16.gmra.mrb[136].mxu1 %v4019_v48  ;;  %v4042_v47 = vld [vmem:[%s4765_s18 + $0x260] ss:$8 sps:$4 sm:$0xff]  }
 0x161   : > { %v4249_v58 = vpop.eup %4248  ;;  %3155 = vst [vmem:[%s4921_s21 + $0x68] sm:$0xff] %v4247_v57  ;;  %2141 = vmatprep.mubr.bf16.mxu0 %v4020_v51  ;;  %2653 = vmatprep.mubr.bf16.mxu1 %v4022_v52  ;;  %v4043_v48 = vld [vmem:[%s4765_s18 + $0x660] ss:$8 sps:$4 sm:$0xff]   ;;  %v4044_v51 = vld [vmem:[%s4765_s18 + $0x274] ss:$8 sps:$4 sm:$0xff]  }
 0x162   : > { %3283 = vst [vmem:[%s4921_s21 + $0x468] sm:$0xff] %v4249_v58  ;;  %v4046_v52 = vld [vmem:[%s4765_s18 + $0x674] ss:$8 sps:$4 sm:$0xff]  }
 0x163   : > { %v1927_v59 = vpop.f32.mrb[32].mxu0  ;;  %v2439_v60 = vpop.f32.mrb[32].mxu1 }
 0x164   : > { %4258 = vtanh.f32 %v1927_v59  ;;  %v1929_v61 = vpop.f32.mrb[33].mxu0  ;;  %v2441_v62 = vpop.f32.mrb[33].mxu1 }
 0x165   : > { %4260 = vtanh.f32 %v2439_v60  ;;  %v1930_v1 = vpop.f32.mrb[34].mxu0  ;;  %v2442_v2 = vpop.f32.mrb[34].mxu1 }
 0x166   : > { %v4251_v5 = vpop.eup %4250  ;;  %4262 = vtanh.f32 %v1930_v1  ;;  %v1932_v6 = vpop.f32.mrb[35].mxu0 }
 0x167   : > { %v2444_v7 = vpop.f32.mrb[35].mxu1  ;;  %v4253_v8 = vpop.eup %4252  ;;  %3156 = vst [vmem:[%s4921_s21 + $0x70] sm:$0xff] %v4251_v5  ;;  %4264 = vtanh.f32 %v2442_v2 }
 0x168   : > { %v4255_v9 = vpop.eup %4254  ;;  %3284 = vst [vmem:[%s4921_s21 + $0x470] sm:$0xff] %v4253_v8  ;;  %2142 = vmatmul.mubr.bf16.gmra.mrb[140].mxu0 %v4024_v63  ;;  %2654 = vmatmul.mubr.bf16.gmra.mrb[140].mxu1 %v4025_v0  ;;  %v4048_v63 = vld [vmem:[%s4765_s18 + $0x270] ss:$8 sps:$4 sm:$0xff]  }
 0x169   : > { %v4257_v10 = vpop.eup %4256  ;;  %3157 = vst [vmem:[%s4921_s21 + $0x78] sm:$0xff] %v4255_v9  ;;  %2149 = vmatprep.mubr.bf16.mxu0 %v4026_v3  ;;  %2661 = vmatprep.mubr.bf16.mxu1 %v4028_v4  ;;  %v4049_v0 = vld [vmem:[%s4765_s18 + $0x670] ss:$8 sps:$4 sm:$0xff]   ;;  %v4050_v3 = vld [vmem:[%s4765_s18 + $0x284] ss:$8 sps:$4 sm:$0xff]  }
 0x16a   : > { %3285 = vst [vmem:[%s4921_s21 + $0x478] sm:$0xff] %v4257_v10  ;;  %v4052_v4 = vld [vmem:[%s4765_s18 + $0x684] ss:$8 sps:$4 sm:$0xff]  }
 0x16b   : > { %v1935_v11 = vpop.f32.mrb[36].mxu0  ;;  %v2447_v12 = vpop.f32.mrb[36].mxu1 }
 0x16c   : > { %4266 = vtanh.f32 %v1935_v11  ;;  %v1937_v13 = vpop.f32.mrb[37].mxu0  ;;  %v2449_v14 = vpop.f32.mrb[37].mxu1 }
 0x16d   : > { %4268 = vtanh.f32 %v2447_v12  ;;  %v1938_v17 = vpop.f32.mrb[38].mxu0  ;;  %v2450_v18 = vpop.f32.mrb[38].mxu1 }
 0x16e   : > { %v4259_v21 = vpop.eup %4258  ;;  %4270 = vtanh.f32 %v1938_v17  ;;  %v1940_v22 = vpop.f32.mrb[39].mxu0 }
 0x16f   : > { %v2452_v23 = vpop.f32.mrb[39].mxu1  ;;  %v4261_v24 = vpop.eup %4260  ;;  %3158 = vst [vmem:[%s4921_s21 + $0x80] sm:$0xff] %v4259_v21  ;;  %4272 = vtanh.f32 %v2450_v18 }
 0x170   : > { %v4263_v25 = vpop.eup %4262  ;;  %3286 = vst [vmem:[%s4921_s21 + $0x480] sm:$0xff] %v4261_v24  ;;  %2150 = vmatmul.mubr.bf16.gmra.mrb[144].mxu0 %v4030_v15  ;;  %2662 = vmatmul.mubr.bf16.gmra.mrb[144].mxu1 %v4031_v16  ;;  %v4054_v15 = vld [vmem:[%s4765_s18 + $0x280] ss:$8 sps:$4 sm:$0xff]  }
 0x171   : > { %v4265_v26 = vpop.eup %4264  ;;  %3159 = vst [vmem:[%s4921_s21 + $0x88] sm:$0xff] %v4263_v25  ;;  %2157 = vmatprep.mubr.bf16.mxu0 %v4032_v19  ;;  %2669 = vmatprep.mubr.bf16.mxu1 %v4034_v20  ;;  %v4055_v16 = vld [vmem:[%s4765_s18 + $0x680] ss:$8 sps:$4 sm:$0xff]   ;;  %v4056_v19 = vld [vmem:[%s4765_s18 + $0x294] ss:$8 sps:$4 sm:$0xff]  }
 0x172   : > { %3287 = vst [vmem:[%s4921_s21 + $0x488] sm:$0xff] %v4265_v26  ;;  %v4058_v20 = vld [vmem:[%s4765_s18 + $0x694] ss:$8 sps:$4 sm:$0xff]  }
 0x173   : > { %v1943_v27 = vpop.f32.mrb[40].mxu0  ;;  %v2455_v28 = vpop.f32.mrb[40].mxu1 }
 0x174   : > { %4274 = vtanh.f32 %v1943_v27  ;;  %v1945_v29 = vpop.f32.mrb[41].mxu0  ;;  %v2457_v30 = vpop.f32.mrb[41].mxu1 }
 0x175   : > { %4276 = vtanh.f32 %v2455_v28  ;;  %v1946_v33 = vpop.f32.mrb[42].mxu0  ;;  %v2458_v34 = vpop.f32.mrb[42].mxu1 }
 0x176   : > { %v4267_v37 = vpop.eup %4266  ;;  %4278 = vtanh.f32 %v1946_v33  ;;  %v1948_v38 = vpop.f32.mrb[43].mxu0 }
 0x177   : > { %v2460_v39 = vpop.f32.mrb[43].mxu1  ;;  %v4269_v40 = vpop.eup %4268  ;;  %3160 = vst [vmem:[%s4921_s21 + $0x90] sm:$0xff] %v4267_v37  ;;  %4280 = vtanh.f32 %v2458_v34 }
 0x178   : > { %v4271_v41 = vpop.eup %4270  ;;  %3288 = vst [vmem:[%s4921_s21 + $0x490] sm:$0xff] %v4269_v40  ;;  %2158 = vmatmul.mubr.bf16.gmra.mrb[148].mxu0 %v4036_v31  ;;  %2670 = vmatmul.mubr.bf16.gmra.mrb[148].mxu1 %v4037_v32  ;;  %v4060_v31 = vld [vmem:[%s4765_s18 + $0x290] ss:$8 sps:$4 sm:$0xff]  }
 0x179   : > { %v4273_v42 = vpop.eup %4272  ;;  %3161 = vst [vmem:[%s4921_s21 + $0x98] sm:$0xff] %v4271_v41  ;;  %2165 = vmatprep.mubr.bf16.mxu0 %v4038_v35  ;;  %2677 = vmatprep.mubr.bf16.mxu1 %v4040_v36  ;;  %v4061_v32 = vld [vmem:[%s4765_s18 + $0x690] ss:$8 sps:$4 sm:$0xff]   ;;  %v4062_v35 = vld [vmem:[%s4765_s18 + $0x2a4] ss:$8 sps:$4 sm:$0xff]  }
 0x17a   : > { %3289 = vst [vmem:[%s4921_s21 + $0x498] sm:$0xff] %v4273_v42  ;;  %v4064_v36 = vld [vmem:[%s4765_s18 + $0x6a4] ss:$8 sps:$4 sm:$0xff]  }
 0x17b   : > { %v1951_v43 = vpop.f32.mrb[44].mxu0  ;;  %v2463_v44 = vpop.f32.mrb[44].mxu1 }
 0x17c   : > { %4282 = vtanh.f32 %v1951_v43  ;;  %v1953_v45 = vpop.f32.mrb[45].mxu0  ;;  %v2465_v46 = vpop.f32.mrb[45].mxu1 }
 0x17d   : > { %4284 = vtanh.f32 %v2463_v44  ;;  %v1954_v49 = vpop.f32.mrb[46].mxu0  ;;  %v2466_v50 = vpop.f32.mrb[46].mxu1 }
 0x17e   : > { %v4275_v53 = vpop.eup %4274  ;;  %4286 = vtanh.f32 %v1954_v49  ;;  %v1956_v54 = vpop.f32.mrb[47].mxu0 }
 0x17f   : > { %v2468_v55 = vpop.f32.mrb[47].mxu1  ;;  %v4277_v56 = vpop.eup %4276  ;;  %3162 = vst [vmem:[%s4921_s21 + $0xa0] sm:$0xff] %v4275_v53  ;;  %4288 = vtanh.f32 %v2466_v50 }
 0x180   : > { %v4279_v57 = vpop.eup %4278  ;;  %3290 = vst [vmem:[%s4921_s21 + $0x4a0] sm:$0xff] %v4277_v56  ;;  %2166 = vmatmul.mubr.bf16.gmra.mrb[152].mxu0 %v4042_v47  ;;  %2678 = vmatmul.mubr.bf16.gmra.mrb[152].mxu1 %v4043_v48  ;;  %v4066_v47 = vld [vmem:[%s4765_s18 + $0x2a0] ss:$8 sps:$4 sm:$0xff]  }
 0x181   : > { %v4281_v58 = vpop.eup %4280  ;;  %3163 = vst [vmem:[%s4921_s21 + $0xa8] sm:$0xff] %v4279_v57  ;;  %2173 = vmatprep.mubr.bf16.mxu0 %v4044_v51  ;;  %2685 = vmatprep.mubr.bf16.mxu1 %v4046_v52  ;;  %v4067_v48 = vld [vmem:[%s4765_s18 + $0x6a0] ss:$8 sps:$4 sm:$0xff]   ;;  %v4068_v51 = vld [vmem:[%s4765_s18 + $0x2b4] ss:$8 sps:$4 sm:$0xff]  }
 0x182   : > { %3291 = vst [vmem:[%s4921_s21 + $0x4a8] sm:$0xff] %v4281_v58  ;;  %v4070_v52 = vld [vmem:[%s4765_s18 + $0x6b4] ss:$8 sps:$4 sm:$0xff]  }
 0x183   : > { %v1959_v59 = vpop.f32.mrb[48].mxu0  ;;  %v2471_v60 = vpop.f32.mrb[48].mxu1 }
 0x184   : > { %4290 = vtanh.f32 %v1959_v59  ;;  %v1961_v61 = vpop.f32.mrb[49].mxu0  ;;  %v2473_v62 = vpop.f32.mrb[49].mxu1 }
 0x185   : > { %4292 = vtanh.f32 %v2471_v60  ;;  %v1962_v1 = vpop.f32.mrb[50].mxu0  ;;  %v2474_v2 = vpop.f32.mrb[50].mxu1 }
 0x186   : > { %v4283_v5 = vpop.eup %4282  ;;  %4294 = vtanh.f32 %v1962_v1  ;;  %v1964_v6 = vpop.f32.mrb[51].mxu0 }
 0x187   : > { %v2476_v7 = vpop.f32.mrb[51].mxu1  ;;  %v4285_v8 = vpop.eup %4284  ;;  %3164 = vst [vmem:[%s4921_s21 + $0xb0] sm:$0xff] %v4283_v5  ;;  %4296 = vtanh.f32 %v2474_v2 }
 0x188   : > { %v4287_v9 = vpop.eup %4286  ;;  %3292 = vst [vmem:[%s4921_s21 + $0x4b0] sm:$0xff] %v4285_v8  ;;  %2174 = vmatmul.mubr.bf16.gmra.mrb[156].mxu0 %v4048_v63  ;;  %2686 = vmatmul.mubr.bf16.gmra.mrb[156].mxu1 %v4049_v0  ;;  %v4072_v63 = vld [vmem:[%s4765_s18 + $0x2b0] ss:$8 sps:$4 sm:$0xff]  }
 0x189   : > { %v4289_v10 = vpop.eup %4288  ;;  %3165 = vst [vmem:[%s4921_s21 + $0xb8] sm:$0xff] %v4287_v9  ;;  %2181 = vmatprep.mubr.bf16.mxu0 %v4050_v3  ;;  %2693 = vmatprep.mubr.bf16.mxu1 %v4052_v4  ;;  %v4073_v0 = vld [vmem:[%s4765_s18 + $0x6b0] ss:$8 sps:$4 sm:$0xff]   ;;  %v4074_v3 = vld [vmem:[%s4765_s18 + $0x2c4] ss:$8 sps:$4 sm:$0xff]  }
 0x18a   : > { %3293 = vst [vmem:[%s4921_s21 + $0x4b8] sm:$0xff] %v4289_v10  ;;  %v4076_v4 = vld [vmem:[%s4765_s18 + $0x6c4] ss:$8 sps:$4 sm:$0xff]  }
 0x18b   : > { %v1967_v11 = vpop.f32.mrb[52].mxu0  ;;  %v2479_v12 = vpop.f32.mrb[52].mxu1 }
 0x18c   : > { %4298 = vtanh.f32 %v1967_v11  ;;  %v1969_v13 = vpop.f32.mrb[53].mxu0  ;;  %v2481_v14 = vpop.f32.mrb[53].mxu1 }
 0x18d   : > { %4300 = vtanh.f32 %v2479_v12  ;;  %v1970_v17 = vpop.f32.mrb[54].mxu0  ;;  %v2482_v18 = vpop.f32.mrb[54].mxu1 }
 0x18e   : > { %v4291_v21 = vpop.eup %4290  ;;  %4302 = vtanh.f32 %v1970_v17  ;;  %v1972_v22 = vpop.f32.mrb[55].mxu0 }
 0x18f   : > { %v2484_v23 = vpop.f32.mrb[55].mxu1  ;;  %v4293_v24 = vpop.eup %4292  ;;  %3166 = vst [vmem:[%s4921_s21 + $0xc0] sm:$0xff] %v4291_v21  ;;  %4304 = vtanh.f32 %v2482_v18 }
 0x190   : > { %v4295_v25 = vpop.eup %4294  ;;  %3294 = vst [vmem:[%s4921_s21 + $0x4c0] sm:$0xff] %v4293_v24  ;;  %2182 = vmatmul.mubr.bf16.gmra.mrb[160].mxu0 %v4054_v15  ;;  %2694 = vmatmul.mubr.bf16.gmra.mrb[160].mxu1 %v4055_v16  ;;  %v4078_v15 = vld [vmem:[%s4765_s18 + $0x2c0] ss:$8 sps:$4 sm:$0xff]  }
 0x191   : > { %v4297_v26 = vpop.eup %4296  ;;  %3167 = vst [vmem:[%s4921_s21 + $0xc8] sm:$0xff] %v4295_v25  ;;  %2189 = vmatprep.mubr.bf16.mxu0 %v4056_v19  ;;  %2701 = vmatprep.mubr.bf16.mxu1 %v4058_v20  ;;  %v4079_v16 = vld [vmem:[%s4765_s18 + $0x6c0] ss:$8 sps:$4 sm:$0xff]   ;;  %v4080_v19 = vld [vmem:[%s4765_s18 + $0x2d4] ss:$8 sps:$4 sm:$0xff]  }
 0x192   : > { %3295 = vst [vmem:[%s4921_s21 + $0x4c8] sm:$0xff] %v4297_v26  ;;  %v4082_v20 = vld [vmem:[%s4765_s18 + $0x6d4] ss:$8 sps:$4 sm:$0xff]  }
 0x193   : > { %v1975_v27 = vpop.f32.mrb[56].mxu0  ;;  %v2487_v28 = vpop.f32.mrb[56].mxu1 }
 0x194   : > { %4306 = vtanh.f32 %v1975_v27  ;;  %v1977_v29 = vpop.f32.mrb[57].mxu0  ;;  %v2489_v30 = vpop.f32.mrb[57].mxu1 }
 0x195   : > { %4308 = vtanh.f32 %v2487_v28  ;;  %v1978_v33 = vpop.f32.mrb[58].mxu0  ;;  %v2490_v34 = vpop.f32.mrb[58].mxu1 }
 0x196   : > { %v4299_v37 = vpop.eup %4298  ;;  %4310 = vtanh.f32 %v1978_v33  ;;  %v1980_v38 = vpop.f32.mrb[59].mxu0 }
 0x197   : > { %v2492_v39 = vpop.f32.mrb[59].mxu1  ;;  %v4301_v40 = vpop.eup %4300  ;;  %3168 = vst [vmem:[%s4921_s21 + $0xd0] sm:$0xff] %v4299_v37  ;;  %4312 = vtanh.f32 %v2490_v34 }
 0x198   : > { %v4303_v41 = vpop.eup %4302  ;;  %3296 = vst [vmem:[%s4921_s21 + $0x4d0] sm:$0xff] %v4301_v40  ;;  %2190 = vmatmul.mubr.bf16.gmra.mrb[164].mxu0 %v4060_v31  ;;  %2702 = vmatmul.mubr.bf16.gmra.mrb[164].mxu1 %v4061_v32  ;;  %v4084_v31 = vld [vmem:[%s4765_s18 + $0x2d0] ss:$8 sps:$4 sm:$0xff]  }
 0x199   : > { %v4305_v42 = vpop.eup %4304  ;;  %3169 = vst [vmem:[%s4921_s21 + $0xd8] sm:$0xff] %v4303_v41  ;;  %2197 = vmatprep.mubr.bf16.mxu0 %v4062_v35  ;;  %2709 = vmatprep.mubr.bf16.mxu1 %v4064_v36  ;;  %v4085_v32 = vld [vmem:[%s4765_s18 + $0x6d0] ss:$8 sps:$4 sm:$0xff]   ;;  %v4086_v35 = vld [vmem:[%s4765_s18 + $0x2e4] ss:$8 sps:$4 sm:$0xff]  }
 0x19a   : > { %3297 = vst [vmem:[%s4921_s21 + $0x4d8] sm:$0xff] %v4305_v42  ;;  %v4088_v36 = vld [vmem:[%s4765_s18 + $0x6e4] ss:$8 sps:$4 sm:$0xff]  }
 0x19b   : > { %v1983_v43 = vpop.f32.mrb[60].mxu0  ;;  %v2495_v44 = vpop.f32.mrb[60].mxu1 }
 0x19c   : > { %4314 = vtanh.f32 %v1983_v43  ;;  %v1985_v45 = vpop.f32.mrb[61].mxu0  ;;  %v2497_v46 = vpop.f32.mrb[61].mxu1 }
 0x19d   : > { %4316 = vtanh.f32 %v2495_v44  ;;  %v1986_v49 = vpop.f32.mrb[62].mxu0  ;;  %v2498_v50 = vpop.f32.mrb[62].mxu1 }
 0x19e   : > { %v4307_v53 = vpop.eup %4306  ;;  %4318 = vtanh.f32 %v1986_v49  ;;  %v1988_v54 = vpop.f32.mrb[63].mxu0 }
 0x19f   : > { %v2500_v55 = vpop.f32.mrb[63].mxu1  ;;  %v4309_v56 = vpop.eup %4308  ;;  %3170 = vst [vmem:[%s4921_s21 + $0xe0] sm:$0xff] %v4307_v53  ;;  %4320 = vtanh.f32 %v2498_v50 }
 0x1a0   : > { %v4311_v57 = vpop.eup %4310  ;;  %3298 = vst [vmem:[%s4921_s21 + $0x4e0] sm:$0xff] %v4309_v56  ;;  %2198 = vmatmul.mubr.bf16.gmra.mrb[168].mxu0 %v4066_v47  ;;  %2710 = vmatmul.mubr.bf16.gmra.mrb[168].mxu1 %v4067_v48  ;;  %v4090_v47 = vld [vmem:[%s4765_s18 + $0x2e0] ss:$8 sps:$4 sm:$0xff]  }
 0x1a1   : > { %v4313_v58 = vpop.eup %4312  ;;  %3171 = vst [vmem:[%s4921_s21 + $0xe8] sm:$0xff] %v4311_v57  ;;  %2205 = vmatprep.mubr.bf16.mxu0 %v4068_v51  ;;  %2717 = vmatprep.mubr.bf16.mxu1 %v4070_v52  ;;  %v4091_v48 = vld [vmem:[%s4765_s18 + $0x6e0] ss:$8 sps:$4 sm:$0xff]   ;;  %v4092_v51 = vld [vmem:[%s4765_s18 + $0x2f4] ss:$8 sps:$4 sm:$0xff]  }
 0x1a2   : > { %3299 = vst [vmem:[%s4921_s21 + $0x4e8] sm:$0xff] %v4313_v58  ;;  %v4094_v52 = vld [vmem:[%s4765_s18 + $0x6f4] ss:$8 sps:$4 sm:$0xff]  }
 0x1a3   : > { %v1991_v59 = vpop.f32.mrb[64].mxu0  ;;  %v2503_v60 = vpop.f32.mrb[64].mxu1 }
 0x1a4   : > { %4322 = vtanh.f32 %v1991_v59  ;;  %v1993_v61 = vpop.f32.mrb[65].mxu0  ;;  %v2505_v62 = vpop.f32.mrb[65].mxu1 }
 0x1a5   : > { %4324 = vtanh.f32 %v2503_v60  ;;  %v1994_v1 = vpop.f32.mrb[66].mxu0  ;;  %v2506_v2 = vpop.f32.mrb[66].mxu1 }
 0x1a6   : > { %v4315_v5 = vpop.eup %4314  ;;  %4326 = vtanh.f32 %v1994_v1  ;;  %v1996_v6 = vpop.f32.mrb[67].mxu0 }
 0x1a7   : > { %v2508_v7 = vpop.f32.mrb[67].mxu1  ;;  %v4317_v8 = vpop.eup %4316  ;;  %3172 = vst [vmem:[%s4921_s21 + $0xf0] sm:$0xff] %v4315_v5  ;;  %4328 = vtanh.f32 %v2506_v2 }
 0x1a8   : > { %v4319_v9 = vpop.eup %4318  ;;  %3300 = vst [vmem:[%s4921_s21 + $0x4f0] sm:$0xff] %v4317_v8  ;;  %2206 = vmatmul.mubr.bf16.gmra.mrb[172].mxu0 %v4072_v63  ;;  %2718 = vmatmul.mubr.bf16.gmra.mrb[172].mxu1 %v4073_v0  ;;  %v4096_v63 = vld [vmem:[%s4765_s18 + $0x2f0] ss:$8 sps:$4 sm:$0xff]  }
 0x1a9   : > { %v4321_v10 = vpop.eup %4320  ;;  %3173 = vst [vmem:[%s4921_s21 + $0xf8] sm:$0xff] %v4319_v9  ;;  %2213 = vmatprep.mubr.bf16.mxu0 %v4074_v3  ;;  %2725 = vmatprep.mubr.bf16.mxu1 %v4076_v4  ;;  %v4097_v0 = vld [vmem:[%s4765_s18 + $0x6f0] ss:$8 sps:$4 sm:$0xff]   ;;  %v4098_v3 = vld [vmem:[%s4765_s18 + $0x304] ss:$8 sps:$4 sm:$0xff]  }
 0x1aa   : > { %3301 = vst [vmem:[%s4921_s21 + $0x4f8] sm:$0xff] %v4321_v10  ;;  %v4100_v4 = vld [vmem:[%s4765_s18 + $0x704] ss:$8 sps:$4 sm:$0xff]  }
 0x1ab   : > { %v1999_v11 = vpop.f32.mrb[68].mxu0  ;;  %v2511_v12 = vpop.f32.mrb[68].mxu1 }
 0x1ac   : > { %4330 = vtanh.f32 %v1999_v11  ;;  %v2001_v13 = vpop.f32.mrb[69].mxu0  ;;  %v2513_v14 = vpop.f32.mrb[69].mxu1 }
 0x1ad   : > { %4332 = vtanh.f32 %v2511_v12  ;;  %v2002_v17 = vpop.f32.mrb[70].mxu0  ;;  %v2514_v18 = vpop.f32.mrb[70].mxu1 }
 0x1ae   : > { %v4323_v21 = vpop.eup %4322  ;;  %4334 = vtanh.f32 %v2002_v17  ;;  %v2004_v22 = vpop.f32.mrb[71].mxu0 }
 0x1af   : > { %v2516_v23 = vpop.f32.mrb[71].mxu1  ;;  %v4325_v24 = vpop.eup %4324  ;;  %3174 = vst [vmem:[%s4921_s21 + $0x100] sm:$0xff] %v4323_v21  ;;  %4336 = vtanh.f32 %v2514_v18 }
 0x1b0   : > { %v4327_v25 = vpop.eup %4326  ;;  %3302 = vst [vmem:[%s4921_s21 + $0x500] sm:$0xff] %v4325_v24  ;;  %2214 = vmatmul.mubr.bf16.gmra.mrb[176].mxu0 %v4078_v15  ;;  %2726 = vmatmul.mubr.bf16.gmra.mrb[176].mxu1 %v4079_v16  ;;  %v4102_v15 = vld [vmem:[%s4765_s18 + $0x300] ss:$8 sps:$4 sm:$0xff]  }
 0x1b1   : > { %v4329_v26 = vpop.eup %4328  ;;  %3175 = vst [vmem:[%s4921_s21 + $0x108] sm:$0xff] %v4327_v25  ;;  %2221 = vmatprep.mubr.bf16.mxu0 %v4080_v19  ;;  %2733 = vmatprep.mubr.bf16.mxu1 %v4082_v20  ;;  %v4103_v16 = vld [vmem:[%s4765_s18 + $0x700] ss:$8 sps:$4 sm:$0xff]   ;;  %v4104_v19 = vld [vmem:[%s4765_s18 + $0x314] ss:$8 sps:$4 sm:$0xff]  }
 0x1b2   : > { %3303 = vst [vmem:[%s4921_s21 + $0x508] sm:$0xff] %v4329_v26  ;;  %v4106_v20 = vld [vmem:[%s4765_s18 + $0x714] ss:$8 sps:$4 sm:$0xff]  }
 0x1b3   : > { %v2007_v27 = vpop.f32.mrb[72].mxu0  ;;  %v2519_v28 = vpop.f32.mrb[72].mxu1 }
 0x1b4   : > { %4338 = vtanh.f32 %v2007_v27  ;;  %v2009_v29 = vpop.f32.mrb[73].mxu0  ;;  %v2521_v30 = vpop.f32.mrb[73].mxu1 }
 0x1b5   : > { %4340 = vtanh.f32 %v2519_v28  ;;  %v2010_v33 = vpop.f32.mrb[74].mxu0  ;;  %v2522_v34 = vpop.f32.mrb[74].mxu1 }
 0x1b6   : > { %v4331_v37 = vpop.eup %4330  ;;  %4342 = vtanh.f32 %v2010_v33  ;;  %v2012_v38 = vpop.f32.mrb[75].mxu0 }
 0x1b7   : > { %v2524_v39 = vpop.f32.mrb[75].mxu1  ;;  %v4333_v40 = vpop.eup %4332  ;;  %3176 = vst [vmem:[%s4921_s21 + $0x110] sm:$0xff] %v4331_v37  ;;  %4344 = vtanh.f32 %v2522_v34 }
 0x1b8   : > { %v4335_v41 = vpop.eup %4334  ;;  %3304 = vst [vmem:[%s4921_s21 + $0x510] sm:$0xff] %v4333_v40  ;;  %2222 = vmatmul.mubr.bf16.gmra.mrb[180].mxu0 %v4084_v31  ;;  %2734 = vmatmul.mubr.bf16.gmra.mrb[180].mxu1 %v4085_v32  ;;  %v4108_v31 = vld [vmem:[%s4765_s18 + $0x310] ss:$8 sps:$4 sm:$0xff]  }
 0x1b9   : > { %v4337_v42 = vpop.eup %4336  ;;  %3177 = vst [vmem:[%s4921_s21 + $0x118] sm:$0xff] %v4335_v41  ;;  %2229 = vmatprep.mubr.bf16.mxu0 %v4086_v35  ;;  %2741 = vmatprep.mubr.bf16.mxu1 %v4088_v36  ;;  %v4109_v32 = vld [vmem:[%s4765_s18 + $0x710] ss:$8 sps:$4 sm:$0xff]   ;;  %v4110_v35 = vld [vmem:[%s4765_s18 + $0x324] ss:$8 sps:$4 sm:$0xff]  }
 0x1ba   : > { %3305 = vst [vmem:[%s4921_s21 + $0x518] sm:$0xff] %v4337_v42  ;;  %v4112_v36 = vld [vmem:[%s4765_s18 + $0x724] ss:$8 sps:$4 sm:$0xff]  }
 0x1bb   : > { %v2015_v43 = vpop.f32.mrb[76].mxu0  ;;  %v2527_v44 = vpop.f32.mrb[76].mxu1 }
 0x1bc   : > { %4346 = vtanh.f32 %v2015_v43  ;;  %v2017_v45 = vpop.f32.mrb[77].mxu0  ;;  %v2529_v46 = vpop.f32.mrb[77].mxu1 }
 0x1bd   : > { %4348 = vtanh.f32 %v2527_v44  ;;  %v2018_v49 = vpop.f32.mrb[78].mxu0  ;;  %v2530_v50 = vpop.f32.mrb[78].mxu1 }
 0x1be   : > { %v4339_v53 = vpop.eup %4338  ;;  %4350 = vtanh.f32 %v2018_v49  ;;  %v2020_v54 = vpop.f32.mrb[79].mxu0 }
 0x1bf   : > { %v2532_v55 = vpop.f32.mrb[79].mxu1  ;;  %v4341_v56 = vpop.eup %4340  ;;  %3178 = vst [vmem:[%s4921_s21 + $0x120] sm:$0xff] %v4339_v53  ;;  %4352 = vtanh.f32 %v2530_v50 }
 0x1c0   : > { %v4343_v57 = vpop.eup %4342  ;;  %3306 = vst [vmem:[%s4921_s21 + $0x520] sm:$0xff] %v4341_v56  ;;  %2230 = vmatmul.mubr.bf16.gmra.mrb[184].mxu0 %v4090_v47  ;;  %2742 = vmatmul.mubr.bf16.gmra.mrb[184].mxu1 %v4091_v48  ;;  %v4114_v47 = vld [vmem:[%s4765_s18 + $0x320] ss:$8 sps:$4 sm:$0xff]  }
 0x1c1   : > { %v4345_v58 = vpop.eup %4344  ;;  %3179 = vst [vmem:[%s4921_s21 + $0x128] sm:$0xff] %v4343_v57  ;;  %2237 = vmatprep.mubr.bf16.mxu0 %v4092_v51  ;;  %2749 = vmatprep.mubr.bf16.mxu1 %v4094_v52  ;;  %v4115_v48 = vld [vmem:[%s4765_s18 + $0x720] ss:$8 sps:$4 sm:$0xff]   ;;  %v4116_v51 = vld [vmem:[%s4765_s18 + $0x334] ss:$8 sps:$4 sm:$0xff]  }
 0x1c2   : > { %3307 = vst [vmem:[%s4921_s21 + $0x528] sm:$0xff] %v4345_v58  ;;  %v4118_v52 = vld [vmem:[%s4765_s18 + $0x734] ss:$8 sps:$4 sm:$0xff]  }
 0x1c3   : > { %v2023_v59 = vpop.f32.mrb[80].mxu0  ;;  %v2535_v60 = vpop.f32.mrb[80].mxu1 }
 0x1c4   : > { %4354 = vtanh.f32 %v2023_v59  ;;  %v2025_v61 = vpop.f32.mrb[81].mxu0  ;;  %v2537_v62 = vpop.f32.mrb[81].mxu1 }
 0x1c5   : > { %4356 = vtanh.f32 %v2535_v60  ;;  %v2026_v1 = vpop.f32.mrb[82].mxu0  ;;  %v2538_v2 = vpop.f32.mrb[82].mxu1 }
 0x1c6   : > { %v4347_v5 = vpop.eup %4346  ;;  %4358 = vtanh.f32 %v2026_v1  ;;  %v2028_v6 = vpop.f32.mrb[83].mxu0 }
 0x1c7   : > { %v2540_v7 = vpop.f32.mrb[83].mxu1  ;;  %v4349_v8 = vpop.eup %4348  ;;  %3180 = vst [vmem:[%s4921_s21 + $0x130] sm:$0xff] %v4347_v5  ;;  %4360 = vtanh.f32 %v2538_v2 }
 0x1c8   : > { %v4351_v9 = vpop.eup %4350  ;;  %3308 = vst [vmem:[%s4921_s21 + $0x530] sm:$0xff] %v4349_v8  ;;  %2238 = vmatmul.mubr.bf16.gmra.mrb[188].mxu0 %v4096_v63  ;;  %2750 = vmatmul.mubr.bf16.gmra.mrb[188].mxu1 %v4097_v0  ;;  %v4120_v63 = vld [vmem:[%s4765_s18 + $0x330] ss:$8 sps:$4 sm:$0xff]  }
 0x1c9   : > { %v4353_v10 = vpop.eup %4352  ;;  %3181 = vst [vmem:[%s4921_s21 + $0x138] sm:$0xff] %v4351_v9  ;;  %2245 = vmatprep.mubr.bf16.mxu0 %v4098_v3  ;;  %2757 = vmatprep.mubr.bf16.mxu1 %v4100_v4  ;;  %v4121_v0 = vld [vmem:[%s4765_s18 + $0x730] ss:$8 sps:$4 sm:$0xff]   ;;  %v4122_v3 = vld [vmem:[%s4765_s18 + $0x344] ss:$8 sps:$4 sm:$0xff]  }
 0x1ca   : > { %3309 = vst [vmem:[%s4921_s21 + $0x538] sm:$0xff] %v4353_v10  ;;  %v4124_v4 = vld [vmem:[%s4765_s18 + $0x744] ss:$8 sps:$4 sm:$0xff]  }
 0x1cb   : > { %v2031_v11 = vpop.f32.mrb[84].mxu0  ;;  %v2543_v12 = vpop.f32.mrb[84].mxu1 }
 0x1cc   : > { %4362 = vtanh.f32 %v2031_v11  ;;  %v2033_v13 = vpop.f32.mrb[85].mxu0  ;;  %v2545_v14 = vpop.f32.mrb[85].mxu1 }
 0x1cd   : > { %4364 = vtanh.f32 %v2543_v12  ;;  %v2034_v17 = vpop.f32.mrb[86].mxu0  ;;  %v2546_v18 = vpop.f32.mrb[86].mxu1 }
 0x1ce   : > { %v4355_v21 = vpop.eup %4354  ;;  %4366 = vtanh.f32 %v2034_v17  ;;  %v2036_v22 = vpop.f32.mrb[87].mxu0 }
 0x1cf   : > { %v2548_v23 = vpop.f32.mrb[87].mxu1  ;;  %v4357_v24 = vpop.eup %4356  ;;  %3182 = vst [vmem:[%s4921_s21 + $0x140] sm:$0xff] %v4355_v21  ;;  %4368 = vtanh.f32 %v2546_v18 }
 0x1d0   : > { %v4359_v25 = vpop.eup %4358  ;;  %3310 = vst [vmem:[%s4921_s21 + $0x540] sm:$0xff] %v4357_v24  ;;  %2246 = vmatmul.mubr.bf16.gmra.mrb[192].mxu0 %v4102_v15  ;;  %2758 = vmatmul.mubr.bf16.gmra.mrb[192].mxu1 %v4103_v16  ;;  %v4126_v15 = vld [vmem:[%s4765_s18 + $0x340] ss:$8 sps:$4 sm:$0xff]  }
 0x1d1   : > { %v4361_v26 = vpop.eup %4360  ;;  %3183 = vst [vmem:[%s4921_s21 + $0x148] sm:$0xff] %v4359_v25  ;;  %2253 = vmatprep.mubr.bf16.mxu0 %v4104_v19  ;;  %2765 = vmatprep.mubr.bf16.mxu1 %v4106_v20  ;;  %v4127_v16 = vld [vmem:[%s4765_s18 + $0x740] ss:$8 sps:$4 sm:$0xff]   ;;  %v4128_v19 = vld [vmem:[%s4765_s18 + $0x354] ss:$8 sps:$4 sm:$0xff]  }
 0x1d2   : > { %3311 = vst [vmem:[%s4921_s21 + $0x548] sm:$0xff] %v4361_v26  ;;  %v4130_v20 = vld [vmem:[%s4765_s18 + $0x754] ss:$8 sps:$4 sm:$0xff]  }
 0x1d3   : > { %v2039_v27 = vpop.f32.mrb[88].mxu0  ;;  %v2551_v28 = vpop.f32.mrb[88].mxu1 }
 0x1d4   : > { %4370 = vtanh.f32 %v2039_v27  ;;  %v2041_v29 = vpop.f32.mrb[89].mxu0  ;;  %v2553_v30 = vpop.f32.mrb[89].mxu1 }
 0x1d5   : > { %4372 = vtanh.f32 %v2551_v28  ;;  %v2042_v33 = vpop.f32.mrb[90].mxu0  ;;  %v2554_v34 = vpop.f32.mrb[90].mxu1 }
 0x1d6   : > { %v4363_v37 = vpop.eup %4362  ;;  %4374 = vtanh.f32 %v2042_v33  ;;  %v2044_v38 = vpop.f32.mrb[91].mxu0 }
 0x1d7   : > { %v2556_v39 = vpop.f32.mrb[91].mxu1  ;;  %v4365_v40 = vpop.eup %4364  ;;  %3184 = vst [vmem:[%s4921_s21 + $0x150] sm:$0xff] %v4363_v37  ;;  %4376 = vtanh.f32 %v2554_v34 }
 0x1d8   : > { %v4367_v41 = vpop.eup %4366  ;;  %3312 = vst [vmem:[%s4921_s21 + $0x550] sm:$0xff] %v4365_v40  ;;  %2254 = vmatmul.mubr.bf16.gmra.mrb[196].mxu0 %v4108_v31  ;;  %2766 = vmatmul.mubr.bf16.gmra.mrb[196].mxu1 %v4109_v32  ;;  %v4132_v31 = vld [vmem:[%s4765_s18 + $0x350] ss:$8 sps:$4 sm:$0xff]  }
 0x1d9   : > { %v4369_v42 = vpop.eup %4368  ;;  %3185 = vst [vmem:[%s4921_s21 + $0x158] sm:$0xff] %v4367_v41  ;;  %2261 = vmatprep.mubr.bf16.mxu0 %v4110_v35  ;;  %2773 = vmatprep.mubr.bf16.mxu1 %v4112_v36  ;;  %v4133_v32 = vld [vmem:[%s4765_s18 + $0x750] ss:$8 sps:$4 sm:$0xff]   ;;  %v4134_v35 = vld [vmem:[%s4765_s18 + $0x364] ss:$8 sps:$4 sm:$0xff]  }
 0x1da   : > { %3313 = vst [vmem:[%s4921_s21 + $0x558] sm:$0xff] %v4369_v42  ;;  %v4136_v36 = vld [vmem:[%s4765_s18 + $0x764] ss:$8 sps:$4 sm:$0xff]  }
 0x1db   : > { %v2047_v43 = vpop.f32.mrb[92].mxu0  ;;  %v2559_v44 = vpop.f32.mrb[92].mxu1 }
 0x1dc   : > { %4378 = vtanh.f32 %v2047_v43  ;;  %v2049_v45 = vpop.f32.mrb[93].mxu0  ;;  %v2561_v46 = vpop.f32.mrb[93].mxu1 }
 0x1dd   : > { %4380 = vtanh.f32 %v2559_v44  ;;  %v2050_v49 = vpop.f32.mrb[94].mxu0  ;;  %v2562_v50 = vpop.f32.mrb[94].mxu1 }
 0x1de   : > { %v4371_v53 = vpop.eup %4370  ;;  %4382 = vtanh.f32 %v2050_v49  ;;  %v2052_v54 = vpop.f32.mrb[95].mxu0 }
 0x1df   : > { %v2564_v55 = vpop.f32.mrb[95].mxu1  ;;  %v4373_v56 = vpop.eup %4372  ;;  %3186 = vst [vmem:[%s4921_s21 + $0x160] sm:$0xff] %v4371_v53  ;;  %4384 = vtanh.f32 %v2562_v50 }
 0x1e0   : > { %v4375_v57 = vpop.eup %4374  ;;  %3314 = vst [vmem:[%s4921_s21 + $0x560] sm:$0xff] %v4373_v56  ;;  %2262 = vmatmul.mubr.bf16.gmra.mrb[200].mxu0 %v4114_v47  ;;  %2774 = vmatmul.mubr.bf16.gmra.mrb[200].mxu1 %v4115_v48  ;;  %v4138_v47 = vld [vmem:[%s4765_s18 + $0x360] ss:$8 sps:$4 sm:$0xff]  }
 0x1e1   : > { %v4377_v58 = vpop.eup %4376  ;;  %3187 = vst [vmem:[%s4921_s21 + $0x168] sm:$0xff] %v4375_v57  ;;  %2269 = vmatprep.mubr.bf16.mxu0 %v4116_v51  ;;  %2781 = vmatprep.mubr.bf16.mxu1 %v4118_v52  ;;  %v4139_v48 = vld [vmem:[%s4765_s18 + $0x760] ss:$8 sps:$4 sm:$0xff]   ;;  %v4140_v51 = vld [vmem:[%s4765_s18 + $0x374] ss:$8 sps:$4 sm:$0xff]  }
 0x1e2   : > { %3315 = vst [vmem:[%s4921_s21 + $0x568] sm:$0xff] %v4377_v58  ;;  %v4142_v52 = vld [vmem:[%s4765_s18 + $0x774] ss:$8 sps:$4 sm:$0xff]  }
 0x1e3   : > { %v2055_v59 = vpop.f32.mrb[96].mxu0  ;;  %v2567_v60 = vpop.f32.mrb[96].mxu1 }
 0x1e4   : > { %4386 = vtanh.f32 %v2055_v59  ;;  %v2057_v61 = vpop.f32.mrb[97].mxu0  ;;  %v2569_v62 = vpop.f32.mrb[97].mxu1 }
 0x1e5   : > { %4388 = vtanh.f32 %v2567_v60  ;;  %v2058_v1 = vpop.f32.mrb[98].mxu0  ;;  %v2570_v2 = vpop.f32.mrb[98].mxu1 }
 0x1e6   : > { %v4379_v5 = vpop.eup %4378  ;;  %4390 = vtanh.f32 %v2058_v1  ;;  %v2060_v6 = vpop.f32.mrb[99].mxu0 }
 0x1e7   : > { %v2572_v7 = vpop.f32.mrb[99].mxu1  ;;  %v4381_v8 = vpop.eup %4380  ;;  %3188 = vst [vmem:[%s4921_s21 + $0x170] sm:$0xff] %v4379_v5  ;;  %4392 = vtanh.f32 %v2570_v2 }
 0x1e8   : > { %v4383_v9 = vpop.eup %4382  ;;  %3316 = vst [vmem:[%s4921_s21 + $0x570] sm:$0xff] %v4381_v8  ;;  %2270 = vmatmul.mubr.bf16.gmra.mrb[204].mxu0 %v4120_v63  ;;  %2782 = vmatmul.mubr.bf16.gmra.mrb[204].mxu1 %v4121_v0  ;;  %v4144_v63 = vld [vmem:[%s4765_s18 + $0x370] ss:$8 sps:$4 sm:$0xff]  }
 0x1e9   : > { %v4385_v10 = vpop.eup %4384  ;;  %3189 = vst [vmem:[%s4921_s21 + $0x178] sm:$0xff] %v4383_v9  ;;  %2277 = vmatprep.mubr.bf16.mxu0 %v4122_v3  ;;  %2789 = vmatprep.mubr.bf16.mxu1 %v4124_v4  ;;  %v4145_v0 = vld [vmem:[%s4765_s18 + $0x770] ss:$8 sps:$4 sm:$0xff]   ;;  %v4146_v3 = vld [vmem:[%s4765_s18 + $0x384] ss:$8 sps:$4 sm:$0xff]  }
 0x1ea   : > { %3317 = vst [vmem:[%s4921_s21 + $0x578] sm:$0xff] %v4385_v10  ;;  %v4148_v4 = vld [vmem:[%s4765_s18 + $0x784] ss:$8 sps:$4 sm:$0xff]  }
 0x1eb   : > { %v2063_v11 = vpop.f32.mrb[100].mxu0  ;;  %v2575_v12 = vpop.f32.mrb[100].mxu1 }
 0x1ec   : > { %4394 = vtanh.f32 %v2063_v11  ;;  %v2065_v13 = vpop.f32.mrb[101].mxu0  ;;  %v2577_v14 = vpop.f32.mrb[101].mxu1 }
 0x1ed   : > { %4396 = vtanh.f32 %v2575_v12  ;;  %v2066_v17 = vpop.f32.mrb[102].mxu0  ;;  %v2578_v18 = vpop.f32.mrb[102].mxu1 }
 0x1ee   : > { %v4387_v21 = vpop.eup %4386  ;;  %4398 = vtanh.f32 %v2066_v17  ;;  %v2068_v22 = vpop.f32.mrb[103].mxu0 }
 0x1ef   : > { %v2580_v23 = vpop.f32.mrb[103].mxu1  ;;  %v4389_v24 = vpop.eup %4388  ;;  %3190 = vst [vmem:[%s4921_s21 + $0x180] sm:$0xff] %v4387_v21  ;;  %4400 = vtanh.f32 %v2578_v18 }
 0x1f0   : > { %v4391_v25 = vpop.eup %4390  ;;  %3318 = vst [vmem:[%s4921_s21 + $0x580] sm:$0xff] %v4389_v24  ;;  %2278 = vmatmul.mubr.bf16.gmra.mrb[208].mxu0 %v4126_v15  ;;  %2790 = vmatmul.mubr.bf16.gmra.mrb[208].mxu1 %v4127_v16  ;;  %v4150_v15 = vld [vmem:[%s4765_s18 + $0x380] ss:$8 sps:$4 sm:$0xff]  }
 0x1f1   : > { %v4393_v26 = vpop.eup %4392  ;;  %3191 = vst [vmem:[%s4921_s21 + $0x188] sm:$0xff] %v4391_v25  ;;  %2285 = vmatprep.mubr.bf16.mxu0 %v4128_v19  ;;  %2797 = vmatprep.mubr.bf16.mxu1 %v4130_v20  ;;  %v4151_v16 = vld [vmem:[%s4765_s18 + $0x780] ss:$8 sps:$4 sm:$0xff]   ;;  %v4152_v19 = vld [vmem:[%s4765_s18 + $0x394] ss:$8 sps:$4 sm:$0xff]  }
 0x1f2   : > { %3319 = vst [vmem:[%s4921_s21 + $0x588] sm:$0xff] %v4393_v26  ;;  %v4154_v20 = vld [vmem:[%s4765_s18 + $0x794] ss:$8 sps:$4 sm:$0xff]  }
 0x1f3   : > { %v2071_v27 = vpop.f32.mrb[104].mxu0  ;;  %v2583_v28 = vpop.f32.mrb[104].mxu1 }
 0x1f4   : > { %4402 = vtanh.f32 %v2071_v27  ;;  %v2073_v29 = vpop.f32.mrb[105].mxu0  ;;  %v2585_v30 = vpop.f32.mrb[105].mxu1 }
 0x1f5   : > { %4404 = vtanh.f32 %v2583_v28  ;;  %v2074_v33 = vpop.f32.mrb[106].mxu0  ;;  %v2586_v34 = vpop.f32.mrb[106].mxu1 }
 0x1f6   : > { %v4395_v37 = vpop.eup %4394  ;;  %4406 = vtanh.f32 %v2074_v33  ;;  %v2076_v38 = vpop.f32.mrb[107].mxu0 }
 0x1f7   : > { %v2588_v39 = vpop.f32.mrb[107].mxu1  ;;  %v4397_v40 = vpop.eup %4396  ;;  %3192 = vst [vmem:[%s4921_s21 + $0x190] sm:$0xff] %v4395_v37  ;;  %4408 = vtanh.f32 %v2586_v34 }
 0x1f8   : > { %v4399_v41 = vpop.eup %4398  ;;  %3320 = vst [vmem:[%s4921_s21 + $0x590] sm:$0xff] %v4397_v40  ;;  %2286 = vmatmul.mubr.bf16.gmra.mrb[212].mxu0 %v4132_v31  ;;  %2798 = vmatmul.mubr.bf16.gmra.mrb[212].mxu1 %v4133_v32  ;;  %v4156_v31 = vld [vmem:[%s4765_s18 + $0x390] ss:$8 sps:$4 sm:$0xff]  }
 0x1f9   : > { %v4401_v42 = vpop.eup %4400  ;;  %3193 = vst [vmem:[%s4921_s21 + $0x198] sm:$0xff] %v4399_v41  ;;  %2293 = vmatprep.mubr.bf16.mxu0 %v4134_v35  ;;  %2805 = vmatprep.mubr.bf16.mxu1 %v4136_v36  ;;  %v4157_v32 = vld [vmem:[%s4765_s18 + $0x790] ss:$8 sps:$4 sm:$0xff]   ;;  %v4158_v35 = vld [vmem:[%s4765_s18 + $0x3a4] ss:$8 sps:$4 sm:$0xff]  }
 0x1fa   : > { %3321 = vst [vmem:[%s4921_s21 + $0x598] sm:$0xff] %v4401_v42  ;;  %v4160_v36 = vld [vmem:[%s4765_s18 + $0x7a4] ss:$8 sps:$4 sm:$0xff]  }
 0x1fb   : > { %v2079_v43 = vpop.f32.mrb[108].mxu0  ;;  %v2591_v44 = vpop.f32.mrb[108].mxu1 }
 0x1fc   : > { %4410 = vtanh.f32 %v2079_v43  ;;  %v2081_v45 = vpop.f32.mrb[109].mxu0  ;;  %v2593_v46 = vpop.f32.mrb[109].mxu1 }
 0x1fd   : > { %4412 = vtanh.f32 %v2591_v44  ;;  %v2082_v49 = vpop.f32.mrb[110].mxu0  ;;  %v2594_v50 = vpop.f32.mrb[110].mxu1 }
 0x1fe   : > { %v4403_v53 = vpop.eup %4402  ;;  %4414 = vtanh.f32 %v2082_v49  ;;  %v2084_v54 = vpop.f32.mrb[111].mxu0 }
 0x1ff   : > { %v2596_v55 = vpop.f32.mrb[111].mxu1  ;;  %v4405_v56 = vpop.eup %4404  ;;  %3194 = vst [vmem:[%s4921_s21 + $0x1a0] sm:$0xff] %v4403_v53  ;;  %4416 = vtanh.f32 %v2594_v50 }
 0x200   : > { %v4407_v57 = vpop.eup %4406  ;;  %3322 = vst [vmem:[%s4921_s21 + $0x5a0] sm:$0xff] %v4405_v56  ;;  %2294 = vmatmul.mubr.bf16.gmra.mrb[216].mxu0 %v4138_v47  ;;  %2806 = vmatmul.mubr.bf16.gmra.mrb[216].mxu1 %v4139_v48  ;;  %v4162_v47 = vld [vmem:[%s4765_s18 + $0x3a0] ss:$8 sps:$4 sm:$0xff]  }
 0x201   : > { %v4409_v58 = vpop.eup %4408  ;;  %3195 = vst [vmem:[%s4921_s21 + $0x1a8] sm:$0xff] %v4407_v57  ;;  %2301 = vmatprep.mubr.bf16.mxu0 %v4140_v51  ;;  %2813 = vmatprep.mubr.bf16.mxu1 %v4142_v52  ;;  %v4163_v48 = vld [vmem:[%s4765_s18 + $0x7a0] ss:$8 sps:$4 sm:$0xff]   ;;  %v4164_v51 = vld [vmem:[%s4765_s18 + $0x3b4] ss:$8 sps:$4 sm:$0xff]  }
 0x202   : > { %3323 = vst [vmem:[%s4921_s21 + $0x5a8] sm:$0xff] %v4409_v58  ;;  %v4166_v52 = vld [vmem:[%s4765_s18 + $0x7b4] ss:$8 sps:$4 sm:$0xff]  }
 0x203   : > { %v2087_v59 = vpop.f32.mrb[112].mxu0  ;;  %v2599_v60 = vpop.f32.mrb[112].mxu1 }
 0x204   : > { %4418 = vtanh.f32 %v2087_v59  ;;  %v2089_v61 = vpop.f32.mrb[113].mxu0  ;;  %v2601_v62 = vpop.f32.mrb[113].mxu1 }
 0x205   : > { %4420 = vtanh.f32 %v2599_v60  ;;  %v2090_v1 = vpop.f32.mrb[114].mxu0  ;;  %v2602_v2 = vpop.f32.mrb[114].mxu1 }
 0x206   : > { %v4411_v5 = vpop.eup %4410  ;;  %4422 = vtanh.f32 %v2090_v1  ;;  %v2092_v6 = vpop.f32.mrb[115].mxu0 }
 0x207   : > { %v2604_v7 = vpop.f32.mrb[115].mxu1  ;;  %v4413_v8 = vpop.eup %4412  ;;  %3196 = vst [vmem:[%s4921_s21 + $0x1b0] sm:$0xff] %v4411_v5  ;;  %4424 = vtanh.f32 %v2602_v2 }
 0x208   : > { %v4415_v9 = vpop.eup %4414  ;;  %3324 = vst [vmem:[%s4921_s21 + $0x5b0] sm:$0xff] %v4413_v8  ;;  %2302 = vmatmul.mubr.bf16.gmra.mrb[220].mxu0 %v4144_v63  ;;  %2814 = vmatmul.mubr.bf16.gmra.mrb[220].mxu1 %v4145_v0  ;;  %v4168_v63 = vld [vmem:[%s4765_s18 + $0x3b0] ss:$8 sps:$4 sm:$0xff]  }
 0x209   : > { %v4417_v10 = vpop.eup %4416  ;;  %3197 = vst [vmem:[%s4921_s21 + $0x1b8] sm:$0xff] %v4415_v9  ;;  %2309 = vmatprep.mubr.bf16.mxu0 %v4146_v3  ;;  %2821 = vmatprep.mubr.bf16.mxu1 %v4148_v4  ;;  %v4169_v0 = vld [vmem:[%s4765_s18 + $0x7b0] ss:$8 sps:$4 sm:$0xff]   ;;  %v4170_v3 = vld [vmem:[%s4765_s18 + $0x3c4] ss:$8 sps:$4 sm:$0xff]  }
 0x20a   : > { %3325 = vst [vmem:[%s4921_s21 + $0x5b8] sm:$0xff] %v4417_v10  ;;  %v4172_v4 = vld [vmem:[%s4765_s18 + $0x7c4] ss:$8 sps:$4 sm:$0xff]  }
 0x20b   : > { %v2095_v11 = vpop.f32.mrb[116].mxu0  ;;  %v2607_v12 = vpop.f32.mrb[116].mxu1 }
 0x20c   : > { %4426 = vtanh.f32 %v2095_v11  ;;  %v2097_v13 = vpop.f32.mrb[117].mxu0  ;;  %v2609_v14 = vpop.f32.mrb[117].mxu1 }
 0x20d   : > { %4428 = vtanh.f32 %v2607_v12  ;;  %v2098_v17 = vpop.f32.mrb[118].mxu0  ;;  %v2610_v18 = vpop.f32.mrb[118].mxu1 }
 0x20e   : > { %v4419_v21 = vpop.eup %4418  ;;  %4430 = vtanh.f32 %v2098_v17  ;;  %v2100_v22 = vpop.f32.mrb[119].mxu0 }
 0x20f   : > { %v2612_v23 = vpop.f32.mrb[119].mxu1  ;;  %v4421_v24 = vpop.eup %4420  ;;  %3198 = vst [vmem:[%s4921_s21 + $0x1c0] sm:$0xff] %v4419_v21  ;;  %4432 = vtanh.f32 %v2610_v18 }
 0x210   : > { %v4423_v25 = vpop.eup %4422  ;;  %3326 = vst [vmem:[%s4921_s21 + $0x5c0] sm:$0xff] %v4421_v24  ;;  %2310 = vmatmul.mubr.bf16.gmra.mrb[224].mxu0 %v4150_v15  ;;  %2822 = vmatmul.mubr.bf16.gmra.mrb[224].mxu1 %v4151_v16  ;;  %v4174_v15 = vld [vmem:[%s4765_s18 + $0x3c0] ss:$8 sps:$4 sm:$0xff]  }
 0x211   : > { %v4425_v26 = vpop.eup %4424  ;;  %3199 = vst [vmem:[%s4921_s21 + $0x1c8] sm:$0xff] %v4423_v25  ;;  %2317 = vmatprep.mubr.bf16.mxu0 %v4152_v19  ;;  %2829 = vmatprep.mubr.bf16.mxu1 %v4154_v20  ;;  %v4175_v16 = vld [vmem:[%s4765_s18 + $0x7c0] ss:$8 sps:$4 sm:$0xff]   ;;  %v4176_v19 = vld [vmem:[%s4765_s18 + $0x3d4] ss:$8 sps:$4 sm:$0xff]  }
 0x212   : > { %3327 = vst [vmem:[%s4921_s21 + $0x5c8] sm:$0xff] %v4425_v26  ;;  %v4178_v20 = vld [vmem:[%s4765_s18 + $0x7d4] ss:$8 sps:$4 sm:$0xff]  }
 0x213   : > { %v2103_v27 = vpop.f32.mrb[120].mxu0  ;;  %v2615_v28 = vpop.f32.mrb[120].mxu1 }
 0x214   : > { %4434 = vtanh.f32 %v2103_v27  ;;  %v2105_v29 = vpop.f32.mrb[121].mxu0  ;;  %v2617_v30 = vpop.f32.mrb[121].mxu1 }
 0x215   : > { %4436 = vtanh.f32 %v2615_v28  ;;  %v2106_v33 = vpop.f32.mrb[122].mxu0  ;;  %v2618_v34 = vpop.f32.mrb[122].mxu1 }
 0x216   : > { %v4427_v37 = vpop.eup %4426  ;;  %4438 = vtanh.f32 %v2106_v33  ;;  %v2108_v38 = vpop.f32.mrb[123].mxu0 }
 0x217   : > { %v2620_v39 = vpop.f32.mrb[123].mxu1  ;;  %v4429_v40 = vpop.eup %4428  ;;  %3200 = vst [vmem:[%s4921_s21 + $0x1d0] sm:$0xff] %v4427_v37  ;;  %4440 = vtanh.f32 %v2618_v34 }
 0x218   : > { %v4431_v41 = vpop.eup %4430  ;;  %3328 = vst [vmem:[%s4921_s21 + $0x5d0] sm:$0xff] %v4429_v40  ;;  %2318 = vmatmul.mubr.bf16.gmra.mrb[228].mxu0 %v4156_v31  ;;  %2830 = vmatmul.mubr.bf16.gmra.mrb[228].mxu1 %v4157_v32  ;;  %v4180_v31 = vld [vmem:[%s4765_s18 + $0x3d0] ss:$8 sps:$4 sm:$0xff]  }
 0x219   : > { %v4433_v42 = vpop.eup %4432  ;;  %3201 = vst [vmem:[%s4921_s21 + $0x1d8] sm:$0xff] %v4431_v41  ;;  %2325 = vmatprep.mubr.bf16.mxu0 %v4158_v35  ;;  %2837 = vmatprep.mubr.bf16.mxu1 %v4160_v36  ;;  %v4181_v32 = vld [vmem:[%s4765_s18 + $0x7d0] ss:$8 sps:$4 sm:$0xff]   ;;  %v4182_v35 = vld [vmem:[%s4765_s18 + $0x3e4] ss:$8 sps:$4 sm:$0xff]  }
 0x21a   : > { %3329 = vst [vmem:[%s4921_s21 + $0x5d8] sm:$0xff] %v4433_v42  ;;  %v4184_v36 = vld [vmem:[%s4765_s18 + $0x7e4] ss:$8 sps:$4 sm:$0xff]  }
 0x21b   : > { %v2111_v43 = vpop.f32.mrb[124].mxu0  ;;  %v2623_v44 = vpop.f32.mrb[124].mxu1 }
 0x21c   : > { %4442 = vtanh.f32 %v2111_v43  ;;  %v2113_v45 = vpop.f32.mrb[125].mxu0  ;;  %v2625_v46 = vpop.f32.mrb[125].mxu1 }
 0x21d   : > { %4444 = vtanh.f32 %v2623_v44  ;;  %v2114_v49 = vpop.f32.mrb[126].mxu0  ;;  %v2626_v50 = vpop.f32.mrb[126].mxu1 }
 0x21e   : > { %v4435_v53 = vpop.eup %4434  ;;  %4446 = vtanh.f32 %v2114_v49  ;;  %v2116_v54 = vpop.f32.mrb[127].mxu0 }
 0x21f   : > { %v2628_v55 = vpop.f32.mrb[127].mxu1  ;;  %v4437_v56 = vpop.eup %4436  ;;  %3202 = vst [vmem:[%s4921_s21 + $0x1e0] sm:$0xff] %v4435_v53  ;;  %4448 = vtanh.f32 %v2626_v50 }
 0x220   : > { %v4439_v57 = vpop.eup %4438  ;;  %3330 = vst [vmem:[%s4921_s21 + $0x5e0] sm:$0xff] %v4437_v56  ;;  %2326 = vmatmul.mubr.bf16.gmra.mrb[232].mxu0 %v4162_v47  ;;  %2838 = vmatmul.mubr.bf16.gmra.mrb[232].mxu1 %v4163_v48  ;;  %v4186_v47 = vld [vmem:[%s4765_s18 + $0x3e0] ss:$8 sps:$4 sm:$0xff]  }
 0x221   : > { %v4441_v58 = vpop.eup %4440  ;;  %3203 = vst [vmem:[%s4921_s21 + $0x1e8] sm:$0xff] %v4439_v57  ;;  %2333 = vmatprep.mubr.bf16.mxu0 %v4164_v51  ;;  %2845 = vmatprep.mubr.bf16.mxu1 %v4166_v52  ;;  %v4187_v48 = vld [vmem:[%s4765_s18 + $0x7e0] ss:$8 sps:$4 sm:$0xff]   ;;  %v4188_v51 = vld [vmem:[%s4765_s18 + $0x3f4] ss:$8 sps:$4 sm:$0xff]  }
 0x222   : > { %3331 = vst [vmem:[%s4921_s21 + $0x5e8] sm:$0xff] %v4441_v58  ;;  %v4190_v52 = vld [vmem:[%s4765_s18 + $0x7f4] ss:$8 sps:$4 sm:$0xff]  }
 0x223   : > { %v2119_v59 = vpop.f32.mrb[128].mxu0  ;;  %v2631_v60 = vpop.f32.mrb[128].mxu1 }
 0x224   : > { %4450 = vtanh.f32 %v2119_v59  ;;  %v2121_v61 = vpop.f32.mrb[129].mxu0  ;;  %v2633_v62 = vpop.f32.mrb[129].mxu1 }
 0x225   : > { %4452 = vtanh.f32 %v2631_v60  ;;  %v2122_v1 = vpop.f32.mrb[130].mxu0  ;;  %v2634_v2 = vpop.f32.mrb[130].mxu1 }
 0x226   : > { %v4443_v5 = vpop.eup %4442  ;;  %4454 = vtanh.f32 %v2122_v1  ;;  %v2124_v6 = vpop.f32.mrb[131].mxu0 }
 0x227   : > { %v2636_v7 = vpop.f32.mrb[131].mxu1  ;;  %v4445_v8 = vpop.eup %4444  ;;  %3204 = vst [vmem:[%s4921_s21 + $0x1f0] sm:$0xff] %v4443_v5  ;;  %4456 = vtanh.f32 %v2634_v2 }
 0x228   : > { %v4447_v9 = vpop.eup %4446  ;;  %3332 = vst [vmem:[%s4921_s21 + $0x5f0] sm:$0xff] %v4445_v8  ;;  %2334 = vmatmul.mubr.bf16.gmra.mrb[236].mxu0 %v4168_v63  ;;  %2846 = vmatmul.mubr.bf16.gmra.mrb[236].mxu1 %v4169_v0  ;;  %v4192_v63 = vld [vmem:[%s4765_s18 + $0x3f0] ss:$8 sps:$4 sm:$0xff]  }
 0x229   : > { %v4449_v10 = vpop.eup %4448  ;;  %3205 = vst [vmem:[%s4921_s21 + $0x1f8] sm:$0xff] %v4447_v9  ;;  %2341 = vmatprep.mubr.bf16.mxu0 %v4170_v3  ;;  %2853 = vmatprep.mubr.bf16.mxu1 %v4172_v4  ;;  %v4193_v0 = vld [vmem:[%s4765_s18 + $0x7f0] ss:$8 sps:$4 sm:$0xff]  }
 0x22a   : > { %3333 = vst [vmem:[%s4921_s21 + $0x5f8] sm:$0xff] %v4449_v10 }
 0x22b   : > { %v2127_v11 = vpop.f32.mrb[132].mxu0  ;;  %v2639_v12 = vpop.f32.mrb[132].mxu1 }
 0x22c   : > { %4458 = vtanh.f32 %v2127_v11  ;;  %v2129_v13 = vpop.f32.mrb[133].mxu0  ;;  %v2641_v14 = vpop.f32.mrb[133].mxu1 }
 0x22d   : > { %4460 = vtanh.f32 %v2639_v12  ;;  %v2130_v17 = vpop.f32.mrb[134].mxu0  ;;  %v2642_v18 = vpop.f32.mrb[134].mxu1 }
 0x22e   : > { %v4451_v21 = vpop.eup %4450  ;;  %4462 = vtanh.f32 %v2130_v17  ;;  %v2132_v22 = vpop.f32.mrb[135].mxu0 }
 0x22f   : > { %v2644_v23 = vpop.f32.mrb[135].mxu1  ;;  %v4453_v24 = vpop.eup %4452  ;;  %3206 = vst [vmem:[%s4921_s21 + $0x200] sm:$0xff] %v4451_v21  ;;  %4464 = vtanh.f32 %v2642_v18 }
 0x230   : > { %v4455_v25 = vpop.eup %4454  ;;  %3334 = vst [vmem:[%s4921_s21 + $0x600] sm:$0xff] %v4453_v24  ;;  %2342 = vmatmul.mubr.bf16.gmra.mrb[240].mxu0 %v4174_v15  ;;  %2854 = vmatmul.mubr.bf16.gmra.mrb[240].mxu1 %v4175_v16 }
 0x231   : > { %v4457_v26 = vpop.eup %4456  ;;  %3207 = vst [vmem:[%s4921_s21 + $0x208] sm:$0xff] %v4455_v25  ;;  %2349 = vmatprep.mubr.bf16.mxu0 %v4176_v19  ;;  %2861 = vmatprep.mubr.bf16.mxu1 %v4178_v20 }
 0x232   : > { %3335 = vst [vmem:[%s4921_s21 + $0x608] sm:$0xff] %v4457_v26 }
 0x233   : > { %v2135_v27 = vpop.f32.mrb[136].mxu0  ;;  %v2647_v28 = vpop.f32.mrb[136].mxu1 }
 0x234   : > { %4466 = vtanh.f32 %v2135_v27  ;;  %v2137_v29 = vpop.f32.mrb[137].mxu0  ;;  %v2649_v30 = vpop.f32.mrb[137].mxu1 }
 0x235   : > { %4468 = vtanh.f32 %v2647_v28  ;;  %v2138_v33 = vpop.f32.mrb[138].mxu0  ;;  %v2650_v34 = vpop.f32.mrb[138].mxu1 }
 0x236   : > { %v4459_v37 = vpop.eup %4458  ;;  %4470 = vtanh.f32 %v2138_v33  ;;  %v2140_v38 = vpop.f32.mrb[139].mxu0 }
 0x237   : > { %v2652_v39 = vpop.f32.mrb[139].mxu1  ;;  %v4461_v40 = vpop.eup %4460  ;;  %3208 = vst [vmem:[%s4921_s21 + $0x210] sm:$0xff] %v4459_v37  ;;  %4472 = vtanh.f32 %v2650_v34 }
 0x238   : > { %v4463_v41 = vpop.eup %4462  ;;  %3336 = vst [vmem:[%s4921_s21 + $0x610] sm:$0xff] %v4461_v40  ;;  %2350 = vmatmul.mubr.bf16.gmra.mrb[244].mxu0 %v4180_v31  ;;  %2862 = vmatmul.mubr.bf16.gmra.mrb[244].mxu1 %v4181_v32 }
 0x239   : > { %v4465_v42 = vpop.eup %4464  ;;  %3209 = vst [vmem:[%s4921_s21 + $0x218] sm:$0xff] %v4463_v41  ;;  %2357 = vmatprep.mubr.bf16.mxu0 %v4182_v35  ;;  %2869 = vmatprep.mubr.bf16.mxu1 %v4184_v36 }
 0x23a   : > { %3337 = vst [vmem:[%s4921_s21 + $0x618] sm:$0xff] %v4465_v42 }
 0x23b   : > { %v2143_v43 = vpop.f32.mrb[140].mxu0  ;;  %v2655_v44 = vpop.f32.mrb[140].mxu1 }
 0x23c   : > { %4474 = vtanh.f32 %v2143_v43  ;;  %v2145_v45 = vpop.f32.mrb[141].mxu0  ;;  %v2657_v46 = vpop.f32.mrb[141].mxu1 }
 0x23d   : > { %4476 = vtanh.f32 %v2655_v44  ;;  %v2146_v49 = vpop.f32.mrb[142].mxu0  ;;  %v2658_v50 = vpop.f32.mrb[142].mxu1 }
 0x23e   : > { %v4467_v53 = vpop.eup %4466  ;;  %4478 = vtanh.f32 %v2146_v49  ;;  %v2148_v54 = vpop.f32.mrb[143].mxu0 }
 0x23f   : > { %v2660_v55 = vpop.f32.mrb[143].mxu1  ;;  %v4469_v56 = vpop.eup %4468  ;;  %3210 = vst [vmem:[%s4921_s21 + $0x220] sm:$0xff] %v4467_v53  ;;  %4480 = vtanh.f32 %v2658_v50 }
 0x240   : > { %v4471_v57 = vpop.eup %4470  ;;  %3338 = vst [vmem:[%s4921_s21 + $0x620] sm:$0xff] %v4469_v56  ;;  %2358 = vmatmul.mubr.bf16.gmra.mrb[248].mxu0 %v4186_v47  ;;  %2870 = vmatmul.mubr.bf16.gmra.mrb[248].mxu1 %v4187_v48 }
 0x241   : > { %v4473_v58 = vpop.eup %4472  ;;  %3211 = vst [vmem:[%s4921_s21 + $0x228] sm:$0xff] %v4471_v57  ;;  %2365 = vmatprep.mubr.bf16.mxu0 %v4188_v51  ;;  %2877 = vmatprep.mubr.bf16.mxu1 %v4190_v52 }
 0x242   : > { %3339 = vst [vmem:[%s4921_s21 + $0x628] sm:$0xff] %v4473_v58 }
 0x243   : > { %v2151_v59 = vpop.f32.mrb[144].mxu0  ;;  %v2663_v60 = vpop.f32.mrb[144].mxu1 }
 0x244   : > { %4482 = vtanh.f32 %v2151_v59  ;;  %v2153_v61 = vpop.f32.mrb[145].mxu0  ;;  %v2665_v62 = vpop.f32.mrb[145].mxu1 }
 0x245   : > { %4484 = vtanh.f32 %v2663_v60  ;;  %v2154_v1 = vpop.f32.mrb[146].mxu0  ;;  %v2666_v2 = vpop.f32.mrb[146].mxu1 }
 0x246   : > { %v4475_v3 = vpop.eup %4474  ;;  %4486 = vtanh.f32 %v2154_v1  ;;  %v2156_v4 = vpop.f32.mrb[147].mxu0 }
 0x247   : > { %v2668_v5 = vpop.f32.mrb[147].mxu1  ;;  %v4477_v6 = vpop.eup %4476  ;;  %3212 = vst [vmem:[%s4921_s21 + $0x230] sm:$0xff] %v4475_v3  ;;  %4488 = vtanh.f32 %v2666_v2 }
 0x248   : > { %v4479_v7 = vpop.eup %4478  ;;  %3340 = vst [vmem:[%s4921_s21 + $0x630] sm:$0xff] %v4477_v6  ;;  %2366 = vmatmul.mubr.bf16.gmra.mrb[252].mxu0 %v4192_v63  ;;  %2878 = vmatmul.mubr.bf16.gmra.mrb[252].mxu1 %v4193_v0 }
 0x249   : > { %v4481_v8 = vpop.eup %4480  ;;  %3213 = vst [vmem:[%s4921_s21 + $0x238] sm:$0xff] %v4479_v7 }
 0x24a   : > { %3341 = vst [vmem:[%s4921_s21 + $0x638] sm:$0xff] %v4481_v8 }
 0x24b   : > { %v2159_v9 = vpop.f32.mrb[148].mxu0  ;;  %v2671_v10 = vpop.f32.mrb[148].mxu1 }
 0x24c   : > { %4490 = vtanh.f32 %v2159_v9  ;;  %v2161_v11 = vpop.f32.mrb[149].mxu0  ;;  %v2673_v12 = vpop.f32.mrb[149].mxu1 }
 0x24d   : > { %4492 = vtanh.f32 %v2671_v10  ;;  %v2162_v13 = vpop.f32.mrb[150].mxu0  ;;  %v2674_v14 = vpop.f32.mrb[150].mxu1 }
 0x24e   : > { %v4483_v15 = vpop.eup %4482  ;;  %4494 = vtanh.f32 %v2162_v13  ;;  %v2164_v16 = vpop.f32.mrb[151].mxu0 }
 0x24f   : > { %v2676_v17 = vpop.f32.mrb[151].mxu1  ;;  %v4485_v18 = vpop.eup %4484  ;;  %3214 = vst [vmem:[%s4921_s21 + $0x240] sm:$0xff] %v4483_v15  ;;  %4496 = vtanh.f32 %v2674_v14 }
 0x250   : > { %v4487_v19 = vpop.eup %4486  ;;  %3342 = vst [vmem:[%s4921_s21 + $0x640] sm:$0xff] %v4485_v18 }
 0x251   : > { %v4489_v20 = vpop.eup %4488  ;;  %3215 = vst [vmem:[%s4921_s21 + $0x248] sm:$0xff] %v4487_v19 }
 0x252   : > { %3343 = vst [vmem:[%s4921_s21 + $0x648] sm:$0xff] %v4489_v20 }
 0x253   : > { %v2167_v21 = vpop.f32.mrb[152].mxu0  ;;  %v2679_v22 = vpop.f32.mrb[152].mxu1 }
 0x254   : > { %4498 = vtanh.f32 %v2167_v21  ;;  %v2169_v23 = vpop.f32.mrb[153].mxu0  ;;  %v2681_v24 = vpop.f32.mrb[153].mxu1 }
 0x255   : > { %4500 = vtanh.f32 %v2679_v22  ;;  %v2170_v25 = vpop.f32.mrb[154].mxu0  ;;  %v2682_v26 = vpop.f32.mrb[154].mxu1 }
 0x256   : > { %v4491_v27 = vpop.eup %4490  ;;  %4502 = vtanh.f32 %v2170_v25  ;;  %v2172_v28 = vpop.f32.mrb[155].mxu0 }
 0x257   : > { %v2684_v29 = vpop.f32.mrb[155].mxu1  ;;  %v4493_v30 = vpop.eup %4492  ;;  %3216 = vst [vmem:[%s4921_s21 + $0x250] sm:$0xff] %v4491_v27  ;;  %4504 = vtanh.f32 %v2682_v26 }
 0x258   : > { %v4495_v31 = vpop.eup %4494  ;;  %3344 = vst [vmem:[%s4921_s21 + $0x650] sm:$0xff] %v4493_v30 }
 0x259   : > { %v4497_v32 = vpop.eup %4496  ;;  %3217 = vst [vmem:[%s4921_s21 + $0x258] sm:$0xff] %v4495_v31 }
 0x25a   : > { %3345 = vst [vmem:[%s4921_s21 + $0x658] sm:$0xff] %v4497_v32 }
 0x25b   : > { %v2175_v33 = vpop.f32.mrb[156].mxu0  ;;  %v2687_v34 = vpop.f32.mrb[156].mxu1 }
 0x25c   : > { %4506 = vtanh.f32 %v2175_v33  ;;  %v2177_v35 = vpop.f32.mrb[157].mxu0  ;;  %v2689_v36 = vpop.f32.mrb[157].mxu1 }
 0x25d   : > { %4508 = vtanh.f32 %v2687_v34  ;;  %v2178_v37 = vpop.f32.mrb[158].mxu0  ;;  %v2690_v38 = vpop.f32.mrb[158].mxu1 }
 0x25e   : > { %v4499_v39 = vpop.eup %4498  ;;  %4510 = vtanh.f32 %v2178_v37  ;;  %v2180_v40 = vpop.f32.mrb[159].mxu0 }
 0x25f   : > { %v2692_v41 = vpop.f32.mrb[159].mxu1  ;;  %v4501_v42 = vpop.eup %4500  ;;  %3218 = vst [vmem:[%s4921_s21 + $0x260] sm:$0xff] %v4499_v39  ;;  %4512 = vtanh.f32 %v2690_v38 }
 0x260   : > { %v4503_v43 = vpop.eup %4502  ;;  %3346 = vst [vmem:[%s4921_s21 + $0x660] sm:$0xff] %v4501_v42 }
 0x261   : > { %v4505_v44 = vpop.eup %4504  ;;  %3219 = vst [vmem:[%s4921_s21 + $0x268] sm:$0xff] %v4503_v43 }
 0x262   : > { %3347 = vst [vmem:[%s4921_s21 + $0x668] sm:$0xff] %v4505_v44 }
 0x263   : > { %v2183_v45 = vpop.f32.mrb[160].mxu0  ;;  %v2695_v46 = vpop.f32.mrb[160].mxu1 }
 0x264   : > { %4514 = vtanh.f32 %v2183_v45  ;;  %v2185_v47 = vpop.f32.mrb[161].mxu0  ;;  %v2697_v48 = vpop.f32.mrb[161].mxu1 }
 0x265   : > { %4516 = vtanh.f32 %v2695_v46  ;;  %v2186_v49 = vpop.f32.mrb[162].mxu0  ;;  %v2698_v50 = vpop.f32.mrb[162].mxu1 }
 0x266   : > { %v4507_v51 = vpop.eup %4506  ;;  %4518 = vtanh.f32 %v2186_v49  ;;  %v2188_v52 = vpop.f32.mrb[163].mxu0 }
 0x267   : > { %v2700_v53 = vpop.f32.mrb[163].mxu1  ;;  %v4509_v54 = vpop.eup %4508  ;;  %3220 = vst [vmem:[%s4921_s21 + $0x270] sm:$0xff] %v4507_v51  ;;  %4520 = vtanh.f32 %v2698_v50 }
 0x268   : > { %v4511_v55 = vpop.eup %4510  ;;  %3348 = vst [vmem:[%s4921_s21 + $0x670] sm:$0xff] %v4509_v54 }
 0x269   : > { %v4513_v56 = vpop.eup %4512  ;;  %3221 = vst [vmem:[%s4921_s21 + $0x278] sm:$0xff] %v4511_v55 }
 0x26a   : > { %3349 = vst [vmem:[%s4921_s21 + $0x678] sm:$0xff] %v4513_v56 }
 0x26b   : > { %v2191_v57 = vpop.f32.mrb[164].mxu0  ;;  %v2703_v58 = vpop.f32.mrb[164].mxu1 }
 0x26c   : > { %4522 = vtanh.f32 %v2191_v57  ;;  %v2193_v59 = vpop.f32.mrb[165].mxu0  ;;  %v2705_v60 = vpop.f32.mrb[165].mxu1 }
 0x26d   : > { %4524 = vtanh.f32 %v2703_v58  ;;  %v2194_v61 = vpop.f32.mrb[166].mxu0  ;;  %v2706_v62 = vpop.f32.mrb[166].mxu1 }
 0x26e   : > { %v4515_v63 = vpop.eup %4514  ;;  %4526 = vtanh.f32 %v2194_v61  ;;  %v2196_v0 = vpop.f32.mrb[167].mxu0 }
 0x26f   : > { %v2708_v1 = vpop.f32.mrb[167].mxu1  ;;  %v4517_v2 = vpop.eup %4516  ;;  %3222 = vst [vmem:[%s4921_s21 + $0x280] sm:$0xff] %v4515_v63  ;;  %4528 = vtanh.f32 %v2706_v62 }
 0x270   : > { %v4519_v3 = vpop.eup %4518  ;;  %3350 = vst [vmem:[%s4921_s21 + $0x680] sm:$0xff] %v4517_v2 }
 0x271   : > { %v4521_v4 = vpop.eup %4520  ;;  %3223 = vst [vmem:[%s4921_s21 + $0x288] sm:$0xff] %v4519_v3 }
 0x272   : > { %3351 = vst [vmem:[%s4921_s21 + $0x688] sm:$0xff] %v4521_v4 }
 0x273   : > { %v2199_v5 = vpop.f32.mrb[168].mxu0  ;;  %v2711_v6 = vpop.f32.mrb[168].mxu1 }
 0x274   : > { %4530 = vtanh.f32 %v2199_v5  ;;  %v2201_v7 = vpop.f32.mrb[169].mxu0  ;;  %v2713_v8 = vpop.f32.mrb[169].mxu1 }
 0x275   : > { %4532 = vtanh.f32 %v2711_v6  ;;  %v2202_v9 = vpop.f32.mrb[170].mxu0  ;;  %v2714_v10 = vpop.f32.mrb[170].mxu1 }
 0x276   : > { %v4523_v11 = vpop.eup %4522  ;;  %4534 = vtanh.f32 %v2202_v9  ;;  %v2204_v12 = vpop.f32.mrb[171].mxu0 }
 0x277   : > { %v2716_v13 = vpop.f32.mrb[171].mxu1  ;;  %v4525_v14 = vpop.eup %4524  ;;  %3224 = vst [vmem:[%s4921_s21 + $0x290] sm:$0xff] %v4523_v11  ;;  %4536 = vtanh.f32 %v2714_v10 }
 0x278   : > { %v4527_v15 = vpop.eup %4526  ;;  %3352 = vst [vmem:[%s4921_s21 + $0x690] sm:$0xff] %v4525_v14 }
 0x279   : > { %v4529_v16 = vpop.eup %4528  ;;  %3225 = vst [vmem:[%s4921_s21 + $0x298] sm:$0xff] %v4527_v15 }
 0x27a   : > { %3353 = vst [vmem:[%s4921_s21 + $0x698] sm:$0xff] %v4529_v16 }
 0x27b   : > { %v2207_v17 = vpop.f32.mrb[172].mxu0  ;;  %v2719_v18 = vpop.f32.mrb[172].mxu1 }
 0x27c   : > { %4538 = vtanh.f32 %v2207_v17  ;;  %v2209_v19 = vpop.f32.mrb[173].mxu0  ;;  %v2721_v20 = vpop.f32.mrb[173].mxu1 }
 0x27d   : > { %4540 = vtanh.f32 %v2719_v18  ;;  %v2210_v21 = vpop.f32.mrb[174].mxu0  ;;  %v2722_v22 = vpop.f32.mrb[174].mxu1 }
 0x27e   : > { %v4531_v23 = vpop.eup %4530  ;;  %4542 = vtanh.f32 %v2210_v21  ;;  %v2212_v24 = vpop.f32.mrb[175].mxu0 }
 0x27f   : > { %v2724_v25 = vpop.f32.mrb[175].mxu1  ;;  %v4533_v26 = vpop.eup %4532  ;;  %3226 = vst [vmem:[%s4921_s21 + $0x2a0] sm:$0xff] %v4531_v23  ;;  %4544 = vtanh.f32 %v2722_v22 }
 0x280   : > { %v4535_v27 = vpop.eup %4534  ;;  %3354 = vst [vmem:[%s4921_s21 + $0x6a0] sm:$0xff] %v4533_v26 }
 0x281   : > { %v4537_v28 = vpop.eup %4536  ;;  %3227 = vst [vmem:[%s4921_s21 + $0x2a8] sm:$0xff] %v4535_v27 }
 0x282   : > { %3355 = vst [vmem:[%s4921_s21 + $0x6a8] sm:$0xff] %v4537_v28 }
 0x283   : > { %v2215_v29 = vpop.f32.mrb[176].mxu0  ;;  %v2727_v30 = vpop.f32.mrb[176].mxu1 }
 0x284   : > { %4546 = vtanh.f32 %v2215_v29  ;;  %v2217_v31 = vpop.f32.mrb[177].mxu0  ;;  %v2729_v32 = vpop.f32.mrb[177].mxu1 }
 0x285   : > { %4548 = vtanh.f32 %v2727_v30  ;;  %v2218_v33 = vpop.f32.mrb[178].mxu0  ;;  %v2730_v34 = vpop.f32.mrb[178].mxu1 }
 0x286   : > { %v4539_v35 = vpop.eup %4538  ;;  %4550 = vtanh.f32 %v2218_v33  ;;  %v2220_v36 = vpop.f32.mrb[179].mxu0 }
 0x287   : > { %v2732_v37 = vpop.f32.mrb[179].mxu1  ;;  %v4541_v38 = vpop.eup %4540  ;;  %3228 = vst [vmem:[%s4921_s21 + $0x2b0] sm:$0xff] %v4539_v35  ;;  %4552 = vtanh.f32 %v2730_v34 }
 0x288   : > { %v4543_v39 = vpop.eup %4542  ;;  %3356 = vst [vmem:[%s4921_s21 + $0x6b0] sm:$0xff] %v4541_v38 }
 0x289   : > { %v4545_v40 = vpop.eup %4544  ;;  %3229 = vst [vmem:[%s4921_s21 + $0x2b8] sm:$0xff] %v4543_v39 }
 0x28a   : > { %3357 = vst [vmem:[%s4921_s21 + $0x6b8] sm:$0xff] %v4545_v40 }
 0x28b   : > { %v2223_v41 = vpop.f32.mrb[180].mxu0  ;;  %v2735_v42 = vpop.f32.mrb[180].mxu1 }
 0x28c   : > { %4554 = vtanh.f32 %v2223_v41  ;;  %v2225_v43 = vpop.f32.mrb[181].mxu0  ;;  %v2737_v44 = vpop.f32.mrb[181].mxu1 }
 0x28d   : > { %4556 = vtanh.f32 %v2735_v42  ;;  %v2226_v45 = vpop.f32.mrb[182].mxu0  ;;  %v2738_v46 = vpop.f32.mrb[182].mxu1 }
 0x28e   : > { %v4547_v47 = vpop.eup %4546  ;;  %4558 = vtanh.f32 %v2226_v45  ;;  %v2228_v48 = vpop.f32.mrb[183].mxu0 }
 0x28f   : > { %v2740_v49 = vpop.f32.mrb[183].mxu1  ;;  %v4549_v50 = vpop.eup %4548  ;;  %3230 = vst [vmem:[%s4921_s21 + $0x2c0] sm:$0xff] %v4547_v47  ;;  %4560 = vtanh.f32 %v2738_v46 }
 0x290   : > { %v4551_v51 = vpop.eup %4550  ;;  %3358 = vst [vmem:[%s4921_s21 + $0x6c0] sm:$0xff] %v4549_v50 }
 0x291   : > { %v4553_v52 = vpop.eup %4552  ;;  %3231 = vst [vmem:[%s4921_s21 + $0x2c8] sm:$0xff] %v4551_v51 }
 0x292   : > { %3359 = vst [vmem:[%s4921_s21 + $0x6c8] sm:$0xff] %v4553_v52 }
 0x293   : > { %v2231_v53 = vpop.f32.mrb[184].mxu0  ;;  %v2743_v54 = vpop.f32.mrb[184].mxu1 }
 0x294   : > { %4562 = vtanh.f32 %v2231_v53  ;;  %v2233_v55 = vpop.f32.mrb[185].mxu0  ;;  %v2745_v56 = vpop.f32.mrb[185].mxu1 }
 0x295   : > { %4564 = vtanh.f32 %v2743_v54  ;;  %v2234_v57 = vpop.f32.mrb[186].mxu0  ;;  %v2746_v58 = vpop.f32.mrb[186].mxu1 }
 0x296   : > { %v4555_v59 = vpop.eup %4554  ;;  %4566 = vtanh.f32 %v2234_v57  ;;  %v2236_v60 = vpop.f32.mrb[187].mxu0 }
 0x297   : > { %v2748_v61 = vpop.f32.mrb[187].mxu1  ;;  %v4557_v62 = vpop.eup %4556  ;;  %3232 = vst [vmem:[%s4921_s21 + $0x2d0] sm:$0xff] %v4555_v59  ;;  %4568 = vtanh.f32 %v2746_v58 }
 0x298   : > { %v4559_v63 = vpop.eup %4558  ;;  %3360 = vst [vmem:[%s4921_s21 + $0x6d0] sm:$0xff] %v4557_v62 }
 0x299   : > { %v4561_v0 = vpop.eup %4560  ;;  %3233 = vst [vmem:[%s4921_s21 + $0x2d8] sm:$0xff] %v4559_v63 }
 0x29a   : > { %3361 = vst [vmem:[%s4921_s21 + $0x6d8] sm:$0xff] %v4561_v0 }
 0x29b   : > { %v2239_v1 = vpop.f32.mrb[188].mxu0  ;;  %v2751_v2 = vpop.f32.mrb[188].mxu1 }
 0x29c   : > { %4570 = vtanh.f32 %v2239_v1  ;;  %v2241_v3 = vpop.f32.mrb[189].mxu0  ;;  %v2753_v4 = vpop.f32.mrb[189].mxu1 }
 0x29d   : > { %4572 = vtanh.f32 %v2751_v2  ;;  %v2242_v5 = vpop.f32.mrb[190].mxu0  ;;  %v2754_v6 = vpop.f32.mrb[190].mxu1 }
 0x29e   : > { %v4563_v7 = vpop.eup %4562  ;;  %4574 = vtanh.f32 %v2242_v5  ;;  %v2244_v8 = vpop.f32.mrb[191].mxu0 }
 0x29f   : > { %v2756_v9 = vpop.f32.mrb[191].mxu1  ;;  %v4565_v10 = vpop.eup %4564  ;;  %3234 = vst [vmem:[%s4921_s21 + $0x2e0] sm:$0xff] %v4563_v7  ;;  %4576 = vtanh.f32 %v2754_v6 }
 0x2a0   : > { %v4567_v11 = vpop.eup %4566  ;;  %3362 = vst [vmem:[%s4921_s21 + $0x6e0] sm:$0xff] %v4565_v10 }
 0x2a1   : > { %v4569_v12 = vpop.eup %4568  ;;  %3235 = vst [vmem:[%s4921_s21 + $0x2e8] sm:$0xff] %v4567_v11 }
 0x2a2   : > { %3363 = vst [vmem:[%s4921_s21 + $0x6e8] sm:$0xff] %v4569_v12 }
 0x2a3   : > { %v2247_v13 = vpop.f32.mrb[192].mxu0  ;;  %v2759_v14 = vpop.f32.mrb[192].mxu1 }
 0x2a4   : > { %4578 = vtanh.f32 %v2247_v13  ;;  %v2249_v15 = vpop.f32.mrb[193].mxu0  ;;  %v2761_v16 = vpop.f32.mrb[193].mxu1 }
 0x2a5   : > { %4580 = vtanh.f32 %v2759_v14  ;;  %v2250_v17 = vpop.f32.mrb[194].mxu0  ;;  %v2762_v18 = vpop.f32.mrb[194].mxu1 }
 0x2a6   : > { %v4571_v19 = vpop.eup %4570  ;;  %4582 = vtanh.f32 %v2250_v17  ;;  %v2252_v20 = vpop.f32.mrb[195].mxu0 }
 0x2a7   : > { %v2764_v21 = vpop.f32.mrb[195].mxu1  ;;  %v4573_v22 = vpop.eup %4572  ;;  %3236 = vst [vmem:[%s4921_s21 + $0x2f0] sm:$0xff] %v4571_v19  ;;  %4584 = vtanh.f32 %v2762_v18 }
 0x2a8   : > { %v4575_v23 = vpop.eup %4574  ;;  %3364 = vst [vmem:[%s4921_s21 + $0x6f0] sm:$0xff] %v4573_v22 }
 0x2a9   : > { %v4577_v24 = vpop.eup %4576  ;;  %3237 = vst [vmem:[%s4921_s21 + $0x2f8] sm:$0xff] %v4575_v23 }
 0x2aa   : > { %3365 = vst [vmem:[%s4921_s21 + $0x6f8] sm:$0xff] %v4577_v24 }
 0x2ab   : > { %v2255_v25 = vpop.f32.mrb[196].mxu0  ;;  %v2767_v26 = vpop.f32.mrb[196].mxu1 }
 0x2ac   : > { %4586 = vtanh.f32 %v2255_v25  ;;  %v2257_v27 = vpop.f32.mrb[197].mxu0  ;;  %v2769_v28 = vpop.f32.mrb[197].mxu1 }
 0x2ad   : > { %4588 = vtanh.f32 %v2767_v26  ;;  %v2258_v29 = vpop.f32.mrb[198].mxu0  ;;  %v2770_v30 = vpop.f32.mrb[198].mxu1 }
 0x2ae   : > { %v4579_v31 = vpop.eup %4578  ;;  %4590 = vtanh.f32 %v2258_v29  ;;  %v2260_v32 = vpop.f32.mrb[199].mxu0 }
 0x2af   : > { %v2772_v33 = vpop.f32.mrb[199].mxu1  ;;  %v4581_v34 = vpop.eup %4580  ;;  %3238 = vst [vmem:[%s4921_s21 + $0x300] sm:$0xff] %v4579_v31  ;;  %4592 = vtanh.f32 %v2770_v30 }
 0x2b0   : > { %v4583_v35 = vpop.eup %4582  ;;  %3366 = vst [vmem:[%s4921_s21 + $0x700] sm:$0xff] %v4581_v34 }
 0x2b1   : > { %v4585_v36 = vpop.eup %4584  ;;  %3239 = vst [vmem:[%s4921_s21 + $0x308] sm:$0xff] %v4583_v35 }
 0x2b2   : > { %3367 = vst [vmem:[%s4921_s21 + $0x708] sm:$0xff] %v4585_v36 }
 0x2b3   : > { %v2263_v37 = vpop.f32.mrb[200].mxu0  ;;  %v2775_v38 = vpop.f32.mrb[200].mxu1 }
 0x2b4   : > { %4594 = vtanh.f32 %v2263_v37  ;;  %v2265_v39 = vpop.f32.mrb[201].mxu0  ;;  %v2777_v40 = vpop.f32.mrb[201].mxu1 }
 0x2b5   : > { %4596 = vtanh.f32 %v2775_v38  ;;  %v2266_v41 = vpop.f32.mrb[202].mxu0  ;;  %v2778_v42 = vpop.f32.mrb[202].mxu1 }
 0x2b6   : > { %v4587_v43 = vpop.eup %4586  ;;  %4598 = vtanh.f32 %v2266_v41  ;;  %v2268_v44 = vpop.f32.mrb[203].mxu0 }
 0x2b7   : > { %v2780_v45 = vpop.f32.mrb[203].mxu1  ;;  %v4589_v46 = vpop.eup %4588  ;;  %3240 = vst [vmem:[%s4921_s21 + $0x310] sm:$0xff] %v4587_v43  ;;  %4600 = vtanh.f32 %v2778_v42 }
 0x2b8   : > { %v4591_v47 = vpop.eup %4590  ;;  %3368 = vst [vmem:[%s4921_s21 + $0x710] sm:$0xff] %v4589_v46 }
 0x2b9   : > { %v4593_v48 = vpop.eup %4592  ;;  %3241 = vst [vmem:[%s4921_s21 + $0x318] sm:$0xff] %v4591_v47 }
 0x2ba   : > { %3369 = vst [vmem:[%s4921_s21 + $0x718] sm:$0xff] %v4593_v48 }
 0x2bb   : > { %v2271_v49 = vpop.f32.mrb[204].mxu0  ;;  %v2783_v50 = vpop.f32.mrb[204].mxu1 }
 0x2bc   : > { %4602 = vtanh.f32 %v2271_v49  ;;  %v2273_v51 = vpop.f32.mrb[205].mxu0  ;;  %v2785_v52 = vpop.f32.mrb[205].mxu1 }
 0x2bd   : > { %4604 = vtanh.f32 %v2783_v50  ;;  %v2274_v53 = vpop.f32.mrb[206].mxu0  ;;  %v2786_v54 = vpop.f32.mrb[206].mxu1 }
 0x2be   : > { %v4595_v55 = vpop.eup %4594  ;;  %4606 = vtanh.f32 %v2274_v53  ;;  %v2276_v56 = vpop.f32.mrb[207].mxu0 }
 0x2bf   : > { %v2788_v57 = vpop.f32.mrb[207].mxu1  ;;  %v4597_v58 = vpop.eup %4596  ;;  %3242 = vst [vmem:[%s4921_s21 + $0x320] sm:$0xff] %v4595_v55  ;;  %4608 = vtanh.f32 %v2786_v54 }
 0x2c0   : > { %v4599_v59 = vpop.eup %4598  ;;  %3370 = vst [vmem:[%s4921_s21 + $0x720] sm:$0xff] %v4597_v58 }
 0x2c1   : > { %v4601_v60 = vpop.eup %4600  ;;  %3243 = vst [vmem:[%s4921_s21 + $0x328] sm:$0xff] %v4599_v59 }
 0x2c2   : > { %3371 = vst [vmem:[%s4921_s21 + $0x728] sm:$0xff] %v4601_v60 }
 0x2c3   : > { %v2279_v61 = vpop.f32.mrb[208].mxu0  ;;  %v2791_v62 = vpop.f32.mrb[208].mxu1 }
 0x2c4   : > { %4610 = vtanh.f32 %v2279_v61  ;;  %v2281_v63 = vpop.f32.mrb[209].mxu0  ;;  %v2793_v0 = vpop.f32.mrb[209].mxu1 }
 0x2c5   : > { %4612 = vtanh.f32 %v2791_v62  ;;  %v2282_v1 = vpop.f32.mrb[210].mxu0  ;;  %v2794_v2 = vpop.f32.mrb[210].mxu1 }
 0x2c6   : > { %v4603_v3 = vpop.eup %4602  ;;  %4614 = vtanh.f32 %v2282_v1  ;;  %v2284_v4 = vpop.f32.mrb[211].mxu0 }
 0x2c7   : > { %v2796_v5 = vpop.f32.mrb[211].mxu1  ;;  %v4605_v6 = vpop.eup %4604  ;;  %3244 = vst [vmem:[%s4921_s21 + $0x330] sm:$0xff] %v4603_v3  ;;  %4616 = vtanh.f32 %v2794_v2 }
 0x2c8   : > { %v4607_v7 = vpop.eup %4606  ;;  %3372 = vst [vmem:[%s4921_s21 + $0x730] sm:$0xff] %v4605_v6 }
 0x2c9   : > { %v4609_v8 = vpop.eup %4608  ;;  %3245 = vst [vmem:[%s4921_s21 + $0x338] sm:$0xff] %v4607_v7 }
 0x2ca   : > { %3373 = vst [vmem:[%s4921_s21 + $0x738] sm:$0xff] %v4609_v8 }
 0x2cb   : > { %v2287_v9 = vpop.f32.mrb[212].mxu0  ;;  %v2799_v10 = vpop.f32.mrb[212].mxu1 }
 0x2cc   : > { %4618 = vtanh.f32 %v2287_v9  ;;  %v2289_v11 = vpop.f32.mrb[213].mxu0  ;;  %v2801_v12 = vpop.f32.mrb[213].mxu1 }
 0x2cd   : > { %4620 = vtanh.f32 %v2799_v10  ;;  %v2290_v13 = vpop.f32.mrb[214].mxu0  ;;  %v2802_v14 = vpop.f32.mrb[214].mxu1 }
 0x2ce   : > { %v4611_v15 = vpop.eup %4610  ;;  %4622 = vtanh.f32 %v2290_v13  ;;  %v2292_v16 = vpop.f32.mrb[215].mxu0 }
 0x2cf   : > { %v2804_v17 = vpop.f32.mrb[215].mxu1  ;;  %v4613_v18 = vpop.eup %4612  ;;  %3246 = vst [vmem:[%s4921_s21 + $0x340] sm:$0xff] %v4611_v15  ;;  %4624 = vtanh.f32 %v2802_v14 }
 0x2d0   : > { %v4615_v19 = vpop.eup %4614  ;;  %3374 = vst [vmem:[%s4921_s21 + $0x740] sm:$0xff] %v4613_v18 }
 0x2d1   : > { %v4617_v20 = vpop.eup %4616  ;;  %3247 = vst [vmem:[%s4921_s21 + $0x348] sm:$0xff] %v4615_v19 }
 0x2d2   : > { %3375 = vst [vmem:[%s4921_s21 + $0x748] sm:$0xff] %v4617_v20 }
 0x2d3   : > { %v2295_v21 = vpop.f32.mrb[216].mxu0  ;;  %v2807_v22 = vpop.f32.mrb[216].mxu1 }
 0x2d4   : > { %4626 = vtanh.f32 %v2295_v21  ;;  %v2297_v23 = vpop.f32.mrb[217].mxu0  ;;  %v2809_v24 = vpop.f32.mrb[217].mxu1 }
 0x2d5   : > { %4628 = vtanh.f32 %v2807_v22  ;;  %v2298_v25 = vpop.f32.mrb[218].mxu0  ;;  %v2810_v26 = vpop.f32.mrb[218].mxu1 }
 0x2d6   : > { %v4619_v27 = vpop.eup %4618  ;;  %4630 = vtanh.f32 %v2298_v25  ;;  %v2300_v28 = vpop.f32.mrb[219].mxu0 }
 0x2d7   : > { %v2812_v29 = vpop.f32.mrb[219].mxu1  ;;  %v4621_v30 = vpop.eup %4620  ;;  %3248 = vst [vmem:[%s4921_s21 + $0x350] sm:$0xff] %v4619_v27  ;;  %4632 = vtanh.f32 %v2810_v26 }
 0x2d8   : > { %v4623_v31 = vpop.eup %4622  ;;  %3376 = vst [vmem:[%s4921_s21 + $0x750] sm:$0xff] %v4621_v30 }
 0x2d9   : > { %v4625_v32 = vpop.eup %4624  ;;  %3249 = vst [vmem:[%s4921_s21 + $0x358] sm:$0xff] %v4623_v31 }
 0x2da   : > { %3377 = vst [vmem:[%s4921_s21 + $0x758] sm:$0xff] %v4625_v32 }
 0x2db   : > { %v2303_v33 = vpop.f32.mrb[220].mxu0  ;;  %v2815_v34 = vpop.f32.mrb[220].mxu1 }
 0x2dc   : > { %4634 = vtanh.f32 %v2303_v33  ;;  %v2305_v35 = vpop.f32.mrb[221].mxu0  ;;  %v2817_v36 = vpop.f32.mrb[221].mxu1 }
 0x2dd   : > { %4636 = vtanh.f32 %v2815_v34  ;;  %v2306_v37 = vpop.f32.mrb[222].mxu0  ;;  %v2818_v38 = vpop.f32.mrb[222].mxu1 }
 0x2de   : > { %v4627_v39 = vpop.eup %4626  ;;  %4638 = vtanh.f32 %v2306_v37  ;;  %v2308_v40 = vpop.f32.mrb[223].mxu0 }
 0x2df   : > { %v2820_v41 = vpop.f32.mrb[223].mxu1  ;;  %v4629_v42 = vpop.eup %4628  ;;  %3250 = vst [vmem:[%s4921_s21 + $0x360] sm:$0xff] %v4627_v39  ;;  %4640 = vtanh.f32 %v2818_v38 }
 0x2e0   : > { %v4631_v43 = vpop.eup %4630  ;;  %3378 = vst [vmem:[%s4921_s21 + $0x760] sm:$0xff] %v4629_v42 }
 0x2e1   : > { %v4633_v44 = vpop.eup %4632  ;;  %3251 = vst [vmem:[%s4921_s21 + $0x368] sm:$0xff] %v4631_v43 }
 0x2e2   : > { %3379 = vst [vmem:[%s4921_s21 + $0x768] sm:$0xff] %v4633_v44 }
 0x2e3   : > { %v2311_v45 = vpop.f32.mrb[224].mxu0  ;;  %v2823_v46 = vpop.f32.mrb[224].mxu1 }
 0x2e4   : > { %4642 = vtanh.f32 %v2311_v45  ;;  %v2313_v47 = vpop.f32.mrb[225].mxu0  ;;  %v2825_v48 = vpop.f32.mrb[225].mxu1 }
 0x2e5   : > { %4644 = vtanh.f32 %v2823_v46  ;;  %v2314_v49 = vpop.f32.mrb[226].mxu0  ;;  %v2826_v50 = vpop.f32.mrb[226].mxu1 }
 0x2e6   : > { %v4635_v51 = vpop.eup %4634  ;;  %4646 = vtanh.f32 %v2314_v49  ;;  %v2316_v52 = vpop.f32.mrb[227].mxu0 }
 0x2e7   : > { %v2828_v53 = vpop.f32.mrb[227].mxu1  ;;  %v4637_v54 = vpop.eup %4636  ;;  %3252 = vst [vmem:[%s4921_s21 + $0x370] sm:$0xff] %v4635_v51  ;;  %4648 = vtanh.f32 %v2826_v50 }
 0x2e8   : > { %v4639_v55 = vpop.eup %4638  ;;  %3380 = vst [vmem:[%s4921_s21 + $0x770] sm:$0xff] %v4637_v54 }
 0x2e9   : > { %v4641_v56 = vpop.eup %4640  ;;  %3253 = vst [vmem:[%s4921_s21 + $0x378] sm:$0xff] %v4639_v55 }
 0x2ea   : > { %3381 = vst [vmem:[%s4921_s21 + $0x778] sm:$0xff] %v4641_v56 }
 0x2eb   : > { %v2319_v57 = vpop.f32.mrb[228].mxu0  ;;  %v2831_v58 = vpop.f32.mrb[228].mxu1 }
 0x2ec   : > { %4650 = vtanh.f32 %v2319_v57  ;;  %v2321_v59 = vpop.f32.mrb[229].mxu0  ;;  %v2833_v60 = vpop.f32.mrb[229].mxu1 }
 0x2ed   : > { %4652 = vtanh.f32 %v2831_v58  ;;  %v2322_v61 = vpop.f32.mrb[230].mxu0  ;;  %v2834_v62 = vpop.f32.mrb[230].mxu1 }
 0x2ee   : > { %v4643_v63 = vpop.eup %4642  ;;  %4654 = vtanh.f32 %v2322_v61  ;;  %v2324_v0 = vpop.f32.mrb[231].mxu0 }
 0x2ef   : > { %v2836_v1 = vpop.f32.mrb[231].mxu1  ;;  %v4645_v2 = vpop.eup %4644  ;;  %3254 = vst [vmem:[%s4921_s21 + $0x380] sm:$0xff] %v4643_v63  ;;  %4656 = vtanh.f32 %v2834_v62 }
 0x2f0   : > { %v4647_v3 = vpop.eup %4646  ;;  %3382 = vst [vmem:[%s4921_s21 + $0x780] sm:$0xff] %v4645_v2 }
 0x2f1   : > { %v4649_v4 = vpop.eup %4648  ;;  %3255 = vst [vmem:[%s4921_s21 + $0x388] sm:$0xff] %v4647_v3 }
 0x2f2   : > { %3383 = vst [vmem:[%s4921_s21 + $0x788] sm:$0xff] %v4649_v4 }
 0x2f3   : > { %v2327_v5 = vpop.f32.mrb[232].mxu0  ;;  %v2839_v6 = vpop.f32.mrb[232].mxu1 }
 0x2f4   : > { %4658 = vtanh.f32 %v2327_v5  ;;  %v2329_v7 = vpop.f32.mrb[233].mxu0  ;;  %v2841_v8 = vpop.f32.mrb[233].mxu1 }
 0x2f5   : > { %4660 = vtanh.f32 %v2839_v6  ;;  %v2330_v9 = vpop.f32.mrb[234].mxu0  ;;  %v2842_v10 = vpop.f32.mrb[234].mxu1 }
 0x2f6   : > { %v4651_v11 = vpop.eup %4650  ;;  %4662 = vtanh.f32 %v2330_v9  ;;  %v2332_v12 = vpop.f32.mrb[235].mxu0 }
 0x2f7   : > { %v2844_v13 = vpop.f32.mrb[235].mxu1  ;;  %v4653_v14 = vpop.eup %4652  ;;  %3256 = vst [vmem:[%s4921_s21 + $0x390] sm:$0xff] %v4651_v11  ;;  %4664 = vtanh.f32 %v2842_v10 }
 0x2f8   : > { %v4655_v15 = vpop.eup %4654  ;;  %3384 = vst [vmem:[%s4921_s21 + $0x790] sm:$0xff] %v4653_v14 }
 0x2f9   : > { %v4657_v16 = vpop.eup %4656  ;;  %3257 = vst [vmem:[%s4921_s21 + $0x398] sm:$0xff] %v4655_v15 }
 0x2fa   : > { %3385 = vst [vmem:[%s4921_s21 + $0x798] sm:$0xff] %v4657_v16 }
 0x2fb   : > { %v2335_v17 = vpop.f32.mrb[236].mxu0  ;;  %v2847_v18 = vpop.f32.mrb[236].mxu1 }
 0x2fc   : > { %4666 = vtanh.f32 %v2335_v17  ;;  %v2337_v19 = vpop.f32.mrb[237].mxu0  ;;  %v2849_v20 = vpop.f32.mrb[237].mxu1 }
 0x2fd   : > { %4668 = vtanh.f32 %v2847_v18  ;;  %v2338_v21 = vpop.f32.mrb[238].mxu0  ;;  %v2850_v22 = vpop.f32.mrb[238].mxu1 }
 0x2fe   : > { %v4659_v23 = vpop.eup %4658  ;;  %4670 = vtanh.f32 %v2338_v21  ;;  %v2340_v24 = vpop.f32.mrb[239].mxu0 }
 0x2ff   : > { %v2852_v25 = vpop.f32.mrb[239].mxu1  ;;  %v4661_v26 = vpop.eup %4660  ;;  %3258 = vst [vmem:[%s4921_s21 + $0x3a0] sm:$0xff] %v4659_v23  ;;  %4672 = vtanh.f32 %v2850_v22 }
 0x300   : > { %v4663_v27 = vpop.eup %4662  ;;  %3386 = vst [vmem:[%s4921_s21 + $0x7a0] sm:$0xff] %v4661_v26 }
 0x301   : > { %v4665_v28 = vpop.eup %4664  ;;  %3259 = vst [vmem:[%s4921_s21 + $0x3a8] sm:$0xff] %v4663_v27 }
 0x302   : > { %3387 = vst [vmem:[%s4921_s21 + $0x7a8] sm:$0xff] %v4665_v28 }
 0x303   : > { %v2343_v29 = vpop.f32.mrb[240].mxu0  ;;  %v2855_v30 = vpop.f32.mrb[240].mxu1 }
 0x304   : > { %4674 = vtanh.f32 %v2343_v29  ;;  %v2345_v31 = vpop.f32.mrb[241].mxu0  ;;  %v2857_v32 = vpop.f32.mrb[241].mxu1 }
 0x305   : > { %4676 = vtanh.f32 %v2855_v30  ;;  %v2346_v33 = vpop.f32.mrb[242].mxu0  ;;  %v2858_v34 = vpop.f32.mrb[242].mxu1 }
 0x306   : > { %v4667_v35 = vpop.eup %4666  ;;  %4678 = vtanh.f32 %v2346_v33  ;;  %v2348_v36 = vpop.f32.mrb[243].mxu0 }
 0x307   : > { %v2860_v37 = vpop.f32.mrb[243].mxu1  ;;  %v4669_v38 = vpop.eup %4668  ;;  %3260 = vst [vmem:[%s4921_s21 + $0x3b0] sm:$0xff] %v4667_v35  ;;  %4680 = vtanh.f32 %v2858_v34 }
 0x308   : > { %v4671_v39 = vpop.eup %4670  ;;  %3388 = vst [vmem:[%s4921_s21 + $0x7b0] sm:$0xff] %v4669_v38 }
 0x309   : > { %v4673_v40 = vpop.eup %4672  ;;  %3261 = vst [vmem:[%s4921_s21 + $0x3b8] sm:$0xff] %v4671_v39 }
 0x30a   : > { %3389 = vst [vmem:[%s4921_s21 + $0x7b8] sm:$0xff] %v4673_v40 }
 0x30b   : > { %v2351_v41 = vpop.f32.mrb[244].mxu0  ;;  %v2863_v42 = vpop.f32.mrb[244].mxu1 }
 0x30c   : > { %4682 = vtanh.f32 %v2351_v41  ;;  %v2353_v43 = vpop.f32.mrb[245].mxu0  ;;  %v2865_v44 = vpop.f32.mrb[245].mxu1 }
 0x30d   : > { %4684 = vtanh.f32 %v2863_v42  ;;  %v2354_v45 = vpop.f32.mrb[246].mxu0  ;;  %v2866_v46 = vpop.f32.mrb[246].mxu1 }
 0x30e   : > { %v4675_v47 = vpop.eup %4674  ;;  %4686 = vtanh.f32 %v2354_v45  ;;  %v2356_v48 = vpop.f32.mrb[247].mxu0 }
 0x30f   : > { %v2868_v49 = vpop.f32.mrb[247].mxu1  ;;  %v4677_v50 = vpop.eup %4676  ;;  %3262 = vst [vmem:[%s4921_s21 + $0x3c0] sm:$0xff] %v4675_v47  ;;  %4688 = vtanh.f32 %v2866_v46 }
 0x310   : > { %v4679_v51 = vpop.eup %4678  ;;  %3390 = vst [vmem:[%s4921_s21 + $0x7c0] sm:$0xff] %v4677_v50 }
 0x311   : > { %v4681_v52 = vpop.eup %4680  ;;  %3263 = vst [vmem:[%s4921_s21 + $0x3c8] sm:$0xff] %v4679_v51 }
 0x312   : > { %3391 = vst [vmem:[%s4921_s21 + $0x7c8] sm:$0xff] %v4681_v52 }
 0x313   : > { %v2359_v53 = vpop.f32.mrb[248].mxu0  ;;  %v2871_v54 = vpop.f32.mrb[248].mxu1 }
 0x314   : > { %4690 = vtanh.f32 %v2359_v53  ;;  %v2361_v55 = vpop.f32.mrb[249].mxu0  ;;  %v2873_v56 = vpop.f32.mrb[249].mxu1 }
 0x315   : > { %4692 = vtanh.f32 %v2871_v54  ;;  %v2362_v57 = vpop.f32.mrb[250].mxu0  ;;  %v2874_v58 = vpop.f32.mrb[250].mxu1 }
 0x316   : > { %v4683_v59 = vpop.eup %4682  ;;  %4694 = vtanh.f32 %v2362_v57  ;;  %v2364_v60 = vpop.f32.mrb[251].mxu0 }
 0x317   : > { %v2876_v61 = vpop.f32.mrb[251].mxu1  ;;  %v4685_v62 = vpop.eup %4684  ;;  %3264 = vst [vmem:[%s4921_s21 + $0x3d0] sm:$0xff] %v4683_v59  ;;  %4696 = vtanh.f32 %v2874_v58 }
 0x318   : > { %v4687_v63 = vpop.eup %4686  ;;  %3392 = vst [vmem:[%s4921_s21 + $0x7d0] sm:$0xff] %v4685_v62 }
 0x319   : > { %v4689_v0 = vpop.eup %4688  ;;  %3265 = vst [vmem:[%s4921_s21 + $0x3d8] sm:$0xff] %v4687_v63 }
 0x31a   : > { %3393 = vst [vmem:[%s4921_s21 + $0x7d8] sm:$0xff] %v4689_v0 }
 0x31b   : > { %v2367_v1 = vpop.f32.mrb[252].mxu0  ;;  %v2879_v2 = vpop.f32.mrb[252].mxu1 }
 0x31c   : > { %4698 = vtanh.f32 %v2367_v1  ;;  %v2369_v3 = vpop.f32.mrb[253].mxu0  ;;  %v2881_v4 = vpop.f32.mrb[253].mxu1 }
 0x31d   : > { %4700 = vtanh.f32 %v2879_v2  ;;  %v2370_v5 = vpop.f32.mrb[254].mxu0  ;;  %v2882_v6 = vpop.f32.mrb[254].mxu1 }
 0x31e   : > { %v4691_v7 = vpop.eup %4690  ;;  %4702 = vtanh.f32 %v2370_v5  ;;  %v2372_v8 = vpop.f32.mrb[255].mxu0 }
 0x31f   : > { %v2884_v9 = vpop.f32.mrb[255].mxu1  ;;  %v4693_v10 = vpop.eup %4692  ;;  %3266 = vst [vmem:[%s4921_s21 + $0x3e0] sm:$0xff] %v4691_v7  ;;  %4704 = vtanh.f32 %v2882_v6 }
 0x320   : > { %v4695_v11 = vpop.eup %4694  ;;  %3394 = vst [vmem:[%s4921_s21 + $0x7e0] sm:$0xff] %v4693_v10 }
 0x321   : > { %v4697_v12 = vpop.eup %4696  ;;  %3267 = vst [vmem:[%s4921_s21 + $0x3e8] sm:$0xff] %v4695_v11 }
 0x322   : > { %3395 = vst [vmem:[%s4921_s21 + $0x7e8] sm:$0xff] %v4697_v12 }
 0x326   : > { %v4699_v13 = vpop.eup %4698 }
 0x327   : > { %v4701_v14 = vpop.eup %4700  ;;  %3268 = vst [vmem:[%s4921_s21 + $0x3f0] sm:$0xff] %v4699_v13 }
 0x328   : > { %v4703_v15 = vpop.eup %4702  ;;  %3396 = vst [vmem:[%s4921_s21 + $0x7f0] sm:$0xff] %v4701_v14 }
 0x329   : > { %v4705_v16 = vpop.eup %4704  ;;  %3269 = vst [vmem:[%s4921_s21 + $0x3f8] sm:$0xff] %v4703_v15 }
 0x32a   : > { %3397 = vst [vmem:[%s4921_s21 + $0x7f8] sm:$0xff] %v4705_v16 }
 0x32b PF: > { %s12_s9 = sadd.s32 1, %s4712_s9  }
 0x32c   : > { %p9_p4 = scmp.ge.s32.totalorder %s12_s9, 6  }
 0x32e   :  { %11 = sbr.rel (!%p9_p4) target bundleno = 1 (0x1), region = 61 }

</bundles_post_ra>
